<compile_context>
chip_gen: v6e
topology: v6e:2x2x1
jax: 0.10.0
libtpu: 0.0.40
codegen_flags: <defaults>
</compile_context>

<pallas_src>
import math
import jax
import jax.numpy as jnp
from jax.experimental import pallas as pl
from jax.experimental.pallas import tpu as pltpu

# ---- model hyper-parameters (match the PyTorch module) ----
d_Q = 64
d_V = 64
d_model = 256
n_head = 8
d_ff = 256
n_layers = 6
d_feature = 3
LN_EPS = 1e-5  # torch nn.LayerNorm default


# ---------------------------------------------------------------------------
# In-kernel helpers (traced inside the Pallas kernel body)
# ---------------------------------------------------------------------------
def _layer_norm(y):
    # y: (M, d_model) f32 ; no affine (matches freshly-constructed nn.LayerNorm)
    mean = jnp.mean(y, axis=-1, keepdims=True)
    c = y - mean
    var = jnp.mean(c * c, axis=-1, keepdims=True)
    return c * jax.lax.rsqrt(var + LN_EPS)


def _mha_core(q, k, v, bias, keep):
    # q: (B, Lq, H*dq) f32 ; k: (B, Lk, H*dq) f32 ; v: (B, Lk, H*dV) f32
    # bias/keep: (B, Lq, Lk) f32  (bias = 0 / -1e9, keep = 1 / 0)
    b, lq, _ = q.shape
    scale = 1.0 / math.sqrt(d_Q)
    qb = q.astype(jnp.bfloat16)
    kb = k.astype(jnp.bfloat16)
    vb = v.astype(jnp.bfloat16)
    ctx_heads = []
    for h in range(n_head):  # static unroll over heads (scores/AV are inherently per-head)
        qh = qb[:, :, h * d_Q:(h + 1) * d_Q]
        kh = kb[:, :, h * d_Q:(h + 1) * d_Q]
        vh = vb[:, :, h * d_V:(h + 1) * d_V]
        s = jnp.einsum('bqd,bkd->bqk', qh, kh,
                       preferred_element_type=jnp.float32) * scale
        s = s + bias                                        # masked_fill(-1e9) (additive form)
        m = jnp.max(s, axis=-1, keepdims=True)
        e = jnp.exp(s - m)
        p = e * pl.reciprocal(jnp.sum(e, axis=-1, keepdims=True), approx=True)
        p = p * keep                                        # masked_fill(attn, 0)
        ctx_heads.append(jnp.einsum('bqk,bkd->bqd', p.astype(jnp.bfloat16), vh,
                                    preferred_element_type=jnp.float32))
    ctx = jnp.concatenate(ctx_heads, axis=-1)               # (B, Lq, H*dV) f32
    return ctx.reshape(b * lq, n_head * d_V)


# ---------------------------------------------------------------------------
# Fused decoder-stack kernel: one grid step == one full decoder layer
# ---------------------------------------------------------------------------
def _decoder_stack_kernel(dec0_ref, enc_ref, sb_ref, sk_ref, eb_ref, ek_ref,
                          sa_wqkv_ref, sa_wo_ref, ca_wq_ref, ca_wkv_ref, ca_wo_ref,
                          ff_w1_ref, ff_w2_ref, o_ref, x_sc):
    l = pl.program_id(0)
    b, ld, dm = dec0_ref.shape
    le = enc_ref.shape[1]
    hq = n_head * d_Q
    hv = n_head * d_V

    @pl.when(l == 0)
    def _init():
        x_sc[...] = dec0_ref[...].reshape(b * ld, dm)

    x = x_sc[...]                                            # (B*Ld, d_model) f32

    # ---------------- self-attention ----------------
    qkv = jnp.dot(x.astype(jnp.bfloat16), sa_wqkv_ref[0],
                  preferred_element_type=jnp.float32)        # (B*Ld, 3*H*dq), one matmul
    q = qkv[:, :hq].reshape(b, ld, hq)
    k = qkv[:, hq:2 * hq].reshape(b, ld, hq)
    v = qkv[:, 2 * hq:].reshape(b, ld, hv)
    ctx = _mha_core(q, k, v, sb_ref[...], sk_ref[...])       # (B*Ld, H*dV)
    att = jnp.dot(ctx.astype(jnp.bfloat16), sa_wo_ref[0],
                  preferred_element_type=jnp.float32)        # single output projection
    x = _layer_norm(att + x)

    # ---------------- cross-attention ----------------
    q = jnp.dot(x.astype(jnp.bfloat16), ca_wq_ref[0],
                preferred_element_type=jnp.float32).reshape(b, ld, hq)
    kv = jnp.dot(enc_ref[...].reshape(b * le, dm), ca_wkv_ref[0],
                 preferred_element_type=jnp.float32)         # (B*Le, 2*H*dq), one matmul
    k = kv[:, :hq].reshape(b, le, hq)
    v = kv[:, hq:].reshape(b, le, hv)
    ctx = _mha_core(q, k, v, eb_ref[...], ek_ref[...])
    att = jnp.dot(ctx.astype(jnp.bfloat16), ca_wo_ref[0],
                  preferred_element_type=jnp.float32)
    x = _layer_norm(att + x)

    # ---------------- position-wise FFN ----------------
    hdn = jnp.maximum(jnp.dot(x.astype(jnp.bfloat16), ff_w1_ref[0],
                              preferred_element_type=jnp.float32), 0.0)
    ff = jnp.dot(hdn.astype(jnp.bfloat16), ff_w2_ref[0],
                 preferred_element_type=jnp.float32)
    x = _layer_norm(ff + x)

    x_sc[...] = x                                            # carry to next layer

    @pl.when(l == pl.num_programs(0) - 1)
    def _final():
        o_ref[...] = x.reshape(b, ld, dm)


# ---------------------------------------------------------------------------
# Plain-JAX glue: positional encoding table, pos2emb, masks
# ---------------------------------------------------------------------------
def make_pe_table(max_len, dm):
    pos = jnp.arange(max_len, dtype=jnp.float32)[:, None]
    div = jnp.exp(jnp.arange(0, dm, 2, dtype=jnp.float32) * (-math.log(10000.0) / dm))
    pe = jnp.zeros((max_len, dm), dtype=jnp.float32)
    pe = pe.at[:, 0::2].set(jnp.sin(pos * div))
    pe = pe.at[:, 1::2].set(jnp.cos(pos * div))
    return pe  # (max_len, d_model)


def decoder_forward(params, position_seq, position_graph, enc_embedding, pe_table):
    B, Ld, _ = position_seq.shape
    Le = position_graph.shape[1]

    # position2embedding (Linear(3, d_model) with bias) + positional encoding: plain JAX —
    # a K=3 matmul on 32 rows is pure launch overhead as a standalone Pallas kernel.
    dec0 = position_seq.reshape(B * Ld, d_feature) @ params["p2e_w"] + params["p2e_b"]
    dec0 = dec0.reshape(B, Ld, d_model) + pe_table[:Ld][None, :, :]
    # TODO(synk): dropout after positional encoding treated as identity (eval mode).

    # masks -> additive bias (0/-1e9) + post-softmax keep (1/0), precomputed once
    pad_q = position_seq[:, :, 1] == -1.0                    # (B, Ld)
    pad_k = position_graph[:, :, 1] == -1.0                  # (B, Le)
    sub = jnp.triu(jnp.ones((Ld, Ld), dtype=bool), k=1)[None]
    self_mask = sub | pad_q[:, :, None] | pad_q[:, None, :]  # (B, Ld, Ld)
    enc_mask = pad_q[:, :, None] | pad_k[:, None, :]         # (B, Ld, Le)
    self_bias = jnp.where(self_mask, -1e9, 0.0).astype(jnp.float32)
    self_keep = jnp.where(self_mask, 0.0, 1.0).astype(jnp.float32)
    enc_bias = jnp.where(enc_mask, -1e9, 0.0).astype(jnp.float32)
    enc_keep = jnp.where(enc_mask, 0.0, 1.0).astype(jnp.float32)

    enc_bf = enc_embedding.astype(jnp.bfloat16)              # only used as a matmul operand

    hq = n_head * d_Q
    hv = n_head * d_V

    def wspec(kdim, ndim):
        # one layer's weight per grid step; pipeline double-buffers -> next-layer prefetch
        return pl.BlockSpec((1, kdim, ndim), lambda l: (l, 0, 0))

    def const3(shape):
        return pl.BlockSpec(shape, lambda l: (0, 0, 0))

    out = pl.pallas_call(
        _decoder_stack_kernel,
        out_shape=jax.ShapeDtypeStruct((B, Ld, d_model), jnp.float32),
        grid=(n_layers,),
        in_specs=[
            const3((B, Ld, d_model)),            # dec0 (initial activation)
            const3((B, Le, d_model)),            # enc_embedding (bf16)
            const3((B, Ld, Ld)),                 # self-attn bias
            const3((B, Ld, Ld)),                 # self-attn keep
            const3((B, Ld, Le)),                 # cross-attn bias
            const3((B, Ld, Le)),                 # cross-attn keep
            wspec(d_model, 3 * hq),              # sa_wqkv
            wspec(hv, d_model),                  # sa_wo
            wspec(d_model, hq),                  # ca_wq
            wspec(d_model, hq + hv),             # ca_wkv
            wspec(hv, d_model),                  # ca_wo
            wspec(d_model, d_ff),                # ff_w1
            wspec(d_ff, d_model),                # ff_w2
        ],
        out_specs=pl.BlockSpec((B, Ld, d_model), lambda l: (0, 0, 0)),
        scratch_shapes=[pltpu.VMEM((B * Ld, d_model), jnp.float32)],
        compiler_params=pltpu.CompilerParams(
            dimension_semantics=("arbitrary",),           # layer axis carries state
            vmem_limit_bytes=32 * 1024 * 1024,            # > v5e 16 MiB default; fits v7x 64 MiB
        ),
    )(dec0, enc_bf, self_bias, self_keep, enc_bias, enc_keep,
      params["sa_wqkv"], params["sa_wo"], params["ca_wq"], params["ca_wkv"],
      params["ca_wo"], params["ff_w1"], params["ff_w2"])
    return out


def init_params(key):
    def nrm(k, shape, scale=0.02):
        return scale * jax.random.normal(k, shape, dtype=jnp.float32)

    keys = jax.random.split(key, 9)
    hq = n_head * d_Q
    hv = n_head * d_V
    params = {
        "p2e_w": nrm(keys[0], (d_feature, d_model)),
        "p2e_b": nrm(keys[1], (d_model,)),
        # per-layer weights stacked on a leading n_layers axis; stored bf16 (f32 accumulation
        # via preferred_element_type in the kernel).
        "sa_wqkv": nrm(keys[2], (n_layers, d_model, 3 * hq)).astype(jnp.bfloat16),
        "sa_wo":   nrm(keys[3], (n_layers, hv, d_model)).astype(jnp.bfloat16),
        "ca_wq":   nrm(keys[4], (n_layers, d_model, hq)).astype(jnp.bfloat16),
        "ca_wkv":  nrm(keys[5], (n_layers, d_model, hq + hv)).astype(jnp.bfloat16),
        "ca_wo":   nrm(keys[6], (n_layers, hv, d_model)).astype(jnp.bfloat16),
        "ff_w1":   nrm(keys[7], (n_layers, d_model, d_ff)).astype(jnp.bfloat16),
        "ff_w2":   nrm(keys[8], (n_layers, d_ff, d_model)).astype(jnp.bfloat16),
    }
    return params


if __name__ == "__main__":
    key = jax.random.PRNGKey(0)
    k_par, k_ps, k_pg, k_enc = jax.random.split(key, 4)

    B, Ld, Le = 2, 16, 16

    params = init_params(k_par)

    position_seq = jax.random.normal(k_ps, (B, Ld, d_feature), dtype=jnp.float32)
    # mark the last two decoder positions as padding (feature index 1 == -1)
    position_seq = position_seq.at[:, -2:, 1].set(-1.0)

    position_graph = jax.random.normal(k_pg, (B, Le, d_feature), dtype=jnp.float32)
    # mark the last encoder position as padding
    position_graph = position_graph.at[:, -1, 1].set(-1.0)

    enc_embedding = jax.random.normal(k_enc, (B, Le, d_model), dtype=jnp.float32)

    pe_table = make_pe_table(5000, d_model)

    fwd = jax.jit(decoder_forward)
    out = fwd(params, position_seq, position_graph, enc_embedding, pe_table)
    out = jax.block_until_ready(out)
    assert out.shape == (B, Ld, d_model) and out.dtype == jnp.float32
    assert bool(jnp.all(jnp.isfinite(out)))
    print("KERNEL_OK")
</pallas_src>

<mosaic_0001>
module attributes {stable_mosaic.version = 11 : i64} {
  func.func @_decoder_stack_kernel(%arg0: i32, %arg1: memref<2x16x256xf32, #tpu.memory_space<vmem>>, %arg2: memref<2x16x256xbf16, #tpu.memory_space<vmem>>, %arg3: memref<2x16x16xf32, #tpu.memory_space<vmem>>, %arg4: memref<2x16x16xf32, #tpu.memory_space<vmem>>, %arg5: memref<2x16x16xf32, #tpu.memory_space<vmem>>, %arg6: memref<2x16x16xf32, #tpu.memory_space<vmem>>, %arg7: memref<1x256x1536xbf16, #tpu.memory_space<vmem>>, %arg8: memref<1x512x256xbf16, #tpu.memory_space<vmem>>, %arg9: memref<1x256x512xbf16, #tpu.memory_space<vmem>>, %arg10: memref<1x256x1024xbf16, #tpu.memory_space<vmem>>, %arg11: memref<1x512x256xbf16, #tpu.memory_space<vmem>>, %arg12: memref<1x256x256xbf16, #tpu.memory_space<vmem>>, %arg13: memref<1x256x256xbf16, #tpu.memory_space<vmem>>, %arg14: memref<2x16x256xf32, #tpu.memory_space<vmem>>, %arg15: memref<32x256xf32, #tpu.memory_space<vmem>>) attributes {dimension_semantics = [#tpu.dimension_semantics<arbitrary>], iteration_bounds = array<i64: 6>, scalar_prefetch = 0 : i64, scratch_operands = 1 : i64, tpu.core_type = #tpu.core_type<tc>, window_params = [{pipeline_mode = #tpu.pipeline_mode<synchronous>, transform_indices = @transform_0, window_bounds = array<i64: 2, 16, 256>}, {pipeline_mode = #tpu.pipeline_mode<synchronous>, transform_indices = @transform_1, window_bounds = array<i64: 2, 16, 256>}, {pipeline_mode = #tpu.pipeline_mode<synchronous>, transform_indices = @transform_2, window_bounds = array<i64: 2, 16, 16>}, {pipeline_mode = #tpu.pipeline_mode<synchronous>, transform_indices = @transform_3, window_bounds = array<i64: 2, 16, 16>}, {pipeline_mode = #tpu.pipeline_mode<synchronous>, transform_indices = @transform_4, window_bounds = array<i64: 2, 16, 16>}, {pipeline_mode = #tpu.pipeline_mode<synchronous>, transform_indices = @transform_5, window_bounds = array<i64: 2, 16, 16>}, {transform_indices = @transform_6, window_bounds = array<i64: 1, 256, 1536>}, {transform_indices = @transform_7, window_bounds = array<i64: 1, 512, 256>}, {transform_indices = @transform_8, window_bounds = array<i64: 1, 256, 512>}, {transform_indices = @transform_9, window_bounds = array<i64: 1, 256, 1024>}, {transform_indices = @transform_10, window_bounds = array<i64: 1, 512, 256>}, {transform_indices = @transform_11, window_bounds = array<i64: 1, 256, 256>}, {transform_indices = @transform_12, window_bounds = array<i64: 1, 256, 256>}, {pipeline_mode = #tpu.pipeline_mode<synchronous>, transform_indices = @transform_13, window_bounds = array<i64: 2, 16, 256>}]} {
    %c0_i32 = arith.constant 0 : i32
    %0 = arith.cmpi eq, %arg0, %c0_i32 : i32
    %1 = arith.extui %0 : i1 to i32
    %c0_i32_0 = arith.constant 0 : i32
    %2 = arith.cmpi ne, %1, %c0_i32_0 : i32
    scf.if %2 {
      %c0_143 = arith.constant 0 : index
      %c0_144 = arith.constant 0 : index
      %c0_145 = arith.constant 0 : index
      %435 = vector.load %arg1[%c0_143, %c0_144, %c0_145] : memref<2x16x256xf32, #tpu.memory_space<vmem>>, vector<2x16x256xf32>
      %436 = vector.shape_cast %435 : vector<2x16x256xf32> to vector<32x256xf32>
      %c0_146 = arith.constant 0 : index
      %c0_147 = arith.constant 0 : index
      %437 = vector.load %arg15[%c0_146, %c0_147] : memref<32x256xf32, #tpu.memory_space<vmem>>, vector<32x256xf32>
      tpu.vector_store %arg15[%c0_146, %c0_147], %436 {strides = array<i32>} : memref<32x256xf32, #tpu.memory_space<vmem>>, vector<32x256xf32>,
    } else {
    }
    %c0 = arith.constant 0 : index
    %c0_1 = arith.constant 0 : index
    %3 = vector.load %arg15[%c0, %c0_1] : memref<32x256xf32, #tpu.memory_space<vmem>>, vector<32x256xf32>
    %4 = arith.truncf %3 : vector<32x256xf32> to vector<32x256xbf16>
    %c0_2 = arith.constant 0 : index
    %c0_3 = arith.constant 0 : index
    %c0_4 = arith.constant 0 : index
    %5 = vector.load %arg7[%c0_2, %c0_3, %c0_4] : memref<1x256x1536xbf16, #tpu.memory_space<vmem>>, vector<1x256x1536xbf16>
    %6 = vector.shape_cast %5 : vector<1x256x1536xbf16> to vector<256x1536xbf16>
    %cst = arith.constant dense<0.000000e+00> : vector<32x1536xf32>
    %7 = tpu.matmul %4, %6, %cst {dimension_numbers = #tpu.dot_dimension_numbers<[1], [0], [0], [1], [0, 0, 1, 1], [], []>} : vector<32x256xbf16>, vector<256x1536xbf16>, vector<32x1536xf32> -> vector<32x1536xf32>
    %8 = vector.extract_strided_slice %7 {offsets = [0, 0], sizes = [32, 512], strides = [1, 1]} : vector<32x1536xf32> to vector<32x512xf32>
    %9 = vector.shape_cast %8 : vector<32x512xf32> to vector<2x16x512xf32>
    %10 = vector.extract_strided_slice %7 {offsets = [0, 512], sizes = [32, 512], strides = [1, 1]} : vector<32x1536xf32> to vector<32x512xf32>
    %11 = vector.shape_cast %10 : vector<32x512xf32> to vector<2x16x512xf32>
    %12 = vector.extract_strided_slice %7 {offsets = [0, 1024], sizes = [32, 512], strides = [1, 1]} : vector<32x1536xf32> to vector<32x512xf32>
    %13 = vector.shape_cast %12 : vector<32x512xf32> to vector<2x16x512xf32>
    %c0_5 = arith.constant 0 : index
    %c0_6 = arith.constant 0 : index
    %c0_7 = arith.constant 0 : index
    %14 = vector.load %arg3[%c0_5, %c0_6, %c0_7] : memref<2x16x16xf32, #tpu.memory_space<vmem>>, vector<2x16x16xf32>
    %c0_8 = arith.constant 0 : index
    %c0_9 = arith.constant 0 : index
    %c0_10 = arith.constant 0 : index
    %15 = vector.load %arg4[%c0_8, %c0_9, %c0_10] : memref<2x16x16xf32, #tpu.memory_space<vmem>>, vector<2x16x16xf32>
    %16 = arith.truncf %9 : vector<2x16x512xf32> to vector<2x16x512xbf16>
    %17 = arith.truncf %11 : vector<2x16x512xf32> to vector<2x16x512xbf16>
    %18 = arith.truncf %13 : vector<2x16x512xf32> to vector<2x16x512xbf16>
    %19 = vector.extract_strided_slice %16 {offsets = [0, 0, 0], sizes = [2, 16, 64], strides = [1, 1, 1]} : vector<2x16x512xbf16> to vector<2x16x64xbf16>
    %20 = vector.extract_strided_slice %17 {offsets = [0, 0, 0], sizes = [2, 16, 64], strides = [1, 1, 1]} : vector<2x16x512xbf16> to vector<2x16x64xbf16>
    %21 = vector.extract_strided_slice %18 {offsets = [0, 0, 0], sizes = [2, 16, 64], strides = [1, 1, 1]} : vector<2x16x512xbf16> to vector<2x16x64xbf16>
    "tpu.trace_start"() <{level = 10 : i32, message = "bqd,bkd->bqk"}> : () -> ()
    %cst_11 = arith.constant dense<0.000000e+00> : vector<2x16x16xf32>
    %22 = tpu.matmul %19, %20, %cst_11 {dimension_numbers = #tpu.dot_dimension_numbers<[2], [2], [1], [1], [0, 0, 0, 1, 1, 1], [0], [0]>} : vector<2x16x64xbf16>, vector<2x16x64xbf16>, vector<2x16x16xf32> -> vector<2x16x16xf32>
    "tpu.trace_stop"() : () -> ()
    %cst_12 = arith.constant 1.250000e-01 : f32
    %23 = vector.broadcast %cst_12 : f32 to vector<2x16x16xf32>
    %24 = arith.mulf %22, %23 : vector<2x16x16xf32>
    %25 = arith.addf %24, %14 : vector<2x16x16xf32>
    %cst_13 = arith.constant dense<0xFF800000> : vector<2x16xf32>
    %26 = vector.multi_reduction <maximumf>, %25, %cst_13 [2] : vector<2x16x16xf32> to vector<2x16xf32>
    %27 = vector.shape_cast %26 : vector<2x16xf32> to vector<2x16x1xf32>
    %28 = vector.broadcast %27 : vector<2x16x1xf32> to vector<2x16x16xf32>
    %29 = arith.subf %25, %28 : vector<2x16x16xf32>
    %30 = math.exp %29 : vector<2x16x16xf32>
    %cst_14 = arith.constant dense<0.000000e+00> : vector<2x16xf32>
    %31 = vector.multi_reduction <add>, %30, %cst_14 [2] : vector<2x16x16xf32> to vector<2x16xf32>
    %32 = vector.shape_cast %31 : vector<2x16xf32> to vector<2x16x1xf32>
    %33 = tpu.reciprocal %32 {approx = true} : vector<2x16x1xf32> -> vector<2x16x1xf32>
    %34 = vector.broadcast %33 : vector<2x16x1xf32> to vector<2x16x16xf32>
    %35 = arith.mulf %30, %34 : vector<2x16x16xf32>
    %36 = arith.mulf %35, %15 : vector<2x16x16xf32>
    %37 = arith.truncf %36 : vector<2x16x16xf32> to vector<2x16x16xbf16>
    "tpu.trace_start"() <{level = 10 : i32, message = "bqk,bkd->bqd"}> : () -> ()
    %cst_15 = arith.constant dense<0.000000e+00> : vector<2x16x64xf32>
    %38 = tpu.matmul %37, %21, %cst_15 {dimension_numbers = #tpu.dot_dimension_numbers<[2], [1], [1], [2], [0, 0, 0, 1, 1, 2], [0], [0]>} : vector<2x16x16xbf16>, vector<2x16x64xbf16>, vector<2x16x64xf32> -> vector<2x16x64xf32>
    "tpu.trace_stop"() : () -> ()
    %39 = vector.extract_strided_slice %16 {offsets = [0, 0, 64], sizes = [2, 16, 64], strides = [1, 1, 1]} : vector<2x16x512xbf16> to vector<2x16x64xbf16>
    %40 = vector.extract_strided_slice %17 {offsets = [0, 0, 64], sizes = [2, 16, 64], strides = [1, 1, 1]} : vector<2x16x512xbf16> to vector<2x16x64xbf16>
    %41 = vector.extract_strided_slice %18 {offsets = [0, 0, 64], sizes = [2, 16, 64], strides = [1, 1, 1]} : vector<2x16x512xbf16> to vector<2x16x64xbf16>
    "tpu.trace_start"() <{level = 10 : i32, message = "bqd,bkd->bqk"}> : () -> ()
    %cst_16 = arith.constant dense<0.000000e+00> : vector<2x16x16xf32>
    %42 = tpu.matmul %39, %40, %cst_16 {dimension_numbers = #tpu.dot_dimension_numbers<[2], [2], [1], [1], [0, 0, 0, 1, 1, 1], [0], [0]>} : vector<2x16x64xbf16>, vector<2x16x64xbf16>, vector<2x16x16xf32> -> vector<2x16x16xf32>
    "tpu.trace_stop"() : () -> ()
    %cst_17 = arith.constant 1.250000e-01 : f32
    %43 = vector.broadcast %cst_17 : f32 to vector<2x16x16xf32>
    %44 = arith.mulf %42, %43 : vector<2x16x16xf32>
    %45 = arith.addf %44, %14 : vector<2x16x16xf32>
    %cst_18 = arith.constant dense<0xFF800000> : vector<2x16xf32>
    %46 = vector.multi_reduction <maximumf>, %45, %cst_18 [2] : vector<2x16x16xf32> to vector<2x16xf32>
    %47 = vector.shape_cast %46 : vector<2x16xf32> to vector<2x16x1xf32>
    %48 = vector.broadcast %47 : vector<2x16x1xf32> to vector<2x16x16xf32>
    %49 = arith.subf %45, %48 : vector<2x16x16xf32>
    %50 = math.exp %49 : vector<2x16x16xf32>
    %cst_19 = arith.constant dense<0.000000e+00> : vector<2x16xf32>
    %51 = vector.multi_reduction <add>, %50, %cst_19 [2] : vector<2x16x16xf32> to vector<2x16xf32>
    %52 = vector.shape_cast %51 : vector<2x16xf32> to vector<2x16x1xf32>
    %53 = tpu.reciprocal %52 {approx = true} : vector<2x16x1xf32> -> vector<2x16x1xf32>
    %54 = vector.broadcast %53 : vector<2x16x1xf32> to vector<2x16x16xf32>
    %55 = arith.mulf %50, %54 : vector<2x16x16xf32>
    %56 = arith.mulf %55, %15 : vector<2x16x16xf32>
    %57 = arith.truncf %56 : vector<2x16x16xf32> to vector<2x16x16xbf16>
    "tpu.trace_start"() <{level = 10 : i32, message = "bqk,bkd->bqd"}> : () -> ()
    %cst_20 = arith.constant dense<0.000000e+00> : vector<2x16x64xf32>
    %58 = tpu.matmul %57, %41, %cst_20 {dimension_numbers = #tpu.dot_dimension_numbers<[2], [1], [1], [2], [0, 0, 0, 1, 1, 2], [0], [0]>} : vector<2x16x16xbf16>, vector<2x16x64xbf16>, vector<2x16x64xf32> -> vector<2x16x64xf32>
    "tpu.trace_stop"() : () -> ()
    %59 = vector.extract_strided_slice %16 {offsets = [0, 0, 128], sizes = [2, 16, 64], strides = [1, 1, 1]} : vector<2x16x512xbf16> to vector<2x16x64xbf16>
    %60 = vector.extract_strided_slice %17 {offsets = [0, 0, 128], sizes = [2, 16, 64], strides = [1, 1, 1]} : vector<2x16x512xbf16> to vector<2x16x64xbf16>
    %61 = vector.extract_strided_slice %18 {offsets = [0, 0, 128], sizes = [2, 16, 64], strides = [1, 1, 1]} : vector<2x16x512xbf16> to vector<2x16x64xbf16>
    "tpu.trace_start"() <{level = 10 : i32, message = "bqd,bkd->bqk"}> : () -> ()
    %cst_21 = arith.constant dense<0.000000e+00> : vector<2x16x16xf32>
    %62 = tpu.matmul %59, %60, %cst_21 {dimension_numbers = #tpu.dot_dimension_numbers<[2], [2], [1], [1], [0, 0, 0, 1, 1, 1], [0], [0]>} : vector<2x16x64xbf16>, vector<2x16x64xbf16>, vector<2x16x16xf32> -> vector<2x16x16xf32>
    "tpu.trace_stop"() : () -> ()
    %cst_22 = arith.constant 1.250000e-01 : f32
    %63 = vector.broadcast %cst_22 : f32 to vector<2x16x16xf32>
    %64 = arith.mulf %62, %63 : vector<2x16x16xf32>
    %65 = arith.addf %64, %14 : vector<2x16x16xf32>
    %cst_23 = arith.constant dense<0xFF800000> : vector<2x16xf32>
    %66 = vector.multi_reduction <maximumf>, %65, %cst_23 [2] : vector<2x16x16xf32> to vector<2x16xf32>
    %67 = vector.shape_cast %66 : vector<2x16xf32> to vector<2x16x1xf32>
    %68 = vector.broadcast %67 : vector<2x16x1xf32> to vector<2x16x16xf32>
    %69 = arith.subf %65, %68 : vector<2x16x16xf32>
    %70 = math.exp %69 : vector<2x16x16xf32>
    %cst_24 = arith.constant dense<0.000000e+00> : vector<2x16xf32>
    %71 = vector.multi_reduction <add>, %70, %cst_24 [2] : vector<2x16x16xf32> to vector<2x16xf32>
    %72 = vector.shape_cast %71 : vector<2x16xf32> to vector<2x16x1xf32>
    %73 = tpu.reciprocal %72 {approx = true} : vector<2x16x1xf32> -> vector<2x16x1xf32>
    %74 = vector.broadcast %73 : vector<2x16x1xf32> to vector<2x16x16xf32>
    %75 = arith.mulf %70, %74 : vector<2x16x16xf32>
    %76 = arith.mulf %75, %15 : vector<2x16x16xf32>
    %77 = arith.truncf %76 : vector<2x16x16xf32> to vector<2x16x16xbf16>
    "tpu.trace_start"() <{level = 10 : i32, message = "bqk,bkd->bqd"}> : () -> ()
    %cst_25 = arith.constant dense<0.000000e+00> : vector<2x16x64xf32>
    %78 = tpu.matmul %77, %61, %cst_25 {dimension_numbers = #tpu.dot_dimension_numbers<[2], [1], [1], [2], [0, 0, 0, 1, 1, 2], [0], [0]>} : vector<2x16x16xbf16>, vector<2x16x64xbf16>, vector<2x16x64xf32> -> vector<2x16x64xf32>
    "tpu.trace_stop"() : () -> ()
    %79 = vector.extract_strided_slice %16 {offsets = [0, 0, 192], sizes = [2, 16, 64], strides = [1, 1, 1]} : vector<2x16x512xbf16> to vector<2x16x64xbf16>
    %80 = vector.extract_strided_slice %17 {offsets = [0, 0, 192], sizes = [2, 16, 64], strides = [1, 1, 1]} : vector<2x16x512xbf16> to vector<2x16x64xbf16>
    %81 = vector.extract_strided_slice %18 {offsets = [0, 0, 192], sizes = [2, 16, 64], strides = [1, 1, 1]} : vector<2x16x512xbf16> to vector<2x16x64xbf16>
    "tpu.trace_start"() <{level = 10 : i32, message = "bqd,bkd->bqk"}> : () -> ()
    %cst_26 = arith.constant dense<0.000000e+00> : vector<2x16x16xf32>
    %82 = tpu.matmul %79, %80, %cst_26 {dimension_numbers = #tpu.dot_dimension_numbers<[2], [2], [1], [1], [0, 0, 0, 1, 1, 1], [0], [0]>} : vector<2x16x64xbf16>, vector<2x16x64xbf16>, vector<2x16x16xf32> -> vector<2x16x16xf32>
    "tpu.trace_stop"() : () -> ()
    %cst_27 = arith.constant 1.250000e-01 : f32
    %83 = vector.broadcast %cst_27 : f32 to vector<2x16x16xf32>
    %84 = arith.mulf %82, %83 : vector<2x16x16xf32>
    %85 = arith.addf %84, %14 : vector<2x16x16xf32>
    %cst_28 = arith.constant dense<0xFF800000> : vector<2x16xf32>
    %86 = vector.multi_reduction <maximumf>, %85, %cst_28 [2] : vector<2x16x16xf32> to vector<2x16xf32>
    %87 = vector.shape_cast %86 : vector<2x16xf32> to vector<2x16x1xf32>
    %88 = vector.broadcast %87 : vector<2x16x1xf32> to vector<2x16x16xf32>
    %89 = arith.subf %85, %88 : vector<2x16x16xf32>
    %90 = math.exp %89 : vector<2x16x16xf32>
    %cst_29 = arith.constant dense<0.000000e+00> : vector<2x16xf32>
    %91 = vector.multi_reduction <add>, %90, %cst_29 [2] : vector<2x16x16xf32> to vector<2x16xf32>
    %92 = vector.shape_cast %91 : vector<2x16xf32> to vector<2x16x1xf32>
    %93 = tpu.reciprocal %92 {approx = true} : vector<2x16x1xf32> -> vector<2x16x1xf32>
    %94 = vector.broadcast %93 : vector<2x16x1xf32> to vector<2x16x16xf32>
    %95 = arith.mulf %90, %94 : vector<2x16x16xf32>
    %96 = arith.mulf %95, %15 : vector<2x16x16xf32>
    %97 = arith.truncf %96 : vector<2x16x16xf32> to vector<2x16x16xbf16>
    "tpu.trace_start"() <{level = 10 : i32, message = "bqk,bkd->bqd"}> : () -> ()
    %cst_30 = arith.constant dense<0.000000e+00> : vector<2x16x64xf32>
    %98 = tpu.matmul %97, %81, %cst_30 {dimension_numbers = #tpu.dot_dimension_numbers<[2], [1], [1], [2], [0, 0, 0, 1, 1, 2], [0], [0]>} : vector<2x16x16xbf16>, vector<2x16x64xbf16>, vector<2x16x64xf32> -> vector<2x16x64xf32>
    "tpu.trace_stop"() : () -> ()
    %99 = vector.extract_strided_slice %16 {offsets = [0, 0, 256], sizes = [2, 16, 64], strides = [1, 1, 1]} : vector<2x16x512xbf16> to vector<2x16x64xbf16>
    %100 = vector.extract_strided_slice %17 {offsets = [0, 0, 256], sizes = [2, 16, 64], strides = [1, 1, 1]} : vector<2x16x512xbf16> to vector<2x16x64xbf16>
    %101 = vector.extract_strided_slice %18 {offsets = [0, 0, 256], sizes = [2, 16, 64], strides = [1, 1, 1]} : vector<2x16x512xbf16> to vector<2x16x64xbf16>
    "tpu.trace_start"() <{level = 10 : i32, message = "bqd,bkd->bqk"}> : () -> ()
    %cst_31 = arith.constant dense<0.000000e+00> : vector<2x16x16xf32>
    %102 = tpu.matmul %99, %100, %cst_31 {dimension_numbers = #tpu.dot_dimension_numbers<[2], [2], [1], [1], [0, 0, 0, 1, 1, 1], [0], [0]>} : vector<2x16x64xbf16>, vector<2x16x64xbf16>, vector<2x16x16xf32> -> vector<2x16x16xf32>
    "tpu.trace_stop"() : () -> ()
    %cst_32 = arith.constant 1.250000e-01 : f32
    %103 = vector.broadcast %cst_32 : f32 to vector<2x16x16xf32>
    %104 = arith.mulf %102, %103 : vector<2x16x16xf32>
    %105 = arith.addf %104, %14 : vector<2x16x16xf32>
    %cst_33 = arith.constant dense<0xFF800000> : vector<2x16xf32>
    %106 = vector.multi_reduction <maximumf>, %105, %cst_33 [2] : vector<2x16x16xf32> to vector<2x16xf32>
    %107 = vector.shape_cast %106 : vector<2x16xf32> to vector<2x16x1xf32>
    %108 = vector.broadcast %107 : vector<2x16x1xf32> to vector<2x16x16xf32>
    %109 = arith.subf %105, %108 : vector<2x16x16xf32>
    %110 = math.exp %109 : vector<2x16x16xf32>
    %cst_34 = arith.constant dense<0.000000e+00> : vector<2x16xf32>
    %111 = vector.multi_reduction <add>, %110, %cst_34 [2] : vector<2x16x16xf32> to vector<2x16xf32>
    %112 = vector.shape_cast %111 : vector<2x16xf32> to vector<2x16x1xf32>
    %113 = tpu.reciprocal %112 {approx = true} : vector<2x16x1xf32> -> vector<2x16x1xf32>
    %114 = vector.broadcast %113 : vector<2x16x1xf32> to vector<2x16x16xf32>
    %115 = arith.mulf %110, %114 : vector<2x16x16xf32>
    %116 = arith.mulf %115, %15 : vector<2x16x16xf32>
    %117 = arith.truncf %116 : vector<2x16x16xf32> to vector<2x16x16xbf16>
    "tpu.trace_start"() <{level = 10 : i32, message = "bqk,bkd->bqd"}> : () -> ()
    %cst_35 = arith.constant dense<0.000000e+00> : vector<2x16x64xf32>
    %118 = tpu.matmul %117, %101, %cst_35 {dimension_numbers = #tpu.dot_dimension_numbers<[2], [1], [1], [2], [0, 0, 0, 1, 1, 2], [0], [0]>} : vector<2x16x16xbf16>, vector<2x16x64xbf16>, vector<2x16x64xf32> -> vector<2x16x64xf32>
    "tpu.trace_stop"() : () -> ()
    %119 = vector.extract_strided_slice %16 {offsets = [0, 0, 320], sizes = [2, 16, 64], strides = [1, 1, 1]} : vector<2x16x512xbf16> to vector<2x16x64xbf16>
    %120 = vector.extract_strided_slice %17 {offsets = [0, 0, 320], sizes = [2, 16, 64], strides = [1, 1, 1]} : vector<2x16x512xbf16> to vector<2x16x64xbf16>
    %121 = vector.extract_strided_slice %18 {offsets = [0, 0, 320], sizes = [2, 16, 64], strides = [1, 1, 1]} : vector<2x16x512xbf16> to vector<2x16x64xbf16>
    "tpu.trace_start"() <{level = 10 : i32, message = "bqd,bkd->bqk"}> : () -> ()
    %cst_36 = arith.constant dense<0.000000e+00> : vector<2x16x16xf32>
    %122 = tpu.matmul %119, %120, %cst_36 {dimension_numbers = #tpu.dot_dimension_numbers<[2], [2], [1], [1], [0, 0, 0, 1, 1, 1], [0], [0]>} : vector<2x16x64xbf16>, vector<2x16x64xbf16>, vector<2x16x16xf32> -> vector<2x16x16xf32>
    "tpu.trace_stop"() : () -> ()
    %cst_37 = arith.constant 1.250000e-01 : f32
    %123 = vector.broadcast %cst_37 : f32 to vector<2x16x16xf32>
    %124 = arith.mulf %122, %123 : vector<2x16x16xf32>
    %125 = arith.addf %124, %14 : vector<2x16x16xf32>
    %cst_38 = arith.constant dense<0xFF800000> : vector<2x16xf32>
    %126 = vector.multi_reduction <maximumf>, %125, %cst_38 [2] : vector<2x16x16xf32> to vector<2x16xf32>
    %127 = vector.shape_cast %126 : vector<2x16xf32> to vector<2x16x1xf32>
    %128 = vector.broadcast %127 : vector<2x16x1xf32> to vector<2x16x16xf32>
    %129 = arith.subf %125, %128 : vector<2x16x16xf32>
    %130 = math.exp %129 : vector<2x16x16xf32>
    %cst_39 = arith.constant dense<0.000000e+00> : vector<2x16xf32>
    %131 = vector.multi_reduction <add>, %130, %cst_39 [2] : vector<2x16x16xf32> to vector<2x16xf32>
    %132 = vector.shape_cast %131 : vector<2x16xf32> to vector<2x16x1xf32>
    %133 = tpu.reciprocal %132 {approx = true} : vector<2x16x1xf32> -> vector<2x16x1xf32>
    %134 = vector.broadcast %133 : vector<2x16x1xf32> to vector<2x16x16xf32>
    %135 = arith.mulf %130, %134 : vector<2x16x16xf32>
    %136 = arith.mulf %135, %15 : vector<2x16x16xf32>
    %137 = arith.truncf %136 : vector<2x16x16xf32> to vector<2x16x16xbf16>
    "tpu.trace_start"() <{level = 10 : i32, message = "bqk,bkd->bqd"}> : () -> ()
    %cst_40 = arith.constant dense<0.000000e+00> : vector<2x16x64xf32>
    %138 = tpu.matmul %137, %121, %cst_40 {dimension_numbers = #tpu.dot_dimension_numbers<[2], [1], [1], [2], [0, 0, 0, 1, 1, 2], [0], [0]>} : vector<2x16x16xbf16>, vector<2x16x64xbf16>, vector<2x16x64xf32> -> vector<2x16x64xf32>
    "tpu.trace_stop"() : () -> ()
    %139 = vector.extract_strided_slice %16 {offsets = [0, 0, 384], sizes = [2, 16, 64], strides = [1, 1, 1]} : vector<2x16x512xbf16> to vector<2x16x64xbf16>
    %140 = vector.extract_strided_slice %17 {offsets = [0, 0, 384], sizes = [2, 16, 64], strides = [1, 1, 1]} : vector<2x16x512xbf16> to vector<2x16x64xbf16>
    %141 = vector.extract_strided_slice %18 {offsets = [0, 0, 384], sizes = [2, 16, 64], strides = [1, 1, 1]} : vector<2x16x512xbf16> to vector<2x16x64xbf16>
    "tpu.trace_start"() <{level = 10 : i32, message = "bqd,bkd->bqk"}> : () -> ()
    %cst_41 = arith.constant dense<0.000000e+00> : vector<2x16x16xf32>
    %142 = tpu.matmul %139, %140, %cst_41 {dimension_numbers = #tpu.dot_dimension_numbers<[2], [2], [1], [1], [0, 0, 0, 1, 1, 1], [0], [0]>} : vector<2x16x64xbf16>, vector<2x16x64xbf16>, vector<2x16x16xf32> -> vector<2x16x16xf32>
    "tpu.trace_stop"() : () -> ()
    %cst_42 = arith.constant 1.250000e-01 : f32
    %143 = vector.broadcast %cst_42 : f32 to vector<2x16x16xf32>
    %144 = arith.mulf %142, %143 : vector<2x16x16xf32>
    %145 = arith.addf %144, %14 : vector<2x16x16xf32>
    %cst_43 = arith.constant dense<0xFF800000> : vector<2x16xf32>
    %146 = vector.multi_reduction <maximumf>, %145, %cst_43 [2] : vector<2x16x16xf32> to vector<2x16xf32>
    %147 = vector.shape_cast %146 : vector<2x16xf32> to vector<2x16x1xf32>
    %148 = vector.broadcast %147 : vector<2x16x1xf32> to vector<2x16x16xf32>
    %149 = arith.subf %145, %148 : vector<2x16x16xf32>
    %150 = math.exp %149 : vector<2x16x16xf32>
    %cst_44 = arith.constant dense<0.000000e+00> : vector<2x16xf32>
    %151 = vector.multi_reduction <add>, %150, %cst_44 [2] : vector<2x16x16xf32> to vector<2x16xf32>
    %152 = vector.shape_cast %151 : vector<2x16xf32> to vector<2x16x1xf32>
    %153 = tpu.reciprocal %152 {approx = true} : vector<2x16x1xf32> -> vector<2x16x1xf32>
    %154 = vector.broadcast %153 : vector<2x16x1xf32> to vector<2x16x16xf32>
    %155 = arith.mulf %150, %154 : vector<2x16x16xf32>
    %156 = arith.mulf %155, %15 : vector<2x16x16xf32>
    %157 = arith.truncf %156 : vector<2x16x16xf32> to vector<2x16x16xbf16>
    "tpu.trace_start"() <{level = 10 : i32, message = "bqk,bkd->bqd"}> : () -> ()
    %cst_45 = arith.constant dense<0.000000e+00> : vector<2x16x64xf32>
    %158 = tpu.matmul %157, %141, %cst_45 {dimension_numbers = #tpu.dot_dimension_numbers<[2], [1], [1], [2], [0, 0, 0, 1, 1, 2], [0], [0]>} : vector<2x16x16xbf16>, vector<2x16x64xbf16>, vector<2x16x64xf32> -> vector<2x16x64xf32>
    "tpu.trace_stop"() : () -> ()
    %159 = vector.extract_strided_slice %16 {offsets = [0, 0, 448], sizes = [2, 16, 64], strides = [1, 1, 1]} : vector<2x16x512xbf16> to vector<2x16x64xbf16>
    %160 = vector.extract_strided_slice %17 {offsets = [0, 0, 448], sizes = [2, 16, 64], strides = [1, 1, 1]} : vector<2x16x512xbf16> to vector<2x16x64xbf16>
    %161 = vector.extract_strided_slice %18 {offsets = [0, 0, 448], sizes = [2, 16, 64], strides = [1, 1, 1]} : vector<2x16x512xbf16> to vector<2x16x64xbf16>
    "tpu.trace_start"() <{level = 10 : i32, message = "bqd,bkd->bqk"}> : () -> ()
    %cst_46 = arith.constant dense<0.000000e+00> : vector<2x16x16xf32>
    %162 = tpu.matmul %159, %160, %cst_46 {dimension_numbers = #tpu.dot_dimension_numbers<[2], [2], [1], [1], [0, 0, 0, 1, 1, 1], [0], [0]>} : vector<2x16x64xbf16>, vector<2x16x64xbf16>, vector<2x16x16xf32> -> vector<2x16x16xf32>
    "tpu.trace_stop"() : () -> ()
    %cst_47 = arith.constant 1.250000e-01 : f32
    %163 = vector.broadcast %cst_47 : f32 to vector<2x16x16xf32>
    %164 = arith.mulf %162, %163 : vector<2x16x16xf32>
    %165 = arith.addf %164, %14 : vector<2x16x16xf32>
    %cst_48 = arith.constant dense<0xFF800000> : vector<2x16xf32>
    %166 = vector.multi_reduction <maximumf>, %165, %cst_48 [2] : vector<2x16x16xf32> to vector<2x16xf32>
    %167 = vector.shape_cast %166 : vector<2x16xf32> to vector<2x16x1xf32>
    %168 = vector.broadcast %167 : vector<2x16x1xf32> to vector<2x16x16xf32>
    %169 = arith.subf %165, %168 : vector<2x16x16xf32>
    %170 = math.exp %169 : vector<2x16x16xf32>
    %cst_49 = arith.constant dense<0.000000e+00> : vector<2x16xf32>
    %171 = vector.multi_reduction <add>, %170, %cst_49 [2] : vector<2x16x16xf32> to vector<2x16xf32>
    %172 = vector.shape_cast %171 : vector<2x16xf32> to vector<2x16x1xf32>
    %173 = tpu.reciprocal %172 {approx = true} : vector<2x16x1xf32> -> vector<2x16x1xf32>
    %174 = vector.broadcast %173 : vector<2x16x1xf32> to vector<2x16x16xf32>
    %175 = arith.mulf %170, %174 : vector<2x16x16xf32>
    %176 = arith.mulf %175, %15 : vector<2x16x16xf32>
    %177 = arith.truncf %176 : vector<2x16x16xf32> to vector<2x16x16xbf16>
    "tpu.trace_start"() <{level = 10 : i32, message = "bqk,bkd->bqd"}> : () -> ()
    %cst_50 = arith.constant dense<0.000000e+00> : vector<2x16x64xf32>
    %178 = tpu.matmul %177, %161, %cst_50 {dimension_numbers = #tpu.dot_dimension_numbers<[2], [1], [1], [2], [0, 0, 0, 1, 1, 2], [0], [0]>} : vector<2x16x16xbf16>, vector<2x16x64xbf16>, vector<2x16x64xf32> -> vector<2x16x64xf32>
    "tpu.trace_stop"() : () -> ()
    %179 = tpu.concatenate %38, %58, %78, %98, %118, %138, %158, %178 in 2 : vector<2x16x64xf32>, vector<2x16x64xf32>, vector<2x16x64xf32>, vector<2x16x64xf32>, vector<2x16x64xf32>, vector<2x16x64xf32>, vector<2x16x64xf32>, vector<2x16x64xf32> -> vector<2x16x512xf32>
    %180 = vector.shape_cast %179 : vector<2x16x512xf32> to vector<32x512xf32>
    %181 = arith.truncf %180 : vector<32x512xf32> to vector<32x512xbf16>
    %c0_51 = arith.constant 0 : index
    %c0_52 = arith.constant 0 : index
    %c0_53 = arith.constant 0 : index
    %182 = vector.load %arg8[%c0_51, %c0_52, %c0_53] : memref<1x512x256xbf16, #tpu.memory_space<vmem>>, vector<1x512x256xbf16>
    %183 = vector.shape_cast %182 : vector<1x512x256xbf16> to vector<512x256xbf16>
    %cst_54 = arith.constant dense<0.000000e+00> : vector<32x256xf32>
    %184 = tpu.matmul %181, %183, %cst_54 {dimension_numbers = #tpu.dot_dimension_numbers<[1], [0], [0], [1], [0, 0, 1, 1], [], []>} : vector<32x512xbf16>, vector<512x256xbf16>, vector<32x256xf32> -> vector<32x256xf32>
    %185 = arith.addf %184, %3 : vector<32x256xf32>
    %cst_55 = arith.constant dense<0.000000e+00> : vector<32xf32>
    %186 = vector.multi_reduction <add>, %185, %cst_55 [1] : vector<32x256xf32> to vector<32xf32>
    %187 = vector.shape_cast %186 : vector<32xf32> to vector<32x1xf32>
    %cst_56 = arith.constant 2.560000e+02 : f32
    %188 = vector.broadcast %cst_56 : f32 to vector<32x1xf32>
    %189 = arith.divf %187, %188 : vector<32x1xf32>
    %190 = vector.broadcast %189 : vector<32x1xf32> to vector<32x256xf32>
    %191 = arith.subf %185, %190 : vector<32x256xf32>
    %192 = arith.mulf %191, %191 : vector<32x256xf32>
    %cst_57 = arith.constant dense<0.000000e+00> : vector<32xf32>
    %193 = vector.multi_reduction <add>, %192, %cst_57 [1] : vector<32x256xf32> to vector<32xf32>
    %194 = vector.shape_cast %193 : vector<32xf32> to vector<32x1xf32>
    %cst_58 = arith.constant 2.560000e+02 : f32
    %195 = vector.broadcast %cst_58 : f32 to vector<32x1xf32>
    %196 = arith.divf %194, %195 : vector<32x1xf32>
    %cst_59 = arith.constant 9.99999974E-6 : f32
    %197 = vector.broadcast %cst_59 : f32 to vector<32x1xf32>
    %198 = arith.addf %196, %197 : vector<32x1xf32>
    %199 = math.rsqrt %198 : vector<32x1xf32>
    %200 = vector.broadcast %199 : vector<32x1xf32> to vector<32x256xf32>
    %201 = arith.mulf %191, %200 : vector<32x256xf32>
    %202 = arith.truncf %201 : vector<32x256xf32> to vector<32x256xbf16>
    %c0_60 = arith.constant 0 : index
    %c0_61 = arith.constant 0 : index
    %c0_62 = arith.constant 0 : index
    %203 = vector.load %arg9[%c0_60, %c0_61, %c0_62] : memref<1x256x512xbf16, #tpu.memory_space<vmem>>, vector<1x256x512xbf16>
    %204 = vector.shape_cast %203 : vector<1x256x512xbf16> to vector<256x512xbf16>
    %cst_63 = arith.constant dense<0.000000e+00> : vector<32x512xf32>
    %205 = tpu.matmul %202, %204, %cst_63 {dimension_numbers = #tpu.dot_dimension_numbers<[1], [0], [0], [1], [0, 0, 1, 1], [], []>} : vector<32x256xbf16>, vector<256x512xbf16>, vector<32x512xf32> -> vector<32x512xf32>
    %206 = vector.shape_cast %205 : vector<32x512xf32> to vector<2x16x512xf32>
    %c0_64 = arith.constant 0 : index
    %c0_65 = arith.constant 0 : index
    %c0_66 = arith.constant 0 : index
    %207 = vector.load %arg2[%c0_64, %c0_65, %c0_66] : memref<2x16x256xbf16, #tpu.memory_space<vmem>>, vector<2x16x256xbf16>
    %208 = vector.shape_cast %207 : vector<2x16x256xbf16> to vector<32x256xbf16>
    %c0_67 = arith.constant 0 : index
    %c0_68 = arith.constant 0 : index
    %c0_69 = arith.constant 0 : index
    %209 = vector.load %arg10[%c0_67, %c0_68, %c0_69] : memref<1x256x1024xbf16, #tpu.memory_space<vmem>>, vector<1x256x1024xbf16>
    %210 = vector.shape_cast %209 : vector<1x256x1024xbf16> to vector<256x1024xbf16>
    %cst_70 = arith.constant dense<0.000000e+00> : vector<32x1024xf32>
    %211 = tpu.matmul %208, %210, %cst_70 {dimension_numbers = #tpu.dot_dimension_numbers<[1], [0], [0], [1], [0, 0, 1, 1], [], []>} : vector<32x256xbf16>, vector<256x1024xbf16>, vector<32x1024xf32> -> vector<32x1024xf32>
    %212 = vector.extract_strided_slice %211 {offsets = [0, 0], sizes = [32, 512], strides = [1, 1]} : vector<32x1024xf32> to vector<32x512xf32>
    %213 = vector.shape_cast %212 : vector<32x512xf32> to vector<2x16x512xf32>
    %214 = vector.extract_strided_slice %211 {offsets = [0, 512], sizes = [32, 512], strides = [1, 1]} : vector<32x1024xf32> to vector<32x512xf32>
    %215 = vector.shape_cast %214 : vector<32x512xf32> to vector<2x16x512xf32>
    %c0_71 = arith.constant 0 : index
    %c0_72 = arith.constant 0 : index
    %c0_73 = arith.constant 0 : index
    %216 = vector.load %arg5[%c0_71, %c0_72, %c0_73] : memref<2x16x16xf32, #tpu.memory_space<vmem>>, vector<2x16x16xf32>
    %c0_74 = arith.constant 0 : index
    %c0_75 = arith.constant 0 : index
    %c0_76 = arith.constant 0 : index
    %217 = vector.load %arg6[%c0_74, %c0_75, %c0_76] : memref<2x16x16xf32, #tpu.memory_space<vmem>>, vector<2x16x16xf32>
    %218 = arith.truncf %206 : vector<2x16x512xf32> to vector<2x16x512xbf16>
    %219 = arith.truncf %213 : vector<2x16x512xf32> to vector<2x16x512xbf16>
    %220 = arith.truncf %215 : vector<2x16x512xf32> to vector<2x16x512xbf16>
    %221 = vector.extract_strided_slice %218 {offsets = [0, 0, 0], sizes = [2, 16, 64], strides = [1, 1, 1]} : vector<2x16x512xbf16> to vector<2x16x64xbf16>
    %222 = vector.extract_strided_slice %219 {offsets = [0, 0, 0], sizes = [2, 16, 64], strides = [1, 1, 1]} : vector<2x16x512xbf16> to vector<2x16x64xbf16>
    %223 = vector.extract_strided_slice %220 {offsets = [0, 0, 0], sizes = [2, 16, 64], strides = [1, 1, 1]} : vector<2x16x512xbf16> to vector<2x16x64xbf16>
    "tpu.trace_start"() <{level = 10 : i32, message = "bqd,bkd->bqk"}> : () -> ()
    %cst_77 = arith.constant dense<0.000000e+00> : vector<2x16x16xf32>
    %224 = tpu.matmul %221, %222, %cst_77 {dimension_numbers = #tpu.dot_dimension_numbers<[2], [2], [1], [1], [0, 0, 0, 1, 1, 1], [0], [0]>} : vector<2x16x64xbf16>, vector<2x16x64xbf16>, vector<2x16x16xf32> -> vector<2x16x16xf32>
    "tpu.trace_stop"() : () -> ()
    %cst_78 = arith.constant 1.250000e-01 : f32
    %225 = vector.broadcast %cst_78 : f32 to vector<2x16x16xf32>
    %226 = arith.mulf %224, %225 : vector<2x16x16xf32>
    %227 = arith.addf %226, %216 : vector<2x16x16xf32>
    %cst_79 = arith.constant dense<0xFF800000> : vector<2x16xf32>
    %228 = vector.multi_reduction <maximumf>, %227, %cst_79 [2] : vector<2x16x16xf32> to vector<2x16xf32>
    %229 = vector.shape_cast %228 : vector<2x16xf32> to vector<2x16x1xf32>
    %230 = vector.broadcast %229 : vector<2x16x1xf32> to vector<2x16x16xf32>
    %231 = arith.subf %227, %230 : vector<2x16x16xf32>
    %232 = math.exp %231 : vector<2x16x16xf32>
    %cst_80 = arith.constant dense<0.000000e+00> : vector<2x16xf32>
    %233 = vector.multi_reduction <add>, %232, %cst_80 [2] : vector<2x16x16xf32> to vector<2x16xf32>
    %234 = vector.shape_cast %233 : vector<2x16xf32> to vector<2x16x1xf32>
    %235 = tpu.reciprocal %234 {approx = true} : vector<2x16x1xf32> -> vector<2x16x1xf32>
    %236 = vector.broadcast %235 : vector<2x16x1xf32> to vector<2x16x16xf32>
    %237 = arith.mulf %232, %236 : vector<2x16x16xf32>
    %238 = arith.mulf %237, %217 : vector<2x16x16xf32>
    %239 = arith.truncf %238 : vector<2x16x16xf32> to vector<2x16x16xbf16>
    "tpu.trace_start"() <{level = 10 : i32, message = "bqk,bkd->bqd"}> : () -> ()
    %cst_81 = arith.constant dense<0.000000e+00> : vector<2x16x64xf32>
    %240 = tpu.matmul %239, %223, %cst_81 {dimension_numbers = #tpu.dot_dimension_numbers<[2], [1], [1], [2], [0, 0, 0, 1, 1, 2], [0], [0]>} : vector<2x16x16xbf16>, vector<2x16x64xbf16>, vector<2x16x64xf32> -> vector<2x16x64xf32>
    "tpu.trace_stop"() : () -> ()
    %241 = vector.extract_strided_slice %218 {offsets = [0, 0, 64], sizes = [2, 16, 64], strides = [1, 1, 1]} : vector<2x16x512xbf16> to vector<2x16x64xbf16>
    %242 = vector.extract_strided_slice %219 {offsets = [0, 0, 64], sizes = [2, 16, 64], strides = [1, 1, 1]} : vector<2x16x512xbf16> to vector<2x16x64xbf16>
    %243 = vector.extract_strided_slice %220 {offsets = [0, 0, 64], sizes = [2, 16, 64], strides = [1, 1, 1]} : vector<2x16x512xbf16> to vector<2x16x64xbf16>
    "tpu.trace_start"() <{level = 10 : i32, message = "bqd,bkd->bqk"}> : () -> ()
    %cst_82 = arith.constant dense<0.000000e+00> : vector<2x16x16xf32>
    %244 = tpu.matmul %241, %242, %cst_82 {dimension_numbers = #tpu.dot_dimension_numbers<[2], [2], [1], [1], [0, 0, 0, 1, 1, 1], [0], [0]>} : vector<2x16x64xbf16>, vector<2x16x64xbf16>, vector<2x16x16xf32> -> vector<2x16x16xf32>
    "tpu.trace_stop"() : () -> ()
    %cst_83 = arith.constant 1.250000e-01 : f32
    %245 = vector.broadcast %cst_83 : f32 to vector<2x16x16xf32>
    %246 = arith.mulf %244, %245 : vector<2x16x16xf32>
    %247 = arith.addf %246, %216 : vector<2x16x16xf32>
    %cst_84 = arith.constant dense<0xFF800000> : vector<2x16xf32>
    %248 = vector.multi_reduction <maximumf>, %247, %cst_84 [2] : vector<2x16x16xf32> to vector<2x16xf32>
    %249 = vector.shape_cast %248 : vector<2x16xf32> to vector<2x16x1xf32>
    %250 = vector.broadcast %249 : vector<2x16x1xf32> to vector<2x16x16xf32>
    %251 = arith.subf %247, %250 : vector<2x16x16xf32>
    %252 = math.exp %251 : vector<2x16x16xf32>
    %cst_85 = arith.constant dense<0.000000e+00> : vector<2x16xf32>
    %253 = vector.multi_reduction <add>, %252, %cst_85 [2] : vector<2x16x16xf32> to vector<2x16xf32>
    %254 = vector.shape_cast %253 : vector<2x16xf32> to vector<2x16x1xf32>
    %255 = tpu.reciprocal %254 {approx = true} : vector<2x16x1xf32> -> vector<2x16x1xf32>
    %256 = vector.broadcast %255 : vector<2x16x1xf32> to vector<2x16x16xf32>
    %257 = arith.mulf %252, %256 : vector<2x16x16xf32>
    %258 = arith.mulf %257, %217 : vector<2x16x16xf32>
    %259 = arith.truncf %258 : vector<2x16x16xf32> to vector<2x16x16xbf16>
    "tpu.trace_start"() <{level = 10 : i32, message = "bqk,bkd->bqd"}> : () -> ()
    %cst_86 = arith.constant dense<0.000000e+00> : vector<2x16x64xf32>
    %260 = tpu.matmul %259, %243, %cst_86 {dimension_numbers = #tpu.dot_dimension_numbers<[2], [1], [1], [2], [0, 0, 0, 1, 1, 2], [0], [0]>} : vector<2x16x16xbf16>, vector<2x16x64xbf16>, vector<2x16x64xf32> -> vector<2x16x64xf32>
    "tpu.trace_stop"() : () -> ()
    %261 = vector.extract_strided_slice %218 {offsets = [0, 0, 128], sizes = [2, 16, 64], strides = [1, 1, 1]} : vector<2x16x512xbf16> to vector<2x16x64xbf16>
    %262 = vector.extract_strided_slice %219 {offsets = [0, 0, 128], sizes = [2, 16, 64], strides = [1, 1, 1]} : vector<2x16x512xbf16> to vector<2x16x64xbf16>
    %263 = vector.extract_strided_slice %220 {offsets = [0, 0, 128], sizes = [2, 16, 64], strides = [1, 1, 1]} : vector<2x16x512xbf16> to vector<2x16x64xbf16>
    "tpu.trace_start"() <{level = 10 : i32, message = "bqd,bkd->bqk"}> : () -> ()
    %cst_87 = arith.constant dense<0.000000e+00> : vector<2x16x16xf32>
    %264 = tpu.matmul %261, %262, %cst_87 {dimension_numbers = #tpu.dot_dimension_numbers<[2], [2], [1], [1], [0, 0, 0, 1, 1, 1], [0], [0]>} : vector<2x16x64xbf16>, vector<2x16x64xbf16>, vector<2x16x16xf32> -> vector<2x16x16xf32>
    "tpu.trace_stop"() : () -> ()
    %cst_88 = arith.constant 1.250000e-01 : f32
    %265 = vector.broadcast %cst_88 : f32 to vector<2x16x16xf32>
    %266 = arith.mulf %264, %265 : vector<2x16x16xf32>
    %267 = arith.addf %266, %216 : vector<2x16x16xf32>
    %cst_89 = arith.constant dense<0xFF800000> : vector<2x16xf32>
    %268 = vector.multi_reduction <maximumf>, %267, %cst_89 [2] : vector<2x16x16xf32> to vector<2x16xf32>
    %269 = vector.shape_cast %268 : vector<2x16xf32> to vector<2x16x1xf32>
    %270 = vector.broadcast %269 : vector<2x16x1xf32> to vector<2x16x16xf32>
    %271 = arith.subf %267, %270 : vector<2x16x16xf32>
    %272 = math.exp %271 : vector<2x16x16xf32>
    %cst_90 = arith.constant dense<0.000000e+00> : vector<2x16xf32>
    %273 = vector.multi_reduction <add>, %272, %cst_90 [2] : vector<2x16x16xf32> to vector<2x16xf32>
    %274 = vector.shape_cast %273 : vector<2x16xf32> to vector<2x16x1xf32>
    %275 = tpu.reciprocal %274 {approx = true} : vector<2x16x1xf32> -> vector<2x16x1xf32>
    %276 = vector.broadcast %275 : vector<2x16x1xf32> to vector<2x16x16xf32>
    %277 = arith.mulf %272, %276 : vector<2x16x16xf32>
    %278 = arith.mulf %277, %217 : vector<2x16x16xf32>
    %279 = arith.truncf %278 : vector<2x16x16xf32> to vector<2x16x16xbf16>
    "tpu.trace_start"() <{level = 10 : i32, message = "bqk,bkd->bqd"}> : () -> ()
    %cst_91 = arith.constant dense<0.000000e+00> : vector<2x16x64xf32>
    %280 = tpu.matmul %279, %263, %cst_91 {dimension_numbers = #tpu.dot_dimension_numbers<[2], [1], [1], [2], [0, 0, 0, 1, 1, 2], [0], [0]>} : vector<2x16x16xbf16>, vector<2x16x64xbf16>, vector<2x16x64xf32> -> vector<2x16x64xf32>
    "tpu.trace_stop"() : () -> ()
    %281 = vector.extract_strided_slice %218 {offsets = [0, 0, 192], sizes = [2, 16, 64], strides = [1, 1, 1]} : vector<2x16x512xbf16> to vector<2x16x64xbf16>
    %282 = vector.extract_strided_slice %219 {offsets = [0, 0, 192], sizes = [2, 16, 64], strides = [1, 1, 1]} : vector<2x16x512xbf16> to vector<2x16x64xbf16>
    %283 = vector.extract_strided_slice %220 {offsets = [0, 0, 192], sizes = [2, 16, 64], strides = [1, 1, 1]} : vector<2x16x512xbf16> to vector<2x16x64xbf16>
    "tpu.trace_start"() <{level = 10 : i32, message = "bqd,bkd->bqk"}> : () -> ()
    %cst_92 = arith.constant dense<0.000000e+00> : vector<2x16x16xf32>
    %284 = tpu.matmul %281, %282, %cst_92 {dimension_numbers = #tpu.dot_dimension_numbers<[2], [2], [1], [1], [0, 0, 0, 1, 1, 1], [0], [0]>} : vector<2x16x64xbf16>, vector<2x16x64xbf16>, vector<2x16x16xf32> -> vector<2x16x16xf32>
    "tpu.trace_stop"() : () -> ()
    %cst_93 = arith.constant 1.250000e-01 : f32
    %285 = vector.broadcast %cst_93 : f32 to vector<2x16x16xf32>
    %286 = arith.mulf %284, %285 : vector<2x16x16xf32>
    %287 = arith.addf %286, %216 : vector<2x16x16xf32>
    %cst_94 = arith.constant dense<0xFF800000> : vector<2x16xf32>
    %288 = vector.multi_reduction <maximumf>, %287, %cst_94 [2] : vector<2x16x16xf32> to vector<2x16xf32>
    %289 = vector.shape_cast %288 : vector<2x16xf32> to vector<2x16x1xf32>
    %290 = vector.broadcast %289 : vector<2x16x1xf32> to vector<2x16x16xf32>
    %291 = arith.subf %287, %290 : vector<2x16x16xf32>
    %292 = math.exp %291 : vector<2x16x16xf32>
    %cst_95 = arith.constant dense<0.000000e+00> : vector<2x16xf32>
    %293 = vector.multi_reduction <add>, %292, %cst_95 [2] : vector<2x16x16xf32> to vector<2x16xf32>
    %294 = vector.shape_cast %293 : vector<2x16xf32> to vector<2x16x1xf32>
    %295 = tpu.reciprocal %294 {approx = true} : vector<2x16x1xf32> -> vector<2x16x1xf32>
    %296 = vector.broadcast %295 : vector<2x16x1xf32> to vector<2x16x16xf32>
    %297 = arith.mulf %292, %296 : vector<2x16x16xf32>
    %298 = arith.mulf %297, %217 : vector<2x16x16xf32>
    %299 = arith.truncf %298 : vector<2x16x16xf32> to vector<2x16x16xbf16>
    "tpu.trace_start"() <{level = 10 : i32, message = "bqk,bkd->bqd"}> : () -> ()
    %cst_96 = arith.constant dense<0.000000e+00> : vector<2x16x64xf32>
    %300 = tpu.matmul %299, %283, %cst_96 {dimension_numbers = #tpu.dot_dimension_numbers<[2], [1], [1], [2], [0, 0, 0, 1, 1, 2], [0], [0]>} : vector<2x16x16xbf16>, vector<2x16x64xbf16>, vector<2x16x64xf32> -> vector<2x16x64xf32>
    "tpu.trace_stop"() : () -> ()
    %301 = vector.extract_strided_slice %218 {offsets = [0, 0, 256], sizes = [2, 16, 64], strides = [1, 1, 1]} : vector<2x16x512xbf16> to vector<2x16x64xbf16>
    %302 = vector.extract_strided_slice %219 {offsets = [0, 0, 256], sizes = [2, 16, 64], strides = [1, 1, 1]} : vector<2x16x512xbf16> to vector<2x16x64xbf16>
    %303 = vector.extract_strided_slice %220 {offsets = [0, 0, 256], sizes = [2, 16, 64], strides = [1, 1, 1]} : vector<2x16x512xbf16> to vector<2x16x64xbf16>
    "tpu.trace_start"() <{level = 10 : i32, message = "bqd,bkd->bqk"}> : () -> ()
    %cst_97 = arith.constant dense<0.000000e+00> : vector<2x16x16xf32>
    %304 = tpu.matmul %301, %302, %cst_97 {dimension_numbers = #tpu.dot_dimension_numbers<[2], [2], [1], [1], [0, 0, 0, 1, 1, 1], [0], [0]>} : vector<2x16x64xbf16>, vector<2x16x64xbf16>, vector<2x16x16xf32> -> vector<2x16x16xf32>
    "tpu.trace_stop"() : () -> ()
    %cst_98 = arith.constant 1.250000e-01 : f32
    %305 = vector.broadcast %cst_98 : f32 to vector<2x16x16xf32>
    %306 = arith.mulf %304, %305 : vector<2x16x16xf32>
    %307 = arith.addf %306, %216 : vector<2x16x16xf32>
    %cst_99 = arith.constant dense<0xFF800000> : vector<2x16xf32>
    %308 = vector.multi_reduction <maximumf>, %307, %cst_99 [2] : vector<2x16x16xf32> to vector<2x16xf32>
    %309 = vector.shape_cast %308 : vector<2x16xf32> to vector<2x16x1xf32>
    %310 = vector.broadcast %309 : vector<2x16x1xf32> to vector<2x16x16xf32>
    %311 = arith.subf %307, %310 : vector<2x16x16xf32>
    %312 = math.exp %311 : vector<2x16x16xf32>
    %cst_100 = arith.constant dense<0.000000e+00> : vector<2x16xf32>
    %313 = vector.multi_reduction <add>, %312, %cst_100 [2] : vector<2x16x16xf32> to vector<2x16xf32>
    %314 = vector.shape_cast %313 : vector<2x16xf32> to vector<2x16x1xf32>
    %315 = tpu.reciprocal %314 {approx = true} : vector<2x16x1xf32> -> vector<2x16x1xf32>
    %316 = vector.broadcast %315 : vector<2x16x1xf32> to vector<2x16x16xf32>
    %317 = arith.mulf %312, %316 : vector<2x16x16xf32>
    %318 = arith.mulf %317, %217 : vector<2x16x16xf32>
    %319 = arith.truncf %318 : vector<2x16x16xf32> to vector<2x16x16xbf16>
    "tpu.trace_start"() <{level = 10 : i32, message = "bqk,bkd->bqd"}> : () -> ()
    %cst_101 = arith.constant dense<0.000000e+00> : vector<2x16x64xf32>
    %320 = tpu.matmul %319, %303, %cst_101 {dimension_numbers = #tpu.dot_dimension_numbers<[2], [1], [1], [2], [0, 0, 0, 1, 1, 2], [0], [0]>} : vector<2x16x16xbf16>, vector<2x16x64xbf16>, vector<2x16x64xf32> -> vector<2x16x64xf32>
    "tpu.trace_stop"() : () -> ()
    %321 = vector.extract_strided_slice %218 {offsets = [0, 0, 320], sizes = [2, 16, 64], strides = [1, 1, 1]} : vector<2x16x512xbf16> to vector<2x16x64xbf16>
    %322 = vector.extract_strided_slice %219 {offsets = [0, 0, 320], sizes = [2, 16, 64], strides = [1, 1, 1]} : vector<2x16x512xbf16> to vector<2x16x64xbf16>
    %323 = vector.extract_strided_slice %220 {offsets = [0, 0, 320], sizes = [2, 16, 64], strides = [1, 1, 1]} : vector<2x16x512xbf16> to vector<2x16x64xbf16>
    "tpu.trace_start"() <{level = 10 : i32, message = "bqd,bkd->bqk"}> : () -> ()
    %cst_102 = arith.constant dense<0.000000e+00> : vector<2x16x16xf32>
    %324 = tpu.matmul %321, %322, %cst_102 {dimension_numbers = #tpu.dot_dimension_numbers<[2], [2], [1], [1], [0, 0, 0, 1, 1, 1], [0], [0]>} : vector<2x16x64xbf16>, vector<2x16x64xbf16>, vector<2x16x16xf32> -> vector<2x16x16xf32>
    "tpu.trace_stop"() : () -> ()
    %cst_103 = arith.constant 1.250000e-01 : f32
    %325 = vector.broadcast %cst_103 : f32 to vector<2x16x16xf32>
    %326 = arith.mulf %324, %325 : vector<2x16x16xf32>
    %327 = arith.addf %326, %216 : vector<2x16x16xf32>
    %cst_104 = arith.constant dense<0xFF800000> : vector<2x16xf32>
    %328 = vector.multi_reduction <maximumf>, %327, %cst_104 [2] : vector<2x16x16xf32> to vector<2x16xf32>
    %329 = vector.shape_cast %328 : vector<2x16xf32> to vector<2x16x1xf32>
    %330 = vector.broadcast %329 : vector<2x16x1xf32> to vector<2x16x16xf32>
    %331 = arith.subf %327, %330 : vector<2x16x16xf32>
    %332 = math.exp %331 : vector<2x16x16xf32>
    %cst_105 = arith.constant dense<0.000000e+00> : vector<2x16xf32>
    %333 = vector.multi_reduction <add>, %332, %cst_105 [2] : vector<2x16x16xf32> to vector<2x16xf32>
    %334 = vector.shape_cast %333 : vector<2x16xf32> to vector<2x16x1xf32>
    %335 = tpu.reciprocal %334 {approx = true} : vector<2x16x1xf32> -> vector<2x16x1xf32>
    %336 = vector.broadcast %335 : vector<2x16x1xf32> to vector<2x16x16xf32>
    %337 = arith.mulf %332, %336 : vector<2x16x16xf32>
    %338 = arith.mulf %337, %217 : vector<2x16x16xf32>
    %339 = arith.truncf %338 : vector<2x16x16xf32> to vector<2x16x16xbf16>
    "tpu.trace_start"() <{level = 10 : i32, message = "bqk,bkd->bqd"}> : () -> ()
    %cst_106 = arith.constant dense<0.000000e+00> : vector<2x16x64xf32>
    %340 = tpu.matmul %339, %323, %cst_106 {dimension_numbers = #tpu.dot_dimension_numbers<[2], [1], [1], [2], [0, 0, 0, 1, 1, 2], [0], [0]>} : vector<2x16x16xbf16>, vector<2x16x64xbf16>, vector<2x16x64xf32> -> vector<2x16x64xf32>
    "tpu.trace_stop"() : () -> ()
    %341 = vector.extract_strided_slice %218 {offsets = [0, 0, 384], sizes = [2, 16, 64], strides = [1, 1, 1]} : vector<2x16x512xbf16> to vector<2x16x64xbf16>
    %342 = vector.extract_strided_slice %219 {offsets = [0, 0, 384], sizes = [2, 16, 64], strides = [1, 1, 1]} : vector<2x16x512xbf16> to vector<2x16x64xbf16>
    %343 = vector.extract_strided_slice %220 {offsets = [0, 0, 384], sizes = [2, 16, 64], strides = [1, 1, 1]} : vector<2x16x512xbf16> to vector<2x16x64xbf16>
    "tpu.trace_start"() <{level = 10 : i32, message = "bqd,bkd->bqk"}> : () -> ()
    %cst_107 = arith.constant dense<0.000000e+00> : vector<2x16x16xf32>
    %344 = tpu.matmul %341, %342, %cst_107 {dimension_numbers = #tpu.dot_dimension_numbers<[2], [2], [1], [1], [0, 0, 0, 1, 1, 1], [0], [0]>} : vector<2x16x64xbf16>, vector<2x16x64xbf16>, vector<2x16x16xf32> -> vector<2x16x16xf32>
    "tpu.trace_stop"() : () -> ()
    %cst_108 = arith.constant 1.250000e-01 : f32
    %345 = vector.broadcast %cst_108 : f32 to vector<2x16x16xf32>
    %346 = arith.mulf %344, %345 : vector<2x16x16xf32>
    %347 = arith.addf %346, %216 : vector<2x16x16xf32>
    %cst_109 = arith.constant dense<0xFF800000> : vector<2x16xf32>
    %348 = vector.multi_reduction <maximumf>, %347, %cst_109 [2] : vector<2x16x16xf32> to vector<2x16xf32>
    %349 = vector.shape_cast %348 : vector<2x16xf32> to vector<2x16x1xf32>
    %350 = vector.broadcast %349 : vector<2x16x1xf32> to vector<2x16x16xf32>
    %351 = arith.subf %347, %350 : vector<2x16x16xf32>
    %352 = math.exp %351 : vector<2x16x16xf32>
    %cst_110 = arith.constant dense<0.000000e+00> : vector<2x16xf32>
    %353 = vector.multi_reduction <add>, %352, %cst_110 [2] : vector<2x16x16xf32> to vector<2x16xf32>
    %354 = vector.shape_cast %353 : vector<2x16xf32> to vector<2x16x1xf32>
    %355 = tpu.reciprocal %354 {approx = true} : vector<2x16x1xf32> -> vector<2x16x1xf32>
    %356 = vector.broadcast %355 : vector<2x16x1xf32> to vector<2x16x16xf32>
    %357 = arith.mulf %352, %356 : vector<2x16x16xf32>
    %358 = arith.mulf %357, %217 : vector<2x16x16xf32>
    %359 = arith.truncf %358 : vector<2x16x16xf32> to vector<2x16x16xbf16>
    "tpu.trace_start"() <{level = 10 : i32, message = "bqk,bkd->bqd"}> : () -> ()
    %cst_111 = arith.constant dense<0.000000e+00> : vector<2x16x64xf32>
    %360 = tpu.matmul %359, %343, %cst_111 {dimension_numbers = #tpu.dot_dimension_numbers<[2], [1], [1], [2], [0, 0, 0, 1, 1, 2], [0], [0]>} : vector<2x16x16xbf16>, vector<2x16x64xbf16>, vector<2x16x64xf32> -> vector<2x16x64xf32>
    "tpu.trace_stop"() : () -> ()
    %361 = vector.extract_strided_slice %218 {offsets = [0, 0, 448], sizes = [2, 16, 64], strides = [1, 1, 1]} : vector<2x16x512xbf16> to vector<2x16x64xbf16>
    %362 = vector.extract_strided_slice %219 {offsets = [0, 0, 448], sizes = [2, 16, 64], strides = [1, 1, 1]} : vector<2x16x512xbf16> to vector<2x16x64xbf16>
    %363 = vector.extract_strided_slice %220 {offsets = [0, 0, 448], sizes = [2, 16, 64], strides = [1, 1, 1]} : vector<2x16x512xbf16> to vector<2x16x64xbf16>
    "tpu.trace_start"() <{level = 10 : i32, message = "bqd,bkd->bqk"}> : () -> ()
    %cst_112 = arith.constant dense<0.000000e+00> : vector<2x16x16xf32>
    %364 = tpu.matmul %361, %362, %cst_112 {dimension_numbers = #tpu.dot_dimension_numbers<[2], [2], [1], [1], [0, 0, 0, 1, 1, 1], [0], [0]>} : vector<2x16x64xbf16>, vector<2x16x64xbf16>, vector<2x16x16xf32> -> vector<2x16x16xf32>
    "tpu.trace_stop"() : () -> ()
    %cst_113 = arith.constant 1.250000e-01 : f32
    %365 = vector.broadcast %cst_113 : f32 to vector<2x16x16xf32>
    %366 = arith.mulf %364, %365 : vector<2x16x16xf32>
    %367 = arith.addf %366, %216 : vector<2x16x16xf32>
    %cst_114 = arith.constant dense<0xFF800000> : vector<2x16xf32>
    %368 = vector.multi_reduction <maximumf>, %367, %cst_114 [2] : vector<2x16x16xf32> to vector<2x16xf32>
    %369 = vector.shape_cast %368 : vector<2x16xf32> to vector<2x16x1xf32>
    %370 = vector.broadcast %369 : vector<2x16x1xf32> to vector<2x16x16xf32>
    %371 = arith.subf %367, %370 : vector<2x16x16xf32>
    %372 = math.exp %371 : vector<2x16x16xf32>
    %cst_115 = arith.constant dense<0.000000e+00> : vector<2x16xf32>
    %373 = vector.multi_reduction <add>, %372, %cst_115 [2] : vector<2x16x16xf32> to vector<2x16xf32>
    %374 = vector.shape_cast %373 : vector<2x16xf32> to vector<2x16x1xf32>
    %375 = tpu.reciprocal %374 {approx = true} : vector<2x16x1xf32> -> vector<2x16x1xf32>
    %376 = vector.broadcast %375 : vector<2x16x1xf32> to vector<2x16x16xf32>
    %377 = arith.mulf %372, %376 : vector<2x16x16xf32>
    %378 = arith.mulf %377, %217 : vector<2x16x16xf32>
    %379 = arith.truncf %378 : vector<2x16x16xf32> to vector<2x16x16xbf16>
    "tpu.trace_start"() <{level = 10 : i32, message = "bqk,bkd->bqd"}> : () -> ()
    %cst_116 = arith.constant dense<0.000000e+00> : vector<2x16x64xf32>
    %380 = tpu.matmul %379, %363, %cst_116 {dimension_numbers = #tpu.dot_dimension_numbers<[2], [1], [1], [2], [0, 0, 0, 1, 1, 2], [0], [0]>} : vector<2x16x16xbf16>, vector<2x16x64xbf16>, vector<2x16x64xf32> -> vector<2x16x64xf32>
    "tpu.trace_stop"() : () -> ()
    %381 = tpu.concatenate %240, %260, %280, %300, %320, %340, %360, %380 in 2 : vector<2x16x64xf32>, vector<2x16x64xf32>, vector<2x16x64xf32>, vector<2x16x64xf32>, vector<2x16x64xf32>, vector<2x16x64xf32>, vector<2x16x64xf32>, vector<2x16x64xf32> -> vector<2x16x512xf32>
    %382 = vector.shape_cast %381 : vector<2x16x512xf32> to vector<32x512xf32>
    %383 = arith.truncf %382 : vector<32x512xf32> to vector<32x512xbf16>
    %c0_117 = arith.constant 0 : index
    %c0_118 = arith.constant 0 : index
    %c0_119 = arith.constant 0 : index
    %384 = vector.load %arg11[%c0_117, %c0_118, %c0_119] : memref<1x512x256xbf16, #tpu.memory_space<vmem>>, vector<1x512x256xbf16>
    %385 = vector.shape_cast %384 : vector<1x512x256xbf16> to vector<512x256xbf16>
    %cst_120 = arith.constant dense<0.000000e+00> : vector<32x256xf32>
    %386 = tpu.matmul %383, %385, %cst_120 {dimension_numbers = #tpu.dot_dimension_numbers<[1], [0], [0], [1], [0, 0, 1, 1], [], []>} : vector<32x512xbf16>, vector<512x256xbf16>, vector<32x256xf32> -> vector<32x256xf32>
    %387 = arith.addf %386, %201 : vector<32x256xf32>
    %cst_121 = arith.constant dense<0.000000e+00> : vector<32xf32>
    %388 = vector.multi_reduction <add>, %387, %cst_121 [1] : vector<32x256xf32> to vector<32xf32>
    %389 = vector.shape_cast %388 : vector<32xf32> to vector<32x1xf32>
    %cst_122 = arith.constant 2.560000e+02 : f32
    %390 = vector.broadcast %cst_122 : f32 to vector<32x1xf32>
    %391 = arith.divf %389, %390 : vector<32x1xf32>
    %392 = vector.broadcast %391 : vector<32x1xf32> to vector<32x256xf32>
    %393 = arith.subf %387, %392 : vector<32x256xf32>
    %394 = arith.mulf %393, %393 : vector<32x256xf32>
    %cst_123 = arith.constant dense<0.000000e+00> : vector<32xf32>
    %395 = vector.multi_reduction <add>, %394, %cst_123 [1] : vector<32x256xf32> to vector<32xf32>
    %396 = vector.shape_cast %395 : vector<32xf32> to vector<32x1xf32>
    %cst_124 = arith.constant 2.560000e+02 : f32
    %397 = vector.broadcast %cst_124 : f32 to vector<32x1xf32>
    %398 = arith.divf %396, %397 : vector<32x1xf32>
    %cst_125 = arith.constant 9.99999974E-6 : f32
    %399 = vector.broadcast %cst_125 : f32 to vector<32x1xf32>
    %400 = arith.addf %398, %399 : vector<32x1xf32>
    %401 = math.rsqrt %400 : vector<32x1xf32>
    %402 = vector.broadcast %401 : vector<32x1xf32> to vector<32x256xf32>
    %403 = arith.mulf %393, %402 : vector<32x256xf32>
    %404 = arith.truncf %403 : vector<32x256xf32> to vector<32x256xbf16>
    %c0_126 = arith.constant 0 : index
    %c0_127 = arith.constant 0 : index
    %c0_128 = arith.constant 0 : index
    %405 = vector.load %arg12[%c0_126, %c0_127, %c0_128] : memref<1x256x256xbf16, #tpu.memory_space<vmem>>, vector<1x256x256xbf16>
    %406 = vector.shape_cast %405 : vector<1x256x256xbf16> to vector<256x256xbf16>
    %cst_129 = arith.constant dense<0.000000e+00> : vector<32x256xf32>
    %407 = tpu.matmul %404, %406, %cst_129 {dimension_numbers = #tpu.dot_dimension_numbers<[1], [0], [0], [1], [0, 0, 1, 1], [], []>} : vector<32x256xbf16>, vector<256x256xbf16>, vector<32x256xf32> -> vector<32x256xf32>
    %cst_130 = arith.constant 0.000000e+00 : f32
    %408 = vector.broadcast %cst_130 : f32 to vector<32x256xf32>
    %409 = arith.maximumf %407, %408 : vector<32x256xf32>
    %410 = arith.truncf %409 : vector<32x256xf32> to vector<32x256xbf16>
    %c0_131 = arith.constant 0 : index
    %c0_132 = arith.constant 0 : index
    %c0_133 = arith.constant 0 : index
    %411 = vector.load %arg13[%c0_131, %c0_132, %c0_133] : memref<1x256x256xbf16, #tpu.memory_space<vmem>>, vector<1x256x256xbf16>
    %412 = vector.shape_cast %411 : vector<1x256x256xbf16> to vector<256x256xbf16>
    %cst_134 = arith.constant dense<0.000000e+00> : vector<32x256xf32>
    %413 = tpu.matmul %410, %412, %cst_134 {dimension_numbers = #tpu.dot_dimension_numbers<[1], [0], [0], [1], [0, 0, 1, 1], [], []>} : vector<32x256xbf16>, vector<256x256xbf16>, vector<32x256xf32> -> vector<32x256xf32>
    %414 = arith.addf %413, %403 : vector<32x256xf32>
    %cst_135 = arith.constant dense<0.000000e+00> : vector<32xf32>
    %415 = vector.multi_reduction <add>, %414, %cst_135 [1] : vector<32x256xf32> to vector<32xf32>
    %416 = vector.shape_cast %415 : vector<32xf32> to vector<32x1xf32>
    %cst_136 = arith.constant 2.560000e+02 : f32
    %417 = vector.broadcast %cst_136 : f32 to vector<32x1xf32>
    %418 = arith.divf %416, %417 : vector<32x1xf32>
    %419 = vector.broadcast %418 : vector<32x1xf32> to vector<32x256xf32>
    %420 = arith.subf %414, %419 : vector<32x256xf32>
    %421 = arith.mulf %420, %420 : vector<32x256xf32>
    %cst_137 = arith.constant dense<0.000000e+00> : vector<32xf32>
    %422 = vector.multi_reduction <add>, %421, %cst_137 [1] : vector<32x256xf32> to vector<32xf32>
    %423 = vector.shape_cast %422 : vector<32xf32> to vector<32x1xf32>
    %cst_138 = arith.constant 2.560000e+02 : f32
    %424 = vector.broadcast %cst_138 : f32 to vector<32x1xf32>
    %425 = arith.divf %423, %424 : vector<32x1xf32>
    %cst_139 = arith.constant 9.99999974E-6 : f32
    %426 = vector.broadcast %cst_139 : f32 to vector<32x1xf32>
    %427 = arith.addf %425, %426 : vector<32x1xf32>
    %428 = math.rsqrt %427 : vector<32x1xf32>
    %429 = vector.broadcast %428 : vector<32x1xf32> to vector<32x256xf32>
    %430 = arith.mulf %420, %429 : vector<32x256xf32>
    %c0_140 = arith.constant 0 : index
    %c0_141 = arith.constant 0 : index
    %431 = vector.load %arg15[%c0_140, %c0_141] : memref<32x256xf32, #tpu.memory_space<vmem>>, vector<32x256xf32>
    tpu.vector_store %arg15[%c0_140, %c0_141], %430 {strides = array<i32>} : memref<32x256xf32, #tpu.memory_space<vmem>>, vector<32x256xf32>,
    %c5_i32 = arith.constant 5 : i32
    %432 = arith.cmpi eq, %arg0, %c5_i32 : i32
    %433 = arith.extui %432 : i1 to i32
    %c0_i32_142 = arith.constant 0 : i32
    %434 = arith.cmpi ne, %433, %c0_i32_142 : i32
    scf.if %434 {
      %435 = vector.shape_cast %430 : vector<32x256xf32> to vector<2x16x256xf32>
      %c0_143 = arith.constant 0 : index
      %c0_144 = arith.constant 0 : index
      %c0_145 = arith.constant 0 : index
      %436 = vector.load %arg14[%c0_143, %c0_144, %c0_145] : memref<2x16x256xf32, #tpu.memory_space<vmem>>, vector<2x16x256xf32>
      tpu.vector_store %arg14[%c0_143, %c0_144, %c0_145], %435 {strides = array<i32>} : memref<2x16x256xf32, #tpu.memory_space<vmem>>, vector<2x16x256xf32>,
    } else {
    }
    return
  }
  func.func @transform_0(%arg0: i32) -> (i32, i32, i32) {
    %c0_i32 = arith.constant 0 : i32
    %c0_i32_0 = arith.constant 0 : i32
    %c0_i32_1 = arith.constant 0 : i32
    %c0_i32_2 = arith.constant 0 : i32
    return %c0_i32, %c0_i32_0, %c0_i32_1 : i32, i32, i32
  }
  func.func @transform_1(%arg0: i32) -> (i32, i32, i32) {
    %c0_i32 = arith.constant 0 : i32
    %c0_i32_0 = arith.constant 0 : i32
    %c0_i32_1 = arith.constant 0 : i32
    %c0_i32_2 = arith.constant 0 : i32
    return %c0_i32, %c0_i32_0, %c0_i32_1 : i32, i32, i32
  }
  func.func @transform_2(%arg0: i32) -> (i32, i32, i32) {
    %c0_i32 = arith.constant 0 : i32
    %c0_i32_0 = arith.constant 0 : i32
    %c0_i32_1 = arith.constant 0 : i32
    %c0_i32_2 = arith.constant 0 : i32
    return %c0_i32, %c0_i32_0, %c0_i32_1 : i32, i32, i32
  }
  func.func @transform_3(%arg0: i32) -> (i32, i32, i32) {
    %c0_i32 = arith.constant 0 : i32
    %c0_i32_0 = arith.constant 0 : i32
    %c0_i32_1 = arith.constant 0 : i32
    %c0_i32_2 = arith.constant 0 : i32
    return %c0_i32, %c0_i32_0, %c0_i32_1 : i32, i32, i32
  }
  func.func @transform_4(%arg0: i32) -> (i32, i32, i32) {
    %c0_i32 = arith.constant 0 : i32
    %c0_i32_0 = arith.constant 0 : i32
    %c0_i32_1 = arith.constant 0 : i32
    %c0_i32_2 = arith.constant 0 : i32
    return %c0_i32, %c0_i32_0, %c0_i32_1 : i32, i32, i32
  }
  func.func @transform_5(%arg0: i32) -> (i32, i32, i32) {
    %c0_i32 = arith.constant 0 : i32
    %c0_i32_0 = arith.constant 0 : i32
    %c0_i32_1 = arith.constant 0 : i32
    %c0_i32_2 = arith.constant 0 : i32
    return %c0_i32, %c0_i32_0, %c0_i32_1 : i32, i32, i32
  }
  func.func @transform_6(%arg0: i32) -> (i32, i32, i32) {
    %c0_i32 = arith.constant 0 : i32
    %c0_i32_0 = arith.constant 0 : i32
    %c0_i32_1 = arith.constant 0 : i32
    return %arg0, %c0_i32, %c0_i32_0 : i32, i32, i32
  }
  func.func @transform_7(%arg0: i32) -> (i32, i32, i32) {
    %c0_i32 = arith.constant 0 : i32
    %c0_i32_0 = arith.constant 0 : i32
    %c0_i32_1 = arith.constant 0 : i32
    return %arg0, %c0_i32, %c0_i32_0 : i32, i32, i32
  }
  func.func @transform_8(%arg0: i32) -> (i32, i32, i32) {
    %c0_i32 = arith.constant 0 : i32
    %c0_i32_0 = arith.constant 0 : i32
    %c0_i32_1 = arith.constant 0 : i32
    return %arg0, %c0_i32, %c0_i32_0 : i32, i32, i32
  }
  func.func @transform_9(%arg0: i32) -> (i32, i32, i32) {
    %c0_i32 = arith.constant 0 : i32
    %c0_i32_0 = arith.constant 0 : i32
    %c0_i32_1 = arith.constant 0 : i32
    return %arg0, %c0_i32, %c0_i32_0 : i32, i32, i32
  }
  func.func @transform_10(%arg0: i32) -> (i32, i32, i32) {
    %c0_i32 = arith.constant 0 : i32
    %c0_i32_0 = arith.constant 0 : i32
    %c0_i32_1 = arith.constant 0 : i32
    return %arg0, %c0_i32, %c0_i32_0 : i32, i32, i32
  }
  func.func @transform_11(%arg0: i32) -> (i32, i32, i32) {
    %c0_i32 = arith.constant 0 : i32
    %c0_i32_0 = arith.constant 0 : i32
    %c0_i32_1 = arith.constant 0 : i32
    return %arg0, %c0_i32, %c0_i32_0 : i32, i32, i32
  }
  func.func @transform_12(%arg0: i32) -> (i32, i32, i32) {
    %c0_i32 = arith.constant 0 : i32
    %c0_i32_0 = arith.constant 0 : i32
    %c0_i32_1 = arith.constant 0 : i32
    return %arg0, %c0_i32, %c0_i32_0 : i32, i32, i32
  }
  func.func @transform_13(%arg0: i32) -> (i32, i32, i32) {
    %c0_i32 = arith.constant 0 : i32
    %c0_i32_0 = arith.constant 0 : i32
    %c0_i32_1 = arith.constant 0 : i32
    %c0_i32_2 = arith.constant 0 : i32
    return %c0_i32, %c0_i32_0, %c0_i32_1 : i32, i32, i32
  }
}

</mosaic_0001>

<bundles_post_ra>
// kernel: decoder_forward.1
= control target key start
LH: loop header
LB: loop body
LE: loop exit
PB: predicated region body
PF: predicated region fallthrough
CT: control target
= control target key end

     0   :  { %s15029_s0 = inlined_call_operand.vmem [shape: f32[2,16,256], index: 0, kind: input, shape index: {}]   ;;  %s15030_s1 = inlined_call_operand.vmem [shape: bf16[2,16,256], index: 1, kind: input, shape index: {}]   ;;  %s15031_s2 = inlined_call_operand.vmem [shape: f32[2,16,16], index: 2, kind: input, shape index: {}]   ;;  %s15032_s3 = inlined_call_operand.vmem [shape: f32[2,16,16], index: 3, kind: input, shape index: {}]   ;;  %s15033_s4 = inlined_call_operand.vmem [shape: f32[2,16,16], index: 4, kind: input, shape index: {}]   ;;  %s15034_s5 = inlined_call_operand.vmem [shape: f32[2,16,16], index: 5, kind: input, shape index: {}]   ;;  %s15035_s6 = inlined_call_operand.hbm [shape: bf16[6,256,1536], index: 6, kind: input, shape index: {}]   ;;  %s15036_s7 = inlined_call_operand.hbm [shape: bf16[6,512,256], index: 7, kind: input, shape index: {}]   ;;  %s15037_s8 = inlined_call_operand.hbm [shape: bf16[6,256,512], index: 8, kind: input, shape index: {}]   ;;  %s15038_s9 = inlined_call_operand.hbm [shape: bf16[6,256,1024], index: 9, kind: input, shape index: {}]   ;;  %s15039_s10 = inlined_call_operand.hbm [shape: bf16[6,512,256], index: 10, kind: input, shape index: {}]   ;;  %s15040_s11 = inlined_call_operand.hbm [shape: bf16[6,256,256], index: 11, kind: input, shape index: {}]   ;;  %s15041_s12 = inlined_call_operand.hbm [shape: bf16[6,256,256], index: 12, kind: input, shape index: {}]   ;;  %s15042_s13 = inlined_call_operand.hbm [shape: f32[2,16,256], index: 13, kind: output, shape index: {}]  }
   0x1   :  { %15064 = sst [smem:[#allocation25_spill]] %s15029_s0 }
   0x2   :  { %15065 = sst [smem:[#allocation26_spill]] %s15030_s1 }
   0x3   :  { %15066 = sst [smem:[#allocation27_spill]] %s15031_s2 }
   0x4   :  { %15067 = sst [smem:[#allocation28_spill]] %s15032_s3 }
   0x5   :  { %15068 = sst [smem:[#allocation29_spill]] %s15033_s4 }
   0x6   :  { %15069 = sst [smem:[#allocation30_spill]] %s15034_s5 }
   0x7   :  { %15070 = sst [smem:[#allocation31_spill]] %s15036_s7 }
   0x8   :  { %15071 = sst [smem:[#allocation32_spill]] %s15038_s9 }
   0x9   :  { %15072 = sst [smem:[#allocation33_spill]] %s15040_s11 }
   0xa   :  { %15073 = sst [smem:[#allocation34_spill]] %s15042_s13 }
   0xb   :  { %18 = vsyncpa [#allocation4], 0 }
   0xc   :  { %20 = vsyncpa [#allocation4 + $0x1], 0 }
   0xd   :  { %21 = vsyncpa [#allocation7], 0 }
   0xe   :  { %23 = vsyncpa [#allocation7 + $0x1], 0 }
   0xf   :  { %24 = vsyncpa [#allocation10], 0 }
  0x10   :  { %26 = vsyncpa [#allocation10 + $0x1], 0 }
  0x11   :  { %27 = vsyncpa [#allocation13], 0 }
  0x12   :  { %29 = vsyncpa [#allocation13 + $0x1], 0 }
  0x13   :  { %30 = vsyncpa [#allocation5], 0  ;;  %s12522_s25 = smov 0   ;;  %s12524_s26 = smov 0  }
  0x14   :  { %s12526_s27 = smov 0   ;;  %s12528_s28 = smov 0  }
  0x15 LB: > { %15074 = sst [smem:[#allocation21_spill]] %s12425_s27  ;;  %s12541_s29 = sadd.s32 4294967295, %s12429_s28   ;;  %s12429_s28 = sphi %s12528_s28, %s15112_s28   ;;  %s12425_s27 = sphi %s12526_s27, %s15114_s27   ;;  %s12421_s26 = sphi %s12524_s26, %s15116_s26   ;;  %s12417_s25 = sphi %s12522_s25, %s15115_s25  }
  0x16   : > { %15075 = sst [smem:[#allocation22_spill]] %s12541_s29  ;;  %s12544_s30 = sadd.s32 1, %s12429_s28  }
  0x17   : > { %15076 = sst [smem:[#allocation23_spill]] %s12544_s30  ;;  %s166_s14 = ssub.s32 %s12429_s28, %s12544_s30 }
  0x18   : > { %s169_s15 = sadd.s32 1, %s12425_s27  ;;  %p167_p0 = scmp.eq.s32.totalorder %s166_s14, 0 }
  0x19   : > { %p176_p1 = scmp.ne.s32.totalorder %s12425_s27, %s12421_s26  ;;  %p177_p2 = scmp.eq.s32.totalorder %s12429_s28, 0 }
  0x1a   : > { %p182_p3 = scmp.ne.s32.totalorder %s12421_s26, %s12417_s25  ;;  %p183_p5 = scmp.eq.s32.totalorder %s12541_s29, 0 }
  0x1b   : > { %s12554_s16 = scalar_select %p167_p0, %s12425_s27, %s169_s15  }
  0x1c   : > { %p178_p4 = por %p177_p2, %p176_p1  ;;  %p11048_p6 = scmp.lt.s32.totalorder %s12429_s28, 6 }
  0x1d   : > { %15077 = sst [smem:[#allocation24_spill]] %s12554_s16  ;;  %p12558_p7 = por %p183_p5, %p182_p3 }
  0x1e   : > { %s12563_s18 = sand.u32 1, %s12425_s27   ;;  %p12565_p8 = pnand %p11048_p6, %p178_p4 }
  0x1f   : > { %s15078_s17 = scalar_select %p12558_p7, 1, 0 }
  0x20   : > { %s12570_s20 = sand.u32 1, %s12429_s28   ;;  %s12573_s21 = sshll.u32 %s12563_s18, 9 }
  0x21   : > { %s12576_s22 = sshll.u32 %s12429_s28, 13  ;;  %s426_s23 = scalar_lea.vmem [#allocation6], %s12573_s21 }
  0x22   : > { %s433_s24 = sshll.u32 %s426_s23, 4  ;;  %s15080_s7 = sld [smem:[#allocation31_spill]]  ;;  %s12585_s24 = int_to_ptr.vmem [resolvable:$true] %s433_s24 }
  0x23   : > { %p12592_p10 = pneg %p12565_p8 }
  0x28   : > { %s12583_s15 = scalar_lea.hbm %s15080_s7, %s12576_s22  ;;  %s12164_s14 = scalar_lea.hbm %s15080_s7, 49152 }
  0x29   : > { %s12159_s27 = scalar_lea.hbm %s12583_s15, 8192  ;;  %p12165_p13 = scmp.lt.s32.totalorder %s12583_s15, %s15080_s7 }
  0x2a   : > { %p12160_p9 = scmp.ne.s32.totalorder %s12583_s15, %s12159_s27  ;;  %p12166_p0 = scmp.lt.s32.totalorder %s12164_s14, %s12159_s27 }
  0x2c   : > { %p12162_p11 = pnand %p12592_p10, %p12160_p9  ;;  %p12167_p1 = por %p12166_p0, %p12165_p13 }
  0x2e   : > { %p12163_p12 = pneg %p12162_p11 }
  0x30   : > { %p12168_p2 = pnand %p12167_p1, %p12163_p12 }
  0x32   : > { %12171 = shalt.err (!%p12168_p2)
}
  0x33   : > { %s12172_s16 = scalar_lea.vmem %s12585_s24, 8192  ;;  %s12431_s4 = smov [#allocation6]  }
  0x34   : > { %p12173_p3 = scmp.ne.s32.totalorder %s12585_s24, %s12172_s16  ;;  %s12177_s23 = sshll.u32 %s12431_s4, 4  ;;  %s12178_s23 = int_to_ptr.vmem [resolvable:$false] %s12177_s23 }
  0x35   : > { %s12179_s25 = scalar_lea.vmem %s12178_s23, 16384  ;;  %p12180_p6 = scmp.lt.s32.totalorder %s12585_s24, %s12178_s23 }
  0x36   : > { %p12175_p4 = pnand %p12173_p3, %p12592_p10  ;;  %p12181_p9 = scmp.lt.s32.totalorder %s12179_s25, %s12172_s16 }
  0x38   : > { %p12176_p5 = pneg %p12175_p4  ;;  %p12182_p11 = por %p12181_p9, %p12180_p6 }
  0x3a   : > { %p12183_p7 = pnand %p12182_p11, %p12176_p5 }
  0x3c   : > { %12186 = shalt.err (!%p12183_p7)
}
  0x3d   : > { %s15051_s5 = smov 128   ;;  %s15053_s13 = smov 8  }
  0x3e   : > { %s15082_s4 = scalar_lea.sflag [#allocation7], %s12570_s20  ;;  %p9830_p12 = scmp.ge.s32.totalorder %s12429_s28, 1 }
  0x3f   : > { %11032 = dma.hbm_to_vmem [thread:$0]  (!%p12565_p8), %s12583_s15, 8192, %s12585_s24, %s15082_s4, %s15051_s5, %s15051_s5, %s15053_s13  }
  0x40   : > { %p546_p7 = scmp.lt.s32.totalorder %s12429_s28, 7  ;;  %s9818_s27 = sshll.u32 %s12563_s18, 10 }
  0x41   : > { %s10489_s14 = sshll.u32 %s12429_s28, 14  ;;  %s468_s23 = scalar_lea.vmem [#allocation9], %s9818_s27 }
  0x42   : > { %p12622_p13 = pnand %p9830_p12, %p546_p7  ;;  %s475_s25 = sshll.u32 %s468_s23, 4  ;;  %s12632_s25 = int_to_ptr.vmem [resolvable:$true] %s475_s25 }
  0x43   : > { %s15084_s9 = sld [smem:[#allocation32_spill]]  ;;  %s15056_s24 = scalar_lea.sflag [#allocation10], %s12570_s20 }
  0x44   : > { %s15083_s16 = scalar_select %p12622_p13, 1, 0 }
  0x49   : > { %s12630_s3 = scalar_lea.hbm %s15084_s9, %s10489_s14  ;;  %s12192_s27 = scalar_lea.hbm %s15084_s9, 98304 }
  0x4a   : > { %s12187_s15 = scalar_lea.hbm %s12630_s3, 16384  ;;  %p12193_p3 = scmp.lt.s32.totalorder %s12630_s3, %s15084_s9 }
  0x4b   : > { %p12188_p0 = scmp.ne.s32.totalorder %s12630_s3, %s12187_s15  ;;  %p12194_p4 = scmp.lt.s32.totalorder %s12192_s27, %s12187_s15 }
  0x4d   : > { %p12190_p1 = pnand %p12188_p0, %p12592_p10  ;;  %p12195_p5 = por %p12194_p4, %p12193_p3 }
  0x4f   : > { %p12191_p2 = pneg %p12190_p1 }
  0x51   : > { %p12196_p6 = pnand %p12195_p5, %p12191_p2 }
  0x53   : > { %12199 = shalt.err (!%p12196_p6)
}
  0x54   : > { %s12200_s1 = scalar_lea.vmem %s12632_s25, 16384  ;;  %s12434_s7 = smov [#allocation9]  }
  0x55   : > { %p12201_p9 = scmp.ne.s32.totalorder %s12632_s25, %s12200_s1  ;;  %s12205_s5 = sshll.u32 %s12434_s7, 4  ;;  %s12206_s5 = int_to_ptr.vmem [resolvable:$false] %s12205_s5 }
  0x56   : > { %s12207_s14 = scalar_lea.vmem %s12206_s5, 32768  ;;  %p12208_p7 = scmp.lt.s32.totalorder %s12632_s25, %s12206_s5 }
  0x57   : > { %p12203_p11 = pnand %p12201_p9, %p12592_p10  ;;  %p12209_p0 = scmp.lt.s32.totalorder %s12207_s14, %s12200_s1 }
  0x59   : > { %p12204_p12 = pneg %p12203_p11  ;;  %p12210_p1 = por %p12209_p0, %p12208_p7 }
  0x5b   : > { %p12211_p13 = pnand %p12210_p1, %p12204_p12 }
  0x5d   : > { %12214 = shalt.err (!%p12211_p13)
}
  0x5e   : > { %s12435_s13 = smov 512   ;;  %s12436_s15 = smov 32  }
  0x5f   : > { %11038 = dma.hbm_to_vmem [thread:$0]  (!%p12565_p8), %s12630_s3, 16384, %s12632_s25, %s15056_s24, %s12435_s13, %s12435_s13, %s12436_s15  }
  0x60   : > { %s9824_s4 = sshll.u32 %s12563_s18, 8  ;;  %s10491_s27 = sshll.u32 %s12429_s28, 12 }
  0x61   : > { %s15085_s11 = sld [smem:[#allocation33_spill]]  ;;  %s510_s5 = scalar_lea.vmem [#allocation12], %s9824_s4 }
  0x62   : > { %s517_s14 = sshll.u32 %s510_s5, 4  ;;  %s15061_s9 = scalar_lea.sflag [#allocation13], %s12570_s20  ;;  %s12668_s14 = int_to_ptr.vmem [resolvable:$true] %s517_s14 }
  0x67   : > { %s12664_s7 = scalar_lea.hbm %s15085_s11, %s10491_s27  ;;  %s12220_s13 = scalar_lea.hbm %s15085_s11, 24576 }
  0x68   : > { %s12215_s2 = scalar_lea.hbm %s12664_s7, 4096  ;;  %p12221_p4 = scmp.lt.s32.totalorder %s12664_s7, %s15085_s11 }
  0x69   : > { %p12216_p13 = scmp.ne.s32.totalorder %s12664_s7, %s12215_s2  ;;  %p12222_p5 = scmp.lt.s32.totalorder %s12220_s13, %s12215_s2 }
  0x6b   : > { %p12218_p2 = pnand %p12216_p13, %p12592_p10  ;;  %p12223_p6 = por %p12222_p5, %p12221_p4 }
  0x6d   : > { %p12219_p3 = pneg %p12218_p2 }
  0x6f   : > { %p12224_p9 = pnand %p12223_p6, %p12219_p3 }
  0x71   : > { %12227 = shalt.err (!%p12224_p9)
}
  0x72   : > { %s12228_s1 = scalar_lea.vmem %s12668_s14, 4096  ;;  %s12437_s5 = smov [#allocation12]  }
  0x73   : > { %p12229_p11 = scmp.ne.s32.totalorder %s12668_s14, %s12228_s1  ;;  %s12233_s3 = sshll.u32 %s12437_s5, 4  ;;  %s12234_s3 = int_to_ptr.vmem [resolvable:$false] %s12233_s3 }
  0x74   : > { %s12235_s25 = scalar_lea.vmem %s12234_s3, 8192  ;;  %p12236_p0 = scmp.lt.s32.totalorder %s12668_s14, %s12234_s3 }
  0x75   : > { %p12231_p12 = pnand %p12229_p11, %p12592_p10  ;;  %p12237_p1 = scmp.lt.s32.totalorder %s12235_s25, %s12228_s1 }
  0x77   : > { %p12232_p7 = pneg %p12231_p12  ;;  %p12238_p13 = por %p12237_p1, %p12236_p0 }
  0x79   : > { %p12239_p2 = pnand %p12238_p13, %p12232_p7 }
  0x7b   : > { %12242 = shalt.err (!%p12239_p2)
}
  0x7c   : > { %s15086_s2 = smov 8   ;;  %s15087_s13 = smov 128  }
  0x7d   : > { %11044 = dma.hbm_to_vmem [thread:$0]  (!%p12565_p8), %s12664_s7, 4096, %s12668_s14, %s15061_s9, %s15087_s13, %s15087_s13, %s15086_s2  }
  0x7e   : > { %s12701_s1 = scalar_lea.hbm %s15041_s12, %s10491_s27  ;;  %s12705_s5 = scalar_lea.vmem [#allocation14], %s9824_s4 }
  0x7f   : > { %s11005_s25 = smul.u32 1536, %s12563_s18  ;;  %s12721_s4 = scalar_lea.hbm %s15037_s8, %s12576_s22 }
  0x80   : > { %s11006_s24 = smul.u32 24576, %s12429_s28  ;;  %s402_s23 = scalar_lea.sflag [#allocation4], %s12563_s18 }
  0x81   : > { %s405_s7 = scalar_lea.vmem [#allocation3], %s11005_s25  ;;  %s12248_s28 = scalar_lea.hbm %s15035_s6, 147456 }
  0x82   : > { %s12713_s29 = scalar_lea.hbm %s15035_s6, %s11006_s24  ;;  %s412_s14 = sshll.u32 %s405_s7, 4  ;;  %s12715_s14 = int_to_ptr.vmem [resolvable:$true] %s412_s14 }
  0x83   : > { %s12243_s9 = scalar_lea.hbm %s12713_s29, 24576  ;;  %p12249_p6 = scmp.lt.s32.totalorder %s12713_s29, %s15035_s6 }
  0x84   : > { %p12244_p3 = scmp.ne.s32.totalorder %s12713_s29, %s12243_s9  ;;  %p12250_p9 = scmp.lt.s32.totalorder %s12248_s28, %s12243_s9 }
  0x86   : > { %p12246_p4 = pnand %p12244_p3, %p12592_p10  ;;  %p12251_p11 = por %p12250_p9, %p12249_p6 }
  0x88   : > { %p12247_p5 = pneg %p12246_p4 }
  0x8a   : > { %p12252_p12 = pnand %p12251_p11, %p12247_p5 }
  0x8c   : > { %12255 = shalt.err (!%p12252_p12)
}
  0x8d   : > { %s12256_s7 = scalar_lea.vmem %s12715_s14, 24576  ;;  %s12438_s27 = smov [#allocation3]  }
  0x8e   : > { %p12257_p7 = scmp.ne.s32.totalorder %s12715_s14, %s12256_s7  ;;  %s12261_s15 = sshll.u32 %s12438_s27, 4  ;;  %s12262_s15 = int_to_ptr.vmem [resolvable:$false] %s12261_s15 }
  0x8f   : > { %s12263_s0 = scalar_lea.vmem %s12262_s15, 49152  ;;  %p12264_p13 = scmp.lt.s32.totalorder %s12715_s14, %s12262_s15 }
  0x90   : > { %p12259_p0 = pnand %p12257_p7, %p12592_p10  ;;  %p12265_p2 = scmp.lt.s32.totalorder %s12263_s0, %s12256_s7 }
  0x92   : > { %p12260_p1 = pneg %p12259_p0  ;;  %p12266_p3 = por %p12265_p2, %p12264_p13 }
  0x94   : > { %p12267_p4 = pnand %p12266_p3, %p12260_p1 }
  0x96   : > { %12270 = shalt.err (!%p12267_p4)
}
  0x97   : > { %s12439_s9 = smov 768   ;;  %s12440_s11 = smov 48  }
  0x98   : > { %11029 = dma.hbm_to_vmem [thread:$0]  (!%p12565_p8), %s12713_s29, 24576, %s12715_s14, %s402_s23, %s12439_s9, %s12439_s9, %s12440_s11  }
  0x99   : > { %s447_s28 = scalar_lea.vmem [#allocation8], %s12573_s21  ;;  %s12271_s25 = scalar_lea.hbm %s12721_s4, 8192 }
  0x9a   : > { %s454_s24 = sshll.u32 %s447_s28, 4  ;;  %p12272_p5 = scmp.ne.s32.totalorder %s12721_s4, %s12271_s25  ;;  %s12747_s24 = int_to_ptr.vmem [resolvable:$true] %s454_s24 }
  0x9b   : > { %s12276_s15 = scalar_lea.hbm %s15037_s8, 49152  ;;  %p12277_p11 = scmp.lt.s32.totalorder %s12721_s4, %s15037_s8 }
  0x9c   : > { %p12274_p6 = pnand %p12272_p5, %p12592_p10  ;;  %p12278_p12 = scmp.lt.s32.totalorder %s12276_s15, %s12271_s25 }
  0x9e   : > { %p12275_p9 = pneg %p12274_p6  ;;  %p12279_p7 = por %p12278_p12, %p12277_p11 }
  0xa0   : > { %p12280_p0 = pnand %p12279_p7, %p12275_p9 }
  0xa2   : > { %12283 = shalt.err (!%p12280_p0)
}
  0xa3   : > { %s12284_s29 = scalar_lea.vmem %s12747_s24, 8192  ;;  %s12441_s18 = smov [#allocation8]  }
  0xa4   : > { %p12285_p1 = scmp.ne.s32.totalorder %s12747_s24, %s12284_s29  ;;  %s12289_s14 = sshll.u32 %s12441_s18, 4  ;;  %s12290_s14 = int_to_ptr.vmem [resolvable:$false] %s12289_s14 }
  0xa5   : > { %s12291_s23 = scalar_lea.vmem %s12290_s14, 16384  ;;  %p12292_p3 = scmp.lt.s32.totalorder %s12747_s24, %s12290_s14 }
  0xa6   : > { %p12287_p13 = pnand %p12285_p1, %p12592_p10  ;;  %p12293_p4 = scmp.lt.s32.totalorder %s12291_s23, %s12284_s29 }
  0xa8   : > { %p12288_p2 = pneg %p12287_p13  ;;  %p12294_p5 = por %p12293_p4, %p12292_p3 }
  0xaa   : > { %p12295_p6 = pnand %p12294_p5, %p12288_p2 }
  0xac   : > { %12298 = shalt.err (!%p12295_p6)
}
  0xad   : > { %s12442_s3 = smov 256   ;;  %s12443_s9 = smov 16  }
  0xae   : > { %s15088_s11 = scalar_lea.sflag [#allocation7], %s12570_s20  ;;  %s12775_s7 = scalar_lea.hbm %s15039_s10, %s12576_s22 }
  0xaf   : > { %11035 = dma.hbm_to_vmem [thread:$0]  (!%p12565_p8), %s12721_s4, 8192, %s12747_s24, %s15088_s11, %s12442_s3, %s12442_s3, %s12443_s9  }
  0xb0   : > { %s15089_s27 = sshll.u32 %s12705_s5, 4  ;;  %s489_s15 = scalar_lea.vmem [#allocation11], %s12573_s21  ;;  %s12779_s27 = int_to_ptr.vmem [resolvable:$true] %s15089_s27 }
  0xb1   : > { %s496_s0 = sshll.u32 %s489_s15, 4  ;;  %s12299_s29 = scalar_lea.hbm %s12775_s7, 8192  ;;  %s497_s0 = int_to_ptr.vmem [resolvable:$true] %s496_s0 }
  0xb2   : > { %p12300_p9 = scmp.ne.s32.totalorder %s12775_s7, %s12299_s29  ;;  %s12304_s18 = scalar_lea.hbm %s15039_s10, 49152 }
  0xb3   : > { %p12305_p7 = scmp.lt.s32.totalorder %s12775_s7, %s15039_s10  ;;  %p12306_p0 = scmp.lt.s32.totalorder %s12304_s18, %s12299_s29 }
  0xb4   : > { %p12302_p11 = pnand %p12300_p9, %p12592_p10 }
  0xb5   : > { %p12307_p1 = por %p12306_p0, %p12305_p7 }
  0xb6   : > { %p12303_p12 = pneg %p12302_p11 }
  0xb8   : > { %p12308_p13 = pnand %p12307_p1, %p12303_p12 }
  0xba   : > { %12311 = shalt.err (!%p12308_p13)
}
  0xbb   : > { %s12312_s21 = scalar_lea.vmem %s497_s0, 8192  ;;  %s12444_s5 = smov [#allocation11]  }
  0xbc   : > { %p12313_p2 = scmp.ne.s32.totalorder %s497_s0, %s12312_s21  ;;  %s12317_s23 = sshll.u32 %s12444_s5, 4  ;;  %s12318_s23 = int_to_ptr.vmem [resolvable:$false] %s12317_s23 }
  0xbd   : > { %s12319_s3 = scalar_lea.vmem %s12318_s23, 16384  ;;  %p12320_p5 = scmp.lt.s32.totalorder %s497_s0, %s12318_s23 }
  0xbe   : > { %p12315_p3 = pnand %p12313_p2, %p12592_p10  ;;  %p12321_p6 = scmp.lt.s32.totalorder %s12319_s3, %s12312_s21 }
  0xc0   : > { %p12316_p4 = pneg %p12315_p3  ;;  %p12322_p9 = por %p12321_p6, %p12320_p5 }
  0xc2   : > { %p12323_p11 = pnand %p12322_p9, %p12316_p4 }
  0xc4   : > { %12326 = shalt.err (!%p12323_p11)
}
  0xc5   : > { %s15090_s9 = scalar_lea.sflag [#allocation10], %s12570_s20  ;;  %s12327_s11 = scalar_lea.hbm %s12701_s1, 4096 }
  0xc6   : > { %11041 = dma.hbm_to_vmem [thread:$0]  (!%p12565_p8), %s12775_s7, 8192, %s497_s0, %s15090_s9, %s15087_s13, %s15087_s13, %s15086_s2  }
  0xc7   : > { %p12328_p12 = scmp.ne.s32.totalorder %s12701_s1, %s12327_s11  ;;  %s12332_s15 = scalar_lea.hbm %s15041_s12, 24576 }
  0xc8   : > { %p12333_p1 = scmp.lt.s32.totalorder %s12701_s1, %s15041_s12  ;;  %p12334_p13 = scmp.lt.s32.totalorder %s12332_s15, %s12327_s11 }
  0xc9   : > { %p12330_p7 = pnand %p12328_p12, %p12592_p10 }
  0xca   : > { %p12335_p2 = por %p12334_p13, %p12333_p1 }
  0xcb   : > { %p12331_p0 = pneg %p12330_p7 }
  0xcd   : > { %p12336_p3 = pnand %p12335_p2, %p12331_p0 }
  0xcf   : > { %12339 = shalt.err (!%p12336_p3)
}
  0xd0   : > { %s12340_s7 = scalar_lea.vmem %s12779_s27, 4096  ;;  %s12445_s0 = smov [#allocation14]  }
  0xd1   : > { %p12341_p4 = scmp.ne.s32.totalorder %s12779_s27, %s12340_s7  ;;  %s12345_s24 = sshll.u32 %s12445_s0, 4  ;;  %s12346_s24 = int_to_ptr.vmem [resolvable:$false] %s12345_s24 }
  0xd2   : > { %s12347_s18 = scalar_lea.vmem %s12346_s24, 8192  ;;  %p12348_p9 = scmp.lt.s32.totalorder %s12779_s27, %s12346_s24 }
  0xd3   : > { %p12343_p5 = pnand %p12341_p4, %p12592_p10  ;;  %p12349_p11 = scmp.lt.s32.totalorder %s12347_s18, %s12340_s7 }
  0xd5   : > { %p12344_p6 = pneg %p12343_p5  ;;  %p12350_p12 = por %p12349_p11, %p12348_p9 }
  0xd7   : > { %p12351_p7 = pnand %p12350_p12, %p12344_p6 }
  0xd9   : > { %12354 = shalt.err (!%p12351_p7)
}
  0xda   : > { %s15091_s22 = scalar_lea.sflag [#allocation13], %s12570_s20  ;;  %p15092_p10 = scmp.ne.s32.totalorder %s15083_s16, 0 }
  0xdb   : > { %11047 = dma.hbm_to_vmem [thread:$0]  (!%p12565_p8), %s12701_s1, 4096, %s12779_s27, %s15091_s22, %s15087_s13, %s15087_s13, %s15086_s2  }
  0xdc   : > { %550 = sbr.rel (%p15092_p10) target bundleno = 11807 (0x2e1f), region = 72  ;;  %s552_s30 = sand.u32 (!%p15092_p10), 1, %s12421_s26  }
  0xdd   : > { %s11007_s14 = smul.u32 (!%p15092_p10), 1536, %s552_s30  ;;  %s553_s21 = scalar_lea.sflag (!%p15092_p10), [#allocation4], %s552_s30 }
  0xde   : > { %p15093_p0 = scmp.ne.s32.totalorder (!%p15092_p10), %s15078_s17, 0 }
  0xdf   : > { %s12831_s5 = scalar_lea.vmem (!%p15092_p10), [#allocation3], %s11007_s14 }
  0xe1   : > { %12396 = dma.done.wait (%p15093_p0), %s553_s21, 24576  }
  0xe2   : > { %12398 = vsyncadd (%p15093_p0), %s553_s21, 4294942720  ;;  %s15094_s19 = sld [smem:[#allocation22_spill]]  ;;  %s9831_s23 = sshll.u32 %s552_s30, 9 }
  0xe3   : > { %s12838_s13 = scalar_lea.vmem [#allocation6], %s9831_s23 }
  0xe8   : > { %s561_s20 = sand.u32 1, %s15094_s19  }
  0xe9   : > { %s562_s2 = scalar_lea.sflag [#allocation7], %s561_s20 }
  0xea   : > { %12400 = dma.done.wait (%p15093_p0), %s562_s2, 16384  }
  0xeb   : > { %12402 = vsyncadd (%p15093_p0), %s562_s2, 4294950912  ;;  %s9833_s16 = sshll.u32 %s552_s30, 10  ;;  %s12844_s1 = scalar_lea.vmem [#allocation8], %s9831_s23 }
  0xec   : > { %s580_s27 = scalar_lea.sflag [#allocation10], %s561_s20  ;;  %s12846_s3 = scalar_lea.vmem [#allocation9], %s9833_s16 }
  0xed   : > { %12404 = dma.done.wait (%p15093_p0), %s580_s27, 24576  }
  0xee   : > { %12406 = vsyncadd (%p15093_p0), %s580_s27, 4294942720  ;;  %s9835_s9 = sshll.u32 %s552_s30, 8  ;;  %s12852_s11 = scalar_lea.vmem [#allocation11], %s9831_s23 }
  0xef   : > { %s598_s28 = scalar_lea.sflag [#allocation13], %s561_s20  ;;  %s12854_s25 = scalar_lea.vmem [#allocation12], %s9835_s9 }
  0xf0   : > { %12408 = dma.done.wait (%p15093_p0), %s598_s28, 8192  }
  0xf1   : > { %12410 = vsyncadd (%p15093_p0), %s598_s28, 4294959104  ;;  %s12860_s15 = scalar_lea.vmem [#allocation14], %s9835_s9  ;;  %p9837_p8 = scmp.ne.s32.totalorder %s15094_s19, 0 }
  0xf2   : > { %s15095_s7 = sld [smem:[#allocation25_spill]] (!%p9837_p8) }
  0xf3   : > { %682 = sbr.rel (%p9837_p8) target bundleno = 253 (0xfd), region = 104 }
  0xf8   : > { %v683_v0 = vld [vmem:[%s15095_s7] sm:$0xff]  ;;  %v684_v1 = vld [vmem:[%s15095_s7 + $0x8] sm:$0xff]  ;;  %v685_v2 = vld [vmem:[%s15095_s7 + $0x10] sm:$0xff] }
  0xf9   : > { %691 = vst [vmem:[#allocation2 + $0x30] sm:$0xff] %v683_v0  ;;  %692 = vst [vmem:[#allocation2] sm:$0xff] %v684_v1  ;;  %v686_v3 = vld [vmem:[%s15095_s7 + $0x18] sm:$0xff]  ;;  %v687_v4 = vld [vmem:[%s15095_s7 + $0x20] sm:$0xff] }
  0xfa   : > { %693 = vst [vmem:[#allocation2 + $0x18] sm:$0xff] %v685_v2  ;;  %v688_v5 = vld [vmem:[%s15095_s7 + $0x28] sm:$0xff]  ;;  %694 = vst [vmem:[#allocation2 + $0x10] sm:$0xff] %v686_v3  ;;  %v689_v6 = vld [vmem:[%s15095_s7 + $0x30] sm:$0xff] }
  0xfb   : > { %695 = vst [vmem:[#allocation2 + $0x8] sm:$0xff] %v687_v4  ;;  %696 = vst [vmem:[#allocation2 + $0x20] sm:$0xff] %v688_v5  ;;  %v690_v7 = vld [vmem:[%s15095_s7 + $0x38] sm:$0xff] }
  0xfc   : > { %697 = vst [vmem:[#allocation2 + $0x28] sm:$0xff] %v689_v6  ;;  %698 = vst [vmem:[#allocation2 + $0x38] sm:$0xff] %v690_v7 }
  0xfd PF: > { %v11177_v8 = vld [vmem:[%s12831_s5 + $0x2a4] ss:$48 sps:$4 sm:$0xff]   ;;  %v11179_v9 = vld [vmem:[%s12831_s5 + $0x2a0] ss:$48 sps:$4 sm:$0xff]   ;;  %v11273_v36 = vld [vmem:[%s12831_s5 + $0x2ac] ss:$48 sps:$4 sm:$0xff]  }
  0xfe   : > { %1863 = vmatprep.subr.bf16.mxu0 %v11177_v8  ;;  %v11180_v10 = vld [vmem:[%s12831_s5 + $0x244] ss:$48 sps:$4 sm:$0xff]   ;;  %v11182_v11 = vld [vmem:[%s12831_s5 + $0x240] ss:$48 sps:$4 sm:$0xff]   ;;  %v11275_v37 = vld [vmem:[%s12831_s5 + $0x2a8] ss:$48 sps:$4 sm:$0xff]   ;;  %1916 = vmatprep.subr.bf16.mxu1 %v11273_v36 }
  0xff   : > { %1864 = vmatpush1.bf16.msra.mxu0 %v11179_v9  ;;  %v11183_v12 = vld [vmem:[%s12831_s5 + $0x1e4] ss:$48 sps:$4 sm:$0xff]   ;;  %v11185_v13 = vld [vmem:[%s12831_s5 + $0x1e0] ss:$48 sps:$4 sm:$0xff]   ;;  %v11276_v39 = vld [vmem:[%s12831_s5 + $0x24c] ss:$48 sps:$4 sm:$0xff]   ;;  %1917 = vmatpush1.bf16.msra.mxu1 %v11275_v37 }
 0x100   : > { %1865 = vmatprep.subr.bf16.mxu0 %v11180_v10  ;;  %v11186_v14 = vld [vmem:[%s12831_s5 + $0x184] ss:$48 sps:$4 sm:$0xff]   ;;  %v11188_v15 = vld [vmem:[%s12831_s5 + $0x180] ss:$48 sps:$4 sm:$0xff]   ;;  %v11278_v41 = vld [vmem:[%s12831_s5 + $0x248] ss:$48 sps:$4 sm:$0xff]   ;;  %1918 = vmatprep.subr.bf16.mxu1 %v11276_v39 }
 0x101   : > { %v11189_v16 = vld [vmem:[%s12831_s5 + $0x124] ss:$48 sps:$4 sm:$0xff]   ;;  %v11191_v17 = vld [vmem:[%s12831_s5 + $0x120] ss:$48 sps:$4 sm:$0xff]   ;;  %v11279_v42 = vld [vmem:[%s12831_s5 + $0x1ec] ss:$48 sps:$4 sm:$0xff]  }
 0x102   : > { %v11192_v18 = vld [vmem:[%s12831_s5 + $0xc4] ss:$48 sps:$4 sm:$0xff]   ;;  %v11194_v19 = vld [vmem:[%s12831_s5 + $0xc0] ss:$48 sps:$4 sm:$0xff]   ;;  %v11281_v45 = vld [vmem:[%s12831_s5 + $0x1e8] ss:$48 sps:$4 sm:$0xff]  }
 0x103   : > { %1866 = vmatpush1.bf16.msra.mxu0 %v11182_v11  ;;  %v11195_v20 = vld [vmem:[%s12831_s5 + $0x64] ss:$48 sps:$4 sm:$0xff]   ;;  %v11197_v24 = vld [vmem:[%s12831_s5 + $0x60] ss:$48 sps:$4 sm:$0xff]   ;;  %1919 = vmatpush1.bf16.msra.mxu1 %v11278_v41  ;;  %v11282_v46 = vld [vmem:[%s12831_s5 + $0x18c] ss:$48 sps:$4 sm:$0xff]  }
 0x104   : > { %1867 = vmatprep.subr.bf16.mxu0 %v11183_v12  ;;  %v700_v21 = vld [vmem:[#allocation2] sm:$0xff]  ;;  %v702_v22 = vld [vmem:[#allocation2 + $0x10] sm:$0xff]  ;;  %1920 = vmatprep.subr.bf16.mxu1 %v11279_v42  ;;  %v11284_v51 = vld [vmem:[%s12831_s5 + $0x188] ss:$48 sps:$4 sm:$0xff]   ;;  %vm12447_vm0 = vmmov 0   ;;  %vm2213_vm1 = vcmask 523264  }
 0x105   : > { %v12900_v23 = vpack.c.bf16 %v702_v22, %v700_v21  ;;  %v11198_v25 = vld [vmem:[%s12831_s5 + $0x4] ss:$48 sps:$4 sm:$0xff]   ;;  %v11200_v26 = vld [vmem:[%s12831_s5] ss:$48 sps:$4 sm:$0xff]   ;;  %v701_v52 = vld [vmem:[#allocation2 + $0x18] sm:$0xff]  ;;  %s15096_s28 = sld [smem:[#allocation27_spill]] }
 0x106   : > { %v11201_v27 = vld [vmem:[%s12831_s5 + $0x5a4] ss:$48 sps:$4 sm:$0xff]   ;;  %v11203_v28 = vld [vmem:[%s12831_s5 + $0x5a0] ss:$48 sps:$4 sm:$0xff]   ;;  %v11285_v53 = vld [vmem:[%s12831_s5 + $0x12c] ss:$48 sps:$4 sm:$0xff]  }
 0x107   : > { %1868 = vmatpush1.bf16.msra.mxu0 %v11185_v13  ;;  %1895 = vmatprep.mubr.bf16.mxu0 %v12900_v23  ;;  %v11204_v29 = vld [vmem:[%s12831_s5 + $0x544] ss:$48 sps:$4 sm:$0xff]   ;;  %v11206_v30 = vld [vmem:[%s12831_s5 + $0x540] ss:$48 sps:$4 sm:$0xff]   ;;  %v706_v56 = vld [vmem:[#allocation2 + $0x38] sm:$0xff]  ;;  %vm2316_vm2 = vcmask 130048  }
 0x108   : > { %1869 = vmatprep.subr.bf16.mxu0 %v11186_v14  ;;  %1948 = vmatprep.mubr.bf16.mxu1 %v12900_v23  ;;  %v11207_v31 = vld [vmem:[%s12831_s5 + $0x4e4] ss:$48 sps:$4 sm:$0xff]   ;;  %v11209_v32 = vld [vmem:[%s12831_s5 + $0x4e0] ss:$48 sps:$4 sm:$0xff]   ;;  %v11287_v57 = vld [vmem:[%s12831_s5 + $0x128] ss:$48 sps:$4 sm:$0xff]  }
 0x109   : > { %v11210_v33 = vld [vmem:[%s12831_s5 + $0x484] ss:$48 sps:$4 sm:$0xff]   ;;  %v11212_v34 = vld [vmem:[%s12831_s5 + $0x480] ss:$48 sps:$4 sm:$0xff]   ;;  %1921 = vmatpush1.bf16.msra.mxu1 %v11281_v45  ;;  %v11288_v59 = vld [vmem:[%s12831_s5 + $0xcc] ss:$48 sps:$4 sm:$0xff]  }
 0x10a   : > { %v11213_v35 = vld [vmem:[%s12831_s5 + $0x424] ss:$48 sps:$4 sm:$0xff]   ;;  %v11215_v38 = vld [vmem:[%s12831_s5 + $0x420] ss:$48 sps:$4 sm:$0xff]   ;;  %1922 = vmatprep.subr.bf16.mxu1 %v11282_v46  ;;  %v11290_v63 = vld [vmem:[%s12831_s5 + $0xc8] ss:$48 sps:$4 sm:$0xff]  }
 0x10b   : > { %1870 = vmatpush1.bf16.msra.mxu0 %v11188_v15  ;;  %v11216_v40 = vld [vmem:[%s12831_s5 + $0x3c4] ss:$48 sps:$4 sm:$0xff]   ;;  %v11218_v43 = vld [vmem:[%s12831_s5 + $0x3c0] ss:$48 sps:$4 sm:$0xff]   ;;  %v11291_v1 = vld [vmem:[%s12831_s5 + $0x6c] ss:$48 sps:$4 sm:$0xff]   ;;  %s15097_s29 = smov %s15096_s28 }
 0x10c   : > { %1871 = vmatprep.subr.bf16.mxu0 %v11189_v16  ;;  %v11219_v44 = vld [vmem:[%s12831_s5 + $0x364] ss:$48 sps:$4 sm:$0xff]   ;;  %v11221_v47 = vld [vmem:[%s12831_s5 + $0x360] ss:$48 sps:$4 sm:$0xff]   ;;  %v703_v2 = vld [vmem:[#allocation2 + $0x8] sm:$0xff]  ;;  %s12448_s30 = smov 64  }
 0x10d   : > { %v11222_v48 = vld [vmem:[%s12831_s5 + $0x304] ss:$48 sps:$4 sm:$0xff]   ;;  %v11224_v49 = vld [vmem:[%s12831_s5 + $0x300] ss:$48 sps:$4 sm:$0xff]   ;;  %1923 = vmatpush1.bf16.msra.mxu1 %v11284_v51  ;;  %v705_v3 = vld [vmem:[#allocation2 + $0x28] sm:$0xff]  ;;  %s15098_s19 = sld [smem:[#allocation28_spill]] }
 0x10e   : > { %v699_v50 = vld [vmem:[#allocation2 + $0x30] sm:$0xff]  ;;  %v704_v55 = vld [vmem:[#allocation2 + $0x20] sm:$0xff]  ;;  %1924 = vmatprep.subr.bf16.mxu1 %v11285_v53  ;;  %v11293_v5 = vld [vmem:[%s12831_s5 + $0x68] ss:$48 sps:$4 sm:$0xff]   ;;  %v12948_v6 = vpack.c.bf16 %v705_v3, %v703_v2  ;;  %s15099_s9 = sld [smem:[#allocation26_spill]] }
 0x10f   : > { %1872 = vmatpush1.bf16.msra.mxu0 %v11191_v17  ;;  %v11227_v54 = vld [vmem:[%s12831_s5 + $0x2b4] ss:$48 sps:$4 sm:$0xff]   ;;  %v12934_v58 = vpack.c.bf16 %v701_v52, %v699_v50  ;;  %v11225_v60 = vld [vmem:[%s12831_s5 + $0x2b0] ss:$48 sps:$4 sm:$0xff]   ;;  %v12938_v61 = vpack.c.bf16 %v706_v56, %v704_v55  ;;  %v11294_v7 = vld [vmem:[%s12831_s5 + $0xc] ss:$48 sps:$4 sm:$0xff]  }
 0x110   : > { %1873 = vmatprep.subr.bf16.mxu0 %v11192_v18  ;;  %v11230_v62 = vld [vmem:[%s12831_s5 + $0x254] ss:$48 sps:$4 sm:$0xff]   ;;  %v11228_v0 = vld [vmem:[%s12831_s5 + $0x250] ss:$48 sps:$4 sm:$0xff]   ;;  %v11296_v10 = vld [vmem:[%s12831_s5 + $0x8] ss:$48 sps:$4 sm:$0xff]  }
 0x111   : > { %1925 = vmatpush1.bf16.msra.mxu1 %v11287_v57  ;;  %v11233_v4 = vld [vmem:[%s12831_s5 + $0x1f4] ss:$48 sps:$4 sm:$0xff]   ;;  %v11231_v8 = vld [vmem:[%s12831_s5 + $0x1f0] ss:$48 sps:$4 sm:$0xff]   ;;  %v11297_v11 = vld [vmem:[%s12831_s5 + $0x5ac] ss:$48 sps:$4 sm:$0xff]  }
 0x112   : > { %1926 = vmatprep.subr.bf16.mxu1 %v11288_v59  ;;  %v11236_v9 = vld [vmem:[%s12831_s5 + $0x194] ss:$48 sps:$4 sm:$0xff]   ;;  %v11234_v12 = vld [vmem:[%s12831_s5 + $0x190] ss:$48 sps:$4 sm:$0xff]   ;;  %v11299_v14 = vld [vmem:[%s12831_s5 + $0x5a8] ss:$48 sps:$4 sm:$0xff]  }
 0x113   : > { %1874 = vmatpush1.bf16.msra.mxu0 %v11194_v19  ;;  %v11239_v13 = vld [vmem:[%s12831_s5 + $0x134] ss:$48 sps:$4 sm:$0xff]   ;;  %v11300_v15 = vld [vmem:[%s12831_s5 + $0x54c] ss:$48 sps:$4 sm:$0xff]   ;;  %v11237_v16 = vld [vmem:[%s12831_s5 + $0x130] ss:$48 sps:$4 sm:$0xff]  }
 0x114   : > { %1875 = vmatprep.subr.bf16.mxu0 %v11195_v20  ;;  %v11242_v17 = vld [vmem:[%s12831_s5 + $0xd4] ss:$48 sps:$4 sm:$0xff]   ;;  %v11302_v18 = vld [vmem:[%s12831_s5 + $0x548] ss:$48 sps:$4 sm:$0xff]   ;;  %v11303_v19 = vld [vmem:[%s12831_s5 + $0x4ec] ss:$48 sps:$4 sm:$0xff]  }
 0x115   : > { %1927 = vmatpush1.bf16.msra.mxu1 %v11290_v63  ;;  %v11240_v20 = vld [vmem:[%s12831_s5 + $0xd0] ss:$48 sps:$4 sm:$0xff]   ;;  %v11245_v21 = vld [vmem:[%s12831_s5 + $0x74] ss:$48 sps:$4 sm:$0xff]   ;;  %v11305_v22 = vld [vmem:[%s12831_s5 + $0x4e8] ss:$48 sps:$4 sm:$0xff]  }
 0x116   : > { %1928 = vmatprep.subr.bf16.mxu1 %v11291_v1  ;;  %v11315_v36 = vld [vmem:[%s12831_s5 + $0x36c] ss:$48 sps:$4 sm:$0xff]   ;;  %v11252_v37 = vld [vmem:[%s12831_s5 + $0x550] ss:$48 sps:$4 sm:$0xff]   ;;  %v11317_v39 = vld [vmem:[%s12831_s5 + $0x368] ss:$48 sps:$4 sm:$0xff]  }
 0x117   : > { %1876 = vmatpush1.bf16.msra.mxu0 %v11197_v24  ;;  %v11306_v24 = vld [vmem:[%s12831_s5 + $0x48c] ss:$48 sps:$4 sm:$0xff]   ;;  %v11255_v41 = vld [vmem:[%s12831_s5 + $0x4f0] ss:$48 sps:$4 sm:$0xff]   ;;  %v11260_v42 = vld [vmem:[%s12831_s5 + $0x494] ss:$48 sps:$4 sm:$0xff]  }
 0x118   : > { %1877 = vmatprep.subr.bf16.mxu0 %v11198_v25  ;;  %v11243_v25 = vld [vmem:[%s12831_s5 + $0x70] ss:$48 sps:$4 sm:$0xff]   ;;  %v11263_v46 = vld [vmem:[%s12831_s5 + $0x434] ss:$48 sps:$4 sm:$0xff]   ;;  %v11324_v51 = vld [vmem:[%s12831_s5 + $0x258] ss:$48 sps:$4 sm:$0xff]  }
 0x119   : > { %1929 = vmatpush1.bf16.msra.mxu1 %v11293_v5  ;;  %v11258_v45 = vld [vmem:[%s12831_s5 + $0x490] ss:$48 sps:$4 sm:$0xff]   ;;  %v11266_v50 = vld [vmem:[%s12831_s5 + $0x3d4] ss:$48 sps:$4 sm:$0xff]   ;;  %v11329_v52 = vld [vmem:[%s12831_s5 + $0x1fc] ss:$48 sps:$4 sm:$0xff]  }
 0x11a   : > { %1930 = vmatprep.subr.bf16.mxu1 %v11294_v7  ;;  %v11264_v53 = vld [vmem:[%s12831_s5 + $0x3d0] ss:$48 sps:$4 sm:$0xff]   ;;  %v11327_v55 = vld [vmem:[%s12831_s5 + $0x1f8] ss:$48 sps:$4 sm:$0xff]   ;;  %v11332_v56 = vld [vmem:[%s12831_s5 + $0x19c] ss:$48 sps:$4 sm:$0xff]  }
 0x11b   : > { %1878 = vmatpush1.bf16.msra.mxu0 %v11200_v26  ;;  %v11248_v26 = vld [vmem:[%s12831_s5 + $0x14] ss:$48 sps:$4 sm:$0xff]   ;;  %v11267_v57 = vld [vmem:[%s12831_s5 + $0x370] ss:$48 sps:$4 sm:$0xff]   ;;  %v11333_v1 = vld [vmem:[%s12831_s5 + $0x138] ss:$48 sps:$4 sm:$0xff]  }
 0x11c   : > { %1879 = vmatprep.subr.bf16.mxu0 %v11201_v27  ;;  %v11308_v27 = vld [vmem:[%s12831_s5 + $0x488] ss:$48 sps:$4 sm:$0xff]   ;;  %v11272_v59 = vld [vmem:[%s12831_s5 + $0x314] ss:$48 sps:$4 sm:$0xff]   ;;  %v11270_v63 = vld [vmem:[%s12831_s5 + $0x310] ss:$48 sps:$4 sm:$0xff]  }
 0x11d   : > { %1931 = vmatpush1.bf16.msra.mxu1 %v11296_v10  ;;  %v11338_v2 = vld [vmem:[%s12831_s5 + $0xdc] ss:$48 sps:$4 sm:$0xff]   ;;  %v11360_v3 = vld [vmem:[%s12831_s5 + $0x2c0] ss:$48 sps:$4 sm:$0xff]   ;;  %v11336_v5 = vld [vmem:[%s12831_s5 + $0xd8] ss:$48 sps:$4 sm:$0xff]  }
 0x11e   : > { %1932 = vmatprep.subr.bf16.mxu1 %v11297_v11  ;;  %v11341_v7 = vld [vmem:[%s12831_s5 + $0x7c] ss:$48 sps:$4 sm:$0xff]   ;;  %v11339_v10 = vld [vmem:[%s12831_s5 + $0x78] ss:$48 sps:$4 sm:$0xff]   ;;  %s15100_s14 = sld [smem:[#allocation29_spill]] }
 0x11f   : > { %1880 = vmatpush2.bf16.msra.mxu0 %v11203_v28  ;;  %v11246_v28 = vld [vmem:[%s12831_s5 + $0x10] ss:$48 sps:$4 sm:$0xff]   ;;  %v11344_v11 = vld [vmem:[%s12831_s5 + $0x1c] ss:$48 sps:$4 sm:$0xff]  }
 0x120   : > { %1881 = vmatprep.subr.bf16.mxu0 %v11204_v29  ;;  %v11309_v29 = vld [vmem:[%s12831_s5 + $0x42c] ss:$48 sps:$4 sm:$0xff]  }
 0x121   : > { %1933 = vmatpush2.bf16.msra.mxu1 %v11299_v14  ;;  %v11342_v14 = vld [vmem:[%s12831_s5 + $0x18] ss:$48 sps:$4 sm:$0xff]  }
 0x122   : > { %1934 = vmatprep.subr.bf16.mxu1 %v11300_v15  ;;  %v11347_v15 = vld [vmem:[%s12831_s5 + $0x5bc] ss:$48 sps:$4 sm:$0xff]  }
 0x123   : > { %1882 = vmatpush2.bf16.msra.mxu0 %v11206_v30  ;;  %v11251_v30 = vld [vmem:[%s12831_s5 + $0x5b4] ss:$48 sps:$4 sm:$0xff]  }
 0x124   : > { %1883 = vmatprep.subr.bf16.mxu0 %v11207_v31  ;;  %v11311_v31 = vld [vmem:[%s12831_s5 + $0x428] ss:$48 sps:$4 sm:$0xff]  }
 0x125   : > { %1935 = vmatpush2.bf16.msra.mxu1 %v11302_v18  ;;  %v11345_v18 = vld [vmem:[%s12831_s5 + $0x5b8] ss:$48 sps:$4 sm:$0xff]  }
 0x126   : > { %1936 = vmatprep.subr.bf16.mxu1 %v11303_v19  ;;  %v11350_v19 = vld [vmem:[%s12831_s5 + $0x55c] ss:$48 sps:$4 sm:$0xff]  }
 0x127   : > { %1884 = vmatpush2.bf16.msra.mxu0 %v11209_v32  ;;  %v11312_v32 = vld [vmem:[%s12831_s5 + $0x3cc] ss:$48 sps:$4 sm:$0xff]  }
 0x128   : > { %1885 = vmatprep.subr.bf16.mxu0 %v11210_v33  ;;  %v11249_v33 = vld [vmem:[%s12831_s5 + $0x5b0] ss:$48 sps:$4 sm:$0xff]  }
 0x129   : > { %1937 = vmatpush2.bf16.msra.mxu1 %v11305_v22  ;;  %v11348_v22 = vld [vmem:[%s12831_s5 + $0x558] ss:$48 sps:$4 sm:$0xff]  }
 0x12a   : > { %1938 = vmatprep.subr.bf16.mxu1 %v11306_v24  ;;  %v11353_v24 = vld [vmem:[%s12831_s5 + $0x4fc] ss:$48 sps:$4 sm:$0xff]  }
 0x12b   : > { %1886 = vmatpush2.bf16.msra.mxu0 %v11212_v34  ;;  %v11254_v34 = vld [vmem:[%s12831_s5 + $0x554] ss:$48 sps:$4 sm:$0xff]  }
 0x12c   : > { %1887 = vmatprep.subr.bf16.mxu0 %v11213_v35  ;;  %v11314_v35 = vld [vmem:[%s12831_s5 + $0x3c8] ss:$48 sps:$4 sm:$0xff]  }
 0x12d   : > { %1939 = vmatpush2.bf16.msra.mxu1 %v11308_v27  ;;  %v11351_v27 = vld [vmem:[%s12831_s5 + $0x4f8] ss:$48 sps:$4 sm:$0xff]  }
 0x12e   : > { %1940 = vmatprep.subr.bf16.mxu1 %v11309_v29  ;;  %v11396_v29 = vld [vmem:[%s12831_s5 + $0x80] ss:$48 sps:$4 sm:$0xff]  }
 0x12f   : > { %1888 = vmatpush2.bf16.msra.mxu0 %v11215_v38  ;;  %v11257_v38 = vld [vmem:[%s12831_s5 + $0x4f4] ss:$48 sps:$4 sm:$0xff]  }
 0x130   : > { %1889 = vmatprep.subr.bf16.mxu0 %v11216_v40  ;;  %v11318_v40 = vld [vmem:[%s12831_s5 + $0x30c] ss:$48 sps:$4 sm:$0xff]  }
 0x131   : > { %1941 = vmatpush2.bf16.msra.mxu1 %v11311_v31  ;;  %v11354_v31 = vld [vmem:[%s12831_s5 + $0x498] ss:$48 sps:$4 sm:$0xff]  }
 0x132   : > { %1942 = vmatprep.subr.bf16.mxu1 %v11312_v32  ;;  %v11359_v32 = vld [vmem:[%s12831_s5 + $0x43c] ss:$48 sps:$4 sm:$0xff]  }
 0x133   : > { %1890 = vmatpush2.bf16.msra.mxu0 %v11218_v43  ;;  %v11320_v43 = vld [vmem:[%s12831_s5 + $0x308] ss:$48 sps:$4 sm:$0xff]  }
 0x134   : > { %1891 = vmatprep.subr.bf16.mxu0 %v11219_v44  ;;  %v11323_v44 = vld [vmem:[%s12831_s5 + $0x2bc] ss:$48 sps:$4 sm:$0xff]  }
 0x135   : > { %1943 = vmatpush2.bf16.msra.mxu1 %v11314_v35  ;;  %v11357_v35 = vld [vmem:[%s12831_s5 + $0x438] ss:$48 sps:$4 sm:$0xff]  }
 0x136   : > { %1944 = vmatprep.subr.bf16.mxu1 %v11315_v36  ;;  %v11365_v36 = vld [vmem:[%s12831_s5 + $0x3dc] ss:$48 sps:$4 sm:$0xff]  }
 0x137   : > { %1892 = vmatpush2.bf16.msra.mxu0 %v11221_v47  ;;  %v11321_v47 = vld [vmem:[%s12831_s5 + $0x2b8] ss:$48 sps:$4 sm:$0xff]  }
 0x138   : > { %1893 = vmatprep.subr.bf16.mxu0 %v11222_v48  ;;  %v11326_v48 = vld [vmem:[%s12831_s5 + $0x25c] ss:$48 sps:$4 sm:$0xff]  }
 0x139   : > { %1945 = vmatpush2.bf16.msra.mxu1 %v11317_v39  ;;  %v11363_v39 = vld [vmem:[%s12831_s5 + $0x3d8] ss:$48 sps:$4 sm:$0xff]  }
 0x13a   : > { %1946 = vmatprep.subr.bf16.mxu1 %v11318_v40  ;;  %v11371_v40 = vld [vmem:[%s12831_s5 + $0x37c] ss:$48 sps:$4 sm:$0xff]  }
 0x13b   : > { %1894 = vmatpush2.bf16.msra.mxu0 %v11224_v49  ;;  %v11261_v49 = vld [vmem:[%s12831_s5 + $0x430] ss:$48 sps:$4 sm:$0xff]  }
 0x13c   : > { %1969 = vmatprep.subr.bf16.mxu0 %v11227_v54  ;;  %v11269_v54 = vld [vmem:[%s12831_s5 + $0x374] ss:$48 sps:$4 sm:$0xff]  }
 0x13d   : > { %1947 = vmatpush2.bf16.msra.mxu1 %v11320_v43  ;;  %v11369_v43 = vld [vmem:[%s12831_s5 + $0x378] ss:$48 sps:$4 sm:$0xff]  }
 0x13e   : > { %1896 = vmatmul.mubr.bf16.vlgmr.msra.gmra.mxu0 %v12934_v58  ;;  %2022 = vmatprep.subr.bf16.mxu1 %v11323_v44  ;;  %v11377_v44 = vld [vmem:[%s12831_s5 + $0x31c] ss:$48 sps:$4 sm:$0xff]  }
 0x13f   : > { %1970 = vmatpush1.bf16.msra.mxu0 %v11225_v60  ;;  %1905 = vmatprep.mubr.bf16.mxu0 %v12938_v61  ;;  %v11330_v60 = vld [vmem:[%s12831_s5 + $0x198] ss:$48 sps:$4 sm:$0xff]  }
 0x140   : > { %1971 = vmatprep.subr.bf16.mxu0 %v11230_v62  ;;  %1949 = vmatmul.mubr.bf16.vlgmr.msra.gmra.mxu1 %v12934_v58  ;;  %v11335_v62 = vld [vmem:[%s12831_s5 + $0x13c] ss:$48 sps:$4 sm:$0xff]  }
 0x141   : > { %2023 = vmatpush1.bf16.msra.mxu1 %v11321_v47  ;;  %1958 = vmatprep.mubr.bf16.mxu1 %v12938_v61  ;;  %v11375_v47 = vld [vmem:[%s12831_s5 + $0x318] ss:$48 sps:$4 sm:$0xff]  }
 0x142   : > { %2024 = vmatprep.subr.bf16.mxu1 %v11326_v48  ;;  %v11383_v48 = vld [vmem:[%s12831_s5 + $0x2cc] ss:$48 sps:$4 sm:$0xff]  }
 0x143   : > { %1972 = vmatpush1.bf16.msra.mxu0 %v11228_v0  ;;  %v11362_v0 = vld [vmem:[%s12831_s5 + $0x2c4] ss:$48 sps:$4 sm:$0xff]  }
 0x144   : > { %1973 = vmatprep.subr.bf16.mxu0 %v11233_v4  ;;  %v11368_v4 = vld [vmem:[%s12831_s5 + $0x264] ss:$48 sps:$4 sm:$0xff]  }
 0x145   : > { %2025 = vmatpush1.bf16.msra.mxu1 %v11324_v51  ;;  %v11381_v51 = vld [vmem:[%s12831_s5 + $0x2c8] ss:$48 sps:$4 sm:$0xff]  }
 0x146   : > { %1906 = vmatmul.mubr.bf16.gmra.mxu0 %v12948_v6  ;;  %2026 = vmatprep.subr.bf16.mxu1 %v11329_v52  ;;  %v11389_v52 = vld [vmem:[%s12831_s5 + $0x26c] ss:$48 sps:$4 sm:$0xff]  }
 0x147   : > { %1974 = vmatpush1.bf16.msra.mxu0 %v11231_v8  ;;  %2001 = vmatprep.mubr.bf16.mxu0 %v12900_v23  ;;  %v11366_v8 = vld [vmem:[%s12831_s5 + $0x260] ss:$48 sps:$4 sm:$0xff]  }
 0x148   : > { %1975 = vmatprep.subr.bf16.mxu0 %v11236_v9  ;;  %1959 = vmatmul.mubr.bf16.gmra.mxu1 %v12948_v6  ;;  %v11374_v9 = vld [vmem:[%s12831_s5 + $0x204] ss:$48 sps:$4 sm:$0xff]  }
 0x149   : > { %2027 = vmatpush1.bf16.msra.mxu1 %v11327_v55  ;;  %2054 = vmatprep.mubr.bf16.mxu1 %v12900_v23  ;;  %v11387_v55 = vld [vmem:[%s12831_s5 + $0x268] ss:$48 sps:$4 sm:$0xff]  }
 0x14a   : > { %2028 = vmatprep.subr.bf16.mxu1 %v11332_v56  ;;  %v11395_v56 = vld [vmem:[%s12831_s5 + $0x20c] ss:$48 sps:$4 sm:$0xff]  }
 0x14b   : > { %1976 = vmatpush1.bf16.msra.mxu0 %v11234_v12  ;;  %v11372_v12 = vld [vmem:[%s12831_s5 + $0x200] ss:$48 sps:$4 sm:$0xff]  }
 0x14c   : > { %1977 = vmatprep.subr.bf16.mxu0 %v11239_v13  ;;  %v11380_v13 = vld [vmem:[%s12831_s5 + $0x1a4] ss:$48 sps:$4 sm:$0xff]  }
 0x14d   : > { %2029 = vmatpush1.bf16.msra.mxu1 %v11330_v60  ;;  %v11393_v60 = vld [vmem:[%s12831_s5 + $0x208] ss:$48 sps:$4 sm:$0xff]  }
 0x14e   : > { %2030 = vmatprep.subr.bf16.mxu1 %v11335_v62  ;;  %v11401_v62 = vld [vmem:[%s12831_s5 + $0x1ac] ss:$48 sps:$4 sm:$0xff]  }
 0x14f   : > { %1978 = vmatpush1.bf16.msra.mxu0 %v11237_v16  ;;  %v11378_v16 = vld [vmem:[%s12831_s5 + $0x1a0] ss:$48 sps:$4 sm:$0xff]  }
 0x150   : > { %1979 = vmatprep.subr.bf16.mxu0 %v11242_v17  ;;  %v11386_v17 = vld [vmem:[%s12831_s5 + $0x144] ss:$48 sps:$4 sm:$0xff]  }
 0x151   : > { %2031 = vmatpush1.bf16.msra.mxu1 %v11333_v1  ;;  %v11399_v1 = vld [vmem:[%s12831_s5 + $0x1a8] ss:$48 sps:$4 sm:$0xff]  }
 0x152   : > { %2032 = vmatprep.subr.bf16.mxu1 %v11338_v2  ;;  %v11407_v2 = vld [vmem:[%s12831_s5 + $0x14c] ss:$48 sps:$4 sm:$0xff]  }
 0x153   : > { %1980 = vmatpush1.bf16.msra.mxu0 %v11240_v20  ;;  %v11384_v20 = vld [vmem:[%s12831_s5 + $0x140] ss:$48 sps:$4 sm:$0xff]  }
 0x154   : > { %1981 = vmatprep.subr.bf16.mxu0 %v11245_v21  ;;  %v11392_v21 = vld [vmem:[%s12831_s5 + $0xe4] ss:$48 sps:$4 sm:$0xff]  }
 0x155   : > { %2033 = vmatpush1.bf16.msra.mxu1 %v11336_v5  ;;  %v11413_v5 = vld [vmem:[%s12831_s5 + $0xec] ss:$48 sps:$4 sm:$0xff]  }
 0x156   : > { %2034 = vmatprep.subr.bf16.mxu1 %v11341_v7  ;;  %v11411_v7 = vld [vmem:[%s12831_s5 + $0xe8] ss:$48 sps:$4 sm:$0xff]  }
 0x157   : > { %1982 = vmatpush1.bf16.msra.mxu0 %v11243_v25  ;;  %v11390_v25 = vld [vmem:[%s12831_s5 + $0xe0] ss:$48 sps:$4 sm:$0xff]  }
 0x158   : > { %1983 = vmatprep.subr.bf16.mxu0 %v11248_v26  ;;  %v11398_v26 = vld [vmem:[%s12831_s5 + $0x84] ss:$48 sps:$4 sm:$0xff]  }
 0x159   : > { %2035 = vmatpush1.bf16.msra.mxu1 %v11339_v10  ;;  %v11423_v10 = vld [vmem:[%s12831_s5 + $0x28] ss:$48 sps:$4 sm:$0xff]  }
 0x15a   : > { %2036 = vmatprep.subr.bf16.mxu1 %v11344_v11  ;;  %v11431_v11 = vld [vmem:[%s12831_s5 + $0x5cc] ss:$48 sps:$4 sm:$0xff]  }
 0x15b   : > { %1984 = vmatpush1.bf16.msra.mxu0 %v11246_v28  ;;  %v11356_v28 = vld [vmem:[%s12831_s5 + $0x49c] ss:$48 sps:$4 sm:$0xff]  }
 0x15c   : > { %1985 = vmatprep.subr.bf16.mxu0 %v11251_v30  ;;  %v11404_v30 = vld [vmem:[%s12831_s5 + $0x24] ss:$48 sps:$4 sm:$0xff]  }
 0x15d   : > { %2037 = vmatpush1.bf16.msra.mxu1 %v11342_v14  ;;  %v11437_v14 = vld [vmem:[%s12831_s5 + $0x56c] ss:$48 sps:$4 sm:$0xff]  }
 0x15e   : > { %2038 = vmatprep.subr.bf16.mxu1 %v11347_v15  ;;  %v11435_v15 = vld [vmem:[%s12831_s5 + $0x568] ss:$48 sps:$4 sm:$0xff]  }
 0x15f   : > { %1986 = vmatpush2.bf16.msra.mxu0 %v11249_v33  ;;  %v11402_v33 = vld [vmem:[%s12831_s5 + $0x20] ss:$48 sps:$4 sm:$0xff]  }
 0x160   : > { %1987 = vmatprep.subr.bf16.mxu0 %v11254_v34  ;;  %v11410_v34 = vld [vmem:[%s12831_s5 + $0x5c4] ss:$48 sps:$4 sm:$0xff]  }
 0x161   : > { %2039 = vmatpush2.bf16.msra.mxu1 %v11345_v18  ;;  %v11449_v18 = vld [vmem:[%s12831_s5 + $0x4ac] ss:$48 sps:$4 sm:$0xff]  }
 0x162   : > { %2040 = vmatprep.subr.bf16.mxu1 %v11350_v19  ;;  %v11447_v19 = vld [vmem:[%s12831_s5 + $0x4a8] ss:$48 sps:$4 sm:$0xff]  }
 0x163   : > { %1988 = vmatpush2.bf16.msra.mxu0 %v11252_v37  ;;  %v11408_v37 = vld [vmem:[%s12831_s5 + $0x5c0] ss:$48 sps:$4 sm:$0xff]  }
 0x164   : > { %1989 = vmatprep.subr.bf16.mxu0 %v11257_v38  ;;  %v11416_v38 = vld [vmem:[%s12831_s5 + $0x564] ss:$48 sps:$4 sm:$0xff]  }
 0x165   : > { %2041 = vmatpush2.bf16.msra.mxu1 %v11348_v22  ;;  %v11458_v22 = vld [vmem:[%s12831_s5 + $0x3ec] ss:$48 sps:$4 sm:$0xff]  }
 0x166   : > { %2042 = vmatprep.subr.bf16.mxu1 %v11353_v24  ;;  %v11456_v24 = vld [vmem:[%s12831_s5 + $0x3e8] ss:$48 sps:$4 sm:$0xff]  }
 0x167   : > { %1990 = vmatpush2.bf16.msra.mxu0 %v11255_v41  ;;  %v11414_v41 = vld [vmem:[%s12831_s5 + $0x560] ss:$48 sps:$4 sm:$0xff]  }
 0x168   : > { %1991 = vmatprep.subr.bf16.mxu0 %v11260_v42  ;;  %v11422_v42 = vld [vmem:[%s12831_s5 + $0x504] ss:$48 sps:$4 sm:$0xff]  }
 0x169   : > { %2043 = vmatpush2.bf16.msra.mxu1 %v11351_v27  ;;  %v11464_v27 = vld [vmem:[%s12831_s5 + $0x32c] ss:$48 sps:$4 sm:$0xff]  }
 0x16a   : > { %2044 = vmatprep.subr.bf16.mxu1 %v11356_v28  ;;  %v11462_v28 = vld [vmem:[%s12831_s5 + $0x328] ss:$48 sps:$4 sm:$0xff]  }
 0x16b   : > { %1992 = vmatpush2.bf16.msra.mxu0 %v11258_v45  ;;  %v11420_v45 = vld [vmem:[%s12831_s5 + $0x500] ss:$48 sps:$4 sm:$0xff]  }
 0x16c   : > { %1993 = vmatprep.subr.bf16.mxu0 %v11263_v46  ;;  %v11428_v46 = vld [vmem:[%s12831_s5 + $0x4a4] ss:$48 sps:$4 sm:$0xff]  }
 0x16d   : > { %2045 = vmatpush2.bf16.msra.mxu1 %v11354_v31 }
 0x16e   : > { %2046 = vmatprep.subr.bf16.mxu1 %v11359_v32 }
 0x16f   : > { %1994 = vmatpush2.bf16.msra.mxu0 %v11261_v49  ;;  %v11426_v49 = vld [vmem:[%s12831_s5 + $0x4a0] ss:$48 sps:$4 sm:$0xff]  }
 0x170   : > { %1995 = vmatprep.subr.bf16.mxu0 %v11266_v50  ;;  %v11434_v50 = vld [vmem:[%s12831_s5 + $0x444] ss:$48 sps:$4 sm:$0xff]  }
 0x171   : > { %2047 = vmatpush2.bf16.msra.mxu1 %v11357_v35 }
 0x172   : > { %2048 = vmatprep.subr.bf16.mxu1 %v11365_v36 }
 0x173   : > { %1996 = vmatpush2.bf16.msra.mxu0 %v11264_v53  ;;  %v11432_v53 = vld [vmem:[%s12831_s5 + $0x440] ss:$48 sps:$4 sm:$0xff]  }
 0x174   : > { %1997 = vmatprep.subr.bf16.mxu0 %v11269_v54  ;;  %v11440_v54 = vld [vmem:[%s12831_s5 + $0x3e4] ss:$48 sps:$4 sm:$0xff]  }
 0x175   : > { %2049 = vmatpush2.bf16.msra.mxu1 %v11363_v39 }
 0x176   : > { %2050 = vmatprep.subr.bf16.mxu1 %v11371_v40 }
 0x177   : > { %1998 = vmatpush2.bf16.msra.mxu0 %v11267_v57  ;;  %v11438_v57 = vld [vmem:[%s12831_s5 + $0x3e0] ss:$48 sps:$4 sm:$0xff]  }
 0x178   : > { %1999 = vmatprep.subr.bf16.mxu0 %v11272_v59  ;;  %v11446_v59 = vld [vmem:[%s12831_s5 + $0x384] ss:$48 sps:$4 sm:$0xff]  }
 0x179   : > { %2051 = vmatpush2.bf16.msra.mxu1 %v11369_v43 }
 0x17a   : > { %2052 = vmatprep.subr.bf16.mxu1 %v11377_v44 }
 0x17b   : > { %2000 = vmatpush2.bf16.msra.mxu0 %v11270_v63  ;;  %v11444_v63 = vld [vmem:[%s12831_s5 + $0x380] ss:$48 sps:$4 sm:$0xff]  }
 0x17c   : > { %2075 = vmatprep.subr.bf16.mxu0 %v11362_v0  ;;  %v11452_v0 = vld [vmem:[%s12831_s5 + $0x324] ss:$48 sps:$4 sm:$0xff]  }
 0x17d   : > { %2053 = vmatpush2.bf16.msra.mxu1 %v11375_v47 }
 0x17e   : > { %2002 = vmatmul.mubr.bf16.vlgmr.msra.gmra.mxu0 %v12934_v58  ;;  %2128 = vmatprep.subr.bf16.mxu1 %v11383_v48 }
 0x17f   : > { %2011 = vmatprep.mubr.bf16.mxu0 %v12938_v61  ;;  %2076 = vmatpush1.bf16.msra.mxu0 %v11360_v3  ;;  %v11450_v3 = vld [vmem:[%s12831_s5 + $0x320] ss:$48 sps:$4 sm:$0xff]  }
 0x180   : > { %2077 = vmatprep.subr.bf16.mxu0 %v11368_v4  ;;  %2055 = vmatmul.mubr.bf16.vlgmr.msra.gmra.mxu1 %v12934_v58  ;;  %v11405_v4 = vld [vmem:[%s12831_s5 + $0x148] ss:$48 sps:$4 sm:$0xff]  }
 0x181   : > { %2129 = vmatpush1.bf16.msra.mxu1 %v11381_v51  ;;  %2064 = vmatprep.mubr.bf16.mxu1 %v12938_v61 }
 0x182   : > { %2130 = vmatprep.subr.bf16.mxu1 %v11389_v52 }
 0x183   : > { %2078 = vmatpush1.bf16.msra.mxu0 %v11366_v8  ;;  %v11419_v8 = vld [vmem:[%s12831_s5 + $0x8c] ss:$48 sps:$4 sm:$0xff]  }
 0x184   : > { %2079 = vmatprep.subr.bf16.mxu0 %v11374_v9  ;;  %v11425_v9 = vld [vmem:[%s12831_s5 + $0x2c] ss:$48 sps:$4 sm:$0xff]  }
 0x185   : > { %2131 = vmatpush1.bf16.msra.mxu1 %v11387_v55 }
 0x186   : > { %2012 = vmatmul.mubr.bf16.gmra.mxu0 %v12948_v6  ;;  %2132 = vmatprep.subr.bf16.mxu1 %v11395_v56 }
 0x187   : > { %2080 = vmatpush1.bf16.msra.mxu0 %v11372_v12  ;;  %2107 = vmatprep.mubr.bf16.mxu0 %v12900_v23  ;;  %v15062_v12 = vmov 0.0  }
 0x188   : > { %2081 = vmatprep.subr.bf16.mxu0 %v11380_v13  ;;  %2065 = vmatmul.mubr.bf16.gmra.mxu1 %v12948_v6  ;;  %v11429_v13 = vld [vmem:[%s12831_s5 + $0x5c8] ss:$48 sps:$4 sm:$0xff]  }
 0x189   : > { %2133 = vmatpush1.bf16.msra.mxu1 %v11393_v60  ;;  %2160 = vmatprep.mubr.bf16.mxu1 %v12900_v23  ;;  %v11417_v23 = vld [vmem:[%s12831_s5 + $0x88] ss:$48 sps:$4 sm:$0xff]  }
 0x18a   : > { %2134 = vmatprep.subr.bf16.mxu1 %v11401_v62 }
 0x18b   : > { %2082 = vmatpush1.bf16.msra.mxu0 %v11378_v16  ;;  %v11443_v16 = vld [vmem:[%s12831_s5 + $0x50c] ss:$48 sps:$4 sm:$0xff]  }
 0x18c   : > { %2083 = vmatprep.subr.bf16.mxu0 %v11386_v17  ;;  %v11441_v17 = vld [vmem:[%s12831_s5 + $0x508] ss:$48 sps:$4 sm:$0xff]  }
 0x18d   : > { %2135 = vmatpush1.bf16.msra.mxu1 %v11399_v1 }
 0x18e   : > { %2136 = vmatprep.subr.bf16.mxu1 %v11407_v2 }
 0x18f   : > { %2084 = vmatpush1.bf16.msra.mxu0 %v11384_v20  ;;  %v11455_v20 = vld [vmem:[%s12831_s5 + $0x44c] ss:$48 sps:$4 sm:$0xff]  }
 0x190   : > { %2085 = vmatprep.subr.bf16.mxu0 %v11392_v21  ;;  %v11453_v21 = vld [vmem:[%s12831_s5 + $0x448] ss:$48 sps:$4 sm:$0xff]  }
 0x191   : > { %2137 = vmatpush1.bf16.msra.mxu1 %v11405_v4 }
 0x192   : > { %2138 = vmatprep.subr.bf16.mxu1 %v11413_v5 }
 0x193   : > { %2086 = vmatpush1.bf16.msra.mxu0 %v11390_v25  ;;  %v11461_v25 = vld [vmem:[%s12831_s5 + $0x38c] ss:$48 sps:$4 sm:$0xff]  }
 0x194   : > { %2087 = vmatprep.subr.bf16.mxu0 %v11398_v26  ;;  %v11459_v26 = vld [vmem:[%s12831_s5 + $0x388] ss:$48 sps:$4 sm:$0xff]  }
 0x195   : > { %2139 = vmatpush1.bf16.msra.mxu1 %v11411_v7 }
 0x196   : > { %2140 = vmatprep.subr.bf16.mxu1 %v11419_v8 }
 0x197   : > { %2088 = vmatpush1.bf16.msra.mxu0 %v11396_v29 }
 0x198   : > { %2089 = vmatprep.subr.bf16.mxu0 %v11404_v30 }
 0x199   : > { %2141 = vmatpush1.bf16.msra.mxu1 %v11417_v23 }
 0x19a   : > { %2142 = vmatprep.subr.bf16.mxu1 %v11425_v9 }
 0x19b   : > { %2090 = vmatpush1.bf16.msra.mxu0 %v11402_v33 }
 0x19c   : > { %2091 = vmatprep.subr.bf16.mxu0 %v11410_v34 }
 0x19d   : > { %2143 = vmatpush1.bf16.msra.mxu1 %v11423_v10 }
 0x19e   : > { %2144 = vmatprep.subr.bf16.mxu1 %v11431_v11 }
 0x19f   : > { %2092 = vmatpush2.bf16.msra.mxu0 %v11408_v37 }
 0x1a0   : > { %2093 = vmatprep.subr.bf16.mxu0 %v11416_v38 }
 0x1a1   : > { %2145 = vmatpush2.bf16.msra.mxu1 %v11429_v13 }
 0x1a2   : > { %2146 = vmatprep.subr.bf16.mxu1 %v11437_v14 }
 0x1a3   : > { %2094 = vmatpush2.bf16.msra.mxu0 %v11414_v41 }
 0x1a4   : > { %2095 = vmatprep.subr.bf16.mxu0 %v11422_v42 }
 0x1a5   : > { %2147 = vmatpush2.bf16.msra.mxu1 %v11435_v15 }
 0x1a6   : > { %2148 = vmatprep.subr.bf16.mxu1 %v11443_v16 }
 0x1a7   : > { %2096 = vmatpush2.bf16.msra.mxu0 %v11420_v45 }
 0x1a8   : > { %2097 = vmatprep.subr.bf16.mxu0 %v11428_v46 }
 0x1a9   : > { %2149 = vmatpush2.bf16.msra.mxu1 %v11441_v17 }
 0x1aa   : > { %2150 = vmatprep.subr.bf16.mxu1 %v11449_v18 }
 0x1ab   : > { %2098 = vmatpush2.bf16.msra.mxu0 %v11426_v49 }
 0x1ac   : > { %2099 = vmatprep.subr.bf16.mxu0 %v11434_v50 }
 0x1ad   : > { %2151 = vmatpush2.bf16.msra.mxu1 %v11447_v19 }
 0x1ae   : > { %2152 = vmatprep.subr.bf16.mxu1 %v11455_v20 }
 0x1af   : > { %2100 = vmatpush2.bf16.msra.mxu0 %v11432_v53 }
 0x1b0   : > { %2101 = vmatprep.subr.bf16.mxu0 %v11440_v54 }
 0x1b1   : > { %2153 = vmatpush2.bf16.msra.mxu1 %v11453_v21 }
 0x1b2   : > { %2154 = vmatprep.subr.bf16.mxu1 %v11458_v22 }
 0x1b3   : > { %2102 = vmatpush2.bf16.msra.mxu0 %v11438_v57 }
 0x1b4   : > { %2103 = vmatprep.subr.bf16.mxu0 %v11446_v59 }
 0x1b5   : > { %2155 = vmatpush2.bf16.msra.mxu1 %v11456_v24 }
 0x1b6   : > { %2156 = vmatprep.subr.bf16.mxu1 %v11461_v25 }
 0x1b7   : > { %2104 = vmatpush2.bf16.msra.mxu0 %v11444_v63 }
 0x1b8   : > { %2105 = vmatprep.subr.bf16.mxu0 %v11452_v0 }
 0x1b9   : > { %2157 = vmatpush2.bf16.msra.mxu1 %v11459_v26 }
 0x1ba   : > { %2158 = vmatprep.subr.bf16.mxu1 %v11464_v27 }
 0x1bb   : > { %2106 = vmatpush2.bf16.msra.mxu0 %v11450_v3 }
 0x1bc   : > { %10621 = vmatprep.subr.bf16.mxu0 %v15062_v12 }
 0x1bd   : > { %2159 = vmatpush2.bf16.msra.mxu1 %v11462_v28  ;;  %v13208_v28 = vld [vmem:[%s15096_s28] sm:$0xff] }
 0x1be   : > { %2108 = vmatmul.mubr.bf16.vlgmr.msra.gmra.mxu0 %v12934_v58  ;;  %10627 = vmatprep.subr.bf16.mxu1 %v15062_v12 }
 0x1bf   : > { %2117 = vmatprep.mubr.bf16.mxu0 %v12938_v61 }
 0x1c0   : > { %2161 = vmatmul.mubr.bf16.vlgmr.msra.gmra.mxu1 %v12934_v58 }
 0x1c1   : > { %2170 = vmatprep.mubr.bf16.mxu1 %v12938_v61 }
 0x1c6   : > { %2118 = vmatmul.mubr.bf16.gmra.mxu0 %v12948_v6 }
 0x1c7   : > { %10623 = vmatprep.mubr.msk.bf16.mxu0 %vm12447_vm0, %v15062_v12 }
 0x1c8   : > { %2171 = vmatmul.mubr.bf16.gmra.mxu1 %v12948_v6 }
 0x1c9   : > { %10629 = vmatprep.mubr.msk.bf16.mxu1 %vm12447_vm0, %v15062_v12 }
 0x1fe   : > { %v1897_v29 = vpop.f32.mrf.mxu0 }
 0x200   : > { %v13117_v30 = vpop.f32.mrf.mxu0  ;;  %v1950_v32 = vpop.f32.mrf.mxu1 }
 0x202   : > { %v1901_v31 = vpop.f32.mrf.mxu0  ;;  %v13121_v34 = vpop.f32.mrf.mxu1 }
 0x203   : > { %v13146_v52 = vpack.c.bf16 %v1901_v31, %v1897_v29 }
 0x204   : > { %v13119_v33 = vpop.f32.mrf.mxu0  ;;  %v1954_v36 = vpop.f32.mrf.mxu1 }
 0x205   : > { %v13123_v37 = vpack.c.bf16 %v1954_v36, %v1950_v32 }
 0x206   : > { %v1907_v35 = vpop.f32.mrf.mxu0  ;;  %v13125_v58 = vpop.f32.mrf.mxu1 }
 0x208   : > { %v13127_v61 = vpop.f32.mrf.mxu0  ;;  %v1960_v6 = vpop.f32.mrf.mxu1 }
 0x20a   : > { %v13129_v38 = vpop.f32.mrf.mxu1  ;;  %v1911_v39 = vpop.f32.mrf.mxu0 }
 0x20b   : > { %v13157_v55 = vpack.c.bf16 %v1911_v39, %v1907_v35 }
 0x20c   : > { %v1964_v40 = vpop.f32.mrf.mxu1  ;;  %v13133_v42 = vpop.f32.mrf.mxu0 }
 0x20d   : > { %v13131_v41 = vpack.c.bf16 %v1964_v40, %v1960_v6  ;;  %v13216_v6 = vld [vmem:[%s15097_s29 + $0x8] sm:$0xff] }
 0x20e   : > { %v13163_v56 = vpop.f32.mrf.mxu1 }
 0x23e   : > { %v2003_v43 = vpop.f32.mrf.mxu0 }
 0x240   : > { %v13135_v44 = vpop.f32.mrf.mxu0  ;;  %v2056_v57 = vpop.f32.mrf.mxu1 }
 0x242   : > { %v2007_v45 = vpop.f32.mrf.mxu0  ;;  %v13165_v59 = vpop.f32.mrf.mxu1 }
 0x243   : > { %v13137_v46 = vpack.c.bf16 %v2007_v45, %v2003_v43 }
 0x244   : > { %v13139_v47 = vpop.f32.mrf.mxu0  ;;  %v2060_v60 = vpop.f32.mrf.mxu1 }
 0x245   : > { %v2218_v48 = vsel %vm2213_vm1, %v13137_v46, 0  ;;  %v13167_v62 = vpack.c.bf16 %v2060_v60, %v2056_v57 }
 0x246   : > { %v2013_v49 = vpop.f32.mrf.mxu0  ;;  %10622 = vmatpush3.bf16.xpose.msra.mxu0 %v2218_v48  ;;  %v13169_v63 = vpop.f32.mrf.mxu1 }
 0x247   : > { %10633 = vmatprep.subr.bf16.mxu0 %v15062_v12 }
 0x248   : > { %v13144_v50 = vpop.f32.mrf.mxu0  ;;  %v2066_v0 = vpop.f32.mrf.mxu1 }
 0x24a   : > { %v2017_v51 = vpop.f32.mrf.mxu0  ;;  %v13171_v1 = vpop.f32.mrf.mxu1 }
 0x24b   : > { %v13148_v53 = vpack.c.bf16 %v2017_v51, %v2013_v49  ;;  %v13223_v49 = vld [vmem:[%s15097_s29 + $0x10] sm:$0xff] }
 0x24c   : > { %v2070_v2 = vpop.f32.mrf.mxu1  ;;  %v13175_v4 = vpop.f32.mrf.mxu0 }
 0x24d   : > { %v2265_v54 = vsel %vm2213_vm1, %v13148_v53, 0  ;;  %10624 = vmatmul.mubr.msk.bf16.vlgmr.msra.gmra.mxu0 %vm2213_vm1, %v13146_v52  ;;  %v13173_v3 = vpack.c.bf16 %v2070_v2, %v2066_v0  ;;  %v13230_v2 = vld [vmem:[%s15097_s29 + $0x18] sm:$0xff] }
 0x24e   : > { %10628 = vmatpush3.bf16.xpose.msra.mxu1 %v2265_v54  ;;  %10635 = vmatprep.mubr.msk.bf16.mxu0 %vm12447_vm0, %v15062_v12  ;;  %v13191_v15 = vpop.f32.mrf.mxu1 }
 0x24f   : > { %10639 = vmatprep.subr.bf16.mxu1 %v15062_v12 }
 0x255   : > { %10630 = vmatmul.mubr.msk.bf16.vlgmr.msra.gmra.mxu1 %vm2213_vm1, %v13157_v55 }
 0x256   : > { %10641 = vmatprep.mubr.msk.bf16.mxu1 %vm12447_vm0, %v15062_v12 }
 0x27e   : > { %v2109_v5 = vpop.f32.mrf.mxu0 }
 0x280   : > { %v13177_v7 = vpop.f32.mrf.mxu0  ;;  %v2162_v16 = vpop.f32.mrf.mxu1 }
 0x282   : > { %v2113_v8 = vpop.f32.mrf.mxu0  ;;  %v13193_v17 = vpop.f32.mrf.mxu1 }
 0x283   : > { %v13179_v23 = vpack.c.bf16 %v2113_v8, %v2109_v5 }
 0x284   : > { %v13181_v9 = vpop.f32.mrf.mxu0  ;;  %v2166_v18 = vpop.f32.mrf.mxu1 }
 0x285   : > { %10634 = vmatpush3.bf16.msra.mxu0 %v13179_v23  ;;  %v13195_v19 = vpack.c.bf16 %v2166_v18, %v2162_v16 }
 0x286   : > { %v2119_v10 = vpop.f32.mrf.mxu0  ;;  %10645 = vmatprep.subr.bf16.mxu0 %v15062_v12  ;;  %v13197_v20 = vpop.f32.mrf.mxu1 }
 0x288   : > { %v13185_v11 = vpop.f32.mrf.mxu0  ;;  %v2172_v21 = vpop.f32.mrf.mxu1 }
 0x28a   : > { %v2123_v13 = vpop.f32.mrf.mxu0  ;;  %v13199_v22 = vpop.f32.mrf.mxu1 }
 0x28b   : > { %v13187_v14 = vpack.c.bf16 %v2123_v13, %v2119_v10 }
 0x28c   : > { %v2176_v24 = vpop.f32.mrf.mxu1  ;;  %v13203_v26 = vpop.f32.mrf.mxu0 }
 0x28d   : > { %10640 = vmatpush3.bf16.msra.mxu1 %v13187_v14  ;;  %v13201_v25 = vpack.c.bf16 %v2176_v24, %v2172_v21 }
 0x28e   : > { %10651 = vmatprep.subr.bf16.mxu1 %v15062_v12  ;;  %v13211_v36 = vpop.f32.mrf.mxu1 }
 0x30d   : > { %v2254_v27 = vpop.f32.mrf.mxu0 }
 0x30e   : > { %v2308_v29 = vmul.f32 0.125, %v2254_v27 }
 0x30f   : > { %v10625_v31 = vpop.f32.mrf.mxu0 }
 0x310   : > { %v2312_v32 = vadd.f32 %v2308_v29, %v13208_v28 }
 0x311   : > { %v2257_v35 = vpop.f32.mrf.mxu0 }
 0x312   : > { %v2309_v39 = vmul.f32 0.125, %v2257_v35  ;;  %v2317_v40 = vsel %vm2316_vm2, %v2312_v32, -inf }
 0x313   : > { %2318 = vmax.xlane.f32.xlu0 %v2317_v40  ;;  %v10626_v43 = vpop.f32.mrf.mxu0 }
 0x314   : > { %v2313_v45 = vadd.f32 %v2309_v39, %v13216_v6 }
 0x315   : > { %v2301_v48 = vpop.f32.mrf.mxu1 }
 0x316   : > { %v2310_v51 = vmul.f32 0.125, %v2301_v48  ;;  %v2320_v54 = vsel %vm2316_vm2, %v2313_v45, -inf }
 0x317   : > { %v10631_v57 = vpop.f32.mrf.mxu1  ;;  %2321 = vmax.xlane.f32.xlu0 %v2320_v54 }
 0x318   : > { %v2314_v60 = vadd.f32 %v2310_v51, %v13223_v49 }
 0x319   : > { %v2304_v0 = vpop.f32.mrf.mxu1 }
 0x31a   : > { %v2311_v5 = vmul.f32 0.125, %v2304_v0  ;;  %v2323_v8 = vsel %vm2316_vm2, %v2314_v60, -inf }
 0x31b   : > { %2324 = vmax.xlane.f32.xlu1 %v2323_v8  ;;  %v10632_v10 = vpop.f32.mrf.mxu1 }
 0x31c   : > { %v2315_v13 = vadd.f32 %v2311_v5, %v13230_v2 }
 0x31e   : > { %v2326_v16 = vsel %vm2316_vm2, %v2315_v13, -inf }
 0x31f   : > { %2327 = vmax.xlane.f32.xlu1 %v2326_v16 }
 0x39c   : > { %v2319_v18 = vpop.xlane.xlu0 %2318 }
 0x39d   : > { %v2329_v21 = vsub.f32 %v2312_v32, %v2319_v18  ;;  %v13250_v18 = vld [vmem:[%s15098_s19] sm:$0xff] }
 0x39f   : > { %v2333_v24 = vmul.f32 1.442695, %v2329_v21  ;;  %v13255_v21 = vld [vmem:[%s15098_s19 + $0x8] sm:$0xff] }
 0x3a0   : > { %v2322_v27 = vpop.xlane.xlu0 %2321 }
 0x3a1   : > { %11855 = vpow2.f32 %v2333_v24  ;;  %v2330_v29 = vsub.f32 %v2313_v45, %v2322_v27 }
 0x3a3   : > { %v2335_v31 = vmul.f32 1.442695, %v2330_v29 }
 0x3a4   : > { %v2325_v48 = vpop.xlane.xlu1 %2324 }
 0x3a5   : > { %11857 = vpow2.f32 %v2335_v31  ;;  %v2331_v51 = vsub.f32 %v2314_v60, %v2325_v48 }
 0x3a7   : > { %v2337_v57 = vmul.f32 1.442695, %v2331_v51  ;;  %v13275_v51 = vld [vmem:[%s15098_s19 + $0x18] sm:$0xff] }
 0x3a8   : > { %v2328_v32 = vpop.xlane.xlu1 %2327 }
 0x3a9   : > { %v2332_v45 = vsub.f32 %v2315_v13, %v2328_v32 }
 0x3ab   : > { %v2339_v54 = vmul.f32 1.442695, %v2332_v45  ;;  %v13270_v45 = vld [vmem:[%s15098_s19 + $0x10] sm:$0xff] }
 0x3ad   : > { %11859 = vpow2.f32 %v2339_v54 }
 0x3ae   : > { %v11856_v35 = vpop.eup %11855  ;;  %11861 = vpow2.f32 %v2337_v57 }
 0x3af   : > { %v2341_v39 = vsel %vm2316_vm2, %v11856_v35, 0.0 }
 0x3b0   : > { %2342 = vadd.xlane.f32.xlu0 %v2341_v39 }
 0x3b2   : > { %v11858_v40 = vpop.eup %11857 }
 0x3b3   : > { %v2344_v43 = vsel %vm2316_vm2, %v11858_v40, 0.0 }
 0x3b4   : > { %2345 = vadd.xlane.f32.xlu1 %v2344_v43 }
 0x3ba   : > { %v11860_v0 = vpop.eup %11859 }
 0x3bb   : > { %v2350_v5 = vsel %vm2316_vm2, %v11860_v0, 0.0  ;;  %v11862_v8 = vpop.eup %11861 }
 0x3bc   : > { %v2347_v10 = vsel %vm2316_vm2, %v11862_v8, 0.0 }
 0x3c5   : > { %2456 = vrot.lane.b32.xlu1 %v13146_v52, %s12448_s30 }
 0x3c6   : > { %2459 = vrot.lane.b32.xlu0 %v13137_v46, %s12448_s30 }
 0x3e5   : > { %2351 = vadd.xlane.f32.xlu0 %v2350_v5 }
 0x3e9   : > { %2348 = vadd.xlane.f32.xlu1 %v2347_v10 }
 0x3fa   : > { %2509 = vrot.lane.b32.xlu1 %v13157_v55, %s12448_s30 }
 0x3fb   : > { %2512 = vrot.lane.b32.xlu0 %v13148_v53, %s12448_s30 }
 0x439   : > { %v2343_v46 = vpop.xlane.xlu0 %2342 }
 0x43a   : > { %11863 = vrcp.f32 %v2343_v46 }
 0x43d   : > { %v2346_v52 = vpop.xlane.xlu1 %2345  ;;  %v2460_v27 = vpop.permute.xlu0 %2459 }
 0x43e   : > { %11865 = vrcp.f32 %v2346_v52  ;;  %v2465_v31 = vsel %vm2213_vm1, %v2460_v27, 0 }
 0x447   : > { %v11864_v60 = vpop.eup %11863 }
 0x448   : > { %v2357_v13 = vmul.f32 %v11864_v60, %v11856_v35  ;;  %v2457_v35 = vpop.permute.xlu1 %2456 }
 0x44a   : > { %v2361_v53 = vmul.f32 %v2357_v13, %v13250_v18 }
 0x44b   : > { %v11866_v16 = vpop.eup %11865 }
 0x44c   : > { %v2358_v55 = vmul.f32 %v11866_v16, %v11858_v40 }
 0x44e   : > { %v2362_v24 = vmul.f32 %v2358_v55, %v13255_v21 }
 0x450   : > { %v2365_v29 = vpack.c.bf16 %v2362_v24, %v2361_v53 }
 0x452   : > { %10636 = vmatmul.mubr.msk.bf16.vlgmr.msra.gmra.mxu0 %vm2316_vm2, %v2365_v29 }
 0x453   : > { %10646 = vmatpush3.bf16.xpose.msra.mxu0 %v2465_v31  ;;  %10647 = vmatprep.mubr.msk.bf16.mxu0 %vm12447_vm0, %v15062_v12 }
 0x454   : > { %10657 = vmatprep.subr.bf16.mxu0 %v15062_v12 }
 0x45a   : > { %10648 = vmatmul.mubr.msk.bf16.vlgmr.msra.gmra.mxu0 %vm2213_vm1, %v2457_v35 }
 0x45b   : > { %10659 = vmatprep.mubr.msk.bf16.mxu0 %vm12447_vm0, %v15062_v12 }
 0x46e   : > { %v2352_v39 = vpop.xlane.xlu0 %2351 }
 0x46f   : > { %11867 = vrcp.f32 %v2352_v39 }
 0x472   : > { %v2349_v40 = vpop.xlane.xlu1 %2348  ;;  %v2513_v10 = vpop.permute.xlu0 %2512 }
 0x473   : > { %11869 = vrcp.f32 %v2349_v40 }
 0x476   : > { %v2510_v52 = vpop.permute.xlu1 %2509 }
 0x47c   : > { %v11868_v43 = vpop.eup %11867 }
 0x47d   : > { %v2360_v48 = vmul.f32 %v11868_v43, %v11860_v0  ;;  %v2518_v0 = vsel %vm2213_vm1, %v2513_v10, 0 }
 0x47f   : > { %v2364_v5 = vmul.f32 %v2360_v48, %v13275_v51 }
 0x480   : > { %v11870_v32 = vpop.eup %11869 }
 0x481   : > { %v2359_v54 = vmul.f32 %v11870_v32, %v11862_v8 }
 0x483   : > { %v2363_v57 = vmul.f32 %v2359_v54, %v13270_v45 }
 0x485   : > { %v2366_v46 = vpack.c.bf16 %v2364_v5, %v2363_v57 }
 0x487   : > { %10642 = vmatmul.mubr.msk.bf16.vlgmr.msra.gmra.mxu1 %vm2316_vm2, %v2366_v46 }
 0x488   : > { %10652 = vmatpush3.bf16.xpose.msra.mxu1 %v2518_v0  ;;  %10653 = vmatprep.mubr.msk.bf16.mxu1 %vm12447_vm0, %v15062_v12 }
 0x489   : > { %10663 = vmatprep.subr.bf16.mxu1 %v15062_v12 }
 0x48f   : > { %10654 = vmatmul.mubr.msk.bf16.vlgmr.msra.gmra.mxu1 %vm2213_vm1, %v2510_v52 }
 0x490   : > { %10665 = vmatprep.mubr.msk.bf16.mxu1 %vm12447_vm0, %v15062_v12 }
 0x512   : > { %v13287_v8 = vpop.f32.mrf.mxu0 }
 0x514   : > { %v10637_v60 = vpop.f32.mrf.mxu0 }
 0x516   : > { %v13289_v13 = vpop.f32.mrf.mxu0 }
 0x518   : > { %v10638_v16 = vpop.f32.mrf.mxu0 }
 0x51a   : > { %v2501_v55 = vpop.f32.mrf.mxu0 }
 0x51b   : > { %v2561_v53 = vmul.f32 0.125, %v2501_v55 }
 0x51c   : > { %v10649_v24 = vpop.f32.mrf.mxu0 }
 0x51d   : > { %v2565_v27 = vadd.f32 %v2561_v53, %v13208_v28 }
 0x51e   : > { %v2504_v29 = vpop.f32.mrf.mxu0 }
 0x51f   : > { %v2562_v31 = vmul.f32 0.125, %v2504_v29  ;;  %v2569_v35 = vsel %vm2316_vm2, %v2565_v27, -inf }
 0x520   : > { %2570 = vmax.xlane.f32.xlu1 %v2569_v35  ;;  %v10650_v39 = vpop.f32.mrf.mxu0 }
 0x521   : > { %v2566_v40 = vadd.f32 %v2562_v31, %v13216_v6 }
 0x523   : > { %v2572_v43 = vsel %vm2316_vm2, %v2566_v40, -inf }
 0x524   : > { %2573 = vmax.xlane.f32.xlu0 %v2572_v43 }
 0x547   : > { %v13295_v48 = vpop.f32.mrf.mxu1 }
 0x549   : > { %v10643_v32 = vpop.f32.mrf.mxu1 }
 0x54b   : > { %v13297_v54 = vpop.f32.mrf.mxu1 }
 0x54d   : > { %v10644_v57 = vpop.f32.mrf.mxu1 }
 0x54f   : > { %v2554_v5 = vpop.f32.mrf.mxu1 }
 0x550   : > { %v2563_v10 = vmul.f32 0.125, %v2554_v5 }
 0x551   : > { %v10655_v46 = vpop.f32.mrf.mxu1 }
 0x552   : > { %v2567_v0 = vadd.f32 %v2563_v10, %v13223_v49 }
 0x553   : > { %v2557_v52 = vpop.f32.mrf.mxu1 }
 0x554   : > { %v2564_v60 = vmul.f32 0.125, %v2557_v52  ;;  %v2575_v16 = vsel %vm2316_vm2, %v2567_v0, -inf }
 0x555   : > { %v10656_v55 = vpop.f32.mrf.mxu1  ;;  %2576 = vmax.xlane.f32.xlu0 %v2575_v16 }
 0x556   : > { %v2568_v53 = vadd.f32 %v2564_v60, %v13230_v2 }
 0x558   : > { %v2578_v24 = vsel %vm2316_vm2, %v2568_v53, -inf }
 0x559   : > { %2579 = vmax.xlane.f32.xlu1 %v2578_v24 }
 0x5a9   : > { %v2571_v29 = vpop.xlane.xlu1 %2570 }
 0x5aa   : > { %v2581_v31 = vsub.f32 %v2565_v27, %v2571_v29 }
 0x5ac   : > { %v2585_v35 = vmul.f32 1.442695, %v2581_v31 }
 0x5ad   : > { %v2574_v39 = vpop.xlane.xlu0 %2573 }
 0x5ae   : > { %11871 = vpow2.f32 %v2585_v35  ;;  %v2582_v43 = vsub.f32 %v2566_v40, %v2574_v39 }
 0x5b0   : > { %v2587_v32 = vmul.f32 1.442695, %v2582_v43 }
 0x5b2   : > { %11873 = vpow2.f32 %v2587_v32 }
 0x5bb   : > { %v11872_v57 = vpop.eup %11871 }
 0x5bc   : > { %v2593_v5 = vsel %vm2316_vm2, %v11872_v57, 0.0 }
 0x5bd   : > { %2594 = vadd.xlane.f32.xlu0 %v2593_v5 }
 0x5bf   : > { %v11874_v10 = vpop.eup %11873 }
 0x5c0   : > { %v2596_v46 = vsel %vm2316_vm2, %v11874_v10, 0.0 }
 0x5c1   : > { %2597 = vadd.xlane.f32.xlu1 %v2596_v46  ;;  %v13314_v46 = vpack.c.bf16 %v13139_v47, %v13135_v44  ;;  %v13326_v44 = vpack.c.bf16 %v13119_v33, %v13117_v30  ;;  %v13330_v47 = vpack.c.bf16 %v13181_v9, %v13177_v7 }
 0x5d3   : > { %2620 = vrot.lane.b32.xlu0 %v13179_v23, %s12448_s30 }
 0x5de   : > { %v2577_v52 = vpop.xlane.xlu0 %2576 }
 0x5df   : > { %v2583_v60 = vsub.f32 %v2567_v0, %v2577_v52 }
 0x5e1   : > { %v2589_v27 = vmul.f32 1.442695, %v2583_v60 }
 0x5e2   : > { %v2580_v16 = vpop.xlane.xlu1 %2579 }
 0x5e3   : > { %11875 = vpow2.f32 %v2589_v27  ;;  %v2584_v55 = vsub.f32 %v2568_v53, %v2580_v16  ;;  %v2719_v27 = vsel %vm2213_vm1, %v13314_v46, 0 }
 0x5e5   : > { %v2591_v40 = vmul.f32 1.442695, %v2584_v55  ;;  %v13341_v55 = vpack.c.bf16 %v13175_v4, %v13144_v50  ;;  %v13353_v50 = vpack.c.bf16 %v13133_v42, %v13127_v61  ;;  %v13357_v4 = vpack.c.bf16 %v13203_v26, %v13185_v11 }
 0x5e7   : > { %11877 = vpow2.f32 %v2591_v40 }
 0x5f0   : > { %v11876_v24 = vpop.eup %11875 }
 0x5f1   : > { %v2599_v29 = vsel %vm2316_vm2, %v11876_v24, 0.0 }
 0x5f2   : > { %2600 = vadd.xlane.f32.xlu1 %v2599_v29 }
 0x5f4   : > { %v11878_v31 = vpop.eup %11877 }
 0x5f5   : > { %v2602_v35 = vsel %vm2316_vm2, %v11878_v31, 0.0 }
 0x5f6   : > { %2603 = vadd.xlane.f32.xlu1 %v2602_v35 }
 0x607   : > { %2668 = vrot.lane.b32.xlu1 %v13187_v14, %s12448_s30 }
 0x646   : > { %v2595_v23 = vpop.xlane.xlu0 %2594 }
 0x647   : > { %11879 = vrcp.f32 %v2595_v23  ;;  %v2766_v23 = vsel %vm2213_vm1, %v13341_v55, 0 }
 0x64a   : > { %v2598_v0 = vpop.xlane.xlu1 %2597  ;;  %v2621_v39 = vpop.permute.xlu0 %2620 }
 0x64b   : > { %11881 = vrcp.f32 %v2598_v0  ;;  %10658 = vmatpush3.bf16.msra.mxu0 %v2621_v39 }
 0x64c   : > { %10669 = vmatprep.subr.bf16.mxu0 %v15062_v12 }
 0x654   : > { %v11880_v53 = vpop.eup %11879 }
 0x655   : > { %v2609_v43 = vmul.f32 %v11880_v53, %v11872_v57 }
 0x657   : > { %v2613_v52 = vmul.f32 %v2609_v43, %v13250_v18 }
 0x658   : > { %v11882_v32 = vpop.eup %11881 }
 0x659   : > { %v2610_v5 = vmul.f32 %v11882_v32, %v11874_v10 }
 0x65b   : > { %v2614_v14 = vmul.f32 %v2610_v5, %v13255_v21 }
 0x65d   : > { %v2617_v60 = vpack.c.bf16 %v2614_v14, %v2613_v52 }
 0x65f   : > { %10660 = vmatmul.mubr.msk.bf16.vlgmr.msra.gmra.mxu0 %vm2316_vm2, %v2617_v60 }
 0x660   : > { %10670 = vmatpush3.bf16.xpose.msra.mxu0 %v2719_v27  ;;  %10671 = vmatprep.mubr.msk.bf16.mxu0 %vm12447_vm0, %v15062_v12 }
 0x661   : > { %10681 = vmatprep.subr.bf16.mxu0 %v15062_v12 }
 0x667   : > { %10672 = vmatmul.mubr.msk.bf16.vlgmr.msra.gmra.mxu0 %vm2213_vm1, %v13326_v44 }
 0x668   : > { %10682 = vmatpush3.bf16.msra.mxu0 %v13330_v47  ;;  %10683 = vmatprep.mubr.msk.bf16.mxu0 %vm12447_vm0, %v15062_v12 }
 0x669   : > { %10693 = vmatprep.subr.bf16.mxu0 %v15062_v12 }
 0x67b   : > { %v2601_v57 = vpop.xlane.xlu1 %2600 }
 0x67c   : > { %11883 = vrcp.f32 %v2601_v57 }
 0x67f   : > { %v2604_v10 = vpop.xlane.xlu1 %2603 }
 0x680   : > { %11885 = vrcp.f32 %v2604_v10 }
 0x683   : > { %v2669_v30 = vpop.permute.xlu1 %2668 }
 0x684   : > { %10664 = vmatpush3.bf16.msra.mxu1 %v2669_v30 }
 0x685   : > { %10675 = vmatprep.subr.bf16.mxu1 %v15062_v12 }
 0x689   : > { %v11884_v33 = vpop.eup %11883 }
 0x68a   : > { %v2611_v7 = vmul.f32 %v11884_v33, %v11876_v24 }
 0x68c   : > { %v2615_v40 = vmul.f32 %v2611_v7, %v13270_v45 }
 0x68d   : > { %v11886_v9 = vpop.eup %11885 }
 0x68e   : > { %v2612_v16 = vmul.f32 %v11886_v9, %v11878_v31 }
 0x690   : > { %v2616_v29 = vmul.f32 %v2612_v16, %v13275_v51 }
 0x692   : > { %v2618_v35 = vpack.c.bf16 %v2616_v29, %v2615_v40 }
 0x694   : > { %10666 = vmatmul.mubr.msk.bf16.vlgmr.msra.gmra.mxu1 %vm2316_vm2, %v2618_v35 }
 0x695   : > { %10676 = vmatpush3.bf16.xpose.msra.mxu1 %v2766_v23  ;;  %10677 = vmatprep.mubr.msk.bf16.mxu1 %vm12447_vm0, %v15062_v12 }
 0x696   : > { %10687 = vmatprep.subr.bf16.mxu1 %v15062_v12 }
 0x69c   : > { %10678 = vmatmul.mubr.msk.bf16.vlgmr.msra.gmra.mxu1 %vm2213_vm1, %v13353_v50 }
 0x69d   : > { %10688 = vmatpush3.bf16.msra.mxu1 %v13357_v4  ;;  %10689 = vmatprep.mubr.msk.bf16.mxu1 %vm12447_vm0, %v15062_v12 }
 0x69e   : > { %10699 = vmatprep.subr.bf16.mxu1 %v15062_v12 }
 0x71f   : > { %v13365_v24 = vpop.f32.mrf.mxu0 }
 0x721   : > { %v10661_v31 = vpop.f32.mrf.mxu0 }
 0x723   : > { %v13367_v0 = vpop.f32.mrf.mxu0 }
 0x724   : > { %v11102_v61 = vpack.i.bf16 %v13367_v0, %v13365_v24 }
 0x725   : > { %v10662_v42 = vpop.f32.mrf.mxu0 }
 0x727   : > { %v2755_v11 = vpop.f32.mrf.mxu0 }
 0x728   : > { %v2809_v26 = vmul.f32 0.125, %v2755_v11 }
 0x729   : > { %v10673_v39 = vpop.f32.mrf.mxu0 }
 0x72a   : > { %v2813_v53 = vadd.f32 %v2809_v26, %v13208_v28 }
 0x72b   : > { %v2758_v43 = vpop.f32.mrf.mxu0 }
 0x72c   : > { %v2810_v32 = vmul.f32 0.125, %v2758_v43  ;;  %v2817_v5 = vsel %vm2316_vm2, %v2813_v53, -inf }
 0x72d   : > { %2818 = vmax.xlane.f32.xlu0 %v2817_v5  ;;  %v10674_v52 = vpop.f32.mrf.mxu0 }
 0x72e   : > { %v2814_v14 = vadd.f32 %v2810_v32, %v13216_v6 }
 0x730   : > { %v2820_v60 = vsel %vm2316_vm2, %v2814_v14, -inf }
 0x731   : > { %2821 = vmax.xlane.f32.xlu1 %v2820_v60 }
 0x754   : > { %v13375_v27 = vpop.f32.mrf.mxu1 }
 0x756   : > { %v10667_v57 = vpop.f32.mrf.mxu1 }
 0x758   : > { %v13377_v10 = vpop.f32.mrf.mxu1 }
 0x759   : > { %v11122_v30 = vpack.i.bf16 %v13377_v10, %v13375_v27 }
 0x75a   : > { %v10668_v33 = vpop.f32.mrf.mxu1 }
 0x75c   : > { %v2802_v7 = vpop.f32.mrf.mxu1 }
 0x75d   : > { %v2811_v9 = vmul.f32 0.125, %v2802_v7 }
 0x75e   : > { %v10679_v16 = vpop.f32.mrf.mxu1 }
 0x75f   : > { %v2815_v40 = vadd.f32 %v2811_v9, %v13223_v49 }
 0x760   : > { %v2805_v29 = vpop.f32.mrf.mxu1 }
 0x761   : > { %v2812_v35 = vmul.f32 0.125, %v2805_v29  ;;  %v2823_v23 = vsel %vm2316_vm2, %v2815_v40, -inf }
 0x762   : > { %v10680_v31 = vpop.f32.mrf.mxu1  ;;  %2824 = vmax.xlane.f32.xlu0 %v2823_v23 }
 0x763   : > { %v2816_v42 = vadd.f32 %v2812_v35, %v13230_v2 }
 0x765   : > { %v2826_v11 = vsel %vm2316_vm2, %v2816_v42, -inf }
 0x766   : > { %2827 = vmax.xlane.f32.xlu0 %v2826_v11 }
 0x7b6   : > { %v2819_v26 = vpop.xlane.xlu0 %2818 }
 0x7b7   : > { %v2829_v39 = vsub.f32 %v2813_v53, %v2819_v26 }
 0x7b9   : > { %v2833_v43 = vmul.f32 1.442695, %v2829_v39 }
 0x7ba   : > { %v2822_v32 = vpop.xlane.xlu1 %2821 }
 0x7bb   : > { %11887 = vpow2.f32 %v2833_v43  ;;  %v2830_v5 = vsub.f32 %v2814_v14, %v2822_v32 }
 0x7bd   : > { %v2835_v52 = vmul.f32 1.442695, %v2830_v5 }
 0x7bf   : > { %11889 = vpow2.f32 %v2835_v52 }
 0x7c8   : > { %v11888_v60 = vpop.eup %11887 }
 0x7c9   : > { %v2841_v57 = vsel %vm2316_vm2, %v11888_v60, 0.0 }
 0x7ca   : > { %2842 = vadd.xlane.f32.xlu0 %v2841_v57 }
 0x7cc   : > { %v11890_v33 = vpop.eup %11889 }
 0x7cd   : > { %v2844_v7 = vsel %vm2316_vm2, %v11890_v33, 0.0 }
 0x7ce   : > { %2845 = vadd.xlane.f32.xlu1 %v2844_v7 }
 0x7df   : > { %2956 = vrot.lane.b32.xlu1 %v13326_v44, %s12448_s30 }
 0x7e0   : > { %2959 = vrot.lane.b32.xlu0 %v13314_v46, %s12448_s30 }
 0x7eb   : > { %v2825_v53 = vpop.xlane.xlu0 %2824 }
 0x7ec   : > { %v2831_v9 = vsub.f32 %v2815_v40, %v2825_v53 }
 0x7ee   : > { %v2837_v16 = vmul.f32 1.442695, %v2831_v9 }
 0x7ef   : > { %v2828_v14 = vpop.xlane.xlu0 %2827 }
 0x7f0   : > { %v2832_v29 = vsub.f32 %v2816_v42, %v2828_v14  ;;  %11891 = vpow2.f32 %v2837_v16 }
 0x7f2   : > { %v2839_v35 = vmul.f32 1.442695, %v2832_v29 }
 0x7f4   : > { %11893 = vpow2.f32 %v2839_v35 }
 0x7fd   : > { %v11892_v23 = vpop.eup %11891 }
 0x7fe   : > { %v2847_v26 = vsel %vm2316_vm2, %v11892_v23, 0.0 }
 0x801   : > { %v11894_v31 = vpop.eup %11893 }
 0x802   : > { %v2850_v11 = vsel %vm2316_vm2, %v11894_v31, 0.0 }
 0x803   : > { %2851 = vadd.xlane.f32.xlu0 %v2850_v11  ;;  %2848 = vadd.xlane.f32.xlu1 %v2847_v26 }
 0x814   : > { %3009 = vrot.lane.b32.xlu1 %v13353_v50, %s12448_s30 }
 0x819   : > { %3012 = vrot.lane.b32.xlu0 %v13341_v55, %s12448_s30 }
 0x853   : > { %v2843_v46 = vpop.xlane.xlu0 %2842 }
 0x854   : > { %11895 = vrcp.f32 %v2843_v46 }
 0x857   : > { %v2846_v44 = vpop.xlane.xlu1 %2845  ;;  %v2960_v52 = vpop.permute.xlu0 %2959 }
 0x858   : > { %11897 = vrcp.f32 %v2846_v44  ;;  %v2965_v7 = vsel %vm2213_vm1, %v2960_v52, 0 }
 0x85b   : > { %v2957_v55 = vpop.permute.xlu1 %2956 }
 0x861   : > { %v11896_v40 = vpop.eup %11895 }
 0x862   : > { %v2857_v42 = vmul.f32 %v11896_v40, %v11888_v60 }
 0x864   : > { %v2861_v32 = vmul.f32 %v2857_v42, %v13250_v18 }
 0x865   : > { %v11898_v39 = vpop.eup %11897 }
 0x866   : > { %v2858_v43 = vmul.f32 %v11898_v39, %v11890_v33 }
 0x868   : > { %v2862_v5 = vmul.f32 %v2858_v43, %v13255_v21 }
 0x86a   : > { %v2865_v57 = vpack.c.bf16 %v2862_v5, %v2861_v32 }
 0x86c   : > { %10684 = vmatmul.mubr.msk.bf16.vlgmr.msra.gmra.mxu0 %vm2316_vm2, %v2865_v57 }
 0x86d   : > { %10694 = vmatpush3.bf16.xpose.msra.mxu0 %v2965_v7  ;;  %10695 = vmatprep.mubr.msk.bf16.mxu0 %vm12447_vm0, %v15062_v12 }
 0x86e   : > { %10705 = vmatprep.subr.bf16.mxu0 %v15062_v12 }
 0x874   : > { %10696 = vmatmul.mubr.msk.bf16.vlgmr.msra.gmra.mxu0 %vm2213_vm1, %v2957_v55 }
 0x875   : > { %10707 = vmatprep.mubr.msk.bf16.mxu0 %vm12447_vm0, %v15062_v12 }
 0x88c   : > { %v2852_v50 = vpop.xlane.xlu0 %2851  ;;  %v2849_v60 = vpop.xlane.xlu1 %2848 }
 0x88d   : > { %11899 = vrcp.f32 %v2852_v50 }
 0x88e   : > { %11901 = vrcp.f32 %v2849_v60 }
 0x890   : > { %v3013_v35 = vpop.permute.xlu0 %3012  ;;  %v3010_v46 = vpop.permute.xlu1 %3009 }
 0x891   : > { %v3018_v26 = vsel %vm2213_vm1, %v3013_v35, 0 }
 0x89a   : > { %v11900_v33 = vpop.eup %11899 }
 0x89b   : > { %v11902_v53 = vpop.eup %11901  ;;  %v2860_v9 = vmul.f32 %v11900_v33, %v11894_v31 }
 0x89c   : > { %v2859_v16 = vmul.f32 %v11902_v53, %v11892_v23 }
 0x89d   : > { %v2864_v14 = vmul.f32 %v2860_v9, %v13275_v51 }
 0x89e   : > { %v2863_v29 = vmul.f32 %v2859_v16, %v13270_v45 }
 0x8a0   : > { %v2866_v11 = vpack.c.bf16 %v2864_v14, %v2863_v29 }
 0x8a2   : > { %10690 = vmatmul.mubr.msk.bf16.vlgmr.msra.gmra.mxu1 %vm2316_vm2, %v2866_v11 }
 0x8a3   : > { %10700 = vmatpush3.bf16.xpose.msra.mxu1 %v3018_v26  ;;  %10701 = vmatprep.mubr.msk.bf16.mxu1 %vm12447_vm0, %v15062_v12 }
 0x8a4   : > { %10711 = vmatprep.subr.bf16.mxu1 %v15062_v12 }
 0x8aa   : > { %10702 = vmatmul.mubr.msk.bf16.vlgmr.msra.gmra.mxu1 %vm2213_vm1, %v3010_v46 }
 0x8ab   : > { %10713 = vmatprep.mubr.msk.bf16.mxu1 %vm12447_vm0, %v15062_v12 }
 0x92c   : > { %v13417_v23 = vpop.f32.mrf.mxu0 }
 0x92e   : > { %v10685_v31 = vpop.f32.mrf.mxu0 }
 0x930   : > { %v13419_v44 = vpop.f32.mrf.mxu0 }
 0x932   : > { %v10686_v40 = vpop.f32.mrf.mxu0 }
 0x934   : > { %v3001_v42 = vpop.f32.mrf.mxu0 }
 0x935   : > { %v3061_v39 = vmul.f32 0.125, %v3001_v42 }
 0x936   : > { %v10697_v43 = vpop.f32.mrf.mxu0 }
 0x937   : > { %v3065_v32 = vadd.f32 %v3061_v39, %v13208_v28 }
 0x938   : > { %v3004_v5 = vpop.f32.mrf.mxu0 }
 0x939   : > { %v3062_v52 = vmul.f32 0.125, %v3004_v5  ;;  %v3069_v57 = vsel %vm2316_vm2, %v3065_v32, -inf }
 0x93a   : > { %3070 = vmax.xlane.f32.xlu1 %v3069_v57  ;;  %v10698_v7 = vpop.f32.mrf.mxu0 }
 0x93b   : > { %v3066_v55 = vadd.f32 %v3062_v52, %v13216_v6 }
 0x93d   : > { %v3072_v50 = vsel %vm2316_vm2, %v3066_v55, -inf }
 0x93e   : > { %3073 = vmax.xlane.f32.xlu0 %v3072_v50 }
 0x962   : > { %v13425_v60 = vpop.f32.mrf.mxu1 }
 0x964   : > { %v10691_v33 = vpop.f32.mrf.mxu1 }
 0x966   : > { %v13427_v53 = vpop.f32.mrf.mxu1 }
 0x968   : > { %v10692_v9 = vpop.f32.mrf.mxu1 }
 0x96a   : > { %v3054_v16 = vpop.f32.mrf.mxu1 }
 0x96b   : > { %v3063_v14 = vmul.f32 0.125, %v3054_v16 }
 0x96c   : > { %v10703_v29 = vpop.f32.mrf.mxu1 }
 0x96d   : > { %v3067_v35 = vadd.f32 %v3063_v14, %v13223_v49 }
 0x96e   : > { %v3057_v11 = vpop.f32.mrf.mxu1 }
 0x96f   : > { %v3064_v26 = vmul.f32 0.125, %v3057_v11  ;;  %v3075_v46 = vsel %vm2316_vm2, %v3067_v35, -inf }
 0x970   : > { %3076 = vmax.xlane.f32.xlu0 %v3075_v46  ;;  %v10704_v31 = vpop.f32.mrf.mxu1 }
 0x971   : > { %v3068_v40 = vadd.f32 %v3064_v26, %v13230_v2 }
 0x973   : > { %v3078_v42 = vsel %vm2316_vm2, %v3068_v40, -inf }
 0x974   : > { %3079 = vmax.xlane.f32.xlu1 %v3078_v42 }
 0x9c3   : > { %v3071_v39 = vpop.xlane.xlu1 %3070 }
 0x9c4   : > { %v3081_v43 = vsub.f32 %v3065_v32, %v3071_v39 }
 0x9c6   : > { %v3085_v5 = vmul.f32 1.442695, %v3081_v43 }
 0x9c7   : > { %v3074_v52 = vpop.xlane.xlu0 %3073 }
 0x9c8   : > { %11903 = vpow2.f32 %v3085_v5  ;;  %v3082_v57 = vsub.f32 %v3066_v55, %v3074_v52 }
 0x9ca   : > { %v3087_v7 = vmul.f32 1.442695, %v3082_v57 }
 0x9cc   : > { %11905 = vpow2.f32 %v3087_v7 }
 0x9d5   : > { %v11904_v50 = vpop.eup %11903 }
 0x9d6   : > { %v3093_v33 = vsel %vm2316_vm2, %v11904_v50, 0.0 }
 0x9d7   : > { %3094 = vadd.xlane.f32.xlu0 %v3093_v33 }
 0x9d9   : > { %v11906_v9 = vpop.eup %11905 }
 0x9da   : > { %v3096_v16 = vsel %vm2316_vm2, %v11906_v9, 0.0 }
 0x9db   : > { %3097 = vadd.xlane.f32.xlu1 %v3096_v16 }
 0x9ed   : > { %3120 = vrot.lane.b32.xlu0 %v13330_v47, %s12448_s30 }
 0x9f9   : > { %v3077_v14 = vpop.xlane.xlu0 %3076 }
 0x9fa   : > { %v3083_v29 = vsub.f32 %v3067_v35, %v3077_v14 }
 0x9fc   : > { %v3089_v32 = vmul.f32 1.442695, %v3083_v29 }
 0x9fd   : > { %v3080_v11 = vpop.xlane.xlu1 %3079 }
 0x9fe   : > { %11907 = vpow2.f32 %v3089_v32  ;;  %v3084_v26 = vsub.f32 %v3068_v40, %v3080_v11 }
 0xa00   : > { %v3091_v55 = vmul.f32 1.442695, %v3084_v26 }
 0xa02   : > { %11909 = vpow2.f32 %v3091_v55 }
 0xa0b   : > { %v11908_v46 = vpop.eup %11907 }
 0xa0c   : > { %v3099_v31 = vsel %vm2316_vm2, %v11908_v46, 0.0 }
 0xa0d   : > { %3100 = vadd.xlane.f32.xlu1 %v3099_v31 }
 0xa0f   : > { %v11910_v42 = vpop.eup %11909 }
 0xa10   : > { %v3102_v39 = vsel %vm2316_vm2, %v11910_v42, 0.0 }
 0xa11   : > { %3103 = vadd.xlane.f32.xlu1 %v3102_v39 }
 0xa22   : > { %3168 = vrot.lane.b32.xlu1 %v13357_v4, %s12448_s30  ;;  %v3219_v4 = vsel %vm2213_vm1, %v13167_v62, 0 }
 0xa60   : > { %v3095_v47 = vpop.xlane.xlu0 %3094 }
 0xa61   : > { %11911 = vrcp.f32 %v3095_v47  ;;  %v3266_v47 = vsel %vm2213_vm1, %v13173_v3, 0 }
 0xa64   : > { %v3121_v35 = vpop.permute.xlu0 %3120  ;;  %v3098_v43 = vpop.xlane.xlu1 %3097 }
 0xa65   : > { %11913 = vrcp.f32 %v3098_v43  ;;  %10706 = vmatpush3.bf16.msra.mxu0 %v3121_v35 }
 0xa66   : > { %10717 = vmatprep.subr.bf16.mxu0 %v15062_v12 }
 0xa6e   : > { %v11912_v40 = vpop.eup %11911 }
 0xa6f   : > { %v3109_v5 = vmul.f32 %v11912_v40, %v11904_v50 }
 0xa71   : > { %v3113_v7 = vmul.f32 %v3109_v5, %v13250_v18 }
 0xa72   : > { %v11914_v52 = vpop.eup %11913 }
 0xa73   : > { %v3110_v57 = vmul.f32 %v11914_v52, %v11906_v9 }
 0xa75   : > { %v3114_v33 = vmul.f32 %v3110_v57, %v13255_v21 }
 0xa77   : > { %v3117_v16 = vpack.c.bf16 %v3114_v33, %v3113_v7 }
 0xa79   : > { %10708 = vmatmul.mubr.msk.bf16.vlgmr.msra.gmra.mxu0 %vm2316_vm2, %v3117_v16 }
 0xa7a   : > { %10718 = vmatpush3.bf16.xpose.msra.mxu0 %v3219_v4  ;;  %10719 = vmatprep.mubr.msk.bf16.mxu0 %vm12447_vm0, %v15062_v12 }
 0xa7b   : > { %10729 = vmatprep.subr.bf16.mxu0 %v15062_v12 }
 0xa81   : > { %10720 = vmatmul.mubr.msk.bf16.vlgmr.msra.gmra.mxu0 %vm2213_vm1, %v13123_v37 }
 0xa82   : > { %10730 = vmatpush3.bf16.msra.mxu0 %v13195_v19  ;;  %10731 = vmatprep.mubr.msk.bf16.mxu0 %vm12447_vm0, %v15062_v12 }
 0xa83   : > { %10741 = vmatprep.subr.bf16.mxu0 %v15062_v12 }
 0xa96   : > { %v3101_v50 = vpop.xlane.xlu1 %3100 }
 0xa97   : > { %11915 = vrcp.f32 %v3101_v50 }
 0xa9a   : > { %v3104_v9 = vpop.xlane.xlu1 %3103 }
 0xa9b   : > { %11917 = vrcp.f32 %v3104_v9 }
 0xa9e   : > { %v3169_v14 = vpop.permute.xlu1 %3168 }
 0xa9f   : > { %10712 = vmatpush3.bf16.msra.mxu1 %v3169_v14 }
 0xaa0   : > { %10723 = vmatprep.subr.bf16.mxu1 %v15062_v12 }
 0xaa4   : > { %v11916_v29 = vpop.eup %11915 }
 0xaa5   : > { %v3111_v32 = vmul.f32 %v11916_v29, %v11908_v46 }
 0xaa7   : > { %v3115_v55 = vmul.f32 %v3111_v32, %v13270_v45 }
 0xaa8   : > { %v11918_v11 = vpop.eup %11917 }
 0xaa9   : > { %v3112_v26 = vmul.f32 %v11918_v11, %v11910_v42 }
 0xaab   : > { %v3116_v31 = vmul.f32 %v3112_v26, %v13275_v51 }
 0xaad   : > { %v3118_v39 = vpack.c.bf16 %v3116_v31, %v3115_v55 }
 0xaaf   : > { %10714 = vmatmul.mubr.msk.bf16.vlgmr.msra.gmra.mxu1 %vm2316_vm2, %v3118_v39 }
 0xab0   : > { %10724 = vmatpush3.bf16.xpose.msra.mxu1 %v3266_v47  ;;  %10725 = vmatprep.mubr.msk.bf16.mxu1 %vm12447_vm0, %v15062_v12 }
 0xab1   : > { %10735 = vmatprep.subr.bf16.mxu1 %v15062_v12 }
 0xab7   : > { %10726 = vmatmul.mubr.msk.bf16.vlgmr.msra.gmra.mxu1 %vm2213_vm1, %v13131_v41 }
 0xab8   : > { %10736 = vmatpush3.bf16.msra.mxu1 %v13201_v25  ;;  %10737 = vmatprep.mubr.msk.bf16.mxu1 %vm12447_vm0, %v15062_v12 }
 0xab9   : > { %10747 = vmatprep.subr.bf16.mxu1 %v15062_v12 }
 0xb39   : > { %v13471_v46 = vpop.f32.mrf.mxu0 }
 0xb3b   : > { %v10709_v42 = vpop.f32.mrf.mxu0 }
 0xb3d   : > { %v13473_v35 = vpop.f32.mrf.mxu0 }
 0xb3e   : > { %v11097_v43 = vpack.i.bf16 %v13473_v35, %v13471_v46 }
 0xb3f   : > { %v10710_v40 = vpop.f32.mrf.mxu0 }
 0xb41   : > { %v3255_v5 = vpop.f32.mrf.mxu0 }
 0xb42   : > { %v3309_v52 = vmul.f32 0.125, %v3255_v5 }
 0xb43   : > { %v10721_v57 = vpop.f32.mrf.mxu0 }
 0xb44   : > { %v3313_v7 = vadd.f32 %v3309_v52, %v13208_v28 }
 0xb45   : > { %v3258_v33 = vpop.f32.mrf.mxu0 }
 0xb46   : > { %v3310_v16 = vmul.f32 0.125, %v3258_v33  ;;  %v3317_v4 = vsel %vm2316_vm2, %v3313_v7, -inf }
 0xb47   : > { %3318 = vmax.xlane.f32.xlu0 %v3317_v4  ;;  %v10722_v50 = vpop.f32.mrf.mxu0 }
 0xb48   : > { %v3314_v9 = vadd.f32 %v3310_v16, %v13216_v6 }
 0xb4a   : > { %v3320_v14 = vsel %vm2316_vm2, %v3314_v9, -inf }
 0xb4b   : > { %3321 = vmax.xlane.f32.xlu1 %v3320_v14 }
 0xb6f   : > { %v13481_v29 = vpop.f32.mrf.mxu1 }
 0xb71   : > { %v10715_v32 = vpop.f32.mrf.mxu1 }
 0xb73   : > { %v13483_v11 = vpop.f32.mrf.mxu1 }
 0xb74   : > { %v11117_v26 = vpack.i.bf16 %v13483_v11, %v13481_v29 }
 0xb75   : > { %v10716_v28 = vpop.f32.mrf.mxu1 }
 0xb77   : > { %v3302_v55 = vpop.f32.mrf.mxu1 }
 0xb78   : > { %v3311_v31 = vmul.f32 0.125, %v3302_v55 }
 0xb79   : > { %v10727_v39 = vpop.f32.mrf.mxu1 }
 0xb7a   : > { %v3315_v47 = vadd.f32 %v3311_v31, %v13223_v49 }
 0xb7b   : > { %v3305_v42 = vpop.f32.mrf.mxu1 }
 0xb7c   : > { %v3312_v40 = vmul.f32 0.125, %v3305_v42  ;;  %v3323_v6 = vsel %vm2316_vm2, %v3315_v47, -inf }
 0xb7d   : > { %3324 = vmax.xlane.f32.xlu0 %v3323_v6  ;;  %v10728_v5 = vpop.f32.mrf.mxu1 }
 0xb7e   : > { %v3316_v52 = vadd.f32 %v3312_v40, %v13230_v2 }
 0xb80   : > { %v3326_v57 = vsel %vm2316_vm2, %v3316_v52, -inf }
 0xb81   : > { %3327 = vmax.xlane.f32.xlu0 %v3326_v57 }
 0xbd0   : > { %v3319_v33 = vpop.xlane.xlu0 %3318 }
 0xbd1   : > { %v3329_v16 = vsub.f32 %v3313_v7, %v3319_v33 }
 0xbd3   : > { %v3333_v4 = vmul.f32 1.442695, %v3329_v16 }
 0xbd4   : > { %v3322_v50 = vpop.xlane.xlu1 %3321 }
 0xbd5   : > { %11919 = vpow2.f32 %v3333_v4  ;;  %v3330_v14 = vsub.f32 %v3314_v9, %v3322_v50 }
 0xbd7   : > { %v3335_v32 = vmul.f32 1.442695, %v3330_v14 }
 0xbd9   : > { %11921 = vpow2.f32 %v3335_v32 }
 0xbe2   : > { %v11920_v49 = vpop.eup %11919 }
 0xbe3   : > { %v3341_v28 = vsel %vm2316_vm2, %v11920_v49, 0.0 }
 0xbe4   : > { %3342 = vadd.xlane.f32.xlu0 %v3341_v28 }
 0xbe6   : > { %v11922_v55 = vpop.eup %11921 }
 0xbe7   : > { %v3344_v31 = vsel %vm2316_vm2, %v11922_v55, 0.0 }
 0xbe8   : > { %3345 = vadd.xlane.f32.xlu1 %v3344_v31 }
 0xbf9   : > { %3456 = vrot.lane.b32.xlu1 %v13123_v37, %s12448_s30 }
 0xbfa   : > { %3459 = vrot.lane.b32.xlu0 %v13167_v62, %s12448_s30 }
 0xc06   : > { %v3325_v2 = vpop.xlane.xlu0 %3324 }
 0xc07   : > { %v3331_v7 = vsub.f32 %v3315_v47, %v3325_v2 }
 0xc09   : > { %v3337_v39 = vmul.f32 1.442695, %v3331_v7 }
 0xc0a   : > { %v3328_v9 = vpop.xlane.xlu0 %3327 }
 0xc0b   : > { %v3332_v42 = vsub.f32 %v3316_v52, %v3328_v9  ;;  %11923 = vpow2.f32 %v3337_v39 }
 0xc0d   : > { %v3339_v40 = vmul.f32 1.442695, %v3332_v42 }
 0xc0f   : > { %11925 = vpow2.f32 %v3339_v40 }
 0xc18   : > { %v11924_v6 = vpop.eup %11923 }
 0xc19   : > { %v3347_v57 = vsel %vm2316_vm2, %v11924_v6, 0.0 }
 0xc1c   : > { %v11926_v5 = vpop.eup %11925 }
 0xc1d   : > { %3348 = vadd.xlane.f32.xlu1 %v3347_v57  ;;  %v3350_v33 = vsel %vm2316_vm2, %v11926_v5, 0.0 }
 0xc1e   : > { %3351 = vadd.xlane.f32.xlu0 %v3350_v33 }
 0xc2e   : > { %3509 = vrot.lane.b32.xlu1 %v13131_v41, %s12448_s30 }
 0xc34   : > { %3512 = vrot.lane.b32.xlu0 %v13173_v3, %s12448_s30 }
 0xc6d   : > { %v3343_v37 = vpop.xlane.xlu0 %3342 }
 0xc6e   : > { %11927 = vrcp.f32 %v3343_v37 }
 0xc71   : > { %v3346_v62 = vpop.xlane.xlu1 %3345  ;;  %v3460_v32 = vpop.permute.xlu0 %3459 }
 0xc72   : > { %11929 = vrcp.f32 %v3346_v62  ;;  %v3465_v31 = vsel %vm2213_vm1, %v3460_v32, 0  ;;  %v13537_v32 = vld [vmem:[%s15097_s29 + $0x8] sm:$0xff] }
 0xc75   : > { %v3457_v41 = vpop.permute.xlu1 %3456 }
 0xc7b   : > { %v11928_v47 = vpop.eup %11927 }
 0xc7c   : > { %v3357_v52 = vmul.f32 %v11928_v47, %v11920_v49  ;;  %v13530_v47 = vld [vmem:[%s15097_s29] sm:$0xff] }
 0xc7e   : > { %v3361_v50 = vmul.f32 %v3357_v52, %v13250_v18 }
 0xc7f   : > { %v11930_v16 = vpop.eup %11929 }
 0xc80   : > { %v3358_v4 = vmul.f32 %v11930_v16, %v11922_v55 }
 0xc82   : > { %v3362_v14 = vmul.f32 %v3358_v4, %v13255_v21 }
 0xc84   : > { %v3365_v28 = vpack.c.bf16 %v3362_v14, %v3361_v50 }
 0xc86   : > { %10732 = vmatmul.mubr.msk.bf16.vlgmr.msra.gmra.mxu0 %vm2316_vm2, %v3365_v28 }
 0xc87   : > { %10742 = vmatpush3.bf16.xpose.msra.mxu0 %v3465_v31  ;;  %10743 = vmatprep.mubr.msk.bf16.mxu0 %vm12447_vm0, %v15062_v12 }
 0xc88   : > { %10753 = vmatprep.subr.bf16.mxu0 %v15062_v12 }
 0xc8e   : > { %10744 = vmatmul.mubr.msk.bf16.vlgmr.msra.gmra.mxu0 %vm2213_vm1, %v3457_v41 }
 0xc8f   : > { %10755 = vmatprep.mubr.msk.bf16.mxu0 %vm12447_vm0, %v15062_v12 }
 0xca6   : > { %v3349_v3 = vpop.xlane.xlu1 %3348 }
 0xca7   : > { %11931 = vrcp.f32 %v3349_v3  ;;  %v3352_v18 = vpop.xlane.xlu0 %3351 }
 0xca8   : > { %11933 = vrcp.f32 %v3352_v18 }
 0xcaa   : > { %v3510_v57 = vpop.permute.xlu1 %3509 }
 0xcab   : > { %v3513_v9 = vpop.permute.xlu0 %3512 }
 0xcac   : > { %v3518_v40 = vsel %vm2213_vm1, %v3513_v9, 0 }
 0xcb4   : > { %v11932_v21 = vpop.eup %11931 }
 0xcb5   : > { %v11934_v49 = vpop.eup %11933  ;;  %v3359_v55 = vmul.f32 %v11932_v21, %v11924_v6 }
 0xcb6   : > { %v3360_v2 = vmul.f32 %v11934_v49, %v11926_v5 }
 0xcb7   : > { %v3363_v7 = vmul.f32 %v3359_v55, %v13270_v45 }
 0xcb8   : > { %v3364_v39 = vmul.f32 %v3360_v2, %v13275_v51 }
 0xcba   : > { %v3366_v42 = vpack.c.bf16 %v3364_v39, %v3363_v7  ;;  %v13548_v7 = vld [vmem:[%s15097_s29 + $0x10] sm:$0xff] }
 0xcbc   : > { %10738 = vmatmul.mubr.msk.bf16.vlgmr.msra.gmra.mxu1 %vm2316_vm2, %v3366_v42 }
 0xcbd   : > { %10748 = vmatpush3.bf16.xpose.msra.mxu1 %v3518_v40  ;;  %10749 = vmatprep.mubr.msk.bf16.mxu1 %vm12447_vm0, %v15062_v12 }
 0xcbe   : > { %10759 = vmatprep.subr.bf16.mxu1 %v15062_v12 }
 0xcc4   : > { %10750 = vmatmul.mubr.msk.bf16.vlgmr.msra.gmra.mxu1 %vm2213_vm1, %v3510_v57 }
 0xcc5   : > { %10761 = vmatprep.mubr.msk.bf16.mxu1 %vm12447_vm0, %v15062_v12 }
 0xd46   : > { %v13523_v45 = vpop.f32.mrf.mxu0 }
 0xd48   : > { %v10733_v51 = vpop.f32.mrf.mxu0 }
 0xd49   : > { %v13555_v51 = vld [vmem:[%s15097_s29 + $0x18] sm:$0xff] }
 0xd4a   : > { %v13525_v6 = vpop.f32.mrf.mxu0 }
 0xd4c   : > { %v10734_v5 = vpop.f32.mrf.mxu0 }
 0xd4e   : > { %v3501_v33 = vpop.f32.mrf.mxu0 }
 0xd4f   : > { %v3561_v37 = vmul.f32 0.125, %v3501_v33 }
 0xd50   : > { %v10745_v62 = vpop.f32.mrf.mxu0 }
 0xd51   : > { %v3565_v52 = vadd.f32 %v13530_v47, %v3561_v37 }
 0xd52   : > { %v3504_v16 = vpop.f32.mrf.mxu0 }
 0xd53   : > { %v3562_v4 = vmul.f32 0.125, %v3504_v16  ;;  %v3569_v50 = vsel %vm2316_vm2, %v3565_v52, -inf }
 0xd54   : > { %3570 = vmax.xlane.f32.xlu1 %v3569_v50  ;;  %v10746_v14 = vpop.f32.mrf.mxu0 }
 0xd55   : > { %v3566_v28 = vadd.f32 %v13537_v32, %v3562_v4 }
 0xd57   : > { %v3572_v31 = vsel %vm2316_vm2, %v3566_v28, -inf }
 0xd58   : > { %3573 = vmax.xlane.f32.xlu0 %v3572_v31 }
 0xd7c   : > { %v13541_v41 = vpop.f32.mrf.mxu1 }
 0xd7e   : > { %v10739_v3 = vpop.f32.mrf.mxu1 }
 0xd80   : > { %v13543_v18 = vpop.f32.mrf.mxu1 }
 0xd82   : > { %v10740_v21 = vpop.f32.mrf.mxu1 }
 0xd84   : > { %v3554_v49 = vpop.f32.mrf.mxu1 }
 0xd85   : > { %v3563_v55 = vmul.f32 0.125, %v3554_v49 }
 0xd86   : > { %v10751_v2 = vpop.f32.mrf.mxu1 }
 0xd87   : > { %v3567_v39 = vadd.f32 %v13548_v7, %v3563_v55 }
 0xd88   : > { %v3557_v9 = vpop.f32.mrf.mxu1 }
 0xd89   : > { %v3564_v42 = vmul.f32 0.125, %v3557_v9  ;;  %v3575_v40 = vsel %vm2316_vm2, %v3567_v39, -inf }
 0xd8a   : > { %3576 = vmax.xlane.f32.xlu0 %v3575_v40  ;;  %v10752_v57 = vpop.f32.mrf.mxu1 }
 0xd8b   : > { %v3568_v5 = vadd.f32 %v13555_v51, %v3564_v42 }
 0xd8d   : > { %v3578_v33 = vsel %vm2316_vm2, %v3568_v5, -inf }
 0xd8e   : > { %3579 = vmax.xlane.f32.xlu1 %v3578_v33 }
 0xddd   : > { %v3571_v37 = vpop.xlane.xlu1 %3570 }
 0xdde   : > { %v3581_v62 = vsub.f32 %v3565_v52, %v3571_v37 }
 0xde0   : > { %v3585_v16 = vmul.f32 1.442695, %v3581_v62 }
 0xde1   : > { %v3574_v4 = vpop.xlane.xlu0 %3573 }
 0xde2   : > { %11935 = vpow2.f32 %v3585_v16  ;;  %v3582_v50 = vsub.f32 %v3566_v28, %v3574_v4 }
 0xde4   : > { %v3587_v14 = vmul.f32 1.442695, %v3582_v50 }
 0xde6   : > { %11937 = vpow2.f32 %v3587_v14  ;;  %v13570_v14 = vpack.c.bf16 %v13169_v63, %v13165_v59  ;;  %v13592_v63 = vpack.c.bf16 %v13125_v58, %v13121_v34 }
 0xde8   : > { %v3719_v59 = vsel %vm2213_vm1, %v13570_v14, 0 }
 0xdef   : > { %v11936_v31 = vpop.eup %11935 }
 0xdf0   : > { %v3593_v3 = vsel %vm2316_vm2, %v11936_v31, 0.0 }
 0xdf1   : > { %3594 = vadd.xlane.f32.xlu0 %v3593_v3 }
 0xdf3   : > { %v11938_v21 = vpop.eup %11937 }
 0xdf4   : > { %v3596_v49 = vsel %vm2316_vm2, %v11938_v21, 0.0 }
 0xdf5   : > { %3597 = vadd.xlane.f32.xlu1 %v3596_v49  ;;  %v13581_v49 = vld [vmem:[%s15098_s19 + $0x8] sm:$0xff] }
 0xe07   : > { %3620 = vrot.lane.b32.xlu0 %v13195_v19, %s12448_s30 }
 0xe13   : > { %v3577_v55 = vpop.xlane.xlu0 %3576 }
 0xe14   : > { %v3583_v2 = vsub.f32 %v3567_v39, %v3577_v55 }
 0xe16   : > { %v3589_v52 = vmul.f32 1.442695, %v3583_v2 }
 0xe17   : > { %v3580_v9 = vpop.xlane.xlu1 %3579 }
 0xe18   : > { %11939 = vpow2.f32 %v3589_v52  ;;  %v3584_v42 = vsub.f32 %v3568_v5, %v3580_v9 }
 0xe1a   : > { %v3591_v28 = vmul.f32 1.442695, %v3584_v42  ;;  %v13607_v42 = vpack.c.bf16 %v13191_v15, %v13171_v1  ;;  %v13629_v15 = vpack.c.bf16 %v13163_v56, %v13129_v38 }
 0xe1c   : > { %11941 = vpow2.f32 %v3591_v28  ;;  %v13612_v28 = vld [vmem:[%s15098_s19 + $0x10] sm:$0xff]  ;;  %v3766_v1 = vsel %vm2213_vm1, %v13607_v42, 0 }
 0xe25   : > { %v11940_v40 = vpop.eup %11939 }
 0xe26   : > { %v3599_v57 = vsel %vm2316_vm2, %v11940_v40, 0.0 }
 0xe27   : > { %3600 = vadd.xlane.f32.xlu1 %v3599_v57 }
 0xe29   : > { %v11942_v33 = vpop.eup %11941 }
 0xe2a   : > { %v3602_v37 = vsel %vm2316_vm2, %v11942_v33, 0.0 }
 0xe2b   : > { %3603 = vadd.xlane.f32.xlu1 %v3602_v37  ;;  %v13618_v37 = vld [vmem:[%s15098_s19 + $0x18] sm:$0xff] }
 0xe3c   : > { %3668 = vrot.lane.b32.xlu1 %v13201_v25, %s12448_s30  ;;  %v13575_v25 = vld [vmem:[%s15098_s19] sm:$0xff] }
 0xe7a   : > { %v3595_v19 = vpop.xlane.xlu0 %3594 }
 0xe7b   : > { %11943 = vrcp.f32 %v3595_v19 }
 0xe7e   : > { %v3621_v39 = vpop.permute.xlu0 %3620  ;;  %v3598_v62 = vpop.xlane.xlu1 %3597 }
 0xe7f   : > { %11945 = vrcp.f32 %v3598_v62  ;;  %10754 = vmatpush3.bf16.msra.mxu0 %v3621_v39 }
 0xe80   : > { %10765 = vmatprep.subr.bf16.mxu0 %v15062_v12 }
 0xe88   : > { %v11944_v5 = vpop.eup %11943 }
 0xe89   : > { %v3609_v16 = vmul.f32 %v11944_v5, %v11936_v31 }
 0xe8b   : > { %v3613_v3 = vmul.f32 %v13575_v25, %v3609_v16 }
 0xe8c   : > { %v11946_v4 = vpop.eup %11945 }
 0xe8d   : > { %v3610_v50 = vmul.f32 %v11946_v4, %v11938_v21  ;;  %v13596_v21 = vpack.c.bf16 %v13197_v20, %v13193_v17 }
 0xe8f   : > { %v3614_v31 = vmul.f32 %v13581_v49, %v3610_v50 }
 0xe91   : > { %v3617_v55 = vpack.c.bf16 %v3614_v31, %v3613_v3 }
 0xe93   : > { %10756 = vmatmul.mubr.msk.bf16.vlgmr.msra.gmra.mxu0 %vm2316_vm2, %v3617_v55 }
 0xe94   : > { %10766 = vmatpush3.bf16.xpose.msra.mxu0 %v3719_v59  ;;  %10767 = vmatprep.mubr.msk.bf16.mxu0 %vm12447_vm0, %v15062_v12 }
 0xe95   : > { %10777 = vmatprep.subr.bf16.mxu0 %v15062_v12 }
 0xe9b   : > { %10768 = vmatmul.mubr.msk.bf16.vlgmr.msra.gmra.mxu0 %vm2213_vm1, %v13592_v63 }
 0xe9c   : > { %10778 = vmatpush3.bf16.msra.mxu0 %v13596_v21  ;;  %10779 = vmatprep.mubr.msk.bf16.mxu0 %vm12447_vm0, %v15062_v12 }
 0xe9d   : > { %10789 = vmatprep.subr.bf16.mxu0 %v15062_v12 }
 0xeb0   : > { %v3601_v2 = vpop.xlane.xlu1 %3600 }
 0xeb1   : > { %11947 = vrcp.f32 %v3601_v2 }
 0xeb4   : > { %v3604_v52 = vpop.xlane.xlu1 %3603 }
 0xeb5   : > { %11949 = vrcp.f32 %v3604_v52 }
 0xeb8   : > { %v3669_v34 = vpop.permute.xlu1 %3668 }
 0xeb9   : > { %10760 = vmatpush3.bf16.msra.mxu1 %v3669_v34 }
 0xeba   : > { %10771 = vmatprep.subr.bf16.mxu1 %v15062_v12 }
 0xebe   : > { %v11948_v58 = vpop.eup %11947 }
 0xebf   : > { %v3611_v17 = vmul.f32 %v11948_v58, %v11940_v40 }
 0xec1   : > { %v3615_v57 = vmul.f32 %v13612_v28, %v3611_v17 }
 0xec2   : > { %v11950_v20 = vpop.eup %11949 }
 0xec3   : > { %v3612_v9 = vmul.f32 %v11950_v20, %v11942_v33  ;;  %v13633_v33 = vpack.c.bf16 %v13211_v36, %v13199_v22 }
 0xec5   : > { %v3616_v40 = vmul.f32 %v13618_v37, %v3612_v9 }
 0xec7   : > { %v3618_v19 = vpack.c.bf16 %v3616_v40, %v3615_v57 }
 0xec9   : > { %10762 = vmatmul.mubr.msk.bf16.vlgmr.msra.gmra.mxu1 %vm2316_vm2, %v3618_v19 }
 0xeca   : > { %10772 = vmatpush3.bf16.xpose.msra.mxu1 %v3766_v1  ;;  %10773 = vmatprep.mubr.msk.bf16.mxu1 %vm12447_vm0, %v15062_v12 }
 0xecb   : > { %10783 = vmatprep.subr.bf16.mxu1 %v15062_v12 }
 0xed1   : > { %10774 = vmatmul.mubr.msk.bf16.vlgmr.msra.gmra.mxu1 %vm2213_vm1, %v13629_v15 }
 0xed2   : > { %10784 = vmatpush3.bf16.msra.mxu1 %v13633_v33  ;;  %10785 = vmatprep.mubr.msk.bf16.mxu1 %vm12447_vm0, %v15062_v12 }
 0xed3   : > { %10795 = vmatprep.subr.bf16.mxu1 %v15062_v12 }
 0xf53   : > { %v13641_v39 = vpop.f32.mrf.mxu0 }
 0xf55   : > { %v10757_v62 = vpop.f32.mrf.mxu0 }
 0xf57   : > { %v13643_v5 = vpop.f32.mrf.mxu0 }
 0xf58   : > { %v11112_v38 = vpack.i.bf16 %v13643_v5, %v13641_v39 }
 0xf59   : > { %v10758_v56 = vpop.f32.mrf.mxu0 }
 0xf5b   : > { %v3755_v22 = vpop.f32.mrf.mxu0 }
 0xf5c   : > { %v3809_v36 = vmul.f32 0.125, %v3755_v22 }
 0xf5d   : > { %v10769_v16 = vpop.f32.mrf.mxu0 }
 0xf5e   : > { %v3813_v4 = vadd.f32 %v13530_v47, %v3809_v36 }
 0xf5f   : > { %v3758_v50 = vpop.f32.mrf.mxu0 }
 0xf60   : > { %v3810_v3 = vmul.f32 0.125, %v3758_v50  ;;  %v3817_v31 = vsel %vm2316_vm2, %v3813_v4, -inf }
 0xf61   : > { %3818 = vmax.xlane.f32.xlu0 %v3817_v31  ;;  %v10770_v55 = vpop.f32.mrf.mxu0 }
 0xf62   : > { %v3814_v59 = vadd.f32 %v13537_v32, %v3810_v3 }
 0xf64   : > { %v3820_v2 = vsel %vm2316_vm2, %v3814_v59, -inf }
 0xf65   : > { %3821 = vmax.xlane.f32.xlu1 %v3820_v2 }
 0xf89   : > { %v13651_v52 = vpop.f32.mrf.mxu1 }
 0xf8b   : > { %v10763_v34 = vpop.f32.mrf.mxu1 }
 0xf8d   : > { %v13653_v58 = vpop.f32.mrf.mxu1 }
 0xf8e   : > { %v11132_v17 = vpack.i.bf16 %v13653_v58, %v13651_v52 }
 0xf8f   : > { %v10764_v20 = vpop.f32.mrf.mxu1 }
 0xf91   : > { %v3802_v9 = vpop.f32.mrf.mxu1 }
 0xf92   : > { %v3811_v57 = vmul.f32 0.125, %v3802_v9 }
 0xf93   : > { %v10775_v40 = vpop.f32.mrf.mxu1 }
 0xf94   : > { %v3815_v19 = vadd.f32 %v13548_v7, %v3811_v57 }
 0xf95   : > { %v3805_v1 = vpop.f32.mrf.mxu1 }
 0xf96   : > { %v3812_v62 = vmul.f32 0.125, %v3805_v1  ;;  %v3823_v56 = vsel %vm2316_vm2, %v3815_v19, -inf }
 0xf97   : > { %3824 = vmax.xlane.f32.xlu0 %v3823_v56  ;;  %v10776_v22 = vpop.f32.mrf.mxu1 }
 0xf98   : > { %v3816_v36 = vadd.f32 %v13555_v51, %v3812_v62 }
 0xf9a   : > { %v3826_v16 = vsel %vm2316_vm2, %v3816_v36, -inf }
 0xf9b   : > { %3827 = vmax.xlane.f32.xlu0 %v3826_v16 }
 0xfea   : > { %v3819_v50 = vpop.xlane.xlu0 %3818 }
 0xfeb   : > { %v3829_v3 = vsub.f32 %v3813_v4, %v3819_v50 }
 0xfed   : > { %v3833_v31 = vmul.f32 1.442695, %v3829_v3 }
 0xfee   : > { %v3822_v55 = vpop.xlane.xlu1 %3821 }
 0xfef   : > { %11951 = vpow2.f32 %v3833_v31  ;;  %v3830_v2 = vsub.f32 %v3814_v59, %v3822_v55 }
 0xff1   : > { %v3835_v34 = vmul.f32 1.442695, %v3830_v2 }
 0xff3   : > { %11953 = vpow2.f32 %v3835_v34 }
 0xffc   : > { %v11952_v20 = vpop.eup %11951 }
 0xffd   : > { %v3841_v9 = vsel %vm2316_vm2, %v11952_v20, 0.0 }
 0xffe   : > { %3842 = vadd.xlane.f32.xlu0 %v3841_v9 }
0x1000   : > { %v11954_v57 = vpop.eup %11953 }
0x1001   : > { %v3844_v40 = vsel %vm2316_vm2, %v11954_v57, 0.0 }
0x1002   : > { %3845 = vadd.xlane.f32.xlu1 %v3844_v40 }
0x1013   : > { %3956 = vrot.lane.b32.xlu1 %v13592_v63, %s12448_s30 }
0x1014   : > { %3959 = vrot.lane.b32.xlu0 %v13570_v14, %s12448_s30 }
0x1020   : > { %v3825_v4 = vpop.xlane.xlu0 %3824 }
0x1021   : > { %v3831_v1 = vsub.f32 %v3815_v19, %v3825_v4 }
0x1023   : > { %v3837_v62 = vmul.f32 1.442695, %v3831_v1 }
0x1024   : > { %v3828_v59 = vpop.xlane.xlu0 %3827 }
0x1025   : > { %v3832_v56 = vsub.f32 %v3816_v36, %v3828_v59  ;;  %11955 = vpow2.f32 %v3837_v62 }
0x1027   : > { %v3839_v22 = vmul.f32 1.442695, %v3832_v56 }
0x1029   : > { %11957 = vpow2.f32 %v3839_v22 }
0x1032   : > { %v11956_v16 = vpop.eup %11955 }
0x1033   : > { %v3847_v3 = vsel %vm2316_vm2, %v11956_v16, 0.0 }
0x1036   : > { %v11958_v50 = vpop.eup %11957 }
0x1037   : > { %3848 = vadd.xlane.f32.xlu1 %v3847_v3  ;;  %v3850_v31 = vsel %vm2316_vm2, %v11958_v50, 0.0 }
0x1038   : > { %3851 = vadd.xlane.f32.xlu0 %v3850_v31 }
0x1048   : > { %4009 = vrot.lane.b32.xlu1 %v13629_v15, %s12448_s30 }
0x104e   : > { %4012 = vrot.lane.b32.xlu0 %v13607_v42, %s12448_s30 }
0x1087   : > { %v3843_v14 = vpop.xlane.xlu0 %3842 }
0x1088   : > { %11959 = vrcp.f32 %v3843_v14 }
0x108b   : > { %v3846_v63 = vpop.xlane.xlu1 %3845  ;;  %v3960_v40 = vpop.permute.xlu0 %3959 }
0x108c   : > { %11961 = vrcp.f32 %v3846_v63  ;;  %v3965_v1 = vsel %vm2213_vm1, %v3960_v40, 0 }
0x108f   : > { %v3957_v42 = vpop.permute.xlu1 %3956 }
0x1095   : > { %v11960_v19 = vpop.eup %11959 }
0x1096   : > { %v3857_v36 = vmul.f32 %v11960_v19, %v11952_v20 }
0x1098   : > { %v3861_v34 = vmul.f32 %v13575_v25, %v3857_v36 }
0x1099   : > { %v11962_v55 = vpop.eup %11961 }
0x109a   : > { %v3858_v2 = vmul.f32 %v11962_v55, %v11954_v57 }
0x109c   : > { %v3862_v9 = vmul.f32 %v13581_v49, %v3858_v2 }
0x109e   : > { %v3865_v4 = vpack.c.bf16 %v3862_v9, %v3861_v34 }
0x10a0   : > { %10780 = vmatmul.mubr.msk.bf16.vlgmr.msra.gmra.mxu0 %vm2316_vm2, %v3865_v4 }
0x10a1   : > { %10790 = vmatpush3.bf16.xpose.msra.mxu0 %v3965_v1  ;;  %10791 = vmatprep.mubr.msk.bf16.mxu0 %vm12447_vm0, %v15062_v12 }
0x10a2   : > { %10801 = vmatprep.subr.bf16.mxu0 %v15062_v12 }
0x10a8   : > { %10792 = vmatmul.mubr.msk.bf16.vlgmr.msra.gmra.mxu0 %vm2213_vm1, %v3957_v42 }
0x10a9   : > { %10803 = vmatprep.mubr.msk.bf16.mxu0 %vm12447_vm0, %v15062_v12 }
0x10c0   : > { %v3849_v15 = vpop.xlane.xlu1 %3848 }
0x10c1   : > { %11963 = vrcp.f32 %v3849_v15  ;;  %v3852_v20 = vpop.xlane.xlu0 %3851 }
0x10c2   : > { %11965 = vrcp.f32 %v3852_v20 }
0x10c4   : > { %v4010_v19 = vpop.permute.xlu1 %4009 }
0x10c5   : > { %v4013_v31 = vpop.permute.xlu0 %4012 }
0x10c6   : > { %v4018_v63 = vsel %vm2213_vm1, %v4013_v31, 0 }
0x10ce   : > { %v11964_v57 = vpop.eup %11963 }
0x10cf   : > { %v11966_v62 = vpop.eup %11965  ;;  %v3859_v59 = vmul.f32 %v11964_v57, %v11956_v16 }
0x10d0   : > { %v3860_v56 = vmul.f32 %v11966_v62, %v11958_v50 }
0x10d1   : > { %v3863_v22 = vmul.f32 %v13612_v28, %v3859_v59 }
0x10d2   : > { %v3864_v3 = vmul.f32 %v13618_v37, %v3860_v56 }
0x10d4   : > { %v3866_v14 = vpack.c.bf16 %v3864_v3, %v3863_v22 }
0x10d6   : > { %10786 = vmatmul.mubr.msk.bf16.vlgmr.msra.gmra.mxu1 %vm2316_vm2, %v3866_v14 }
0x10d7   : > { %10796 = vmatpush3.bf16.xpose.msra.mxu1 %v4018_v63  ;;  %10797 = vmatprep.mubr.msk.bf16.mxu1 %vm12447_vm0, %v15062_v12 }
0x10d8   : > { %10807 = vmatprep.subr.bf16.mxu1 %v15062_v12 }
0x10de   : > { %10798 = vmatmul.mubr.msk.bf16.vlgmr.msra.gmra.mxu1 %vm2213_vm1, %v4010_v19 }
0x10df   : > { %10809 = vmatprep.mubr.msk.bf16.mxu1 %vm12447_vm0, %v15062_v12 }
0x1160   : > { %v13693_v16 = vpop.f32.mrf.mxu0 }
0x1162   : > { %v10781_v50 = vpop.f32.mrf.mxu0 }
0x1164   : > { %v13695_v36 = vpop.f32.mrf.mxu0 }
0x1166   : > { %v10782_v55 = vpop.f32.mrf.mxu0 }
0x1168   : > { %v4001_v2 = vpop.f32.mrf.mxu0 }
0x1169   : > { %v4061_v34 = vmul.f32 0.125, %v4001_v2 }
0x116a   : > { %v10793_v9 = vpop.f32.mrf.mxu0 }
0x116b   : > { %v4065_v40 = vadd.f32 %v13530_v47, %v4061_v34 }
0x116c   : > { %v4004_v4 = vpop.f32.mrf.mxu0 }
0x116d   : > { %v4062_v1 = vmul.f32 0.125, %v4004_v4  ;;  %v4069_v42 = vsel %vm2316_vm2, %v4065_v40, -inf }
0x116e   : > { %4070 = vmax.xlane.f32.xlu1 %v4069_v42  ;;  %v10794_v15 = vpop.f32.mrf.mxu0 }
0x116f   : > { %v4066_v20 = vadd.f32 %v13537_v32, %v4062_v1 }
0x1171   : > { %v4072_v57 = vsel %vm2316_vm2, %v4066_v20, -inf }
0x1172   : > { %4073 = vmax.xlane.f32.xlu0 %v4072_v57 }
0x1196   : > { %v13701_v62 = vpop.f32.mrf.mxu1 }
0x1198   : > { %v10787_v59 = vpop.f32.mrf.mxu1 }
0x119a   : > { %v13703_v56 = vpop.f32.mrf.mxu1 }
0x119c   : > { %v10788_v22 = vpop.f32.mrf.mxu1 }
0x119e   : > { %v4054_v3 = vpop.f32.mrf.mxu1 }
0x119f   : > { %v4063_v31 = vmul.f32 0.125, %v4054_v3 }
0x11a0   : > { %v10799_v47 = vpop.f32.mrf.mxu1 }
0x11a1   : > { %v4067_v14 = vadd.f32 %v13548_v7, %v4063_v31 }
0x11a2   : > { %v4057_v63 = vpop.f32.mrf.mxu1 }
0x11a3   : > { %v4064_v19 = vmul.f32 0.125, %v4057_v63  ;;  %v4075_v50 = vsel %vm2316_vm2, %v4067_v14, -inf }
0x11a4   : > { %4076 = vmax.xlane.f32.xlu0 %v4075_v50  ;;  %v10800_v32 = vpop.f32.mrf.mxu1 }
0x11a5   : > { %v4068_v55 = vadd.f32 %v13555_v51, %v4064_v19  ;;  %v11470_v32 = vld [vmem:[%s12838_s13 + $0x64] ss:$8 sps:$4 sm:$0xff]  }
0x11a7   : > { %v4078_v2 = vsel %vm2316_vm2, %v4068_v55, -inf }
0x11a8   : > { %4079 = vmax.xlane.f32.xlu1 %v4078_v2  ;;  %v11474_v2 = vld [vmem:[%s12838_s13 + $0x40] ss:$8 sps:$4 sm:$0xff]  }
0x11f7   : > { %v4071_v34 = vpop.xlane.xlu1 %4070 }
0x11f8   : > { %v4081_v9 = vsub.f32 %v4065_v40, %v4071_v34  ;;  %v11479_v34 = vld [vmem:[%s12838_s13 + $0x34] ss:$8 sps:$4 sm:$0xff]  }
0x11fa   : > { %v4085_v4 = vmul.f32 1.442695, %v4081_v9  ;;  %v11477_v9 = vld [vmem:[%s12838_s13 + $0x30] ss:$8 sps:$4 sm:$0xff]  }
0x11fb   : > { %v4074_v1 = vpop.xlane.xlu0 %4073 }
0x11fc   : > { %11967 = vpow2.f32 %v4085_v4  ;;  %v4082_v42 = vsub.f32 %v4066_v20, %v4074_v1  ;;  %v11482_v4 = vld [vmem:[%s12838_s13 + $0x24] ss:$8 sps:$4 sm:$0xff]   ;;  %v11480_v1 = vld [vmem:[%s12838_s13 + $0x20] ss:$8 sps:$4 sm:$0xff]  }
0x11fe   : > { %v4087_v15 = vmul.f32 1.442695, %v4082_v42  ;;  %v11485_v42 = vld [vmem:[%s12838_s13 + $0x14] ss:$8 sps:$4 sm:$0xff]  }
0x1200   : > { %11969 = vpow2.f32 %v4087_v15  ;;  %v11483_v15 = vld [vmem:[%s12838_s13 + $0x10] ss:$8 sps:$4 sm:$0xff]  }
0x1209   : > { %v11968_v7 = vpop.eup %11967 }
0x120a   : > { %v4093_v57 = vsel %vm2316_vm2, %v11968_v7, 0.0 }
0x120b   : > { %4094 = vadd.xlane.f32.xlu0 %v4093_v57  ;;  %v11486_v57 = vld [vmem:[%s12838_s13] ss:$8 sps:$4 sm:$0xff]  }
0x120d   : > { %v11970_v59 = vpop.eup %11969 }
0x120e   : > { %v4096_v22 = vsel %vm2316_vm2, %v11970_v59, 0.0 }
0x120f   : > { %4097 = vadd.xlane.f32.xlu1 %v4096_v22 }
0x1221   : > { %4120 = vrot.lane.b32.xlu0 %v13596_v21, %s12448_s30 }
0x1225   : > { %11098 = vrot.lane.b32.xlu0 %v11097_v43, %s12448_s30  ;;  %v11467_v43 = vld [vmem:[%s12838_s13 + $0x74] ss:$8 sps:$4 sm:$0xff]  }
0x122d   : > { %v4077_v51 = vpop.xlane.xlu0 %4076 }
0x122e   : > { %v4083_v40 = vsub.f32 %v4067_v14, %v4077_v51  ;;  %v11465_v14 = vld [vmem:[%s12838_s13 + $0x70] ss:$8 sps:$4 sm:$0xff]  }
0x122f   : > { %v11489_v51 = vld [vmem:[%s12838_s13 + $0xf0] ss:$8 sps:$4 sm:$0xff]  }
0x1230   : > { %v4089_v20 = vmul.f32 1.442695, %v4083_v40  ;;  %v11494_v40 = vld [vmem:[%s12838_s13 + $0xe4] ss:$8 sps:$4 sm:$0xff]  }
0x1231   : > { %v4080_v3 = vpop.xlane.xlu1 %4079 }
0x1232   : > { %11971 = vpow2.f32 %v4089_v20  ;;  %v4084_v31 = vsub.f32 %v4068_v55, %v4080_v3  ;;  %v11492_v3 = vld [vmem:[%s12838_s13 + $0xe0] ss:$8 sps:$4 sm:$0xff]  }
0x1234   : > { %v4091_v47 = vmul.f32 1.442695, %v4084_v31  ;;  %v11497_v31 = vld [vmem:[%s12838_s13 + $0xd4] ss:$8 sps:$4 sm:$0xff]  }
0x1236   : > { %11973 = vpow2.f32 %v4091_v47 }
0x123f   : > { %v13717_v63 = vpop.eup %11971 }
0x1240   : > { %v4099_v19 = vsel %vm2316_vm2, %v13717_v63, 0.0 }
0x1241   : > { %4100 = vadd.xlane.f32.xlu1 %v4099_v19  ;;  %v11495_v19 = vld [vmem:[%s12838_s13 + $0xd0] ss:$8 sps:$4 sm:$0xff]  }
0x1243   : > { %v13721_v21 = vpop.eup %11973 }
0x1244   : > { %v4102_v46 = vsel %vm2316_vm2, %v13721_v21, 0.0 }
0x1245   : > { %4103 = vadd.xlane.f32.xlu1 %v4102_v46  ;;  %v11500_v46 = vld [vmem:[%s12838_s13 + $0xc4] ss:$8 sps:$4 sm:$0xff]  }
0x1256   : > { %4168 = vrot.lane.b32.xlu1 %v13633_v33, %s12448_s30 }
0x125a   : > { %11103 = vrot.lane.b32.xlu1 %v11102_v61, %s12448_s30 }
0x125e   : > { %11113 = vrot.lane.b32.xlu1 %v11112_v38, %s12448_s30 }
0x1262   : > { %11123 = vrot.lane.b32.xlu1 %v11122_v30, %s12448_s30 }
0x1266   : > { %11133 = vrot.lane.b32.xlu1 %v11132_v17, %s12448_s30 }
0x1294   : > { %v4095_v35 = vpop.xlane.xlu0 %4094 }
0x1295   : > { %11975 = vrcp.f32 %v4095_v35  ;;  %v11498_v35 = vld [vmem:[%s12838_s13 + $0xc0] ss:$8 sps:$4 sm:$0xff]  }
0x1298   : > { %v4121_v24 = vpop.permute.xlu0 %4120  ;;  %v4098_v0 = vpop.xlane.xlu1 %4097 }
0x1299   : > { %11977 = vrcp.f32 %v4098_v0  ;;  %10802 = vmatpush3.bf16.msra.mxu0 %v4121_v24  ;;  %v11501_v0 = vld [vmem:[%s12838_s13 + $0xb0] ss:$8 sps:$4 sm:$0xff]  }
0x129a   : > { %4687 = vmatprep.subr.bf16.mxu0 %v11467_v43  ;;  %v11503_v43 = vld [vmem:[%s12838_s13 + $0xb4] ss:$8 sps:$4 sm:$0xff]  }
0x129c   : > { %v11099_v33 = vpop.permute.xlu0 %11098 }
0x129d   : > { %v11101_v27 = vunpack.i.h.bf16 %v11099_v33  ;;  %v11100_v10 = vunpack.i.l.bf16 %v11099_v33  ;;  %v11506_v33 = vld [vmem:[%s12838_s13 + $0xa4] ss:$8 sps:$4 sm:$0xff]  }
0x129f   : > { %v4283_v58 = vsel %vm2213_vm1, %v13417_v23, %v11100_v10  ;;  %v4284_v17 = vsel %vm2213_vm1, %v13419_v44, %v11101_v27  ;;  %v11471_v23 = vld [vmem:[%s12838_s13 + $0x50] ss:$8 sps:$4 sm:$0xff]   ;;  %v11476_v44 = vld [vmem:[%s12838_s13 + $0x44] ss:$8 sps:$4 sm:$0xff]   ;;  %v11504_v10 = vld [vmem:[%s12838_s13 + $0xa0] ss:$8 sps:$4 sm:$0xff]  }
0x12a0   : > { %v4296_v55 = vpack.c.bf16 %v4284_v17, %v4283_v58 }
0x12a2   : > { %v11976_v61 = vpop.eup %11975 }
0x12a3   : > { %v4109_v39 = vmul.f32 %v11976_v61, %v11968_v7  ;;  %v11488_v7 = vld [vmem:[%s12838_s13 + $0x4] ss:$8 sps:$4 sm:$0xff]  }
0x12a5   : > { %v4113_v38 = vmul.f32 %v13575_v25, %v4109_v39  ;;  %v11468_v25 = vld [vmem:[%s12838_s13 + $0x60] ss:$8 sps:$4 sm:$0xff]  }
0x12a6   : > { %v11978_v30 = vpop.eup %11977 }
0x12a7   : > { %v4110_v5 = vmul.f32 %v11978_v30, %v11970_v59  ;;  %v11491_v59 = vld [vmem:[%s12838_s13 + $0xf4] ss:$8 sps:$4 sm:$0xff]  }
0x12a9   : > { %v4114_v52 = vmul.f32 %v13581_v49, %v4110_v5  ;;  %v11473_v49 = vld [vmem:[%s12838_s13 + $0x54] ss:$8 sps:$4 sm:$0xff]  }
0x12ab   : > { %v4117_v50 = vpack.c.bf16 %v4114_v52, %v4113_v38  ;;  %v11509_v38 = vld [vmem:[%s12838_s13 + $0x94] ss:$8 sps:$4 sm:$0xff]  }
0x12ad   : > { %10804 = vmatmul.mubr.msk.bf16.vlgmr.msra.gmra.mxu0 %vm2316_vm2, %v4117_v50 }
0x12ae   : > { %4688 = vmatpush1.bf16.msra.mxu0 %v11465_v14  ;;  %4719 = vmatprep.mubr.bf16.mxu0 %v4296_v55  ;;  %v11515_v55 = vld [vmem:[%s12838_s13 + $0x174] ss:$8 sps:$4 sm:$0xff]  }
0x12af   : > { %4689 = vmatprep.subr.bf16.mxu0 %v11470_v32 }
0x12b2   : > { %4690 = vmatpush1.bf16.msra.mxu0 %v11468_v25  ;;  %v11513_v25 = vld [vmem:[%s12838_s13 + $0x170] ss:$8 sps:$4 sm:$0xff]  }
0x12b3   : > { %4691 = vmatprep.subr.bf16.mxu0 %v11473_v49  ;;  %v11518_v49 = vld [vmem:[%s12838_s13 + $0x164] ss:$8 sps:$4 sm:$0xff]  }
0x12b6   : > { %4692 = vmatpush1.bf16.msra.mxu0 %v11471_v23  ;;  %v11516_v23 = vld [vmem:[%s12838_s13 + $0x160] ss:$8 sps:$4 sm:$0xff]  }
0x12b7   : > { %4693 = vmatprep.subr.bf16.mxu0 %v11476_v44  ;;  %v11521_v44 = vld [vmem:[%s12838_s13 + $0x154] ss:$8 sps:$4 sm:$0xff]  }
0x12ba   : > { %4694 = vmatpush1.bf16.msra.mxu0 %v11474_v2  ;;  %v11522_v2 = vld [vmem:[%s12838_s13 + $0x140] ss:$8 sps:$4 sm:$0xff]  }
0x12bb   : > { %4695 = vmatprep.subr.bf16.mxu0 %v11479_v34  ;;  %v11527_v34 = vld [vmem:[%s12838_s13 + $0x134] ss:$8 sps:$4 sm:$0xff]  }
0x12be   : > { %4696 = vmatpush1.bf16.msra.mxu0 %v11477_v9  ;;  %v11525_v9 = vld [vmem:[%s12838_s13 + $0x130] ss:$8 sps:$4 sm:$0xff]  }
0x12bf   : > { %4697 = vmatprep.subr.bf16.mxu0 %v11482_v4  ;;  %v11530_v4 = vld [vmem:[%s12838_s13 + $0x124] ss:$8 sps:$4 sm:$0xff]  }
0x12c2   : > { %4698 = vmatpush1.bf16.msra.mxu0 %v11480_v1  ;;  %v11528_v1 = vld [vmem:[%s12838_s13 + $0x120] ss:$8 sps:$4 sm:$0xff]  }
0x12c3   : > { %4699 = vmatprep.subr.bf16.mxu0 %v11485_v42  ;;  %v11533_v42 = vld [vmem:[%s12838_s13 + $0x114] ss:$8 sps:$4 sm:$0xff]  }
0x12c6   : > { %4700 = vmatpush1.bf16.msra.mxu0 %v11483_v15  ;;  %v11531_v15 = vld [vmem:[%s12838_s13 + $0x110] ss:$8 sps:$4 sm:$0xff]  }
0x12c7   : > { %4701 = vmatprep.subr.bf16.mxu0 %v11488_v7  ;;  %v11536_v7 = vld [vmem:[%s12838_s13 + $0x104] ss:$8 sps:$4 sm:$0xff]  }
0x12ca   : > { %4702 = vmatpush1.bf16.msra.mxu0 %v11486_v57  ;;  %v4101_v22 = vpop.xlane.xlu1 %4100  ;;  %v11534_v57 = vld [vmem:[%s12838_s13 + $0x100] ss:$8 sps:$4 sm:$0xff]  }
0x12cb   : > { %11979 = vrcp.f32 %v4101_v22  ;;  %4703 = vmatprep.subr.bf16.mxu0 %v11491_v59  ;;  %v11539_v59 = vld [vmem:[%s12838_s13 + $0x1f4] ss:$8 sps:$4 sm:$0xff]   ;;  %v11537_v22 = vld [vmem:[%s12838_s13 + $0x1f0] ss:$8 sps:$4 sm:$0xff]  }
0x12ce   : > { %4704 = vmatpush2.bf16.msra.mxu0 %v11489_v51  ;;  %v4104_v20 = vpop.xlane.xlu1 %4103  ;;  %v11542_v51 = vld [vmem:[%s12838_s13 + $0x1e4] ss:$8 sps:$4 sm:$0xff]  }
0x12cf   : > { %11981 = vrcp.f32 %v4104_v20  ;;  %4705 = vmatprep.subr.bf16.mxu0 %v11494_v40  ;;  %v11540_v40 = vld [vmem:[%s12838_s13 + $0x1e0] ss:$8 sps:$4 sm:$0xff]   ;;  %v11545_v20 = vld [vmem:[%s12838_s13 + $0x1d4] ss:$8 sps:$4 sm:$0xff]  }
0x12d2   : > { %4706 = vmatpush2.bf16.msra.mxu0 %v11492_v3  ;;  %v4169_v47 = vpop.permute.xlu1 %4168  ;;  %v11543_v3 = vld [vmem:[%s12838_s13 + $0x1d0] ss:$8 sps:$4 sm:$0xff]  }
0x12d3   : > { %10808 = vmatpush3.bf16.msra.mxu1 %v4169_v47  ;;  %4707 = vmatprep.subr.bf16.mxu0 %v11497_v31  ;;  %v11548_v31 = vld [vmem:[%s12838_s13 + $0x1c4] ss:$8 sps:$4 sm:$0xff]   ;;  %v11546_v47 = vld [vmem:[%s12838_s13 + $0x1c0] ss:$8 sps:$4 sm:$0xff]  }
0x12d4   : > { %4740 = vmatprep.subr.bf16.mxu1 %v11515_v55 }
0x12d6   : > { %4708 = vmatpush2.bf16.msra.mxu0 %v11495_v19  ;;  %v11104_v52 = vpop.permute.xlu1 %11103  ;;  %v11551_v19 = vld [vmem:[%s12838_s13 + $0x1b4] ss:$8 sps:$4 sm:$0xff]  }
0x12d7   : > { %4709 = vmatprep.subr.bf16.mxu0 %v11500_v46  ;;  %v11106_v17 = vunpack.i.h.bf16 %v11104_v52  ;;  %v11105_v14 = vunpack.i.l.bf16 %v11104_v52  ;;  %v11549_v46 = vld [vmem:[%s12838_s13 + $0x1b0] ss:$8 sps:$4 sm:$0xff]  }
0x12d8   : > { %v11980_v24 = vpop.eup %11979 }
0x12d9   : > { %v4111_v61 = vmul.f32 %v11980_v24, %v13717_v63  ;;  %v11507_v63 = vld [vmem:[%s12838_s13 + $0x90] ss:$8 sps:$4 sm:$0xff]   ;;  %v4279_v50 = vsel %vm2213_vm1, %v13287_v8, %v11105_v14  ;;  %v11524_v8 = vld [vmem:[%s12838_s13 + $0x144] ss:$8 sps:$4 sm:$0xff]   ;;  %v11557_v24 = vld [vmem:[%s12838_s13 + $0x194] ss:$8 sps:$4 sm:$0xff]  }
0x12da   : > { %4710 = vmatpush2.bf16.msra.mxu0 %v11498_v35  ;;  %v11554_v35 = vld [vmem:[%s12838_s13 + $0x1a4] ss:$8 sps:$4 sm:$0xff]  }
0x12db   : > { %4711 = vmatprep.subr.bf16.mxu0 %v11503_v43  ;;  %v4115_v30 = vmul.f32 %v13612_v28, %v4111_v61  ;;  %v11510_v28 = vld [vmem:[%s12838_s13 + $0x80] ss:$8 sps:$4 sm:$0xff]   ;;  %v11560_v61 = vld [vmem:[%s12838_s13 + $0x184] ss:$8 sps:$4 sm:$0xff]  }
0x12dc   : > { %v11982_v39 = vpop.eup %11981  ;;  %v11552_v43 = vld [vmem:[%s12838_s13 + $0x1a0] ss:$8 sps:$4 sm:$0xff]  }
0x12dd   : > { %v4112_v27 = vmul.f32 %v11982_v39, %v13721_v21  ;;  %v11512_v21 = vld [vmem:[%s12838_s13 + $0x84] ss:$8 sps:$4 sm:$0xff]  }
0x12de   : > { %4712 = vmatpush2.bf16.msra.mxu0 %v11501_v0  ;;  %v11555_v0 = vld [vmem:[%s12838_s13 + $0x190] ss:$8 sps:$4 sm:$0xff]  }
0x12df   : > { %4713 = vmatprep.subr.bf16.mxu0 %v11506_v33  ;;  %v4116_v5 = vmul.f32 %v13618_v37, %v4112_v27  ;;  %v4280_v37 = vsel %vm2213_vm1, %v13289_v13, %v11106_v17  ;;  %v11519_v13 = vld [vmem:[%s12838_s13 + $0x150] ss:$8 sps:$4 sm:$0xff]   ;;  %v11558_v33 = vld [vmem:[%s12838_s13 + $0x180] ss:$8 sps:$4 sm:$0xff]   ;;  %v11114_v17 = vpop.permute.xlu1 %11113 }
0x12e0   : > { %v4295_v32 = vpack.c.bf16 %v4280_v37, %v4279_v50  ;;  %v11116_v14 = vunpack.i.h.bf16 %v11114_v17 }
0x12e1   : > { %v4118_v58 = vpack.c.bf16 %v4116_v5, %v4115_v30 }
0x12e2   : > { %4714 = vmatpush2.bf16.msra.mxu0 %v11504_v10 }
0x12e3   : > { %10810 = vmatmul.mubr.msk.bf16.vlgmr.msra.gmra.mxu1 %vm2316_vm2, %v4118_v58  ;;  %4715 = vmatprep.subr.bf16.mxu0 %v11509_v38  ;;  %v11124_v37 = vpop.permute.xlu1 %11123 }
0x12e4   : > { %4741 = vmatpush1.bf16.msra.mxu1 %v11513_v25  ;;  %v4288_v25 = vsel %vm2213_vm1, %v13525_v6, %v11116_v14  ;;  %v11126_v11 = vunpack.i.h.bf16 %v11124_v37  ;;  %v12148_v14 = vld [vmem:[#allocation2 + $0x20] sm:$0xff] }
0x12e5   : > { %4742 = vmatprep.subr.bf16.mxu1 %v11518_v49 }
0x12e6   : > { %4716 = vmatpush2.bf16.msra.mxu0 %v11507_v63 }
0x12e7   : > { %4717 = vmatprep.subr.bf16.mxu0 %v11512_v21 }
0x12e8   : > { %4743 = vmatpush1.bf16.msra.mxu1 %v11516_v23 }
0x12e9   : > { %4744 = vmatprep.subr.bf16.mxu1 %v11521_v44 }
0x12ea   : > { %4718 = vmatpush2.bf16.msra.mxu0 %v11510_v28  ;;  %v11115_v28 = vunpack.i.l.bf16 %v11114_v17 }
0x12ec   : > { %4745 = vmatpush1.bf16.msra.mxu1 %v11519_v13  ;;  %v4287_v29 = vsel %vm2213_vm1, %v13523_v45, %v11115_v28  ;;  %v4282_v45 = vsel %vm2213_vm1, %v13297_v54, %v11126_v11 }
0x12ed   : > { %4720 = vmatmul.mubr.bf16.vlgmr.msra.gmra.mxu0 %v4295_v32  ;;  %4746 = vmatprep.subr.bf16.mxu1 %v11524_v8 }
0x12f0   : > { %4747 = vmatpush1.bf16.msra.mxu1 %v11522_v2 }
0x12f1   : > { %4748 = vmatprep.subr.bf16.mxu1 %v11527_v34  ;;  %v4297_v34 = vpack.c.bf16 %v4288_v25, %v4287_v29  ;;  %v12149_v29 = vld [vmem:[#allocation2 + $0x28] sm:$0xff] }
0x12f4   : > { %4749 = vmatpush1.bf16.msra.mxu1 %v11525_v9 }
0x12f5   : > { %4750 = vmatprep.subr.bf16.mxu1 %v11530_v4 }
0x12f8   : > { %4751 = vmatpush1.bf16.msra.mxu1 %v11528_v1  ;;  %v11134_v1 = vpop.permute.xlu1 %11133 }
0x12f9   : > { %4752 = vmatprep.subr.bf16.mxu1 %v11533_v42  ;;  %v11136_v42 = vunpack.i.h.bf16 %v11134_v1 }
0x12fc   : > { %4753 = vmatpush1.bf16.msra.mxu1 %v11531_v15  ;;  %v11135_v15 = vunpack.i.l.bf16 %v11134_v1  ;;  %v11570_v1 = vld [vmem:[%s12844_s1 + $0xc8] ss:$16 sps:$4 sm:$0xff]  }
0x12fd   : > { %4754 = vmatprep.subr.bf16.mxu1 %v11536_v7 }
0x12fe   : > { %v4289_v54 = vsel %vm2213_vm1, %v13541_v41, %v11135_v15  ;;  %v12144_v41 = vld [vmem:[#allocation2] sm:$0xff]  ;;  %v11578_v15 = vld [vmem:[%s12844_s1 + $0xac] ss:$16 sps:$4 sm:$0xff]  }
0x1300   : > { %4755 = vmatpush1.bf16.msra.mxu1 %v11534_v57 }
0x1301   : > { %4756 = vmatprep.subr.bf16.mxu1 %v11539_v59  ;;  %v4290_v59 = vsel %vm2213_vm1, %v13543_v18, %v11136_v42  ;;  %v11575_v42 = vld [vmem:[%s12844_s1 + $0xa4] ss:$16 sps:$4 sm:$0xff]  }
0x1304   : > { %4757 = vmatpush2.bf16.msra.mxu1 %v11537_v22 }
0x1305   : > { %4758 = vmatprep.subr.bf16.mxu1 %v11542_v51  ;;  %v4301_v51 = vpack.c.bf16 %v4290_v59, %v4289_v54  ;;  %v11584_v54 = vld [vmem:[%s12844_s1 + $0x8c] ss:$16 sps:$4 sm:$0xff]   ;;  %v11579_v59 = vld [vmem:[%s12844_s1 + $0x80] ss:$16 sps:$4 sm:$0xff]  }
0x1308   : > { %4759 = vmatpush2.bf16.msra.mxu1 %v11540_v40 }
0x1309   : > { %4760 = vmatprep.subr.bf16.mxu1 %v11545_v20 }
0x130c   : > { %4761 = vmatpush2.bf16.msra.mxu1 %v11543_v3 }
0x130d   : > { %4762 = vmatprep.subr.bf16.mxu1 %v11548_v31 }
0x1310   : > { %4763 = vmatpush2.bf16.msra.mxu1 %v11546_v47  ;;  %v12143_v47 = vld [vmem:[#allocation2 + $0x30] sm:$0xff] }
0x1311   : > { %4764 = vmatprep.subr.bf16.mxu1 %v11551_v19 }
0x1314   : > { %4765 = vmatpush2.bf16.msra.mxu1 %v11549_v46 }
0x1315   : > { %4766 = vmatprep.subr.bf16.mxu1 %v11554_v35 }
0x1318   : > { %4767 = vmatpush2.bf16.msra.mxu1 %v11552_v43 }
0x1319   : > { %4768 = vmatprep.subr.bf16.mxu1 %v11557_v24 }
0x131c   : > { %4769 = vmatpush2.bf16.msra.mxu1 %v11555_v0 }
0x131d   : > { %4770 = vmatprep.subr.bf16.mxu1 %v11560_v61  ;;  %v12146_v61 = vld [vmem:[#allocation2 + $0x10] sm:$0xff] }
0x1320   : > { %4771 = vmatpush2.bf16.msra.mxu1 %v11558_v33 }
0x136d   : > { %v4160_v39 = vpop.f32.mrf.mxu0 }
0x136f   : > { %v10805_v27 = vpop.f32.mrf.mxu0 }
0x1371   : > { %v4163_v10 = vpop.f32.mrf.mxu0 }
0x1372   : > { %v11107_v30 = vpack.i.bf16 %v4163_v10, %v4160_v39 }
0x1373   : > { %v10806_v5 = vpop.f32.mrf.mxu0 }
0x1374   : > { %11108 = vrot.lane.b32.xlu0 %v11107_v30, %s12448_s30 }
0x1378   : > { %11118 = vrot.lane.b32.xlu0 %v11117_v26, %s12448_s30  ;;  %v11125_v26 = vunpack.i.l.bf16 %v11124_v37 }
0x137a   : > { %v4281_v6 = vsel %vm2213_vm1, %v13295_v48, %v11125_v26  ;;  %v12150_v26 = vld [vmem:[#allocation2 + $0x38] sm:$0xff] }
0x137b   : > { %v4299_v4 = vpack.c.bf16 %v4282_v45, %v4281_v6  ;;  %v11563_v6 = vld [vmem:[%s12844_s1 + $0xe4] ss:$16 sps:$4 sm:$0xff]   ;;  %v11564_v45 = vld [vmem:[%s12844_s1 + $0xe8] ss:$16 sps:$4 sm:$0xff]  }
0x137c   : > { %5246 = vmatprep.subr.bf16.mxu0 %v11563_v6  ;;  %v11632_v6 = vld [vmem:[%s12844_s1 + $0x18c] ss:$16 sps:$4 sm:$0xff]  }
0x13a3   : > { %v4208_v38 = vpop.f32.mrf.mxu1 }
0x13a5   : > { %v10811_v52 = vpop.f32.mrf.mxu1 }
0x13a7   : > { %v4211_v58 = vpop.f32.mrf.mxu1 }
0x13a8   : > { %v11127_v63 = vpack.i.bf16 %v4211_v58, %v4208_v38 }
0x13a9   : > { %v10812_v21 = vpop.f32.mrf.mxu1 }
0x13aa   : > { %11128 = vrot.lane.b32.xlu0 %v11127_v63, %s12448_s30  ;;  %v12147_v21 = vld [vmem:[#allocation2 + $0x8] sm:$0xff] }
0x13ad   : > { %v4721_v40 = vpop.f32.mrf.mxu0 }
0x13ae   : > { %v4722_v19 = vadd.f32 %v12143_v47, %v4721_v40  ;;  %v11588_v40 = vld [vmem:[%s12844_s1 + $0x68] ss:$16 sps:$4 sm:$0xff]  }
0x13af   : > { %v4723_v20 = vpop.f32.mrf.mxu0  ;;  %v11594_v47 = vld [vmem:[%s12844_s1 + $0x48] ss:$16 sps:$4 sm:$0xff]  }
0x13b0   : > { %v4724_v46 = vadd.f32 %v12144_v41, %v4723_v20  ;;  %v11593_v20 = vld [vmem:[%s12844_s1 + $0x44] ss:$16 sps:$4 sm:$0xff]   ;;  %v11602_v41 = vld [vmem:[%s12844_s1 + $0x2c] ss:$16 sps:$4 sm:$0xff]  }
0x13b1   : > { %v4725_v3 = vpop.f32.mrf.mxu0 }
0x13b3   : > { %v4727_v35 = vpop.f32.mrf.mxu0 }
0x13b4   : > { %v4728_v33 = vadd.f32 %v12146_v61, %v4727_v35  ;;  %v11600_v35 = vld [vmem:[%s12844_s1 + $0x28] ss:$16 sps:$4 sm:$0xff]   ;;  %v11611_v61 = vld [vmem:[%s12844_s1 + $0x1e4] ss:$16 sps:$4 sm:$0xff]  }
0x13e6   : > { %v11109_v50 = vpop.permute.xlu0 %11108 }
0x13e7   : > { %v11111_v32 = vunpack.i.h.bf16 %v11109_v50  ;;  %v11110_v55 = vunpack.i.l.bf16 %v11109_v50 }
0x13e9   : > { %v4291_v49 = vsel %vm2213_vm1, %v13693_v16, %v11110_v55  ;;  %v4292_v23 = vsel %vm2213_vm1, %v13695_v36, %v11111_v32 }
0x13ea   : > { %v11119_v13 = vpop.permute.xlu0 %11118  ;;  %v4298_v44 = vpack.c.bf16 %v4292_v23, %v4291_v49 }
0x13eb   : > { %v11121_v8 = vunpack.i.h.bf16 %v11119_v13  ;;  %v11120_v2 = vunpack.i.l.bf16 %v11119_v13 }
0x13ec   : > { %4772 = vmatprep.mubr.bf16.mxu1 %v4298_v44 }
0x13ed   : > { %4773 = vmatmul.mubr.bf16.vlgmr.msra.gmra.mxu1 %v4297_v34  ;;  %v4285_v9 = vsel %vm2213_vm1, %v13425_v60, %v11120_v2  ;;  %v4286_v16 = vsel %vm2213_vm1, %v13427_v53, %v11121_v8  ;;  %v11561_v34 = vld [vmem:[%s12844_s1 + $0xe0] ss:$16 sps:$4 sm:$0xff]  }
0x13ee   : > { %v4300_v36 = vpack.c.bf16 %v4286_v16, %v4285_v9  ;;  %v11566_v9 = vld [vmem:[%s12844_s1 + $0xec] ss:$16 sps:$4 sm:$0xff]   ;;  %v11569_v16 = vld [vmem:[%s12844_s1 + $0xc4] ss:$16 sps:$4 sm:$0xff]   ;;  %5247 = vmatpush1.bf16.msra.mxu0 %v11561_v34  ;;  %v11627_v34 = vld [vmem:[%s12844_s1 + $0x180] ss:$16 sps:$4 sm:$0xff]  }
0x13ef   : > { %5299 = vmatprep.subr.bf16.mxu1 %v11566_v9  ;;  %5248 = vmatprep.subr.bf16.mxu0 %v11569_v16  ;;  %v11635_v9 = vld [vmem:[%s12844_s1 + $0x164] ss:$16 sps:$4 sm:$0xff]   ;;  %v11633_v16 = vld [vmem:[%s12844_s1 + $0x160] ss:$16 sps:$4 sm:$0xff]  }
0x13f0   : > { %4729 = vmatprep.mubr.bf16.mxu0 %v4300_v36  ;;  %v11572_v36 = vld [vmem:[%s12844_s1 + $0xcc] ss:$16 sps:$4 sm:$0xff]   ;;  %5300 = vmatpush1.bf16.msra.mxu1 %v11564_v45  ;;  %v11630_v45 = vld [vmem:[%s12844_s1 + $0x188] ss:$16 sps:$4 sm:$0xff]  }
0x13f1   : > { %4730 = vmatmul.mubr.bf16.gmra.mxu0 %v4299_v4  ;;  %v11567_v4 = vld [vmem:[%s12844_s1 + $0xc0] ss:$16 sps:$4 sm:$0xff]   ;;  %5301 = vmatprep.subr.bf16.mxu1 %v11572_v36  ;;  %v11638_v36 = vld [vmem:[%s12844_s1 + $0x16c] ss:$16 sps:$4 sm:$0xff]  }
0x13f2   : > { %5249 = vmatpush1.bf16.msra.mxu0 %v11567_v4  ;;  %v11636_v4 = vld [vmem:[%s12844_s1 + $0x168] ss:$16 sps:$4 sm:$0xff]  }
0x13f3   : > { %5250 = vmatprep.subr.bf16.mxu0 %v11575_v42  ;;  %v11644_v42 = vld [vmem:[%s12844_s1 + $0x14c] ss:$16 sps:$4 sm:$0xff]  }
0x13f4   : > { %5302 = vmatpush1.bf16.msra.mxu1 %v11570_v1  ;;  %v11641_v1 = vld [vmem:[%s12844_s1 + $0x144] ss:$16 sps:$4 sm:$0xff]  }
0x13f5   : > { %5303 = vmatprep.subr.bf16.mxu1 %v11578_v15  ;;  %v11639_v15 = vld [vmem:[%s12844_s1 + $0x140] ss:$16 sps:$4 sm:$0xff]  }
0x141c   : > { %v11129_v7 = vpop.permute.xlu0 %11128 }
0x141d   : > { %v11131_v57 = vunpack.i.h.bf16 %v11129_v7  ;;  %v11130_v48 = vunpack.i.l.bf16 %v11129_v7  ;;  %v11573_v7 = vld [vmem:[%s12844_s1 + $0xa0] ss:$16 sps:$4 sm:$0xff]  }
0x141e   : > { %5251 = vmatpush1.bf16.msra.mxu0 %v11573_v7  ;;  %v11642_v7 = vld [vmem:[%s12844_s1 + $0x148] ss:$16 sps:$4 sm:$0xff]  }
0x141f   : > { %v4293_v60 = vsel %vm2213_vm1, %v13701_v62, %v11130_v48  ;;  %v4294_v53 = vsel %vm2213_vm1, %v13703_v56, %v11131_v57  ;;  %v12145_v56 = vld [vmem:[#allocation2 + $0x18] sm:$0xff]  ;;  %v11581_v48 = vld [vmem:[%s12844_s1 + $0x84] ss:$16 sps:$4 sm:$0xff]  }
0x1420   : > { %v4302_v22 = vpack.c.bf16 %v4294_v53, %v4293_v60  ;;  %v4726_v0 = vadd.f32 %v12145_v56, %v4725_v3  ;;  %v11576_v57 = vld [vmem:[%s12844_s1 + $0xa8] ss:$16 sps:$4 sm:$0xff]   ;;  %5252 = vmatprep.subr.bf16.mxu0 %v11581_v48  ;;  %v11587_v53 = vld [vmem:[%s12844_s1 + $0x64] ss:$16 sps:$4 sm:$0xff]   ;;  %v11596_v3 = vld [vmem:[%s12844_s1 + $0x4c] ss:$16 sps:$4 sm:$0xff]  }
0x1421   : > { %5304 = vmatpush1.bf16.msra.mxu1 %v11576_v57  ;;  %v11582_v60 = vld [vmem:[%s12844_s1 + $0x88] ss:$16 sps:$4 sm:$0xff]   ;;  %v11603_v56 = vld [vmem:[%s12844_s1] ss:$16 sps:$4 sm:$0xff]   ;;  %v11647_v57 = vld [vmem:[%s12844_s1 + $0x124] ss:$16 sps:$4 sm:$0xff]  }
0x1422   : > { %4782 = vmatprep.mubr.bf16.mxu1 %v4302_v22  ;;  %5305 = vmatprep.subr.bf16.mxu1 %v11584_v54  ;;  %v11590_v22 = vld [vmem:[%s12844_s1 + $0x6c] ss:$16 sps:$4 sm:$0xff]   ;;  %v11645_v54 = vld [vmem:[%s12844_s1 + $0x120] ss:$16 sps:$4 sm:$0xff]  }
0x1423   : > { %4783 = vmatmul.mubr.bf16.gmra.mxu1 %v4301_v51  ;;  %5253 = vmatpush1.bf16.msra.mxu0 %v11579_v59  ;;  %v11585_v51 = vld [vmem:[%s12844_s1 + $0x60] ss:$16 sps:$4 sm:$0xff]   ;;  %v11650_v48 = vld [vmem:[%s12844_s1 + $0x12c] ss:$16 sps:$4 sm:$0xff]   ;;  %v11648_v59 = vld [vmem:[%s12844_s1 + $0x128] ss:$16 sps:$4 sm:$0xff]  }
0x1424   : > { %5254 = vmatprep.subr.bf16.mxu0 %v11587_v53  ;;  %v11656_v53 = vld [vmem:[%s12844_s1 + $0x10c] ss:$16 sps:$4 sm:$0xff]  }
0x1425   : > { %5306 = vmatpush1.bf16.msra.mxu1 %v11582_v60  ;;  %v11653_v60 = vld [vmem:[%s12844_s1 + $0x104] ss:$16 sps:$4 sm:$0xff]  }
0x1426   : > { %5307 = vmatprep.subr.bf16.mxu1 %v11590_v22  ;;  %v11651_v22 = vld [vmem:[%s12844_s1 + $0x100] ss:$16 sps:$4 sm:$0xff]  }
0x1427   : > { %5255 = vmatpush1.bf16.msra.mxu0 %v11585_v51  ;;  %v11654_v51 = vld [vmem:[%s12844_s1 + $0x108] ss:$16 sps:$4 sm:$0xff]  }
0x1428   : > { %5256 = vmatprep.subr.bf16.mxu0 %v11593_v20  ;;  %v5416_v20 = vld [vmem:[%s12846_s3 + $0x1e0] sm:$0xff] }
0x1429   : > { %5308 = vmatpush1.bf16.msra.mxu1 %v11588_v40  ;;  %v5412_v40 = vld [vmem:[%s12846_s3 + $0x1c0] sm:$0xff] }
0x142a   : > { %5309 = vmatprep.subr.bf16.mxu1 %v11596_v3  ;;  %v10250_v3 = vcombine.low %v5412_v40, %v5416_v20 }
0x142d   : > { %5310 = vmatpush1.bf16.msra.mxu1 %v11594_v47 }
0x142e   : > { %5311 = vmatprep.subr.bf16.mxu1 %v11602_v41 }
0x1431   : > { %5312 = vmatpush1.bf16.msra.mxu1 %v11600_v35 }
0x14ad   : > { %v4774_v31 = vpop.f32.mrf.mxu1 }
0x14ae   : > { %v13853_v43 = vadd.f32 %v4774_v31, %v4722_v19  ;;  %v11591_v31 = vld [vmem:[%s12844_s1 + $0x40] ss:$16 sps:$4 sm:$0xff]   ;;  %v11599_v19 = vld [vmem:[%s12844_s1 + $0x24] ss:$16 sps:$4 sm:$0xff]  }
0x14af   : > { %v4776_v18 = vpop.f32.mrf.mxu1  ;;  %5257 = vmatpush1.bf16.msra.mxu0 %v11591_v31  ;;  %v10251_v31 = vcombine.high %v5412_v40, %v5416_v20 }
0x14b0   : > { %v13855_v62 = vadd.f32 %v4776_v18, %v4724_v46  ;;  %v11597_v46 = vld [vmem:[%s12844_s1 + $0x20] ss:$16 sps:$4 sm:$0xff]   ;;  %5258 = vmatprep.subr.bf16.mxu0 %v11599_v19  ;;  %v11605_v18 = vld [vmem:[%s12844_s1 + $0x4] ss:$16 sps:$4 sm:$0xff]  }
0x14b1   : > { %v4778_v24 = vpop.f32.mrf.mxu1  ;;  %v4731_v38 = vpop.f32.mrf.mxu0 }
0x14b2   : > { %v4793_v39 = vadd.f32 %v13855_v62, %v13853_v43  ;;  %v13859_v10 = vadd.f32 %v4778_v24, %v4726_v0  ;;  %v4732_v17 = vadd.f32 %v12147_v21, %v4731_v38  ;;  %v11608_v24 = vld [vmem:[%s12844_s1 + $0xc] ss:$16 sps:$4 sm:$0xff]   ;;  %v11606_v0 = vld [vmem:[%s12844_s1 + $0x8] ss:$16 sps:$4 sm:$0xff]  }
0x14b3   : > { %v4780_v27 = vpop.f32.mrf.mxu1  ;;  %v4733_v52 = vpop.f32.mrf.mxu0  ;;  %5259 = vmatpush1.bf16.msra.mxu0 %v11597_v46  ;;  %5313 = vmatprep.subr.bf16.mxu1 %v11608_v24  ;;  %v11620_v38 = vld [vmem:[%s12844_s1 + $0x1cc] ss:$16 sps:$4 sm:$0xff]  }
0x14b4   : > { %v13861_v30 = vadd.f32 %v4780_v27, %v4728_v33  ;;  %4794 = vadd.xlane.f32.xlu0 %v4793_v39  ;;  %v4734_v28 = vadd.f32 %v12148_v14, %v4733_v52  ;;  %5260 = vmatprep.subr.bf16.mxu0 %v11605_v18  ;;  %v11614_v33 = vld [vmem:[%s12844_s1 + $0x1ec] ss:$16 sps:$4 sm:$0xff]   ;;  %v11609_v39 = vld [vmem:[%s12844_s1 + $0x1e0] ss:$16 sps:$4 sm:$0xff]   ;;  %v11612_v27 = vld [vmem:[%s12844_s1 + $0x1e8] ss:$16 sps:$4 sm:$0xff]  }
0x14b5   : > { %v4735_v58 = vpop.f32.mrf.mxu0  ;;  %5314 = vmatpush1.bf16.msra.mxu1 %v11606_v0  ;;  %v11615_v52 = vld [vmem:[%s12844_s1 + $0x1c0] ss:$16 sps:$4 sm:$0xff]  }
0x14b6   : > { %v4796_v5 = vadd.f32 %v13861_v30, %v13859_v10  ;;  %v4736_v11 = vadd.f32 %v12149_v29, %v4735_v58  ;;  %5315 = vmatprep.subr.bf16.mxu1 %v11614_v33  ;;  %v11618_v58 = vld [vmem:[%s12844_s1 + $0x1c8] ss:$16 sps:$4 sm:$0xff]  }
0x14b7   : > { %v4737_v37 = vpop.f32.mrf.mxu0  ;;  %5261 = vmatpush1.bf16.msra.mxu0 %v11603_v56 }
0x14b8   : > { %4797 = vadd.xlane.f32.xlu1 %v4796_v5  ;;  %v4738_v49 = vadd.f32 %v12150_v26, %v4737_v37  ;;  %5262 = vmatprep.subr.bf16.mxu0 %v11611_v61  ;;  %v11617_v5 = vld [vmem:[%s12844_s1 + $0x1c4] ss:$16 sps:$4 sm:$0xff]  }
0x14b9   : > { %5316 = vmatpush2.bf16.msra.mxu1 %v11612_v27  ;;  %v5413_v27 = vld [vmem:[%s12846_s3 + $0x1c8] sm:$0xff] }
0x14ba   : > { %5317 = vmatprep.subr.bf16.mxu1 %v11620_v38 }
0x14bb   : > { %5263 = vmatpush2.bf16.msra.mxu0 %v11609_v39 }
0x14bc   : > { %5264 = vmatprep.subr.bf16.mxu0 %v11617_v5  ;;  %v5417_v5 = vld [vmem:[%s12846_s3 + $0x1e8] sm:$0xff] }
0x14bd   : > { %5318 = vmatpush2.bf16.msra.mxu1 %v11618_v58  ;;  %v10253_v38 = vcombine.high %v5413_v27, %v5417_v5 }
0x14bf   : > { %5265 = vmatpush2.bf16.msra.mxu0 %v11615_v52 }
0x14e3   : > { %v4784_v63 = vpop.f32.mrf.mxu1 }
0x14e4   : > { %v13865_v32 = vadd.f32 %v4784_v63, %v4732_v17 }
0x14e5   : > { %v4786_v50 = vpop.f32.mrf.mxu1 }
0x14e6   : > { %v13867_v55 = vadd.f32 %v4786_v50, %v4734_v28 }
0x14e7   : > { %v4788_v25 = vpop.f32.mrf.mxu1 }
0x14e8   : > { %v4799_v23 = vadd.f32 %v13867_v55, %v13865_v32  ;;  %v13871_v44 = vadd.f32 %v4788_v25, %v4736_v11 }
0x14e9   : > { %v4790_v13 = vpop.f32.mrf.mxu1 }
0x14ea   : > { %v13873_v8 = vadd.f32 %v4790_v13, %v4738_v49  ;;  %4800 = vadd.xlane.f32.xlu0 %v4799_v23  ;;  %v11621_v23 = vld [vmem:[%s12844_s1 + $0x1a0] ss:$16 sps:$4 sm:$0xff]   ;;  %v11624_v13 = vld [vmem:[%s12844_s1 + $0x1a8] ss:$16 sps:$4 sm:$0xff]  }
0x14ec   : > { %v4802_v2 = vadd.f32 %v13873_v8, %v13871_v44 }
0x14ee   : > { %4803 = vadd.xlane.f32.xlu0 %v4802_v2  ;;  %v11629_v2 = vld [vmem:[%s12844_s1 + $0x184] ss:$16 sps:$4 sm:$0xff]  }
0x153d   : > { %v4795_v63 = vpop.xlane.xlu0 %4794 }
0x153e   : > { %v4806_v21 = vmul.f32 0.00390625, %v4795_v63 }
0x1540   : > { %v13918_v17 = vsub.f32 %v13853_v43, %v4806_v21  ;;  %v13921_v14 = vsub.f32 %v13855_v62, %v4806_v21 }
0x1541   : > { %v4798_v28 = vpop.xlane.xlu1 %4797 }
0x1542   : > { %v4818_v37 = vmul.f32 %v13918_v17, %v13918_v17  ;;  %v4819_v50 = vmul.f32 %v13921_v14, %v13921_v14  ;;  %v4807_v25 = vmul.f32 0.00390625, %v4798_v28 }
0x1544   : > { %v13928_v29 = vsub.f32 %v13859_v10, %v4807_v25  ;;  %v13931_v43 = vsub.f32 %v13861_v30, %v4807_v25  ;;  %v4826_v11 = vadd.f32 %v4819_v50, %v4818_v37  ;;  %v11623_v10 = vld [vmem:[%s12844_s1 + $0x1a4] ss:$16 sps:$4 sm:$0xff]   ;;  %v11626_v30 = vld [vmem:[%s12844_s1 + $0x1ac] ss:$16 sps:$4 sm:$0xff]   ;;  %s15101_s1 = sld [smem:[#allocation30_spill]] }
0x1545   : > { %5266 = vmatprep.subr.bf16.mxu0 %v11623_v10  ;;  %5319 = vmatprep.subr.bf16.mxu1 %v11626_v30  ;;  %v5404_v50 = vld [vmem:[%s12846_s3 + $0x180] sm:$0xff]  ;;  %v5405_v10 = vld [vmem:[%s12846_s3 + $0x188] sm:$0xff] }
0x1546   : > { %v4820_v62 = vmul.f32 %v13928_v29, %v13928_v29  ;;  %v4821_v26 = vmul.f32 %v13931_v43, %v13931_v43  ;;  %4827 = vadd.xlane.f32.xlu0 %v4826_v11  ;;  %5267 = vmatpush2.bf16.msra.mxu0 %v11621_v23  ;;  %v5409_v23 = vld [vmem:[%s12846_s3 + $0x1a8] sm:$0xff] }
0x1547   : > { %5320 = vmatpush2.bf16.msra.mxu1 %v11624_v13  ;;  %5268 = vmatprep.subr.bf16.mxu0 %v11629_v2  ;;  %v10252_v13 = vcombine.low %v5413_v27, %v5417_v5  ;;  %v5369_v27 = vld [vmem:[%s12846_s3 + $0x68] sm:$0xff] }
0x1548   : > { %v4829_v49 = vadd.f32 %v4821_v26, %v4820_v62  ;;  %5321 = vmatprep.subr.bf16.mxu1 %v11632_v6  ;;  %v5401_v6 = vld [vmem:[%s12846_s3 + $0x168] sm:$0xff] }
0x154a   : > { %4830 = vadd.xlane.f32.xlu1 %v4829_v49  ;;  %5269 = vmatpush2.bf16.msra.mxu0 %v11627_v34  ;;  %v5408_v49 = vld [vmem:[%s12846_s3 + $0x1a0] sm:$0xff]  ;;  %v10245_v34 = vcombine.high %v5405_v10, %v5409_v23 }
0x154b   : > { %5322 = vmatpush2.bf16.msra.mxu1 %v11630_v45  ;;  %5270 = vmatprep.subr.bf16.mxu0 %v11635_v9  ;;  %v10243_v2 = vcombine.high %v5404_v50, %v5408_v49  ;;  %v10242_v45 = vcombine.low %v5404_v50, %v5408_v49  ;;  %v10244_v9 = vcombine.low %v5405_v10, %v5409_v23  ;;  %v5476_v49 = vld [vmem:[%s12846_s3 + $0x3c0] sm:$0xff] }
0x154c   : > { %5323 = vmatprep.subr.bf16.mxu1 %v11638_v36  ;;  %v5388_v36 = vld [vmem:[%s12846_s3 + $0x100] sm:$0xff] }
0x154d   : > { %v5480_v23 = vld [vmem:[%s12846_s3 + $0x3e0] sm:$0xff] }
0x154e   : > { %5271 = vmatpush2.bf16.msra.mxu0 %v11633_v16 }
0x154f   : > { %5324 = vmatpush2.bf16.msra.mxu1 %v11636_v4  ;;  %5272 = vmatprep.subr.bf16.mxu0 %v11641_v1  ;;  %v5392_v1 = vld [vmem:[%s12846_s3 + $0x120] sm:$0xff] }
0x1550   : > { %5325 = vmatprep.subr.bf16.mxu1 %v11644_v42  ;;  %v5389_v42 = vld [vmem:[%s12846_s3 + $0x108] sm:$0xff] }
0x1552   : > { %5273 = vmatpush2.bf16.msra.mxu0 %v11639_v15  ;;  %v5393_v15 = vld [vmem:[%s12846_s3 + $0x128] sm:$0xff] }
0x1553   : > { %5326 = vmatpush2.bf16.msra.mxu1 %v11642_v7  ;;  %5274 = vmatprep.subr.bf16.mxu0 %v11647_v57  ;;  %v10228_v40 = vcombine.low %v5389_v42, %v5393_v15 }
0x1554   : > { %5327 = vmatprep.subr.bf16.mxu1 %v11650_v48  ;;  %v10227_v48 = vcombine.high %v5388_v36, %v5392_v1 }
0x1556   : > { %5275 = vmatpush2.bf16.msra.mxu0 %v11645_v54  ;;  %v5380_v54 = vld [vmem:[%s12846_s3 + $0xc0] sm:$0xff] }
0x1557   : > { %5328 = vmatpush2.bf16.msra.mxu1 %v11648_v59  ;;  %5276 = vmatprep.subr.bf16.mxu0 %v11653_v60  ;;  %v10229_v59 = vcombine.high %v5389_v42, %v5393_v15  ;;  %v5384_v60 = vld [vmem:[%s12846_s3 + $0xe0] sm:$0xff] }
0x1558   : > { %5329 = vmatprep.subr.bf16.mxu1 %v11656_v53  ;;  %v5381_v53 = vld [vmem:[%s12846_s3 + $0xc8] sm:$0xff]  ;;  %v10219_v20 = vcombine.high %v5380_v54, %v5384_v60 }
0x155a   : > { %5277 = vmatpush2.bf16.msra.mxu0 %v11651_v22  ;;  %v5385_v22 = vld [vmem:[%s12846_s3 + $0xe8] sm:$0xff] }
0x155b   : > { %5330 = vmatpush2.bf16.msra.mxu1 %v11654_v51  ;;  %6144 = vmatprep.subr.bf16.mxu0 %v10251_v31  ;;  %v10226_v51 = vcombine.low %v5388_v36, %v5392_v1  ;;  %v10221_v31 = vcombine.high %v5381_v53, %v5385_v22 }
0x155c   : > { %6197 = vmatprep.subr.bf16.mxu1 %v10253_v38 }
0x1573   : > { %v4801_v47 = vpop.xlane.xlu0 %4800 }
0x1574   : > { %v4808_v19 = vmul.f32 0.00390625, %v4801_v47  ;;  %v5376_v47 = vld [vmem:[%s12846_s3 + $0xa0] sm:$0xff] }
0x1576   : > { %v13964_v41 = vsub.f32 %v13865_v32, %v4808_v19  ;;  %v13967_v46 = vsub.f32 %v13867_v55, %v4808_v19  ;;  %v5373_v19 = vld [vmem:[%s12846_s3 + $0x88] sm:$0xff] }
0x1577   : > { %v4804_v35 = vpop.xlane.xlu0 %4803 }
0x1578   : > { %v4822_v18 = vmul.f32 %v13964_v41, %v13964_v41  ;;  %v4823_v24 = vmul.f32 %v13967_v46, %v13967_v46  ;;  %v4809_v56 = vmul.f32 0.00390625, %v4804_v35  ;;  %v5377_v35 = vld [vmem:[%s12846_s3 + $0xa8] sm:$0xff] }
0x1579   : > { %v10212_v38 = vcombine.low %v5373_v19, %v5377_v35 }
0x157a   : > { %v13974_v0 = vsub.f32 %v13871_v44, %v4809_v56  ;;  %v13977_v61 = vsub.f32 %v13873_v8, %v4809_v56  ;;  %v4832_v33 = vadd.f32 %v4823_v24, %v4822_v18  ;;  %v10218_v18 = vcombine.low %v5380_v54, %v5384_v60  ;;  %v5464_v54 = vld [vmem:[%s12846_s3 + $0x360] sm:$0xff]  ;;  %v5465_v60 = vld [vmem:[%s12846_s3 + $0x368] sm:$0xff] }
0x157b   : > { %v10220_v24 = vcombine.low %v5381_v53, %v5385_v22 }
0x157c   : > { %v4824_v32 = vmul.f32 %v13974_v0, %v13974_v0  ;;  %v4825_v55 = vmul.f32 %v13977_v61, %v13977_v61  ;;  %4833 = vadd.xlane.f32.xlu0 %v4832_v33  ;;  %v5364_v33 = vld [vmem:[%s12846_s3 + $0x40] sm:$0xff] }
0x157e   : > { %v4835_v39 = vadd.f32 %v4825_v55, %v4824_v32  ;;  %v10213_v32 = vcombine.high %v5373_v19, %v5377_v35  ;;  %v5368_v55 = vld [vmem:[%s12846_s3 + $0x60] sm:$0xff]  ;;  %v5457_v19 = vld [vmem:[%s12846_s3 + $0x328] sm:$0xff] }
0x1580   : > { %4836 = vadd.xlane.f32.xlu1 %v4835_v39  ;;  %v5365_v39 = vld [vmem:[%s12846_s3 + $0x48] sm:$0xff] }
0x15cf   : > { %v4828_v44 = vpop.xlane.xlu0 %4827 }
0x15d0   : > { %v4838_v8 = vmul.f32 0.00390625, %v4828_v44  ;;  %v10203_v44 = vcombine.high %v5364_v33, %v5368_v55 }
0x15d2   : > { %v4842_v52 = vadd.f32 1e-05, %v4838_v8  ;;  %v5356_v8 = vld [vmem:[%s12846_s3] sm:$0xff] }
0x15d3   : > { %v4831_v58 = vpop.xlane.xlu1 %4830 }
0x15d4   : > { %v4839_v63 = vmul.f32 0.00390625, %v4831_v58  ;;  %11983 = vrsqrt.f32 %v4842_v52  ;;  %v10205_v52 = vcombine.high %v5365_v39, %v5369_v27  ;;  %v5360_v58 = vld [vmem:[%s12846_s3 + $0x20] sm:$0xff] }
0x15d5   : > { %v10195_v50 = vcombine.high %v5356_v8, %v5360_v58 }
0x15d6   : > { %v4843_v21 = vadd.f32 1e-05, %v4839_v63  ;;  %v5357_v63 = vld [vmem:[%s12846_s3 + $0x8] sm:$0xff] }
0x15d8   : > { %11985 = vrsqrt.f32 %v4843_v21  ;;  %v5361_v21 = vld [vmem:[%s12846_s3 + $0x28] sm:$0xff] }
0x15d9   : > { %v10197_v10 = vcombine.high %v5357_v63, %v5361_v21 }
0x15e1   : > { %v11984_v28 = vpop.eup %11983 }
0x15e2   : > { %v13987_v25 = vmul.f32 %v11984_v28, %v13921_v14  ;;  %v13993_v62 = vmul.f32 %v11984_v28, %v13918_v17  ;;  %v5400_v17 = vld [vmem:[%s12846_s3 + $0x160] sm:$0xff]  ;;  %v10202_v28 = vcombine.low %v5364_v33, %v5368_v55  ;;  %v5445_v55 = vld [vmem:[%s12846_s3 + $0x2c8] sm:$0xff] }
0x15e5   : > { %v11986_v37 = vpop.eup %11985 }
0x15e6   : > { %v13990_v11 = vmul.f32 %v11986_v37, %v13931_v43  ;;  %v13996_v26 = vmul.f32 %v11986_v37, %v13928_v29  ;;  %v5396_v43 = vld [vmem:[%s12846_s3 + $0x140] sm:$0xff]  ;;  %v5397_v29 = vld [vmem:[%s12846_s3 + $0x148] sm:$0xff]  ;;  %v10204_v37 = vcombine.low %v5365_v39, %v5369_v27 }
0x15e7   : > { %v10235_v16 = vcombine.high %v5396_v43, %v5400_v17  ;;  %v10237_v4 = vcombine.high %v5397_v29, %v5401_v6  ;;  %v10234_v7 = vcombine.low %v5396_v43, %v5400_v17  ;;  %v10236_v57 = vcombine.low %v5397_v29, %v5401_v6  ;;  %v5468_v17 = vld [vmem:[%s12846_s3 + $0x380] sm:$0xff]  ;;  %v5449_v39 = vld [vmem:[%s12846_s3 + $0x2e8] sm:$0xff] }
0x15e8   : > { %v4859_v30 = vpack.c.bf16 %v13990_v11, %v13987_v25  ;;  %v4858_v14 = vpack.c.bf16 %v13996_v26, %v13993_v62 }
0x15ea   : > { %5278 = vmatprep.mubr.bf16.mxu0 %v4859_v30  ;;  %5331 = vmatprep.mubr.bf16.mxu1 %v4859_v30  ;;  %v5477_v30 = vld [vmem:[%s12846_s3 + $0x3c8] sm:$0xff] }
0x15eb   : > { %5279 = vmatmul.mubr.bf16.vlgmr.msra.gmra.mxu0 %v4858_v14  ;;  %5332 = vmatmul.mubr.bf16.vlgmr.msra.gmra.mxu1 %v4858_v14  ;;  %v5481_v14 = vld [vmem:[%s12846_s3 + $0x3e8] sm:$0xff] }
0x15ec   : > { %6145 = vmatpush1.bf16.msra.mxu0 %v10250_v3  ;;  %6198 = vmatpush1.bf16.msra.mxu1 %v10252_v13  ;;  %v5372_v3 = vld [vmem:[%s12846_s3 + $0x80] sm:$0xff]  ;;  %v10194_v13 = vcombine.low %v5356_v8, %v5360_v58  ;;  %v10317_v29 = vcombine.high %v5477_v30, %v5481_v14  ;;  %v10316_v1 = vcombine.low %v5477_v30, %v5481_v14  ;;  %v5437_v58 = vld [vmem:[%s12846_s3 + $0x288] sm:$0xff] }
0x15ed   : > { %6146 = vmatprep.subr.bf16.mxu0 %v10243_v2  ;;  %6199 = vmatprep.subr.bf16.mxu1 %v10245_v34  ;;  %v10211_v56 = vcombine.high %v5372_v3, %v5376_v47  ;;  %v10210_v5 = vcombine.low %v5372_v3, %v5376_v47  ;;  %v10196_v2 = vcombine.low %v5357_v63, %v5361_v21  ;;  %v5453_v47 = vld [vmem:[%s12846_s3 + $0x308] sm:$0xff]  ;;  %v5428_v30 = vld [vmem:[%s12846_s3 + $0x240] sm:$0xff] }
0x15ee   : > { %v10315_v34 = vcombine.high %v5476_v49, %v5480_v23  ;;  %v10293_v33 = vcombine.high %v5453_v47, %v5457_v19  ;;  %v10285_v8 = vcombine.high %v5445_v55, %v5449_v39  ;;  %v5441_v63 = vld [vmem:[%s12846_s3 + $0x2a8] sm:$0xff]  ;;  %v5432_v14 = vld [vmem:[%s12846_s3 + $0x260] sm:$0xff] }
0x15f0   : > { %6147 = vmatpush1.bf16.msra.mxu0 %v10242_v45  ;;  %6200 = vmatpush1.bf16.msra.mxu1 %v10244_v9  ;;  %v5472_v45 = vld [vmem:[%s12846_s3 + $0x3a0] sm:$0xff]  ;;  %v5469_v9 = vld [vmem:[%s12846_s3 + $0x388] sm:$0xff] }
0x15f1   : > { %6148 = vmatprep.subr.bf16.mxu0 %v10235_v16  ;;  %6201 = vmatprep.subr.bf16.mxu1 %v10237_v4  ;;  %v5473_v16 = vld [vmem:[%s12846_s3 + $0x3a8] sm:$0xff]  ;;  %v10314_v4 = vcombine.low %v5476_v49, %v5480_v23  ;;  %v10307_v15 = vcombine.high %v5468_v17, %v5472_v45  ;;  %v10306_v22 = vcombine.low %v5468_v17, %v5472_v45  ;;  %v5420_v45 = vld [vmem:[%s12846_s3 + $0x200] sm:$0xff] }
0x15f2   : > { %v10277_v49 = vcombine.high %v5437_v58, %v5441_v63  ;;  %v5433_v17 = vld [vmem:[%s12846_s3 + $0x268] sm:$0xff] }
0x15f4   : > { %6149 = vmatpush1.bf16.msra.mxu0 %v10234_v7  ;;  %6202 = vmatpush1.bf16.msra.mxu1 %v10236_v57  ;;  %v5460_v7 = vld [vmem:[%s12846_s3 + $0x340] sm:$0xff]  ;;  %v10309_v57 = vcombine.high %v5469_v9, %v5473_v16 }
0x15f5   : > { %6150 = vmatprep.subr.bf16.mxu0 %v10227_v48  ;;  %6203 = vmatprep.subr.bf16.mxu1 %v10229_v59  ;;  %v5461_v59 = vld [vmem:[%s12846_s3 + $0x348] sm:$0xff]  ;;  %v10298_v35 = vcombine.low %v5460_v7, %v5464_v54 }
0x15f6   : > { %v10301_v3 = vcombine.high %v5461_v59, %v5465_v60 }
0x15f8   : > { %6151 = vmatpush1.bf16.msra.mxu0 %v10226_v51  ;;  %6204 = vmatpush1.bf16.msra.mxu1 %v10228_v40  ;;  %v10308_v51 = vcombine.low %v5469_v9, %v5473_v16  ;;  %v10299_v40 = vcombine.high %v5460_v7, %v5464_v54  ;;  %v10276_v9 = vcombine.low %v5437_v58, %v5441_v63  ;;  %v5410_v54 = vld [vmem:[%s12846_s3 + $0x1b0] sm:$0xff]  ;;  %v5399_v63 = vld [vmem:[%s12846_s3 + $0x158] sm:$0xff] }
0x15f9   : > { %6152 = vmatprep.subr.bf16.mxu0 %v10219_v20  ;;  %6205 = vmatprep.subr.bf16.mxu1 %v10221_v31  ;;  %v5452_v20 = vld [vmem:[%s12846_s3 + $0x300] sm:$0xff]  ;;  %v5386_v58 = vld [vmem:[%s12846_s3 + $0xf0] sm:$0xff] }
0x15fa   : > { %v5456_v31 = vld [vmem:[%s12846_s3 + $0x320] sm:$0xff] }
0x15fb   : > { %v10290_v27 = vcombine.low %v5452_v20, %v5456_v31 }
0x15fc   : > { %6153 = vmatpush1.bf16.msra.mxu0 %v10218_v18  ;;  %6206 = vmatpush1.bf16.msra.mxu1 %v10220_v24  ;;  %v10300_v18 = vcombine.low %v5461_v59, %v5465_v60  ;;  %v10291_v24 = vcombine.high %v5452_v20, %v5456_v31  ;;  %v14089_v59 = vld [vmem:[%s15099_s9] ss:$8 sps:$4 sm:$0xff]   ;;  %v14094_v60 = vld [vmem:[%s15099_s9 + $0x14] ss:$8 sps:$4 sm:$0xff]  }
0x15fd   : > { %6154 = vmatprep.subr.bf16.mxu0 %v10211_v56  ;;  %6207 = vmatprep.subr.bf16.mxu1 %v10213_v32  ;;  %v5444_v56 = vld [vmem:[%s12846_s3 + $0x2c0] sm:$0xff]  ;;  %v5421_v20 = vld [vmem:[%s12846_s3 + $0x208] sm:$0xff] }
0x15fe   : > { %v5448_v32 = vld [vmem:[%s12846_s3 + $0x2e0] sm:$0xff] }
0x1600   : > { %6155 = vmatpush1.bf16.msra.mxu0 %v10210_v5  ;;  %6208 = vmatpush1.bf16.msra.mxu1 %v10212_v38  ;;  %v10292_v5 = vcombine.low %v5453_v47, %v5457_v19  ;;  %v10283_v38 = vcombine.high %v5444_v56, %v5448_v32 }
0x1601   : > { %6156 = vmatprep.subr.bf16.mxu0 %v10203_v44  ;;  %6209 = vmatprep.subr.bf16.mxu1 %v10205_v52  ;;  %v5436_v44 = vld [vmem:[%s12846_s3 + $0x280] sm:$0xff] }
0x1602   : > { %v5440_v52 = vld [vmem:[%s12846_s3 + $0x2a0] sm:$0xff] }
0x1604   : > { %6157 = vmatpush1.bf16.msra.mxu0 %v10202_v28  ;;  %6210 = vmatpush1.bf16.msra.mxu1 %v10204_v37  ;;  %v10282_v28 = vcombine.low %v5444_v56, %v5448_v32  ;;  %v10284_v37 = vcombine.low %v5445_v55, %v5449_v39  ;;  %v14107_v56 = vld [vmem:[%s15099_s9 + $0x10] ss:$8 sps:$4 sm:$0xff]  }
0x1605   : > { %v4834_v43 = vpop.xlane.xlu0 %4833  ;;  %6158 = vmatprep.subr.bf16.mxu0 %v10195_v50  ;;  %6211 = vmatprep.subr.bf16.mxu1 %v10197_v10  ;;  %v10275_v50 = vcombine.high %v5436_v44, %v5440_v52  ;;  %v5419_v32 = vld [vmem:[%s12846_s3 + $0x1f8] sm:$0xff] }
0x1606   : > { %v4840_v6 = vmul.f32 0.00390625, %v4834_v43 }
0x1608   : > { %v4844_v36 = vadd.f32 1e-05, %v4840_v6  ;;  %6159 = vmatpush1.bf16.msra.mxu0 %v10194_v13  ;;  %6212 = vmatpush1.bf16.msra.mxu1 %v10196_v2 }
0x1609   : > { %v4837_v42 = vpop.xlane.xlu1 %4836  ;;  %6160 = vmatprep.subr.bf16.mxu0 %v10315_v34  ;;  %6213 = vmatprep.subr.bf16.mxu1 %v10317_v29  ;;  %v10274_v34 = vcombine.low %v5436_v44, %v5440_v52  ;;  %v5411_v44 = vld [vmem:[%s12846_s3 + $0x1b8] sm:$0xff] }
0x160a   : > { %v4841_v48 = vmul.f32 0.00390625, %v4837_v42  ;;  %11987 = vrsqrt.f32 %v4844_v36  ;;  %v10266_v36 = vcombine.low %v5428_v30, %v5432_v14  ;;  %v5418_v42 = vld [vmem:[%s12846_s3 + $0x1f0] sm:$0xff] }
0x160c   : > { %v4845_v53 = vadd.f32 1e-05, %v4841_v48  ;;  %6161 = vmatpush2.bf16.msra.mxu0 %v10314_v4  ;;  %6214 = vmatpush2.bf16.msra.mxu1 %v10316_v1  ;;  %v5414_v1 = vld [vmem:[%s12846_s3 + $0x1d0] sm:$0xff] }
0x160d   : > { %6162 = vmatprep.subr.bf16.mxu0 %v10307_v15  ;;  %6215 = vmatprep.subr.bf16.mxu1 %v10309_v57  ;;  %v10255_v57 = vcombine.high %v5414_v1, %v5418_v42  ;;  %v5406_v48 = vld [vmem:[%s12846_s3 + $0x190] sm:$0xff] }
0x160e   : > { %11989 = vrsqrt.f32 %v4845_v53  ;;  %v10254_v53 = vcombine.low %v5414_v1, %v5418_v42  ;;  %v10246_v31 = vcombine.low %v5406_v48, %v5410_v54  ;;  %v5375_v42 = vld [vmem:[%s12846_s3 + $0x98] sm:$0xff] }
0x1610   : > { %6163 = vmatpush2.bf16.msra.mxu0 %v10306_v22  ;;  %6216 = vmatpush2.bf16.msra.mxu1 %v10308_v51  ;;  %v10247_v22 = vcombine.high %v5406_v48, %v5410_v54  ;;  %v5398_v51 = vld [vmem:[%s12846_s3 + $0x150] sm:$0xff] }
0x1611   : > { %6164 = vmatprep.subr.bf16.mxu0 %v10299_v40  ;;  %6217 = vmatprep.subr.bf16.mxu1 %v10301_v3  ;;  %v5402_v40 = vld [vmem:[%s12846_s3 + $0x170] sm:$0xff]  ;;  %v5425_v3 = vld [vmem:[%s12846_s3 + $0x228] sm:$0xff] }
0x1612   : > { %v10260_v47 = vcombine.low %v5421_v20, %v5425_v3  ;;  %v10261_v19 = vcombine.high %v5421_v20, %v5425_v3  ;;  %v10238_v55 = vcombine.low %v5398_v51, %v5402_v40  ;;  %v5478_v20 = vld [vmem:[%s12846_s3 + $0x3d0] sm:$0xff] }
0x1613   : > { %v5482_v3 = vld [vmem:[%s12846_s3 + $0x3f0] sm:$0xff] }
0x1614   : > { %6165 = vmatpush2.bf16.msra.mxu0 %v10298_v35  ;;  %6218 = vmatpush2.bf16.msra.mxu1 %v10300_v18  ;;  %v10239_v35 = vcombine.high %v5398_v51, %v5402_v40  ;;  %v5390_v18 = vld [vmem:[%s12846_s3 + $0x110] sm:$0xff]  ;;  %v5367_v51 = vld [vmem:[%s12846_s3 + $0x58] sm:$0xff] }
0x1615   : > { %6166 = vmatprep.subr.bf16.mxu0 %v10291_v24  ;;  %6219 = vmatprep.subr.bf16.mxu1 %v10293_v33  ;;  %v5394_v24 = vld [vmem:[%s12846_s3 + $0x130] sm:$0xff]  ;;  %v5415_v33 = vld [vmem:[%s12846_s3 + $0x1d8] sm:$0xff] }
0x1616   : > { %v10257_v39 = vcombine.high %v5415_v33, %v5419_v32  ;;  %v5371_v40 = vld [vmem:[%s12846_s3 + $0x78] sm:$0xff] }
0x1617   : > { %v11988_v21 = vpop.eup %11987 }
0x1618   : > { %6167 = vmatpush2.bf16.msra.mxu0 %v10290_v27  ;;  %6220 = vmatpush2.bf16.msra.mxu1 %v10292_v5  ;;  %v14054_v23 = vmul.f32 %v11988_v21, %v13967_v46  ;;  %v14062_v2 = vmul.f32 %v11988_v21, %v13964_v41  ;;  %v5429_v46 = vld [vmem:[%s12846_s3 + $0x248] sm:$0xff]  ;;  %v5424_v41 = vld [vmem:[%s12846_s3 + $0x220] sm:$0xff]  ;;  %v10256_v27 = vcombine.low %v5415_v33, %v5419_v32  ;;  %v5403_v21 = vld [vmem:[%s12846_s3 + $0x178] sm:$0xff] }
0x1619   : > { %6168 = vmatprep.subr.bf16.mxu0 %v10283_v38  ;;  %6221 = vmatprep.subr.bf16.mxu1 %v10285_v8  ;;  %v10269_v16 = vcombine.high %v5429_v46, %v5433_v17  ;;  %v10259_v4 = vcombine.high %v5420_v45, %v5424_v41  ;;  %v10268_v15 = vcombine.low %v5429_v46, %v5433_v17  ;;  %v5407_v38 = vld [vmem:[%s12846_s3 + $0x198] sm:$0xff]  ;;  %v5382_v8 = vld [vmem:[%s12846_s3 + $0xd0] sm:$0xff] }
0x161a   : > { %v10258_v7 = vcombine.low %v5420_v45, %v5424_v41  ;;  %v10231_v5 = vcombine.high %v5390_v18, %v5394_v24  ;;  %v10249_v52 = vcombine.high %v5407_v38, %v5411_v44  ;;  %v10240_v46 = vcombine.low %v5399_v63, %v5403_v21  ;;  %v5387_v45 = vld [vmem:[%s12846_s3 + $0xf8] sm:$0xff]  ;;  %v5366_v41 = vld [vmem:[%s12846_s3 + $0x50] sm:$0xff] }
0x161b   : > { %v11990_v10 = vpop.eup %11989  ;;  %v10222_v17 = vcombine.low %v5382_v8, %v5386_v58  ;;  %v5474_v33 = vld [vmem:[%s12846_s3 + $0x3b0] sm:$0xff]  ;;  %v10208_v32 = vcombine.low %v5367_v51, %v5371_v40 }
0x161c   : > { %6169 = vmatpush2.bf16.msra.mxu0 %v10282_v28  ;;  %v14059_v13 = vmul.f32 %v11990_v10, %v13977_v61  ;;  %v14065_v43 = vmul.f32 %v11990_v10, %v13974_v0  ;;  %6222 = vmatpush2.bf16.msra.mxu1 %v10284_v37  ;;  %v10267_v61 = vcombine.high %v5428_v30, %v5432_v14  ;;  %v14078_v0 = vld [vmem:[%s15099_s9 + $0x4] ss:$8 sps:$4 sm:$0xff]   ;;  %v5391_v10 = vld [vmem:[%s12846_s3 + $0x118] sm:$0xff]  ;;  %v5374_v14 = vld [vmem:[%s12846_s3 + $0x90] sm:$0xff] }
0x161d   : > { %6170 = vmatprep.subr.bf16.mxu0 %v10275_v50  ;;  %6223 = vmatprep.subr.bf16.mxu1 %v10277_v49  ;;  %v10248_v28 = vcombine.low %v5407_v38, %v5411_v44  ;;  %v10230_v37 = vcombine.low %v5390_v18, %v5394_v24  ;;  %v10241_v50 = vcombine.high %v5399_v63, %v5403_v21  ;;  %v5395_v30 = vld [vmem:[%s12846_s3 + $0x138] sm:$0xff]  ;;  %v5470_v24 = vld [vmem:[%s12846_s3 + $0x390] sm:$0xff] }
0x161e   : > { %v4861_v29 = vpack.c.bf16 %v14059_v13, %v14054_v23  ;;  %v4860_v6 = vpack.c.bf16 %v14065_v43, %v14062_v2  ;;  %v10223_v49 = vcombine.high %v5382_v8, %v5386_v58  ;;  %v5363_v18 = vld [vmem:[%s12846_s3 + $0x38] sm:$0xff]  ;;  %v5462_v44 = vld [vmem:[%s12846_s3 + $0x350] sm:$0xff]  ;;  %v10310_v58 = vcombine.low %v5470_v24, %v5474_v33 }
0x161f   : > { %v5483_v38 = vld [vmem:[%s12846_s3 + $0x3f8] sm:$0xff]  ;;  %v5466_v8 = vld [vmem:[%s12846_s3 + $0x370] sm:$0xff] }
0x1620   : > { %5288 = vmatprep.mubr.bf16.mxu0 %v4861_v29  ;;  %5341 = vmatprep.mubr.bf16.mxu1 %v4861_v29  ;;  %v10233_v29 = vcombine.high %v5391_v10, %v5395_v30  ;;  %v10303_v21 = vcombine.high %v5462_v44, %v5466_v8 }
0x1621   : > { %6171 = vmatpush2.bf16.msra.mxu0 %v10274_v34  ;;  %5342 = vmatmul.mubr.bf16.gmra.mxu1 %v4860_v6  ;;  %v5378_v34 = vld [vmem:[%s12846_s3 + $0xb0] sm:$0xff] }
0x1622   : > { %5289 = vmatmul.mubr.bf16.gmra.mxu0 %v4860_v6  ;;  %6172 = vmatprep.subr.bf16.mxu0 %v10267_v61  ;;  %v10215_v6 = vcombine.high %v5374_v14, %v5378_v34  ;;  %v5383_v61 = vld [vmem:[%s12846_s3 + $0xd8] sm:$0xff] }
0x1623   : > { %6176 = vmatprep.mubr.bf16.mxu0 %v14078_v0  ;;  %6224 = vmatpush2.bf16.msra.mxu1 %v10276_v9  ;;  %v5370_v9 = vld [vmem:[%s12846_s3 + $0x70] sm:$0xff]  ;;  %v10224_v48 = vcombine.low %v5383_v61, %v5387_v45 }
0x1624   : > { %6225 = vmatprep.subr.bf16.mxu1 %v10269_v16  ;;  %6229 = vmatprep.mubr.bf16.mxu1 %v14078_v0  ;;  %v10232_v16 = vcombine.low %v5391_v10, %v5395_v30  ;;  %v10207_v1 = vcombine.high %v5366_v41, %v5370_v9  ;;  %v10206_v54 = vcombine.low %v5366_v41, %v5370_v9 }
0x1625   : > { %6173 = vmatpush2.bf16.msra.mxu0 %v10266_v36  ;;  %v10214_v36 = vcombine.low %v5374_v14, %v5378_v34  ;;  %v10302_v30 = vcombine.low %v5462_v44, %v5466_v8  ;;  %v5423_v44 = vld [vmem:[%s12846_s3 + $0x218] sm:$0xff] }
0x1626   : > { %6174 = vmatprep.subr.bf16.mxu0 %v10259_v4  ;;  %v10225_v4 = vcombine.high %v5383_v61, %v5387_v45  ;;  %v5427_v8 = vld [vmem:[%s12846_s3 + $0x238] sm:$0xff] }
0x1627   : > { %6226 = vmatpush2.bf16.msra.mxu1 %v10268_v15  ;;  %v5379_v15 = vld [vmem:[%s12846_s3 + $0xb8] sm:$0xff] }
0x1628   : > { %6227 = vmatprep.subr.bf16.mxu1 %v10261_v19  ;;  %v10319_v19 = vcombine.high %v5478_v20, %v5482_v3 }
0x1629   : > { %6175 = vmatpush2.bf16.msra.mxu0 %v10258_v7  ;;  %v5358_v7 = vld [vmem:[%s12846_s3 + $0x10] sm:$0xff] }
0x162a   : > { %6250 = vmatprep.subr.bf16.mxu0 %v10255_v57  ;;  %v5362_v57 = vld [vmem:[%s12846_s3 + $0x30] sm:$0xff] }
0x162b   : > { %6228 = vmatpush2.bf16.msra.mxu1 %v10260_v47  ;;  %v10209_v47 = vcombine.high %v5367_v51, %v5371_v40  ;;  %v5422_v40 = vld [vmem:[%s12846_s3 + $0x210] sm:$0xff] }
0x162c   : > { %6177 = vmatmul.mubr.bf16.vlgmr.msra.gmra.mxu0 %v14089_v59  ;;  %6303 = vmatprep.subr.bf16.mxu1 %v10257_v39 }
0x162d   : > { %6186 = vmatprep.mubr.bf16.mxu0 %v14094_v60  ;;  %6251 = vmatpush1.bf16.msra.mxu0 %v10254_v53  ;;  %v10217_v53 = vcombine.high %v5375_v42, %v5379_v15 }
0x162e   : > { %6252 = vmatprep.subr.bf16.mxu0 %v10247_v22  ;;  %6230 = vmatmul.mubr.bf16.vlgmr.msra.gmra.mxu1 %v14089_v59  ;;  %v10199_v22 = vcombine.high %v5358_v7, %v5362_v57 }
0x162f   : > { %6304 = vmatpush1.bf16.msra.mxu1 %v10256_v27  ;;  %6239 = vmatprep.mubr.bf16.mxu1 %v14094_v60  ;;  %v10311_v27 = vcombine.high %v5470_v24, %v5474_v33  ;;  %v5443_v24 = vld [vmem:[%s12846_s3 + $0x2b8] sm:$0xff] }
0x1630   : > { %6305 = vmatprep.subr.bf16.mxu1 %v10249_v52 }
0x1631   : > { %6253 = vmatpush1.bf16.msra.mxu0 %v10246_v31  ;;  %v10216_v31 = vcombine.low %v5375_v42, %v5379_v15 }
0x1632   : > { %6254 = vmatprep.subr.bf16.mxu0 %v10239_v35  ;;  %v5359_v35 = vld [vmem:[%s12846_s3 + $0x18] sm:$0xff] }
0x1633   : > { %6306 = vmatpush1.bf16.msra.mxu1 %v10248_v28  ;;  %v10201_v39 = vcombine.high %v5359_v35, %v5363_v18  ;;  %v10200_v52 = vcombine.low %v5359_v35, %v5363_v18  ;;  %v5471_v28 = vld [vmem:[%s12846_s3 + $0x398] sm:$0xff] }
0x1634   : > { %6187 = vmatmul.mubr.bf16.gmra.mxu0 %v14107_v56  ;;  %6307 = vmatprep.subr.bf16.mxu1 %v10241_v50  ;;  %v5454_v50 = vld [vmem:[%s12846_s3 + $0x310] sm:$0xff]  ;;  %v5439_v18 = vld [vmem:[%s12846_s3 + $0x298] sm:$0xff] }
0x1635   : > { %6255 = vmatpush1.bf16.msra.mxu0 %v10238_v55  ;;  %6282 = vmatprep.mubr.bf16.mxu0 %v14078_v0  ;;  %v10318_v55 = vcombine.low %v5478_v20, %v5482_v3  ;;  %v5426_v20 = vld [vmem:[%s12846_s3 + $0x230] sm:$0xff]  ;;  %v5447_v3 = vld [vmem:[%s12846_s3 + $0x2d8] sm:$0xff] }
0x1636   : > { %6256 = vmatprep.subr.bf16.mxu0 %v10231_v5  ;;  %6240 = vmatmul.mubr.bf16.gmra.mxu1 %v14107_v56  ;;  %v5479_v5 = vld [vmem:[%s12846_s3 + $0x3d8] sm:$0xff]  ;;  %v10263_v35 = vcombine.high %v5422_v40, %v5426_v20  ;;  %v10262_v33 = vcombine.low %v5422_v40, %v5426_v20 }
0x1637   : > { %6308 = vmatpush1.bf16.msra.mxu1 %v10240_v46  ;;  %6335 = vmatprep.mubr.bf16.mxu1 %v14078_v0  ;;  %v10198_v0 = vcombine.low %v5358_v7, %v5362_v57  ;;  %v10321_v63 = vcombine.high %v5479_v5, %v5483_v38  ;;  %v10320_v10 = vcombine.low %v5479_v5, %v5483_v38  ;;  %v5463_v46 = vld [vmem:[%s12846_s3 + $0x358] sm:$0xff] }
0x1638   : > { %6309 = vmatprep.subr.bf16.mxu1 %v10233_v29  ;;  %v5446_v29 = vld [vmem:[%s12846_s3 + $0x2d0] sm:$0xff] }
0x1639   : > { %6257 = vmatpush1.bf16.msra.mxu0 %v10230_v37  ;;  %v5475_v37 = vld [vmem:[%s12846_s3 + $0x3b8] sm:$0xff] }
0x163a   : > { %6258 = vmatprep.subr.bf16.mxu0 %v10223_v49  ;;  %v5458_v49 = vld [vmem:[%s12846_s3 + $0x330] sm:$0xff]  ;;  %v10313_v14 = vcombine.high %v5471_v28, %v5475_v37  ;;  %v10312_v61 = vcombine.low %v5471_v28, %v5475_v37 }
0x163b   : > { %6310 = vmatpush1.bf16.msra.mxu1 %v10232_v16  ;;  %v10295_v34 = vcombine.high %v5454_v50, %v5458_v49  ;;  %v10294_v45 = vcombine.low %v5454_v50, %v5458_v49  ;;  %v5455_v16 = vld [vmem:[%s12846_s3 + $0x318] sm:$0xff] }
0x163c   : > { %6311 = vmatprep.subr.bf16.mxu1 %v10225_v4  ;;  %v5438_v4 = vld [vmem:[%s12846_s3 + $0x290] sm:$0xff] }
0x163d   : > { %6259 = vmatpush1.bf16.msra.mxu0 %v10222_v17  ;;  %v5467_v17 = vld [vmem:[%s12846_s3 + $0x378] sm:$0xff] }
0x163e   : > { %6260 = vmatprep.subr.bf16.mxu0 %v10215_v6  ;;  %v5450_v6 = vld [vmem:[%s12846_s3 + $0x2f0] sm:$0xff]  ;;  %v10305_v41 = vcombine.high %v5463_v46, %v5467_v17  ;;  %v10304_v42 = vcombine.low %v5463_v46, %v5467_v17 }
0x163f   : > { %6312 = vmatpush1.bf16.msra.mxu1 %v10224_v48  ;;  %v10287_v9 = vcombine.high %v5446_v29, %v5450_v6  ;;  %v10286_v15 = vcombine.low %v5446_v29, %v5450_v6  ;;  %v5430_v48 = vld [vmem:[%s12846_s3 + $0x250] sm:$0xff] }
0x1640   : > { %6313 = vmatprep.subr.bf16.mxu1 %v10217_v53 }
0x1641   : > { %6261 = vmatpush1.bf16.msra.mxu0 %v10214_v36  ;;  %v5459_v36 = vld [vmem:[%s12846_s3 + $0x338] sm:$0xff] }
0x1642   : > { %6262 = vmatprep.subr.bf16.mxu0 %v10207_v1  ;;  %v5442_v1 = vld [vmem:[%s12846_s3 + $0x2b0] sm:$0xff]  ;;  %v10297_v7 = vcombine.high %v5455_v16, %v5459_v36  ;;  %v10296_v53 = vcombine.low %v5455_v16, %v5459_v36 }
0x1643   : > { %6314 = vmatpush1.bf16.msra.mxu1 %v10216_v31  ;;  %v10279_v57 = vcombine.high %v5438_v4, %v5442_v1  ;;  %v5451_v31 = vld [vmem:[%s12846_s3 + $0x2f8] sm:$0xff] }
0x1644   : > { %6315 = vmatprep.subr.bf16.mxu1 %v10209_v47  ;;  %v10289_v47 = vcombine.high %v5447_v3, %v5451_v31 }
0x1645   : > { %6263 = vmatpush1.bf16.msra.mxu0 %v10206_v54  ;;  %v5434_v54 = vld [vmem:[%s12846_s3 + $0x270] sm:$0xff] }
0x1646   : > { %6264 = vmatprep.subr.bf16.mxu0 %v10199_v22  ;;  %v10278_v22 = vcombine.low %v5438_v4, %v5442_v1  ;;  %v10271_v51 = vcombine.high %v5430_v48, %v5434_v54 }
0x1647   : > { %6316 = vmatpush1.bf16.msra.mxu1 %v10208_v32  ;;  %v10281_v32 = vcombine.high %v5439_v18, %v5443_v24 }
0x1648   : > { %6317 = vmatprep.subr.bf16.mxu1 %v10201_v39  ;;  %v5431_v39 = vld [vmem:[%s12846_s3 + $0x258] sm:$0xff] }
0x1649   : > { %6265 = vmatpush1.bf16.msra.mxu0 %v10198_v0  ;;  %v10270_v0 = vcombine.low %v5430_v48, %v5434_v54 }
0x164a   : > { %6266 = vmatprep.subr.bf16.mxu0 %v10319_v19  ;;  %v10288_v19 = vcombine.low %v5447_v3, %v5451_v31 }
0x164b   : > { %6318 = vmatpush1.bf16.msra.mxu1 %v10200_v52  ;;  %v10265_v52 = vcombine.high %v5423_v44, %v5427_v8 }
0x164c   : > { %6319 = vmatprep.subr.bf16.mxu1 %v10321_v63 }
0x164d   : > { %6267 = vmatpush2.bf16.msra.mxu0 %v10318_v55  ;;  %v10280_v55 = vcombine.low %v5439_v18, %v5443_v24 }
0x164e   : > { %6268 = vmatprep.subr.bf16.mxu0 %v10311_v27  ;;  %v5435_v27 = vld [vmem:[%s12846_s3 + $0x278] sm:$0xff] }
0x164f   : > { %6320 = vmatpush2.bf16.msra.mxu1 %v10320_v10  ;;  %v10272_v5 = vcombine.low %v5431_v39, %v5435_v27  ;;  %v10273_v38 = vcombine.high %v5431_v39, %v5435_v27 }
0x1650   : > { %6321 = vmatprep.subr.bf16.mxu1 %v10313_v14 }
0x1651   : > { %6269 = vmatpush2.bf16.msra.mxu0 %v10310_v58  ;;  %v10264_v58 = vcombine.low %v5423_v44, %v5427_v8 }
0x1652   : > { %6270 = vmatprep.subr.bf16.mxu0 %v10303_v21 }
0x1653   : > { %6322 = vmatpush2.bf16.msra.mxu1 %v10312_v61 }
0x1654   : > { %6323 = vmatprep.subr.bf16.mxu1 %v10305_v41 }
0x1655   : > { %6271 = vmatpush2.bf16.msra.mxu0 %v10302_v30 }
0x1656   : > { %6272 = vmatprep.subr.bf16.mxu0 %v10295_v34 }
0x1657   : > { %6324 = vmatpush2.bf16.msra.mxu1 %v10304_v42 }
0x1658   : > { %6325 = vmatprep.subr.bf16.mxu1 %v10297_v7 }
0x1659   : > { %6273 = vmatpush2.bf16.msra.mxu0 %v10294_v45 }
0x165a   : > { %6274 = vmatprep.subr.bf16.mxu0 %v10287_v9 }
0x165b   : > { %6326 = vmatpush2.bf16.msra.mxu1 %v10296_v53 }
0x165c   : > { %6327 = vmatprep.subr.bf16.mxu1 %v10289_v47 }
0x165d   : > { %6275 = vmatpush2.bf16.msra.mxu0 %v10286_v15 }
0x165e   : > { %6276 = vmatprep.subr.bf16.mxu0 %v10279_v57 }
0x165f   : > { %6328 = vmatpush2.bf16.msra.mxu1 %v10288_v19 }
0x1660   : > { %6329 = vmatprep.subr.bf16.mxu1 %v10281_v32 }
0x1661   : > { %6277 = vmatpush2.bf16.msra.mxu0 %v10278_v22 }
0x1662   : > { %6278 = vmatprep.subr.bf16.mxu0 %v10271_v51 }
0x1663   : > { %6330 = vmatpush2.bf16.msra.mxu1 %v10280_v55 }
0x1664   : > { %6331 = vmatprep.subr.bf16.mxu1 %v10273_v38 }
0x1665   : > { %6279 = vmatpush2.bf16.msra.mxu0 %v10270_v0 }
0x1666   : > { %6280 = vmatprep.subr.bf16.mxu0 %v10263_v35 }
0x1667   : > { %6332 = vmatpush2.bf16.msra.mxu1 %v10272_v5 }
0x1668   : > { %6333 = vmatprep.subr.bf16.mxu1 %v10265_v52 }
0x1669   : > { %6281 = vmatpush2.bf16.msra.mxu0 %v10262_v33 }
0x166a   : > { %10813 = vmatprep.subr.bf16.mxu0 %v15062_v12 }
0x166b   : > { %6334 = vmatpush2.bf16.msra.mxu1 %v10264_v58 }
0x166c   : > { %6283 = vmatmul.mubr.bf16.vlgmr.msra.gmra.mxu0 %v14089_v59  ;;  %10819 = vmatprep.subr.bf16.mxu1 %v15062_v12 }
0x166d   : > { %6292 = vmatprep.mubr.bf16.mxu0 %v14094_v60 }
0x166e   : > { %6336 = vmatmul.mubr.bf16.vlgmr.msra.gmra.mxu1 %v14089_v59 }
0x166f   : > { %6345 = vmatprep.mubr.bf16.mxu1 %v14094_v60 }
0x1674   : > { %6293 = vmatmul.mubr.bf16.gmra.mxu0 %v14107_v56 }
0x1675   : > { %10815 = vmatprep.mubr.msk.bf16.mxu0 %vm12447_vm0, %v15062_v12 }
0x1676   : > { %6346 = vmatmul.mubr.bf16.gmra.mxu1 %v14107_v56 }
0x1677   : > { %10821 = vmatprep.mubr.msk.bf16.mxu1 %vm12447_vm0, %v15062_v12 }
0x16ab   : > { %v5280_v63 = vpop.f32.mrf.mxu0  ;;  %v5333_v21 = vpop.f32.mrf.mxu1 }
0x16ad   : > { %v5282_v28 = vpop.f32.mrf.mxu0  ;;  %v5335_v37 = vpop.f32.mrf.mxu1 }
0x16af   : > { %v5284_v50 = vpop.f32.mrf.mxu0  ;;  %v5337_v49 = vpop.f32.mrf.mxu1 }
0x16b0   : > { %v14183_v10 = vpack.c.bf16 %v5337_v49, %v5333_v21  ;;  %v14204_v3 = vpack.c.bf16 %v5284_v50, %v5280_v63 }
0x16b1   : > { %v5286_v59 = vpop.f32.mrf.mxu0  ;;  %v5339_v30 = vpop.f32.mrf.mxu1 }
0x16b2   : > { %v14185_v14 = vpack.c.bf16 %v5286_v59, %v5282_v28  ;;  %v14187_v60 = vpack.c.bf16 %v5339_v30, %v5335_v37 }
0x16e1   : > { %v5343_v34 = vpop.f32.mrf.mxu1 }
0x16e2   : > { %v5290_v46 = vpop.f32.mrf.mxu0 }
0x16e3   : > { %v5345_v56 = vpop.f32.mrf.mxu1 }
0x16e4   : > { %v5292_v17 = vpop.f32.mrf.mxu0 }
0x16e5   : > { %v5347_v29 = vpop.f32.mrf.mxu1 }
0x16e6   : > { %v5294_v6 = vpop.f32.mrf.mxu0  ;;  %v14189_v61 = vpack.c.bf16 %v5347_v29, %v5343_v34 }
0x16e7   : > { %v5349_v45 = vpop.f32.mrf.mxu1  ;;  %v14221_v39 = vpack.c.bf16 %v5294_v6, %v5290_v46 }
0x16e8   : > { %v5296_v41 = vpop.f32.mrf.mxu0  ;;  %v14191_v9 = vpack.c.bf16 %v5349_v45, %v5345_v56 }
0x16e9   : > { %v14193_v16 = vpack.c.bf16 %v5296_v41, %v5292_v17 }
0x16ec   : > { %v6178_v36 = vpop.f32.mrf.mxu0 }
0x16ee   : > { %v6180_v4 = vpop.f32.mrf.mxu0  ;;  %v6231_v48 = vpop.f32.mrf.mxu1 }
0x16f0   : > { %v6182_v1 = vpop.f32.mrf.mxu0  ;;  %v6233_v53 = vpop.f32.mrf.mxu1 }
0x16f1   : > { %v14195_v42 = vpack.c.bf16 %v6182_v1, %v6178_v36  ;;  %v14254_v36 = vld [vmem:[%s15100_s14] sm:$0xff] }
0x16f2   : > { %v6184_v15 = vpop.f32.mrf.mxu0  ;;  %v6235_v51 = vpop.f32.mrf.mxu1 }
0x16f3   : > { %v6392_v7 = vsel %vm2213_vm1, %v14195_v42, 0  ;;  %v14199_v57 = vpack.c.bf16 %v6184_v15, %v6180_v4  ;;  %v14202_v20 = vpack.c.bf16 %v6235_v51, %v6231_v48  ;;  %v14260_v48 = vld [vmem:[%s15100_s14 + $0x8] sm:$0xff] }
0x16f4   : > { %v6188_v54 = vpop.f32.mrf.mxu0  ;;  %10814 = vmatpush3.bf16.xpose.msra.mxu0 %v6392_v7  ;;  %v6237_v0 = vpop.f32.mrf.mxu1 }
0x16f5   : > { %10825 = vmatprep.subr.bf16.mxu0 %v15062_v12  ;;  %v14208_v19 = vpack.c.bf16 %v6237_v0, %v6233_v53 }
0x16f6   : > { %v6190_v22 = vpop.f32.mrf.mxu0  ;;  %v6241_v24 = vpop.f32.mrf.mxu1 }
0x16f8   : > { %v6192_v40 = vpop.f32.mrf.mxu0  ;;  %v6243_v33 = vpop.f32.mrf.mxu1 }
0x16f9   : > { %v14206_v31 = vpack.c.bf16 %v6192_v40, %v6188_v54 }
0x16fa   : > { %v6194_v47 = vpop.f32.mrf.mxu0  ;;  %v6245_v32 = vpop.f32.mrf.mxu1 }
0x16fb   : > { %v6439_v35 = vsel %vm2213_vm1, %v14206_v31, 0  ;;  %10816 = vmatmul.mubr.msk.bf16.vlgmr.msra.gmra.mxu0 %vm2213_vm1, %v14204_v3  ;;  %v14214_v18 = vpack.c.bf16 %v6194_v47, %v6190_v22  ;;  %v14219_v55 = vpack.c.bf16 %v6245_v32, %v6241_v24  ;;  %v14269_v47 = vld [vmem:[%s15100_s14 + $0x10] sm:$0xff] }
0x16fc   : > { %10820 = vmatpush3.bf16.xpose.msra.mxu1 %v6439_v35  ;;  %10827 = vmatprep.mubr.msk.bf16.mxu0 %vm12447_vm0, %v15062_v12  ;;  %v6247_v27 = vpop.f32.mrf.mxu1 }
0x16fd   : > { %10831 = vmatprep.subr.bf16.mxu1 %v15062_v12  ;;  %v14223_v5 = vpack.c.bf16 %v6247_v27, %v6243_v33 }
0x1703   : > { %10822 = vmatmul.mubr.msk.bf16.vlgmr.msra.gmra.mxu1 %vm2213_vm1, %v14221_v39 }
0x1704   : > { %10833 = vmatprep.mubr.msk.bf16.mxu1 %vm12447_vm0, %v15062_v12 }
0x172c   : > { %v6284_v38 = vpop.f32.mrf.mxu0 }
0x172e   : > { %v6286_v44 = vpop.f32.mrf.mxu0  ;;  %v6337_v21 = vpop.f32.mrf.mxu1 }
0x1730   : > { %v6288_v8 = vpop.f32.mrf.mxu0  ;;  %v6339_v37 = vpop.f32.mrf.mxu1 }
0x1731   : > { %v14229_v52 = vpack.c.bf16 %v6288_v8, %v6284_v38  ;;  %v14276_v38 = vld [vmem:[%s15100_s14 + $0x18] sm:$0xff] }
0x1732   : > { %v6290_v58 = vpop.f32.mrf.mxu0  ;;  %v6341_v49 = vpop.f32.mrf.mxu1 }
0x1733   : > { %v14231_v63 = vpack.c.bf16 %v6290_v58, %v6286_v44  ;;  %10826 = vmatpush3.bf16.msra.mxu0 %v14229_v52  ;;  %v14237_v30 = vpack.c.bf16 %v6341_v49, %v6337_v21 }
0x1734   : > { %v6294_v28 = vpop.f32.mrf.mxu0  ;;  %10837 = vmatprep.subr.bf16.mxu0 %v15062_v12  ;;  %v6343_v46 = vpop.f32.mrf.mxu1 }
0x1735   : > { %v14241_v56 = vpack.c.bf16 %v6343_v46, %v6339_v37 }
0x1736   : > { %v14235_v50 = vpop.f32.mrf.mxu0  ;;  %v6347_v17 = vpop.f32.mrf.mxu1 }
0x1738   : > { %v6298_v59 = vpop.f32.mrf.mxu0  ;;  %v14245_v29 = vpop.f32.mrf.mxu1 }
0x1739   : > { %v14239_v34 = vpack.c.bf16 %v6298_v59, %v6294_v28 }
0x173a   : > { %v6351_v6 = vpop.f32.mrf.mxu1  ;;  %v14249_v41 = vpop.f32.mrf.mxu0 }
0x173b   : > { %10832 = vmatpush3.bf16.msra.mxu1 %v14239_v34  ;;  %v14247_v45 = vpack.c.bf16 %v6351_v6, %v6347_v17 }
0x173c   : > { %10843 = vmatprep.subr.bf16.mxu1 %v15062_v12  ;;  %v14262_v53 = vpop.f32.mrf.mxu1 }
0x17bb   : > { %v6428_v4 = vpop.f32.mrf.mxu0 }
0x17bc   : > { %v6482_v1 = vmul.f32 0.125, %v6428_v4 }
0x17bd   : > { %v10817_v15 = vpop.f32.mrf.mxu0 }
0x17be   : > { %v6486_v7 = vadd.f32 %v6482_v1, %v14254_v36 }
0x17bf   : > { %v6431_v54 = vpop.f32.mrf.mxu0 }
0x17c0   : > { %v6483_v22 = vmul.f32 0.125, %v6431_v54  ;;  %v6490_v51 = vsel %vm2316_vm2, %v6486_v7, -inf }
0x17c1   : > { %6491 = vmax.xlane.f32.xlu0 %v6490_v51  ;;  %v10818_v40 = vpop.f32.mrf.mxu0 }
0x17c2   : > { %v6487_v0 = vadd.f32 %v6483_v22, %v14260_v48 }
0x17c3   : > { %v6475_v35 = vpop.f32.mrf.mxu1 }
0x17c4   : > { %v6484_v24 = vmul.f32 0.125, %v6475_v35  ;;  %v6493_v33 = vsel %vm2316_vm2, %v6487_v0, -inf }
0x17c5   : > { %v10823_v32 = vpop.f32.mrf.mxu1  ;;  %6494 = vmax.xlane.f32.xlu1 %v6493_v33 }
0x17c6   : > { %v6488_v27 = vadd.f32 %v6484_v24, %v14269_v47 }
0x17c7   : > { %v6478_v44 = vpop.f32.mrf.mxu1 }
0x17c8   : > { %v6485_v8 = vmul.f32 0.125, %v6478_v44  ;;  %v6496_v58 = vsel %vm2316_vm2, %v6488_v27, -inf }
0x17c9   : > { %v10824_v21 = vpop.f32.mrf.mxu1  ;;  %6497 = vmax.xlane.f32.xlu0 %v6496_v58 }
0x17ca   : > { %v6489_v28 = vadd.f32 %v6485_v8, %v14276_v38 }
0x17cc   : > { %v6499_v37 = vsel %vm2316_vm2, %v6489_v28, -inf }
0x17cd   : > { %6500 = vmax.xlane.f32.xlu1 %v6499_v37  ;;  %v14296_v37 = vld [vmem:[%s15101_s1] sm:$0xff] }
0x184a   : > { %v6492_v49 = vpop.xlane.xlu0 %6491 }
0x184b   : > { %v6502_v59 = vsub.f32 %v6486_v7, %v6492_v49 }
0x184d   : > { %v6506_v46 = vmul.f32 1.442695, %v6502_v59 }
0x184e   : > { %v6495_v17 = vpop.xlane.xlu1 %6494 }
0x184f   : > { %11991 = vpow2.f32 %v6506_v46  ;;  %v6503_v6 = vsub.f32 %v6487_v0, %v6495_v17 }
0x1851   : > { %v6508_v4 = vmul.f32 1.442695, %v6503_v6 }
0x1852   : > { %v6498_v1 = vpop.xlane.xlu0 %6497 }
0x1853   : > { %11993 = vpow2.f32 %v6508_v4  ;;  %v6504_v15 = vsub.f32 %v6488_v27, %v6498_v1 }
0x1855   : > { %v6510_v54 = vmul.f32 1.442695, %v6504_v15 }
0x1856   : > { %v6501_v0 = vpop.xlane.xlu1 %6500 }
0x1857   : > { %11995 = vpow2.f32 %v6510_v54  ;;  %v6505_v33 = vsub.f32 %v6489_v28, %v6501_v0 }
0x1859   : > { %v6512_v32 = vmul.f32 1.442695, %v6505_v33 }
0x185b   : > { %11997 = vpow2.f32 %v6512_v32 }
0x185c   : > { %v11992_v22 = vpop.eup %11991 }
0x185d   : > { %v6514_v51 = vsel %vm2316_vm2, %v11992_v22, 0.0 }
0x185e   : > { %6515 = vadd.xlane.f32.xlu0 %v6514_v51  ;;  %v14316_v51 = vld [vmem:[%s15101_s1 + $0x10] sm:$0xff] }
0x1860   : > { %v11994_v40 = vpop.eup %11993 }
0x1861   : > { %v6517_v35 = vsel %vm2316_vm2, %v11994_v40, 0.0 }
0x1862   : > { %6518 = vadd.xlane.f32.xlu1 %v6517_v35 }
0x1864   : > { %v11996_v24 = vpop.eup %11995 }
0x1865   : > { %v6520_v7 = vsel %vm2316_vm2, %v11996_v24, 0.0 }
0x1866   : > { %6521 = vadd.xlane.f32.xlu0 %v6520_v7 }
0x1868   : > { %v11998_v27 = vpop.eup %11997 }
0x1869   : > { %v6523_v44 = vsel %vm2316_vm2, %v11998_v27, 0.0 }
0x1873   : > { %6629 = vrot.lane.b32.xlu1 %v14204_v3, %s12448_s30 }
0x187c   : > { %6632 = vrot.lane.b32.xlu0 %v14195_v42, %s12448_s30 }
0x1897   : > { %6524 = vadd.xlane.f32.xlu1 %v6523_v44 }
0x18a8   : > { %6685 = vrot.lane.b32.xlu1 %v14206_v31, %s12448_s30  ;;  %v14301_v31 = vld [vmem:[%s15101_s1 + $0x8] sm:$0xff] }
0x18ac   : > { %6682 = vrot.lane.b32.xlu1 %v14221_v39, %s12448_s30 }
0x18e7   : > { %v6516_v8 = vpop.xlane.xlu0 %6515 }
0x18e8   : > { %11999 = vrcp.f32 %v6516_v8 }
0x18eb   : > { %v6519_v3 = vpop.xlane.xlu1 %6518 }
0x18ec   : > { %12001 = vrcp.f32 %v6519_v3 }
0x18ef   : > { %v6522_v21 = vpop.xlane.xlu0 %6521  ;;  %v6630_v4 = vpop.permute.xlu1 %6629 }
0x18f0   : > { %12003 = vrcp.f32 %v6522_v21 }
0x18f3   : > { %v6633_v46 = vpop.permute.xlu0 %6632 }
0x18f4   : > { %v6638_v6 = vsel %vm2213_vm1, %v6633_v46, 0 }
0x18f5   : > { %v12000_v58 = vpop.eup %11999 }
0x18f6   : > { %v6530_v42 = vmul.f32 %v12000_v58, %v11992_v22 }
0x18f8   : > { %v6534_v39 = vmul.f32 %v6530_v42, %v14296_v37 }
0x18f9   : > { %v12002_v28 = vpop.eup %12001 }
0x18fa   : > { %v6531_v49 = vmul.f32 %v12002_v28, %v11994_v40  ;;  %v14321_v40 = vld [vmem:[%s15101_s1 + $0x18] sm:$0xff] }
0x18fc   : > { %v6535_v59 = vmul.f32 %v6531_v49, %v14301_v31 }
0x18fd   : > { %v12004_v15 = vpop.eup %12003 }
0x18fe   : > { %v6538_v17 = vpack.c.bf16 %v6535_v59, %v6534_v39  ;;  %v6532_v54 = vmul.f32 %v12004_v15, %v11996_v24 }
0x1900   : > { %10828 = vmatmul.mubr.msk.bf16.vlgmr.msra.gmra.mxu0 %vm2316_vm2, %v6538_v17  ;;  %v6536_v7 = vmul.f32 %v6532_v54, %v14316_v51 }
0x1901   : > { %10838 = vmatpush3.bf16.xpose.msra.mxu0 %v6638_v6  ;;  %10839 = vmatprep.mubr.msk.bf16.mxu0 %vm12447_vm0, %v15062_v12 }
0x1902   : > { %10849 = vmatprep.subr.bf16.mxu0 %v15062_v12 }
0x1908   : > { %10840 = vmatmul.mubr.msk.bf16.vlgmr.msra.gmra.mxu0 %vm2213_vm1, %v6630_v4 }
0x1909   : > { %10851 = vmatprep.mubr.msk.bf16.mxu0 %vm12447_vm0, %v15062_v12 }
0x1920   : > { %v6525_v1 = vpop.xlane.xlu1 %6524 }
0x1921   : > { %12005 = vrcp.f32 %v6525_v1 }
0x1924   : > { %v6686_v33 = vpop.permute.xlu1 %6685 }
0x1925   : > { %v6691_v24 = vsel %vm2213_vm1, %v6686_v33, 0 }
0x1928   : > { %v6683_v44 = vpop.permute.xlu1 %6682 }
0x192e   : > { %v12006_v22 = vpop.eup %12005 }
0x192f   : > { %v6533_v35 = vmul.f32 %v12006_v22, %v11998_v27 }
0x1931   : > { %v6537_v0 = vmul.f32 %v6533_v35, %v14321_v40 }
0x1933   : > { %v6539_v32 = vpack.c.bf16 %v6537_v0, %v6536_v7 }
0x1935   : > { %10834 = vmatmul.mubr.msk.bf16.vlgmr.msra.gmra.mxu1 %vm2316_vm2, %v6539_v32 }
0x1936   : > { %10844 = vmatpush3.bf16.xpose.msra.mxu1 %v6691_v24  ;;  %10845 = vmatprep.mubr.msk.bf16.mxu1 %vm12447_vm0, %v15062_v12 }
0x1937   : > { %10855 = vmatprep.subr.bf16.mxu1 %v15062_v12 }
0x193d   : > { %10846 = vmatmul.mubr.msk.bf16.vlgmr.msra.gmra.mxu1 %vm2213_vm1, %v6683_v44 }
0x193e   : > { %10857 = vmatprep.mubr.msk.bf16.mxu1 %vm12447_vm0, %v15062_v12 }
0x19c0   : > { %v14333_v27 = vpop.f32.mrf.mxu0 }
0x19c2   : > { %v10829_v8 = vpop.f32.mrf.mxu0 }
0x19c4   : > { %v14335_v3 = vpop.f32.mrf.mxu0 }
0x19c6   : > { %v10830_v58 = vpop.f32.mrf.mxu0 }
0x19c8   : > { %v6674_v21 = vpop.f32.mrf.mxu0 }
0x19c9   : > { %v6734_v42 = vmul.f32 0.125, %v6674_v21 }
0x19ca   : > { %v10841_v28 = vpop.f32.mrf.mxu0 }
0x19cb   : > { %v6738_v49 = vadd.f32 %v6734_v42, %v14254_v36 }
0x19cc   : > { %v6677_v39 = vpop.f32.mrf.mxu0 }
0x19cd   : > { %v6735_v59 = vmul.f32 0.125, %v6677_v39  ;;  %v6742_v46 = vsel %vm2316_vm2, %v6738_v49, -inf }
0x19ce   : > { %6743 = vmax.xlane.f32.xlu0 %v6742_v46  ;;  %v10842_v17 = vpop.f32.mrf.mxu0 }
0x19cf   : > { %v6739_v6 = vadd.f32 %v6735_v59, %v14260_v48 }
0x19d1   : > { %v6745_v4 = vsel %vm2316_vm2, %v6739_v6, -inf }
0x19d2   : > { %6746 = vmax.xlane.f32.xlu1 %v6745_v4 }
0x19f5   : > { %v14341_v1 = vpop.f32.mrf.mxu1 }
0x19f7   : > { %v10835_v15 = vpop.f32.mrf.mxu1 }
0x19f9   : > { %v14343_v54 = vpop.f32.mrf.mxu1 }
0x19fb   : > { %v10836_v22 = vpop.f32.mrf.mxu1 }
0x19fd   : > { %v6727_v35 = vpop.f32.mrf.mxu1 }
0x19fe   : > { %v6736_v7 = vmul.f32 0.125, %v6727_v35 }
0x19ff   : > { %v10847_v0 = vpop.f32.mrf.mxu1 }
0x1a00   : > { %v6740_v33 = vadd.f32 %v6736_v7, %v14269_v47 }
0x1a01   : > { %v6730_v32 = vpop.f32.mrf.mxu1 }
0x1a02   : > { %v6737_v24 = vmul.f32 0.125, %v6730_v32  ;;  %v6748_v44 = vsel %vm2316_vm2, %v6740_v33, -inf }
0x1a03   : > { %v10848_v8 = vpop.f32.mrf.mxu1  ;;  %6749 = vmax.xlane.f32.xlu0 %v6748_v44 }
0x1a04   : > { %v6741_v58 = vadd.f32 %v6737_v24, %v14276_v38 }
0x1a06   : > { %v6751_v21 = vsel %vm2316_vm2, %v6741_v58, -inf }
0x1a07   : > { %6752 = vmax.xlane.f32.xlu0 %v6751_v21 }
0x1a57   : > { %v6744_v42 = vpop.xlane.xlu0 %6743 }
0x1a58   : > { %v6754_v28 = vsub.f32 %v6738_v49, %v6744_v42 }
0x1a5a   : > { %v6758_v39 = vmul.f32 1.442695, %v6754_v28 }
0x1a5b   : > { %v6747_v59 = vpop.xlane.xlu1 %6746 }
0x1a5c   : > { %12007 = vpow2.f32 %v6758_v39  ;;  %v6755_v46 = vsub.f32 %v6739_v6, %v6747_v59 }
0x1a5e   : > { %v6760_v17 = vmul.f32 1.442695, %v6755_v46 }
0x1a60   : > { %12009 = vpow2.f32 %v6760_v17 }
0x1a69   : > { %v12008_v4 = vpop.eup %12007 }
0x1a6a   : > { %v6766_v15 = vsel %vm2316_vm2, %v12008_v4, 0.0 }
0x1a6b   : > { %6767 = vadd.xlane.f32.xlu0 %v6766_v15 }
0x1a6d   : > { %v12010_v22 = vpop.eup %12009 }
0x1a6e   : > { %v6769_v35 = vsel %vm2316_vm2, %v12010_v22, 0.0 }
0x1a6f   : > { %6770 = vadd.xlane.f32.xlu1 %v6769_v35 }
0x1a8c   : > { %v6750_v7 = vpop.xlane.xlu0 %6749 }
0x1a8d   : > { %v6756_v0 = vsub.f32 %v6740_v33, %v6750_v7 }
0x1a8f   : > { %v6762_v32 = vmul.f32 1.442695, %v6756_v0 }
0x1a90   : > { %v6753_v24 = vpop.xlane.xlu0 %6752 }
0x1a91   : > { %12011 = vpow2.f32 %v6762_v32  ;;  %v6757_v49 = vsub.f32 %v6741_v58, %v6753_v24 }
0x1a93   : > { %v6764_v44 = vmul.f32 1.442695, %v6757_v49 }
0x1a95   : > { %12013 = vpow2.f32 %v6764_v44 }
0x1a9e   : > { %v12012_v8 = vpop.eup %12011 }
0x1a9f   : > { %v6772_v6 = vsel %vm2316_vm2, %v12012_v8, 0.0 }
0x1aa0   : > { %6773 = vadd.xlane.f32.xlu0 %v6772_v6 }
0x1aa2   : > { %v12014_v21 = vpop.eup %12013 }
0x1aa3   : > { %v6775_v42 = vsel %vm2316_vm2, %v12014_v21, 0.0 }
0x1aa4   : > { %6776 = vadd.xlane.f32.xlu1 %v6775_v42 }
0x1ab5   : > { %6841 = vrot.lane.b32.xlu1 %v14239_v34, %s12448_s30 }
0x1ab6   : > { %6793 = vrot.lane.b32.xlu0 %v14229_v52, %s12448_s30  ;;  %v6892_v52 = vsel %vm2213_vm1, %v14199_v57, 0 }
0x1af4   : > { %v6768_v28 = vpop.xlane.xlu0 %6767 }
0x1af8   : > { %v6771_v33 = vpop.xlane.xlu1 %6770 }
0x1af9   : > { %12015 = vrcp.f32 %v6771_v33  ;;  %v6939_v33 = vsel %vm2213_vm1, %v14214_v18, 0 }
0x1afa   : > { %12017 = vrcp.f32 %v6768_v28 }
0x1b06   : > { %v12016_v58 = vpop.eup %12015 }
0x1b07   : > { %v12018_v39 = vpop.eup %12017  ;;  %v6783_v59 = vmul.f32 %v12016_v58, %v12010_v22 }
0x1b08   : > { %v6782_v46 = vmul.f32 %v12018_v39, %v12008_v4 }
0x1b09   : > { %v6787_v15 = vmul.f32 %v6783_v59, %v14301_v31 }
0x1b0a   : > { %v6786_v35 = vmul.f32 %v6782_v46, %v14296_v37 }
0x1b0c   : > { %v6790_v34 = vpack.c.bf16 %v6787_v15, %v6786_v35 }
0x1b29   : > { %v6774_v17 = vpop.xlane.xlu0 %6773 }
0x1b2a   : > { %12019 = vrcp.f32 %v6774_v17 }
0x1b2d   : > { %v6794_v7 = vpop.permute.xlu0 %6793  ;;  %v6777_v0 = vpop.xlane.xlu1 %6776 }
0x1b2e   : > { %12021 = vrcp.f32 %v6777_v0  ;;  %10850 = vmatpush3.bf16.msra.mxu0 %v6794_v7 }
0x1b2f   : > { %10861 = vmatprep.subr.bf16.mxu0 %v15062_v12 }
0x1b31   : > { %10852 = vmatmul.mubr.msk.bf16.vlgmr.msra.gmra.mxu0 %vm2316_vm2, %v6790_v34  ;;  %v6842_v22 = vpop.permute.xlu1 %6841 }
0x1b32   : > { %10856 = vmatpush3.bf16.msra.mxu1 %v6842_v22  ;;  %10862 = vmatpush3.bf16.xpose.msra.mxu0 %v6892_v52 }
0x1b33   : > { %10863 = vmatprep.mubr.msk.bf16.mxu0 %vm12447_vm0, %v15062_v12  ;;  %10873 = vmatprep.subr.bf16.mxu0 %v15062_v12 }
0x1b34   : > { %10867 = vmatprep.subr.bf16.mxu1 %v15062_v12 }
0x1b37   : > { %v12020_v4 = vpop.eup %12019 }
0x1b38   : > { %v6784_v32 = vmul.f32 %v12020_v4, %v12012_v8  ;;  %v14383_v8 = vpack.c.bf16 %v14249_v41, %v14235_v50 }
0x1b39   : > { %10864 = vmatmul.mubr.msk.bf16.vlgmr.msra.gmra.mxu0 %vm2213_vm1, %v14185_v14 }
0x1b3a   : > { %10874 = vmatpush3.bf16.msra.mxu0 %v14231_v63  ;;  %10875 = vmatprep.mubr.msk.bf16.mxu0 %vm12447_vm0, %v15062_v12  ;;  %v6788_v44 = vmul.f32 %v6784_v32, %v14316_v51 }
0x1b3b   : > { %v12022_v24 = vpop.eup %12021  ;;  %10885 = vmatprep.subr.bf16.mxu0 %v15062_v12 }
0x1b3c   : > { %v6785_v49 = vmul.f32 %v12022_v24, %v12014_v21 }
0x1b3e   : > { %v6789_v6 = vmul.f32 %v6785_v49, %v14321_v40 }
0x1b40   : > { %v6791_v42 = vpack.c.bf16 %v6789_v6, %v6788_v44 }
0x1b42   : > { %10858 = vmatmul.mubr.msk.bf16.vlgmr.msra.gmra.mxu1 %vm2316_vm2, %v6791_v42 }
0x1b43   : > { %10868 = vmatpush3.bf16.xpose.msra.mxu1 %v6939_v33  ;;  %10869 = vmatprep.mubr.msk.bf16.mxu1 %vm12447_vm0, %v15062_v12 }
0x1b44   : > { %10879 = vmatprep.subr.bf16.mxu1 %v15062_v12 }
0x1b4a   : > { %10870 = vmatmul.mubr.msk.bf16.vlgmr.msra.gmra.mxu1 %vm2213_vm1, %v14193_v16 }
0x1b4b   : > { %10880 = vmatpush3.bf16.msra.mxu1 %v14383_v8  ;;  %10881 = vmatprep.mubr.msk.bf16.mxu1 %vm12447_vm0, %v15062_v12 }
0x1b4c   : > { %10891 = vmatprep.subr.bf16.mxu1 %v15062_v12 }
0x1bf1   : > { %v14391_v21 = vpop.f32.mrf.mxu0 }
0x1bf3   : > { %v10853_v28 = vpop.f32.mrf.mxu0 }
0x1bf5   : > { %v14393_v58 = vpop.f32.mrf.mxu0 }
0x1bf7   : > { %v10854_v50 = vpop.f32.mrf.mxu0 }
0x1bf9   : > { %v6928_v41 = vpop.f32.mrf.mxu0 }
0x1bfa   : > { %v6982_v59 = vmul.f32 0.125, %v6928_v41 }
0x1bfb   : > { %v10865_v46 = vpop.f32.mrf.mxu0 }
0x1bfc   : > { %v6986_v17 = vadd.f32 %v6982_v59, %v14254_v36 }
0x1bfd   : > { %v6931_v15 = vpop.f32.mrf.mxu0 }
0x1bfe   : > { %v6983_v35 = vmul.f32 0.125, %v6931_v15  ;;  %v6990_v7 = vsel %vm2316_vm2, %v6986_v17, -inf }
0x1bff   : > { %6991 = vmax.xlane.f32.xlu1 %v6990_v7  ;;  %v10866_v0 = vpop.f32.mrf.mxu0 }
0x1c00   : > { %v6987_v34 = vadd.f32 %v6983_v35, %v14260_v48 }
0x1c02   : > { %v14400_v52 = vpop.f32.mrf.mxu1  ;;  %v6993_v22 = vsel %vm2316_vm2, %v6987_v34, -inf }
0x1c03   : > { %6994 = vmax.xlane.f32.xlu0 %v6993_v22 }
0x1c04   : > { %v10859_v4 = vpop.f32.mrf.mxu1 }
0x1c06   : > { %v14403_v32 = vpop.f32.mrf.mxu1 }
0x1c08   : > { %v10860_v49 = vpop.f32.mrf.mxu1 }
0x1c0a   : > { %v6975_v44 = vpop.f32.mrf.mxu1 }
0x1c0b   : > { %v6984_v6 = vmul.f32 0.125, %v6975_v44 }
0x1c0c   : > { %v10871_v42 = vpop.f32.mrf.mxu1 }
0x1c0d   : > { %v6988_v33 = vadd.f32 %v6984_v6, %v14269_v47 }
0x1c0e   : > { %v6978_v28 = vpop.f32.mrf.mxu1 }
0x1c0f   : > { %v6985_v50 = vmul.f32 0.125, %v6978_v28  ;;  %v6996_v41 = vsel %vm2316_vm2, %v6988_v33, -inf }
0x1c10   : > { %v10872_v59 = vpop.f32.mrf.mxu1  ;;  %6997 = vmax.xlane.f32.xlu0 %v6996_v41 }
0x1c11   : > { %v6989_v46 = vadd.f32 %v6985_v50, %v14276_v38 }
0x1c13   : > { %v6999_v15 = vsel %vm2316_vm2, %v6989_v46, -inf }
0x1c14   : > { %7000 = vmax.xlane.f32.xlu1 %v6999_v15 }
0x1c88   : > { %v6992_v35 = vpop.xlane.xlu1 %6991 }
0x1c89   : > { %v7002_v7 = vsub.f32 %v6986_v17, %v6992_v35 }
0x1c8b   : > { %v7006_v0 = vmul.f32 1.442695, %v7002_v7 }
0x1c8c   : > { %v6995_v22 = vpop.xlane.xlu0 %6994 }
0x1c8d   : > { %12023 = vpow2.f32 %v7006_v0  ;;  %v7003_v4 = vsub.f32 %v6987_v34, %v6995_v22 }
0x1c8f   : > { %v7008_v49 = vmul.f32 1.442695, %v7003_v4 }
0x1c91   : > { %12025 = vpow2.f32 %v7008_v49 }
0x1c99   : > { %v6998_v44 = vpop.xlane.xlu0 %6997 }
0x1c9a   : > { %v12024_v6 = vpop.eup %12023  ;;  %v7004_v42 = vsub.f32 %v6988_v33, %v6998_v44 }
0x1c9b   : > { %v7014_v28 = vsel %vm2316_vm2, %v12024_v6, 0.0 }
0x1c9c   : > { %v7010_v59 = vmul.f32 1.442695, %v7004_v42  ;;  %7015 = vadd.xlane.f32.xlu0 %v7014_v28 }
0x1c9d   : > { %v7001_v34 = vpop.xlane.xlu1 %7000 }
0x1c9e   : > { %v12026_v41 = vpop.eup %12025  ;;  %12027 = vpow2.f32 %v7010_v59  ;;  %v7005_v35 = vsub.f32 %v6989_v46, %v7001_v34 }
0x1c9f   : > { %v7017_v50 = vsel %vm2316_vm2, %v12026_v41, 0.0 }
0x1ca0   : > { %7018 = vadd.xlane.f32.xlu1 %v7017_v50  ;;  %v7012_v7 = vmul.f32 1.442695, %v7005_v35 }
0x1ca2   : > { %12029 = vpow2.f32 %v7012_v7 }
0x1cab   : > { %v12028_v15 = vpop.eup %12027 }
0x1cac   : > { %v7020_v17 = vsel %vm2316_vm2, %v12028_v15, 0.0 }
0x1cad   : > { %7021 = vadd.xlane.f32.xlu0 %v7020_v17 }
0x1caf   : > { %v12030_v33 = vpop.eup %12029 }
0x1cb0   : > { %v7023_v0 = vsel %vm2316_vm2, %v12030_v33, 0.0 }
0x1cb1   : > { %7129 = vrot.lane.b32.xlu1 %v14185_v14, %s12448_s30 }
0x1cc3   : > { %7132 = vrot.lane.b32.xlu0 %v14199_v57, %s12448_s30 }
0x1cd5   : > { %7024 = vadd.xlane.f32.xlu1 %v7023_v0 }
0x1ce6   : > { %7185 = vrot.lane.b32.xlu1 %v14214_v18, %s12448_s30 }
0x1cea   : > { %7182 = vrot.lane.b32.xlu1 %v14193_v16, %s12448_s30 }
0x1d25   : > { %v7016_v22 = vpop.xlane.xlu0 %7015 }
0x1d26   : > { %12031 = vrcp.f32 %v7016_v22 }
0x1d29   : > { %v7019_v14 = vpop.xlane.xlu1 %7018 }
0x1d2a   : > { %12033 = vrcp.f32 %v7019_v14 }
0x1d2d   : > { %v7130_v16 = vpop.permute.xlu1 %7129 }
0x1d33   : > { %v12032_v46 = vpop.eup %12031 }
0x1d34   : > { %v7030_v4 = vmul.f32 %v12032_v46, %v12024_v6 }
0x1d36   : > { %v7022_v49 = vpop.xlane.xlu0 %7021  ;;  %v7034_v42 = vmul.f32 %v7030_v4, %v14296_v37 }
0x1d37   : > { %v12034_v44 = vpop.eup %12033  ;;  %12035 = vrcp.f32 %v7022_v49 }
0x1d38   : > { %v7031_v57 = vmul.f32 %v12034_v44, %v12026_v41 }
0x1d3a   : > { %v7035_v28 = vmul.f32 %v7031_v57, %v14301_v31  ;;  %v7133_v59 = vpop.permute.xlu0 %7132 }
0x1d3b   : > { %v7138_v18 = vsel %vm2213_vm1, %v7133_v59, 0 }
0x1d3c   : > { %v7038_v50 = vpack.c.bf16 %v7035_v28, %v7034_v42 }
0x1d3e   : > { %10876 = vmatmul.mubr.msk.bf16.vlgmr.msra.gmra.mxu0 %vm2316_vm2, %v7038_v50 }
0x1d3f   : > { %10886 = vmatpush3.bf16.xpose.msra.mxu0 %v7138_v18  ;;  %10887 = vmatprep.mubr.msk.bf16.mxu0 %vm12447_vm0, %v15062_v12 }
0x1d40   : > { %10897 = vmatprep.subr.bf16.mxu0 %v15062_v12 }
0x1d44   : > { %v12036_v41 = vpop.eup %12035 }
0x1d45   : > { %v7032_v17 = vmul.f32 %v12036_v41, %v12028_v15 }
0x1d46   : > { %10888 = vmatmul.mubr.msk.bf16.vlgmr.msra.gmra.mxu0 %vm2213_vm1, %v7130_v16 }
0x1d47   : > { %10899 = vmatprep.mubr.msk.bf16.mxu0 %vm12447_vm0, %v15062_v12  ;;  %v7036_v7 = vmul.f32 %v7032_v17, %v14316_v51 }
0x1d5e   : > { %v7025_v6 = vpop.xlane.xlu1 %7024 }
0x1d5f   : > { %12037 = vrcp.f32 %v7025_v6 }
0x1d62   : > { %v7186_v22 = vpop.permute.xlu1 %7185 }
0x1d63   : > { %v7191_v46 = vsel %vm2213_vm1, %v7186_v22, 0 }
0x1d66   : > { %v7183_v4 = vpop.permute.xlu1 %7182 }
0x1d6c   : > { %v12038_v34 = vpop.eup %12037 }
0x1d6d   : > { %v7033_v35 = vmul.f32 %v12038_v34, %v12030_v33 }
0x1d6f   : > { %v7037_v0 = vmul.f32 %v7033_v35, %v14321_v40 }
0x1d71   : > { %v7039_v14 = vpack.c.bf16 %v7037_v0, %v7036_v7 }
0x1d73   : > { %10882 = vmatmul.mubr.msk.bf16.vlgmr.msra.gmra.mxu1 %vm2316_vm2, %v7039_v14 }
0x1d74   : > { %10892 = vmatpush3.bf16.xpose.msra.mxu1 %v7191_v46  ;;  %10893 = vmatprep.mubr.msk.bf16.mxu1 %vm12447_vm0, %v15062_v12 }
0x1d75   : > { %10903 = vmatprep.subr.bf16.mxu1 %v15062_v12 }
0x1d7b   : > { %10894 = vmatmul.mubr.msk.bf16.vlgmr.msra.gmra.mxu1 %vm2213_vm1, %v7183_v4 }
0x1d7c   : > { %10905 = vmatprep.mubr.msk.bf16.mxu1 %vm12447_vm0, %v15062_v12 }
0x1dfe   : > { %v14443_v15 = vpop.f32.mrf.mxu0 }
0x1e00   : > { %v10877_v33 = vpop.f32.mrf.mxu0 }
0x1e02   : > { %v14445_v49 = vpop.f32.mrf.mxu0 }
0x1e04   : > { %v10878_v44 = vpop.f32.mrf.mxu0 }
0x1e06   : > { %v7174_v57 = vpop.f32.mrf.mxu0 }
0x1e07   : > { %v7234_v42 = vmul.f32 0.125, %v7174_v57 }
0x1e08   : > { %v10889_v28 = vpop.f32.mrf.mxu0 }
0x1e09   : > { %v7238_v59 = vadd.f32 %v7234_v42, %v14254_v36 }
0x1e0a   : > { %v7177_v50 = vpop.f32.mrf.mxu0 }
0x1e0b   : > { %v7235_v18 = vmul.f32 0.125, %v7177_v50  ;;  %v7242_v16 = vsel %vm2316_vm2, %v7238_v59, -inf }
0x1e0c   : > { %7243 = vmax.xlane.f32.xlu0 %v7242_v16  ;;  %v10890_v6 = vpop.f32.mrf.mxu0 }
0x1e0d   : > { %v7239_v41 = vadd.f32 %v7235_v18, %v14260_v48 }
0x1e0f   : > { %v7245_v17 = vsel %vm2316_vm2, %v7239_v41, -inf }
0x1e10   : > { %7246 = vmax.xlane.f32.xlu1 %v7245_v17 }
0x1e33   : > { %v14451_v34 = vpop.f32.mrf.mxu1 }
0x1e35   : > { %v10883_v35 = vpop.f32.mrf.mxu1 }
0x1e37   : > { %v14453_v7 = vpop.f32.mrf.mxu1 }
0x1e39   : > { %v10884_v0 = vpop.f32.mrf.mxu1 }
0x1e3b   : > { %v7227_v22 = vpop.f32.mrf.mxu1 }
0x1e3c   : > { %v7236_v14 = vmul.f32 0.125, %v7227_v22 }
0x1e3d   : > { %v10895_v46 = vpop.f32.mrf.mxu1 }
0x1e3e   : > { %v7240_v4 = vadd.f32 %v7236_v14, %v14269_v47 }
0x1e3f   : > { %v7230_v33 = vpop.f32.mrf.mxu1 }
0x1e40   : > { %v7237_v44 = vmul.f32 0.125, %v7230_v33  ;;  %v7248_v57 = vsel %vm2316_vm2, %v7240_v4, -inf }
0x1e41   : > { %7249 = vmax.xlane.f32.xlu0 %v7248_v57  ;;  %v10896_v42 = vpop.f32.mrf.mxu1 }
0x1e42   : > { %v7241_v28 = vadd.f32 %v7237_v44, %v14276_v38 }
0x1e44   : > { %v7251_v50 = vsel %vm2316_vm2, %v7241_v28, -inf }
0x1e45   : > { %7252 = vmax.xlane.f32.xlu0 %v7251_v50 }
0x1e95   : > { %v7244_v18 = vpop.xlane.xlu0 %7243 }
0x1e96   : > { %v7254_v16 = vsub.f32 %v7238_v59, %v7244_v18 }
0x1e98   : > { %v7258_v6 = vmul.f32 1.442695, %v7254_v16 }
0x1e99   : > { %v7247_v17 = vpop.xlane.xlu1 %7246 }
0x1e9a   : > { %12039 = vpow2.f32 %v7258_v6  ;;  %v7255_v35 = vsub.f32 %v7239_v41, %v7247_v17 }
0x1e9c   : > { %v7260_v0 = vmul.f32 1.442695, %v7255_v35 }
0x1e9e   : > { %12041 = vpow2.f32 %v7260_v0 }
0x1ea7   : > { %v12040_v22 = vpop.eup %12039 }
0x1ea8   : > { %v7266_v14 = vsel %vm2316_vm2, %v12040_v22, 0.0 }
0x1ea9   : > { %7267 = vadd.xlane.f32.xlu0 %v7266_v14 }
0x1eab   : > { %v12042_v46 = vpop.eup %12041 }
0x1eac   : > { %v7269_v33 = vsel %vm2316_vm2, %v12042_v46, 0.0 }
0x1ead   : > { %7270 = vadd.xlane.f32.xlu1 %v7269_v33 }
0x1eca   : > { %v7250_v44 = vpop.xlane.xlu0 %7249 }
0x1ecb   : > { %v7256_v57 = vsub.f32 %v7240_v4, %v7250_v44 }
0x1ecd   : > { %v7262_v42 = vmul.f32 1.442695, %v7256_v57 }
0x1ece   : > { %v7253_v50 = vpop.xlane.xlu0 %7252 }
0x1ecf   : > { %12043 = vpow2.f32 %v7262_v42  ;;  %v7257_v59 = vsub.f32 %v7241_v28, %v7253_v50 }
0x1ed1   : > { %v7264_v18 = vmul.f32 1.442695, %v7257_v59 }
0x1ed3   : > { %12045 = vpow2.f32 %v7264_v18 }
0x1edc   : > { %v12044_v16 = vpop.eup %12043 }
0x1edd   : > { %v7272_v41 = vsel %vm2316_vm2, %v12044_v16, 0.0 }
0x1ede   : > { %7273 = vadd.xlane.f32.xlu0 %v7272_v41 }
0x1ee0   : > { %v12046_v6 = vpop.eup %12045 }
0x1ee1   : > { %v7275_v17 = vsel %vm2316_vm2, %v12046_v6, 0.0 }
0x1ee2   : > { %7276 = vadd.xlane.f32.xlu1 %v7275_v17 }
0x1ef3   : > { %7341 = vrot.lane.b32.xlu1 %v14383_v8, %s12448_s30 }
0x1ef4   : > { %7293 = vrot.lane.b32.xlu0 %v14231_v63, %s12448_s30  ;;  %v7392_v63 = vsel %vm2213_vm1, %v14202_v20, 0 }
0x1f32   : > { %v7268_v35 = vpop.xlane.xlu0 %7267 }
0x1f36   : > { %v7271_v4 = vpop.xlane.xlu1 %7270 }
0x1f37   : > { %12047 = vrcp.f32 %v7271_v4 }
0x1f38   : > { %12049 = vrcp.f32 %v7268_v35 }
0x1f44   : > { %v12048_v28 = vpop.eup %12047 }
0x1f45   : > { %v12050_v0 = vpop.eup %12049  ;;  %v7283_v14 = vmul.f32 %v12048_v28, %v12042_v46 }
0x1f46   : > { %v7282_v33 = vmul.f32 %v12050_v0, %v12040_v22  ;;  %v7439_v0 = vsel %vm2213_vm1, %v14219_v55, 0 }
0x1f47   : > { %v7287_v57 = vmul.f32 %v7283_v14, %v14301_v31 }
0x1f48   : > { %v7286_v42 = vmul.f32 %v7282_v33, %v14296_v37 }
0x1f4a   : > { %v7290_v8 = vpack.c.bf16 %v7287_v57, %v7286_v42 }
0x1f67   : > { %v7274_v44 = vpop.xlane.xlu0 %7273 }
0x1f68   : > { %12051 = vrcp.f32 %v7274_v44 }
0x1f6b   : > { %v7277_v50 = vpop.xlane.xlu1 %7276  ;;  %v7294_v59 = vpop.permute.xlu0 %7293 }
0x1f6c   : > { %12053 = vrcp.f32 %v7277_v50  ;;  %10898 = vmatpush3.bf16.msra.mxu0 %v7294_v59 }
0x1f6d   : > { %10909 = vmatprep.subr.bf16.mxu0 %v15062_v12 }
0x1f6f   : > { %v7342_v18 = vpop.permute.xlu1 %7341  ;;  %10900 = vmatmul.mubr.msk.bf16.vlgmr.msra.gmra.mxu0 %vm2316_vm2, %v7290_v8 }
0x1f70   : > { %10904 = vmatpush3.bf16.msra.mxu1 %v7342_v18  ;;  %10910 = vmatpush3.bf16.xpose.msra.mxu0 %v7392_v63 }
0x1f71   : > { %10911 = vmatprep.mubr.msk.bf16.mxu0 %vm12447_vm0, %v15062_v12  ;;  %10921 = vmatprep.subr.bf16.mxu0 %v15062_v12 }
0x1f72   : > { %10915 = vmatprep.subr.bf16.mxu1 %v15062_v12 }
0x1f75   : > { %v12052_v22 = vpop.eup %12051 }
0x1f76   : > { %v7284_v46 = vmul.f32 %v12052_v22, %v12044_v16 }
0x1f77   : > { %10912 = vmatmul.mubr.msk.bf16.vlgmr.msra.gmra.mxu0 %vm2213_vm1, %v14183_v10 }
0x1f78   : > { %10922 = vmatpush3.bf16.msra.mxu0 %v14237_v30  ;;  %10923 = vmatprep.mubr.msk.bf16.mxu0 %vm12447_vm0, %v15062_v12  ;;  %v7288_v4 = vmul.f32 %v7284_v46, %v14316_v51 }
0x1f79   : > { %v12054_v41 = vpop.eup %12053  ;;  %10933 = vmatprep.subr.bf16.mxu0 %v15062_v12 }
0x1f7a   : > { %v7285_v17 = vmul.f32 %v12054_v41, %v12046_v6 }
0x1f7c   : > { %v7289_v35 = vmul.f32 %v7285_v17, %v14321_v40 }
0x1f7e   : > { %v7291_v28 = vpack.c.bf16 %v7289_v35, %v7288_v4 }
0x1f80   : > { %10906 = vmatmul.mubr.msk.bf16.vlgmr.msra.gmra.mxu1 %vm2316_vm2, %v7291_v28 }
0x1f81   : > { %10916 = vmatpush3.bf16.xpose.msra.mxu1 %v7439_v0  ;;  %10917 = vmatprep.mubr.msk.bf16.mxu1 %vm12447_vm0, %v15062_v12 }
0x1f82   : > { %10927 = vmatprep.subr.bf16.mxu1 %v15062_v12 }
0x1f88   : > { %10918 = vmatmul.mubr.msk.bf16.vlgmr.msra.gmra.mxu1 %vm2213_vm1, %v14189_v61 }
0x1f89   : > { %10928 = vmatpush3.bf16.msra.mxu1 %v14247_v45  ;;  %10929 = vmatprep.mubr.msk.bf16.mxu1 %vm12447_vm0, %v15062_v12 }
0x1f8a   : > { %10939 = vmatprep.subr.bf16.mxu1 %v15062_v12 }
0x202f   : > { %v14497_v16 = vpop.f32.mrf.mxu0 }
0x2031   : > { %v10901_v6 = vpop.f32.mrf.mxu0 }
0x2033   : > { %v14499_v14 = vpop.f32.mrf.mxu0 }
0x2035   : > { %v10902_v44 = vpop.f32.mrf.mxu0 }
0x2037   : > { %v7428_v57 = vpop.f32.mrf.mxu0 }
0x2038   : > { %v7482_v42 = vmul.f32 0.125, %v7428_v57 }
0x2039   : > { %v10913_v50 = vpop.f32.mrf.mxu0 }
0x203a   : > { %v7486_v59 = vadd.f32 %v7482_v42, %v14254_v36 }
0x203b   : > { %v7431_v8 = vpop.f32.mrf.mxu0 }
0x203c   : > { %v7483_v63 = vmul.f32 0.125, %v7431_v8  ;;  %v7490_v18 = vsel %vm2316_vm2, %v7486_v59, -inf }
0x203d   : > { %7491 = vmax.xlane.f32.xlu1 %v7490_v18  ;;  %v10914_v22 = vpop.f32.mrf.mxu0 }
0x203e   : > { %v7487_v46 = vadd.f32 %v7483_v63, %v14260_v48 }
0x2040   : > { %v14506_v41 = vpop.f32.mrf.mxu1  ;;  %v7493_v17 = vsel %vm2316_vm2, %v7487_v46, -inf }
0x2041   : > { %7494 = vmax.xlane.f32.xlu0 %v7493_v17 }
0x2042   : > { %v10907_v4 = vpop.f32.mrf.mxu1 }
0x2044   : > { %v14509_v35 = vpop.f32.mrf.mxu1 }
0x2046   : > { %v10908_v36 = vpop.f32.mrf.mxu1 }
0x2048   : > { %v7475_v0 = vpop.f32.mrf.mxu1 }
0x2049   : > { %v7484_v6 = vmul.f32 0.125, %v7475_v0 }
0x204a   : > { %v10919_v44 = vpop.f32.mrf.mxu1 }
0x204b   : > { %v7488_v57 = vadd.f32 %v7484_v6, %v14269_v47 }
0x204c   : > { %v7478_v42 = vpop.f32.mrf.mxu1 }
0x204d   : > { %v7485_v50 = vmul.f32 0.125, %v7478_v42  ;;  %v7496_v48 = vsel %vm2316_vm2, %v7488_v57, -inf }
0x204e   : > { %7497 = vmax.xlane.f32.xlu0 %v7496_v48  ;;  %v10920_v8 = vpop.f32.mrf.mxu1 }
0x204f   : > { %v7489_v63 = vadd.f32 %v7485_v50, %v14276_v38 }
0x2051   : > { %v7499_v18 = vsel %vm2316_vm2, %v7489_v63, -inf }
0x2052   : > { %7500 = vmax.xlane.f32.xlu1 %v7499_v18 }
0x20c6   : > { %v7492_v22 = vpop.xlane.xlu1 %7491 }
0x20c7   : > { %v7502_v17 = vsub.f32 %v7486_v59, %v7492_v22 }
0x20c9   : > { %v7506_v4 = vmul.f32 1.442695, %v7502_v17 }
0x20ca   : > { %v7495_v36 = vpop.xlane.xlu0 %7494 }
0x20cb   : > { %12055 = vpow2.f32 %v7506_v4  ;;  %v7503_v0 = vsub.f32 %v7487_v46, %v7495_v36 }
0x20cd   : > { %v7508_v44 = vmul.f32 1.442695, %v7503_v0 }
0x20cf   : > { %12057 = vpow2.f32 %v7508_v44 }
0x20d7   : > { %v7498_v47 = vpop.xlane.xlu0 %7497 }
0x20d8   : > { %v12056_v6 = vpop.eup %12055  ;;  %v7504_v42 = vsub.f32 %v7488_v57, %v7498_v47 }
0x20d9   : > { %v7514_v28 = vsel %vm2316_vm2, %v12056_v6, 0.0 }
0x20da   : > { %v7510_v48 = vmul.f32 1.442695, %v7504_v42  ;;  %7515 = vadd.xlane.f32.xlu0 %v7514_v28 }
0x20db   : > { %v7501_v46 = vpop.xlane.xlu1 %7500 }
0x20dc   : > { %v12058_v8 = vpop.eup %12057  ;;  %12059 = vpow2.f32 %v7510_v48  ;;  %v7505_v18 = vsub.f32 %v7489_v63, %v7501_v46 }
0x20dd   : > { %v7517_v38 = vsel %vm2316_vm2, %v12058_v8, 0.0 }
0x20de   : > { %7518 = vadd.xlane.f32.xlu1 %v7517_v38  ;;  %v7512_v22 = vmul.f32 1.442695, %v7505_v18 }
0x20e0   : > { %12061 = vpow2.f32 %v7512_v22 }
0x20e9   : > { %v12060_v50 = vpop.eup %12059 }
0x20ea   : > { %v7520_v59 = vsel %vm2316_vm2, %v12060_v50, 0.0 }
0x20eb   : > { %7521 = vadd.xlane.f32.xlu0 %v7520_v59 }
0x20ed   : > { %v12062_v28 = vpop.eup %12061 }
0x20ee   : > { %v7523_v57 = vsel %vm2316_vm2, %v12062_v28, 0.0 }
0x20ef   : > { %7629 = vrot.lane.b32.xlu1 %v14183_v10, %s12448_s30 }
0x2101   : > { %7632 = vrot.lane.b32.xlu0 %v14202_v20, %s12448_s30 }
0x2113   : > { %7524 = vadd.xlane.f32.xlu1 %v7523_v57 }
0x2124   : > { %7685 = vrot.lane.b32.xlu1 %v14219_v55, %s12448_s30 }
0x2128   : > { %7682 = vrot.lane.b32.xlu1 %v14189_v61, %s12448_s30 }
0x2163   : > { %v7516_v17 = vpop.xlane.xlu0 %7515 }
0x2164   : > { %12063 = vrcp.f32 %v7516_v17 }
0x2167   : > { %v7519_v10 = vpop.xlane.xlu1 %7518 }
0x2168   : > { %12065 = vrcp.f32 %v7519_v10 }
0x216b   : > { %v7630_v61 = vpop.permute.xlu1 %7629 }
0x2171   : > { %v12064_v63 = vpop.eup %12063 }
0x2172   : > { %v7530_v4 = vmul.f32 %v12064_v63, %v12056_v6 }
0x2174   : > { %v7522_v36 = vpop.xlane.xlu0 %7521  ;;  %v7534_v44 = vmul.f32 %v7530_v4, %v14296_v37 }
0x2175   : > { %v12066_v0 = vpop.eup %12065  ;;  %12067 = vrcp.f32 %v7522_v36  ;;  %v14556_v36 = vld [vmem:[%s15100_s14] sm:$0xff] }
0x2176   : > { %v7531_v20 = vmul.f32 %v12066_v0, %v12058_v8 }
0x2178   : > { %v7535_v47 = vmul.f32 %v7531_v20, %v14301_v31  ;;  %v7633_v42 = vpop.permute.xlu0 %7632 }
0x2179   : > { %v7638_v55 = vsel %vm2213_vm1, %v7633_v42, 0 }
0x217a   : > { %v7538_v48 = vpack.c.bf16 %v7535_v47, %v7534_v44 }
0x217c   : > { %10924 = vmatmul.mubr.msk.bf16.vlgmr.msra.gmra.mxu0 %vm2316_vm2, %v7538_v48  ;;  %v14563_v48 = vld [vmem:[%s15100_s14 + $0x8] sm:$0xff] }
0x217d   : > { %10934 = vmatpush3.bf16.xpose.msra.mxu0 %v7638_v55  ;;  %10935 = vmatprep.mubr.msk.bf16.mxu0 %vm12447_vm0, %v15062_v12 }
0x217e   : > { %10945 = vmatprep.subr.bf16.mxu0 %v15062_v12 }
0x2182   : > { %v12068_v31 = vpop.eup %12067 }
0x2183   : > { %v7532_v6 = vmul.f32 %v12068_v31, %v12060_v50 }
0x2184   : > { %10936 = vmatmul.mubr.msk.bf16.vlgmr.msra.gmra.mxu0 %vm2213_vm1, %v7630_v61 }
0x2185   : > { %10947 = vmatprep.mubr.msk.bf16.mxu0 %vm12447_vm0, %v15062_v12  ;;  %v7536_v59 = vmul.f32 %v7532_v6, %v14316_v51 }
0x219c   : > { %v7525_v37 = vpop.xlane.xlu1 %7524 }
0x219d   : > { %12069 = vrcp.f32 %v7525_v37 }
0x21a0   : > { %v7686_v18 = vpop.permute.xlu1 %7685 }
0x21a1   : > { %v7691_v57 = vsel %vm2213_vm1, %v7686_v18, 0  ;;  %v14574_v18 = vld [vmem:[%s15100_s14 + $0x10] sm:$0xff] }
0x21a4   : > { %v7683_v17 = vpop.permute.xlu1 %7682 }
0x21aa   : > { %v12070_v8 = vpop.eup %12069 }
0x21ab   : > { %v7533_v38 = vmul.f32 %v12070_v8, %v12062_v28 }
0x21ad   : > { %v7537_v46 = vmul.f32 %v7533_v38, %v14321_v40 }
0x21af   : > { %v7539_v22 = vpack.c.bf16 %v7537_v46, %v7536_v59 }
0x21b1   : > { %10930 = vmatmul.mubr.msk.bf16.vlgmr.msra.gmra.mxu1 %vm2316_vm2, %v7539_v22 }
0x21b2   : > { %10940 = vmatpush3.bf16.xpose.msra.mxu1 %v7691_v57  ;;  %10941 = vmatprep.mubr.msk.bf16.mxu1 %vm12447_vm0, %v15062_v12 }
0x21b3   : > { %10951 = vmatprep.subr.bf16.mxu1 %v15062_v12 }
0x21b9   : > { %10942 = vmatmul.mubr.msk.bf16.vlgmr.msra.gmra.mxu1 %vm2213_vm1, %v7683_v17 }
0x21ba   : > { %10953 = vmatprep.mubr.msk.bf16.mxu1 %vm12447_vm0, %v15062_v12 }
0x223c   : > { %v14549_v51 = vpop.f32.mrf.mxu0 }
0x223e   : > { %v10925_v40 = vpop.f32.mrf.mxu0 }
0x2240   : > { %v14551_v50 = vpop.f32.mrf.mxu0 }
0x2242   : > { %v10926_v28 = vpop.f32.mrf.mxu0 }
0x2244   : > { %v7674_v10 = vpop.f32.mrf.mxu0 }
0x2245   : > { %v7734_v63 = vmul.f32 0.125, %v7674_v10  ;;  %v14581_v10 = vld [vmem:[%s15100_s14 + $0x18] sm:$0xff] }
0x2246   : > { %v10937_v4 = vpop.f32.mrf.mxu0 }
0x2247   : > { %v7738_v0 = vadd.f32 %v14556_v36, %v7734_v63 }
0x2248   : > { %v7677_v20 = vpop.f32.mrf.mxu0 }
0x2249   : > { %v7735_v44 = vmul.f32 0.125, %v7677_v20  ;;  %v7742_v47 = vsel %vm2316_vm2, %v7738_v0, -inf }
0x224a   : > { %7743 = vmax.xlane.f32.xlu0 %v7742_v47  ;;  %v10938_v42 = vpop.f32.mrf.mxu0 }
0x224b   : > { %v7739_v55 = vadd.f32 %v14563_v48, %v7735_v44 }
0x224d   : > { %v7745_v61 = vsel %vm2316_vm2, %v7739_v55, -inf }
0x224e   : > { %7746 = vmax.xlane.f32.xlu1 %v7745_v61 }
0x2271   : > { %v14567_v37 = vpop.f32.mrf.mxu1 }
0x2273   : > { %v10931_v31 = vpop.f32.mrf.mxu1 }
0x2275   : > { %v14569_v6 = vpop.f32.mrf.mxu1 }
0x2277   : > { %v10932_v8 = vpop.f32.mrf.mxu1 }
0x2279   : > { %v7727_v38 = vpop.f32.mrf.mxu1 }
0x227a   : > { %v7736_v59 = vmul.f32 0.125, %v7727_v38 }
0x227b   : > { %v10943_v46 = vpop.f32.mrf.mxu1 }
0x227c   : > { %v7740_v22 = vadd.f32 %v14574_v18, %v7736_v59 }
0x227d   : > { %v7730_v57 = vpop.f32.mrf.mxu1 }
0x227e   : > { %v7737_v17 = vmul.f32 0.125, %v7730_v57  ;;  %v7748_v40 = vsel %vm2316_vm2, %v7740_v22, -inf }
0x227f   : > { %7749 = vmax.xlane.f32.xlu0 %v7748_v40  ;;  %v10944_v28 = vpop.f32.mrf.mxu1 }
0x2280   : > { %v7741_v63 = vadd.f32 %v14581_v10, %v7737_v17 }
0x2282   : > { %v7751_v4 = vsel %vm2316_vm2, %v7741_v63, -inf }
0x2283   : > { %7752 = vmax.xlane.f32.xlu0 %v7751_v4 }
0x22d3   : > { %v7744_v20 = vpop.xlane.xlu0 %7743 }
0x22d4   : > { %v7754_v44 = vsub.f32 %v7738_v0, %v7744_v20 }
0x22d6   : > { %v7758_v47 = vmul.f32 1.442695, %v7754_v44 }
0x22d7   : > { %v7747_v42 = vpop.xlane.xlu1 %7746 }
0x22d8   : > { %12071 = vpow2.f32 %v7758_v47  ;;  %v7755_v61 = vsub.f32 %v7739_v55, %v7747_v42 }
0x22da   : > { %v7760_v31 = vmul.f32 1.442695, %v7755_v61 }
0x22dc   : > { %12073 = vpow2.f32 %v7760_v31 }
0x22e5   : > { %v12072_v8 = vpop.eup %12071 }
0x22e6   : > { %v7766_v38 = vsel %vm2316_vm2, %v12072_v8, 0.0 }
0x22e7   : > { %7767 = vadd.xlane.f32.xlu0 %v7766_v38 }
0x22e9   : > { %v12074_v59 = vpop.eup %12073 }
0x22ea   : > { %v7769_v46 = vsel %vm2316_vm2, %v12074_v59, 0.0 }
0x22eb   : > { %7770 = vadd.xlane.f32.xlu1 %v7769_v46 }
0x2308   : > { %v7750_v57 = vpop.xlane.xlu0 %7749 }
0x2309   : > { %v7756_v17 = vsub.f32 %v7740_v22, %v7750_v57  ;;  %v14596_v57 = vld [vmem:[%s15101_s1 + $0x8] sm:$0xff] }
0x230b   : > { %v7762_v40 = vmul.f32 1.442695, %v7756_v17 }
0x230c   : > { %v7753_v28 = vpop.xlane.xlu0 %7752 }
0x230d   : > { %12075 = vpow2.f32 %v7762_v40  ;;  %v7757_v0 = vsub.f32 %v7741_v63, %v7753_v28 }
0x230f   : > { %v7764_v4 = vmul.f32 1.442695, %v7757_v0 }
0x2311   : > { %12077 = vpow2.f32 %v7764_v4 }
0x231a   : > { %v12076_v20 = vpop.eup %12075 }
0x231b   : > { %v7772_v55 = vsel %vm2316_vm2, %v12076_v20, 0.0 }
0x231c   : > { %7773 = vadd.xlane.f32.xlu0 %v7772_v55 }
0x231e   : > { %v12078_v44 = vpop.eup %12077 }
0x231f   : > { %v7775_v47 = vsel %vm2316_vm2, %v12078_v44, 0.0 }
0x2320   : > { %7776 = vadd.xlane.f32.xlu1 %v7775_v47 }
0x2331   : > { %7841 = vrot.lane.b32.xlu1 %v14247_v45, %s12448_s30 }
0x2332   : > { %7793 = vrot.lane.b32.xlu0 %v14237_v30, %s12448_s30  ;;  %v14602_v30 = vld [vmem:[%s15101_s1] sm:$0xff] }
0x2370   : > { %v7768_v42 = vpop.xlane.xlu0 %7767 }
0x2374   : > { %v7771_v22 = vpop.xlane.xlu1 %7770 }
0x2375   : > { %12079 = vrcp.f32 %v7771_v22 }
0x2376   : > { %12081 = vrcp.f32 %v7768_v42  ;;  %v14622_v42 = vld [vmem:[%s15101_s1 + $0x10] sm:$0xff] }
0x2382   : > { %v12080_v63 = vpop.eup %12079 }
0x2383   : > { %v12082_v61 = vpop.eup %12081  ;;  %v7783_v31 = vmul.f32 %v12080_v63, %v12074_v59  ;;  %v7892_v59 = vsel %vm2213_vm1, %v14208_v19, 0 }
0x2384   : > { %v7782_v38 = vmul.f32 %v12082_v61, %v12072_v8 }
0x2385   : > { %v7787_v45 = vmul.f32 %v14596_v57, %v7783_v31 }
0x2386   : > { %v7786_v17 = vmul.f32 %v14602_v30, %v7782_v38  ;;  %v7939_v38 = vsel %vm2213_vm1, %v14223_v5, 0 }
0x2388   : > { %v7790_v8 = vpack.c.bf16 %v7787_v45, %v7786_v17 }
0x23a5   : > { %v7774_v46 = vpop.xlane.xlu0 %7773 }
0x23a6   : > { %12083 = vrcp.f32 %v7774_v46 }
0x23a9   : > { %v7777_v40 = vpop.xlane.xlu1 %7776  ;;  %v7794_v28 = vpop.permute.xlu0 %7793 }
0x23aa   : > { %12085 = vrcp.f32 %v7777_v40  ;;  %10946 = vmatpush3.bf16.msra.mxu0 %v7794_v28 }
0x23ab   : > { %10957 = vmatprep.subr.bf16.mxu0 %v15062_v12 }
0x23ad   : > { %v7842_v0 = vpop.permute.xlu1 %7841  ;;  %10948 = vmatmul.mubr.msk.bf16.vlgmr.msra.gmra.mxu0 %vm2316_vm2, %v7790_v8 }
0x23ae   : > { %10952 = vmatpush3.bf16.msra.mxu1 %v7842_v0  ;;  %10958 = vmatpush3.bf16.xpose.msra.mxu0 %v7892_v59 }
0x23af   : > { %10959 = vmatprep.mubr.msk.bf16.mxu0 %vm12447_vm0, %v15062_v12  ;;  %10969 = vmatprep.subr.bf16.mxu0 %v15062_v12 }
0x23b0   : > { %10963 = vmatprep.subr.bf16.mxu1 %v15062_v12 }
0x23b3   : > { %v12084_v4 = vpop.eup %12083 }
0x23b4   : > { %v7784_v55 = vmul.f32 %v12084_v4, %v12076_v20  ;;  %v14628_v20 = vld [vmem:[%s15101_s1 + $0x18] sm:$0xff] }
0x23b5   : > { %10960 = vmatmul.mubr.msk.bf16.vlgmr.msra.gmra.mxu0 %vm2213_vm1, %v14187_v60 }
0x23b6   : > { %10970 = vmatpush3.bf16.msra.mxu0 %v14241_v56  ;;  %10971 = vmatprep.mubr.msk.bf16.mxu0 %vm12447_vm0, %v15062_v12  ;;  %v7788_v63 = vmul.f32 %v14622_v42, %v7784_v55 }
0x23b7   : > { %v12086_v47 = vpop.eup %12085  ;;  %10981 = vmatprep.subr.bf16.mxu0 %v15062_v12 }
0x23b8   : > { %v7785_v22 = vmul.f32 %v12086_v47, %v12078_v44  ;;  %v14639_v44 = vpack.c.bf16 %v14262_v53, %v14245_v29 }
0x23ba   : > { %v7789_v61 = vmul.f32 %v14628_v20, %v7785_v22 }
0x23bc   : > { %v7791_v31 = vpack.c.bf16 %v7789_v61, %v7788_v63 }
0x23be   : > { %10954 = vmatmul.mubr.msk.bf16.vlgmr.msra.gmra.mxu1 %vm2316_vm2, %v7791_v31 }
0x23bf   : > { %10964 = vmatpush3.bf16.xpose.msra.mxu1 %v7939_v38  ;;  %10965 = vmatprep.mubr.msk.bf16.mxu1 %vm12447_vm0, %v15062_v12 }
0x23c0   : > { %10975 = vmatprep.subr.bf16.mxu1 %v15062_v12 }
0x23c6   : > { %10966 = vmatmul.mubr.msk.bf16.vlgmr.msra.gmra.mxu1 %vm2213_vm1, %v14191_v9 }
0x23c7   : > { %10976 = vmatpush3.bf16.msra.mxu1 %v14639_v44  ;;  %10977 = vmatprep.mubr.msk.bf16.mxu1 %vm12447_vm0, %v15062_v12 }
0x23c8   : > { %10987 = vmatprep.subr.bf16.mxu1 %v15062_v12 }
0x246d   : > { %v14647_v46 = vpop.f32.mrf.mxu0 }
0x246f   : > { %v10949_v45 = vpop.f32.mrf.mxu0 }
0x2471   : > { %v14649_v17 = vpop.f32.mrf.mxu0 }
0x2473   : > { %v10950_v29 = vpop.f32.mrf.mxu0 }
0x2475   : > { %v7928_v53 = vpop.f32.mrf.mxu0 }
0x2476   : > { %v7982_v28 = vmul.f32 0.125, %v7928_v53 }
0x2477   : > { %v10961_v8 = vpop.f32.mrf.mxu0 }
0x2478   : > { %v7986_v59 = vadd.f32 %v14556_v36, %v7982_v28 }
0x2479   : > { %v7931_v0 = vpop.f32.mrf.mxu0 }
0x247a   : > { %v7983_v4 = vmul.f32 0.125, %v7931_v0  ;;  %v7990_v55 = vsel %vm2316_vm2, %v7986_v59, -inf }
0x247b   : > { %7991 = vmax.xlane.f32.xlu1 %v7990_v55  ;;  %v10962_v47 = vpop.f32.mrf.mxu0 }
0x247c   : > { %v7987_v22 = vadd.f32 %v14563_v48, %v7983_v4 }
0x247e   : > { %v14656_v63 = vpop.f32.mrf.mxu1  ;;  %v7993_v61 = vsel %vm2316_vm2, %v7987_v22, -inf }
0x247f   : > { %7994 = vmax.xlane.f32.xlu0 %v7993_v61 }
0x2480   : > { %v10955_v31 = vpop.f32.mrf.mxu1 }
0x2482   : > { %v14659_v38 = vpop.f32.mrf.mxu1 }
0x2484   : > { %v10956_v29 = vpop.f32.mrf.mxu1 }
0x2486   : > { %v7975_v53 = vpop.f32.mrf.mxu1 }
0x2487   : > { %v7984_v28 = vmul.f32 0.125, %v7975_v53 }
0x2488   : > { %v10967_v8 = vpop.f32.mrf.mxu1 }
0x2489   : > { %v7988_v0 = vadd.f32 %v14574_v18, %v7984_v28 }
0x248a   : > { %v7978_v55 = vpop.f32.mrf.mxu1 }
0x248b   : > { %v7985_v47 = vmul.f32 0.125, %v7978_v55  ;;  %v7996_v4 = vsel %vm2316_vm2, %v7988_v0, -inf }
0x248c   : > { %7997 = vmax.xlane.f32.xlu0 %v7996_v4  ;;  %v10968_v24 = vpop.f32.mrf.mxu1 }
0x248d   : > { %v7989_v61 = vadd.f32 %v14581_v10, %v7985_v47 }
0x248f   : > { %v7999_v31 = vsel %vm2316_vm2, %v7989_v61, -inf }
0x2490   : > { %8000 = vmax.xlane.f32.xlu1 %v7999_v31 }
0x2504   : > { %v7992_v40 = vpop.xlane.xlu1 %7991 }
0x2505   : > { %v8002_v39 = vsub.f32 %v7986_v59, %v7992_v40 }
0x2507   : > { %v8006_v45 = vmul.f32 1.442695, %v8002_v39 }
0x2508   : > { %v7995_v29 = vpop.xlane.xlu0 %7994 }
0x2509   : > { %12087 = vpow2.f32 %v8006_v45  ;;  %v8003_v53 = vsub.f32 %v7987_v22, %v7995_v29 }
0x250b   : > { %v8008_v8 = vmul.f32 1.442695, %v8003_v53 }
0x250d   : > { %12089 = vpow2.f32 %v8008_v8 }
0x2515   : > { %v7998_v28 = vpop.xlane.xlu0 %7997 }
0x2516   : > { %v12088_v33 = vpop.eup %12087  ;;  %v8004_v55 = vsub.f32 %v7988_v0, %v7998_v28 }
0x2517   : > { %v8014_v12 = vsel %vm2316_vm2, %v12088_v33, 0.0 }
0x2518   : > { %v8010_v4 = vmul.f32 1.442695, %v8004_v55  ;;  %8015 = vadd.xlane.f32.xlu0 %v8014_v12 }
0x2519   : > { %v8001_v40 = vpop.xlane.xlu1 %8000 }
0x251a   : > { %v12090_v24 = vpop.eup %12089  ;;  %12091 = vpow2.f32 %v8010_v4  ;;  %v8005_v59 = vsub.f32 %v7989_v61, %v8001_v40 }
0x251b   : > { %v8017_v47 = vsel %vm2316_vm2, %v12090_v24, 0.0 }
0x251c   : > { %8018 = vadd.xlane.f32.xlu1 %v8017_v47  ;;  %v8012_v22 = vmul.f32 1.442695, %v8005_v59 }
0x251e   : > { %12093 = vpow2.f32 %v8012_v22 }
0x2527   : > { %v12092_v31 = vpop.eup %12091 }
0x2528   : > { %v8020_v39 = vsel %vm2316_vm2, %v12092_v31, 0.0 }
0x2529   : > { %8021 = vadd.xlane.f32.xlu0 %v8020_v39 }
0x252b   : > { %v12094_v12 = vpop.eup %12093 }
0x252c   : > { %v8023_v45 = vsel %vm2316_vm2, %v12094_v12, 0.0 }
0x252d   : > { %8129 = vrot.lane.b32.xlu1 %v14187_v60, %s12448_s30 }
0x253f   : > { %8132 = vrot.lane.b32.xlu0 %v14208_v19, %s12448_s30 }
0x2551   : > { %8024 = vadd.xlane.f32.xlu1 %v8023_v45 }
0x2562   : > { %8185 = vrot.lane.b32.xlu1 %v14223_v5, %s12448_s30 }
0x2566   : > { %8182 = vrot.lane.b32.xlu1 %v14191_v9, %s12448_s30  ;;  %v15102_v9 = vmov 0.0  }
0x25a1   : > { %v8016_v0 = vpop.xlane.xlu0 %8015 }
0x25a2   : > { %12095 = vrcp.f32 %v8016_v0 }
0x25a5   : > { %v8019_v60 = vpop.xlane.xlu1 %8018 }
0x25a6   : > { %12097 = vrcp.f32 %v8019_v60 }
0x25af   : > { %v12096_v61 = vpop.eup %12095 }
0x25b0   : > { %v8030_v29 = vmul.f32 %v12096_v61, %v12088_v33  ;;  %v8130_v33 = vpop.permute.xlu1 %8129 }
0x25b2   : > { %v8022_v53 = vpop.xlane.xlu0 %8021  ;;  %v8034_v28 = vmul.f32 %v14602_v30, %v8030_v29 }
0x25b3   : > { %v12098_v8 = vpop.eup %12097  ;;  %12099 = vrcp.f32 %v8022_v53 }
0x25b4   : > { %v8031_v19 = vmul.f32 %v12098_v8, %v12090_v24 }
0x25b6   : > { %v8035_v55 = vmul.f32 %v14596_v57, %v8031_v19  ;;  %v8133_v4 = vpop.permute.xlu0 %8132 }
0x25b7   : > { %v8138_v5 = vsel %vm2213_vm1, %v8133_v4, 0 }
0x25b8   : > { %v8038_v47 = vpack.c.bf16 %v8035_v55, %v8034_v28 }
0x25ba   : > { %10972 = vmatmul.mubr.msk.bf16.vlgmr.msra.gmra.mxu0 %vm2316_vm2, %v8038_v47 }
0x25bb   : > { %10982 = vmatpush3.bf16.xpose.msra.mxu0 %v8138_v5  ;;  %10983 = vmatprep.mubr.msk.bf16.mxu0 %vm12447_vm0, %v15102_v9 }
0x25bc   : > { %10993 = vmatprep.subr.bf16.mxu0 %v15102_v9 }
0x25c0   : > { %v12100_v39 = vpop.eup %12099 }
0x25c1   : > { %v8032_v40 = vmul.f32 %v12100_v39, %v12092_v31 }
0x25c2   : > { %10984 = vmatmul.mubr.msk.bf16.vlgmr.msra.gmra.mxu0 %vm2213_vm1, %v8130_v33 }
0x25c3   : > { %10995 = vmatprep.mubr.msk.bf16.mxu0 %vm12447_vm0, %v15102_v9  ;;  %v8036_v45 = vmul.f32 %v14622_v42, %v8032_v40 }
0x25da   : > { %v8025_v24 = vpop.xlane.xlu1 %8024 }
0x25db   : > { %12101 = vrcp.f32 %v8025_v24 }
0x25de   : > { %v8186_v60 = vpop.permute.xlu1 %8185 }
0x25df   : > { %v8191_v29 = vsel %vm2213_vm1, %v8186_v60, 0 }
0x25e2   : > { %v8183_v53 = vpop.permute.xlu1 %8182 }
0x25e8   : > { %v12102_v59 = vpop.eup %12101 }
0x25e9   : > { %v8033_v22 = vmul.f32 %v12102_v59, %v12094_v12 }
0x25eb   : > { %v8037_v0 = vmul.f32 %v14628_v20, %v8033_v22 }
0x25ed   : > { %v8039_v61 = vpack.c.bf16 %v8037_v0, %v8036_v45 }
0x25ef   : > { %10978 = vmatmul.mubr.msk.bf16.vlgmr.msra.gmra.mxu1 %vm2316_vm2, %v8039_v61 }
0x25f0   : > { %10988 = vmatpush3.bf16.xpose.msra.mxu1 %v8191_v29  ;;  %10989 = vmatprep.mubr.msk.bf16.mxu1 %vm12447_vm0, %v15102_v9 }
0x25f1   : > { %10999 = vmatprep.subr.bf16.mxu1 %v15102_v9 }
0x25f7   : > { %10990 = vmatmul.mubr.msk.bf16.vlgmr.msra.gmra.mxu1 %vm2213_vm1, %v8183_v53 }
0x25f8   : > { %11001 = vmatprep.mubr.msk.bf16.mxu1 %vm12447_vm0, %v15102_v9 }
0x267a   : > { %v14699_v31 = vpop.f32.mrf.mxu0 }
0x267c   : > { %v10973_v12 = vpop.f32.mrf.mxu0 }
0x267e   : > { %v14701_v8 = vpop.f32.mrf.mxu0 }
0x2680   : > { %v10974_v19 = vpop.f32.mrf.mxu0 }
0x2682   : > { %v8174_v28 = vpop.f32.mrf.mxu0 }
0x2683   : > { %v8234_v55 = vmul.f32 0.125, %v8174_v28 }
0x2684   : > { %v10985_v4 = vpop.f32.mrf.mxu0 }
0x2685   : > { %v8238_v47 = vadd.f32 %v14556_v36, %v8234_v55 }
0x2686   : > { %v8177_v5 = vpop.f32.mrf.mxu0 }
0x2687   : > { %v8235_v33 = vmul.f32 0.125, %v8177_v5  ;;  %v8242_v24 = vsel %vm2316_vm2, %v8238_v47, -inf }
0x2688   : > { %8243 = vmax.xlane.f32.xlu0 %v8242_v24  ;;  %v10986_v39 = vpop.f32.mrf.mxu0 }
0x2689   : > { %v8239_v40 = vadd.f32 %v14563_v48, %v8235_v33 }
0x268b   : > { %v8245_v9 = vsel %vm2316_vm2, %v8239_v40, -inf }
0x268c   : > { %8246 = vmax.xlane.f32.xlu1 %v8245_v9 }
0x26af   : > { %v14707_v59 = vpop.f32.mrf.mxu1 }
0x26b1   : > { %v10979_v22 = vpop.f32.mrf.mxu1 }
0x26b3   : > { %v14709_v45 = vpop.f32.mrf.mxu1 }
0x26b5   : > { %v10980_v0 = vpop.f32.mrf.mxu1 }
0x26b7   : > { %v8227_v60 = vpop.f32.mrf.mxu1 }
0x26b8   : > { %v8236_v61 = vmul.f32 0.125, %v8227_v60 }
0x26b9   : > { %v10991_v36 = vpop.f32.mrf.mxu1 }
0x26ba   : > { %v8240_v29 = vadd.f32 %v14574_v18, %v8236_v61 }
0x26bb   : > { %v8230_v53 = vpop.f32.mrf.mxu1 }
0x26bc   : > { %v8237_v12 = vmul.f32 0.125, %v8230_v53  ;;  %v8248_v19 = vsel %vm2316_vm2, %v8240_v29, -inf }
0x26bd   : > { %8249 = vmax.xlane.f32.xlu0 %v8248_v19  ;;  %v10992_v48 = vpop.f32.mrf.mxu1 }
0x26be   : > { %v8241_v28 = vadd.f32 %v14581_v10, %v8237_v12 }
0x26c0   : > { %v8251_v55 = vsel %vm2316_vm2, %v8241_v28, -inf }
0x26c1   : > { %8252 = vmax.xlane.f32.xlu0 %v8251_v55 }
0x2711   : > { %v8244_v4 = vpop.xlane.xlu0 %8243 }
0x2712   : > { %v8254_v5 = vsub.f32 %v8238_v47, %v8244_v4  ;;  %v15105_v4 = vpack.i.bf16 %v14649_v17, %v14647_v46 }
0x2714   : > { %v8258_v33 = vmul.f32 1.442695, %v8254_v5 }
0x2715   : > { %v8247_v24 = vpop.xlane.xlu1 %8246 }
0x2716   : > { %12103 = vpow2.f32 %v8258_v33  ;;  %v8255_v39 = vsub.f32 %v8239_v40, %v8247_v24  ;;  %v11663_v24 = vld [vmem:[%s12852_s11 + $0x70] ss:$8 sps:$4 sm:$0xff]  }
0x2718   : > { %v8260_v9 = vmul.f32 1.442695, %v8255_v39 }
0x271a   : > { %12105 = vpow2.f32 %v8260_v9  ;;  %v11668_v9 = vld [vmem:[%s12852_s11 + $0x64] ss:$8 sps:$4 sm:$0xff]  }
0x2723   : > { %v12104_v18 = vpop.eup %12103 }
0x2724   : > { %v8266_v22 = vsel %vm2316_vm2, %v12104_v18, 0.0 }
0x2725   : > { %8267 = vadd.xlane.f32.xlu0 %v8266_v22  ;;  %v11671_v22 = vld [vmem:[%s12852_s11 + $0x54] ss:$8 sps:$4 sm:$0xff]  }
0x2727   : > { %v12106_v0 = vpop.eup %12105 }
0x2728   : > { %v8269_v60 = vsel %vm2316_vm2, %v12106_v0, 0.0 }
0x2729   : > { %8270 = vadd.xlane.f32.xlu1 %v8269_v60 }
0x2746   : > { %v8250_v10 = vpop.xlane.xlu0 %8249 }
0x2747   : > { %v8256_v61 = vsub.f32 %v8240_v29, %v8250_v10  ;;  %v15103_v29 = vpack.i.bf16 %v14499_v14, %v14497_v16  ;;  %v15107_v16 = vpack.i.bf16 %v14659_v38, %v14656_v63  ;;  %v11669_v10 = vld [vmem:[%s12852_s11 + $0x50] ss:$8 sps:$4 sm:$0xff]  }
0x2749   : > { %v8262_v36 = vmul.f32 1.442695, %v8256_v61 }
0x274a   : > { %v8253_v53 = vpop.xlane.xlu0 %8252 }
0x274b   : > { %12107 = vpow2.f32 %v8262_v36  ;;  %v8257_v47 = vsub.f32 %v8241_v28, %v8253_v53  ;;  %v15104_v28 = vpack.i.bf16 %v14393_v58, %v14391_v21  ;;  %v11674_v36 = vld [vmem:[%s12852_s11 + $0x44] ss:$8 sps:$4 sm:$0xff]  }
0x274d   : > { %v8264_v12 = vmul.f32 1.442695, %v8257_v47 }
0x274f   : > { %12109 = vpow2.f32 %v8264_v12 }
0x2758   : > { %v12108_v19 = vpop.eup %12107 }
0x2759   : > { %v8272_v40 = vsel %vm2316_vm2, %v12108_v19, 0.0 }
0x275a   : > { %8273 = vadd.xlane.f32.xlu0 %v8272_v40 }
0x275c   : > { %v12110_v48 = vpop.eup %12109 }
0x275d   : > { %v8275_v55 = vsel %vm2316_vm2, %v12110_v48, 0.0 }
0x275e   : > { %8276 = vadd.xlane.f32.xlu1 %v8275_v55  ;;  %v11672_v55 = vld [vmem:[%s12852_s11 + $0x40] ss:$8 sps:$4 sm:$0xff]  }
0x276f   : > { %8341 = vrot.lane.b32.xlu1 %v14639_v44, %s12448_s30 }
0x2770   : > { %8293 = vrot.lane.b32.xlu0 %v14241_v56, %s12448_s30  ;;  %v15106_v56 = vpack.i.bf16 %v14403_v32, %v14400_v52  ;;  %v11665_v32 = vld [vmem:[%s12852_s11 + $0x74] ss:$8 sps:$4 sm:$0xff]  }
0x2773   : > { %11138 = vrot.lane.b32.xlu1 %v15103_v29, %s12448_s30 }
0x2777   : > { %11143 = vrot.lane.b32.xlu1 %v15104_v28, %s12448_s30  ;;  %v11677_v28 = vld [vmem:[%s12852_s11 + $0x34] ss:$8 sps:$4 sm:$0xff]  }
0x277b   : > { %11148 = vrot.lane.b32.xlu1 %v15105_v4, %s12448_s30 }
0x277f   : > { %11163 = vrot.lane.b32.xlu1 %v15106_v56, %s12448_s30 }
0x2783   : > { %11173 = vrot.lane.b32.xlu1 %v15107_v16, %s12448_s30 }
0x27ae   : > { %v8268_v44 = vpop.xlane.xlu0 %8267 }
0x27b2   : > { %v8271_v14 = vpop.xlane.xlu1 %8270 }
0x27b3   : > { %12111 = vrcp.f32 %v8271_v14  ;;  %v11678_v14 = vld [vmem:[%s12852_s11 + $0x20] ss:$8 sps:$4 sm:$0xff]  }
0x27b4   : > { %12113 = vrcp.f32 %v8268_v44  ;;  %v11684_v44 = vld [vmem:[%s12852_s11] ss:$8 sps:$4 sm:$0xff]  }
0x27c0   : > { %v12112_v21 = vpop.eup %12111 }
0x27c1   : > { %v12114_v58 = vpop.eup %12113  ;;  %v8283_v46 = vmul.f32 %v12112_v21, %v12106_v0  ;;  %v11689_v21 = vld [vmem:[%s12852_s11 + $0xf4] ss:$8 sps:$4 sm:$0xff]  }
0x27c2   : > { %v8282_v17 = vmul.f32 %v12114_v58, %v12104_v18  ;;  %v11687_v58 = vld [vmem:[%s12852_s11 + $0xf0] ss:$8 sps:$4 sm:$0xff]  }
0x27c3   : > { %v8287_v52 = vmul.f32 %v14596_v57, %v8283_v46  ;;  %v11666_v57 = vld [vmem:[%s12852_s11 + $0x60] ss:$8 sps:$4 sm:$0xff]   ;;  %v11692_v46 = vld [vmem:[%s12852_s11 + $0xe4] ss:$8 sps:$4 sm:$0xff]  }
0x27c4   : > { %v8286_v63 = vmul.f32 %v14602_v30, %v8282_v17  ;;  %v11690_v17 = vld [vmem:[%s12852_s11 + $0xe0] ss:$8 sps:$4 sm:$0xff]  }
0x27c6   : > { %v8290_v39 = vpack.c.bf16 %v8287_v52, %v8286_v63  ;;  %v11693_v52 = vld [vmem:[%s12852_s11 + $0xd0] ss:$8 sps:$4 sm:$0xff]   ;;  %v11696_v63 = vld [vmem:[%s12852_s11 + $0xc0] ss:$8 sps:$4 sm:$0xff]  }
0x27e3   : > { %v8274_v5 = vpop.xlane.xlu0 %8273 }
0x27e4   : > { %12115 = vrcp.f32 %v8274_v5  ;;  %v11695_v5 = vld [vmem:[%s12852_s11 + $0xd4] ss:$8 sps:$4 sm:$0xff]  }
0x27e7   : > { %v8277_v38 = vpop.xlane.xlu1 %8276  ;;  %v8294_v33 = vpop.permute.xlu0 %8293 }
0x27e8   : > { %12117 = vrcp.f32 %v8277_v38  ;;  %10994 = vmatpush3.bf16.msra.mxu0 %v8294_v33  ;;  %v11701_v38 = vld [vmem:[%s12852_s11 + $0xb4] ss:$8 sps:$4 sm:$0xff]   ;;  %v11699_v33 = vld [vmem:[%s12852_s11 + $0xb0] ss:$8 sps:$4 sm:$0xff]  }
0x27e9   : > { %8860 = vmatprep.subr.bf16.mxu0 %v11665_v32  ;;  %v11698_v32 = vld [vmem:[%s12852_s11 + $0xc4] ss:$8 sps:$4 sm:$0xff]  }
0x27eb   : > { %v8342_v18 = vpop.permute.xlu1 %8341  ;;  %10996 = vmatmul.mubr.msk.bf16.vlgmr.msra.gmra.mxu0 %vm2316_vm2, %v8290_v39  ;;  %v11702_v39 = vld [vmem:[%s12852_s11 + $0xa0] ss:$8 sps:$4 sm:$0xff]  }
0x27ec   : > { %11000 = vmatpush3.bf16.msra.mxu1 %v8342_v18  ;;  %8861 = vmatpush1.bf16.msra.mxu0 %v11663_v24  ;;  %v11704_v24 = vld [vmem:[%s12852_s11 + $0xa4] ss:$8 sps:$4 sm:$0xff]  }
0x27ed   : > { %8862 = vmatprep.subr.bf16.mxu0 %v11668_v9  ;;  %v11707_v9 = vld [vmem:[%s12852_s11 + $0x94] ss:$8 sps:$4 sm:$0xff]  }
0x27ef   : > { %v11139_v30 = vpop.permute.xlu1 %11138 }
0x27f0   : > { %v11141_v0 = vunpack.i.h.bf16 %v11139_v30  ;;  %v11140_v60 = vunpack.i.l.bf16 %v11139_v30  ;;  %8863 = vmatpush1.bf16.msra.mxu0 %v11666_v57  ;;  %v11705_v57 = vld [vmem:[%s12852_s11 + $0x90] ss:$8 sps:$4 sm:$0xff]  }
0x27f1   : > { %v12116_v61 = vpop.eup %12115  ;;  %8864 = vmatprep.subr.bf16.mxu0 %v11671_v22  ;;  %v11710_v22 = vld [vmem:[%s12852_s11 + $0x84] ss:$8 sps:$4 sm:$0xff]  }
0x27f2   : > { %v8456_v53 = vsel %vm2213_vm1, %v14443_v15, %v11140_v60  ;;  %v8457_v47 = vsel %vm2213_vm1, %v14445_v49, %v11141_v0  ;;  %v8284_v40 = vmul.f32 %v12116_v61, %v12108_v19  ;;  %v11675_v49 = vld [vmem:[%s12852_s11 + $0x30] ss:$8 sps:$4 sm:$0xff]   ;;  %v11680_v19 = vld [vmem:[%s12852_s11 + $0x24] ss:$8 sps:$4 sm:$0xff]   ;;  %v11708_v60 = vld [vmem:[%s12852_s11 + $0x80] ss:$8 sps:$4 sm:$0xff]  }
0x27f3   : > { %v8469_v12 = vpack.c.bf16 %v8457_v47, %v8456_v53  ;;  %v11144_v18 = vpop.permute.xlu1 %11143  ;;  %v11713_v53 = vld [vmem:[%s12852_s11 + $0x174] ss:$8 sps:$4 sm:$0xff]   ;;  %v11711_v47 = vld [vmem:[%s12852_s11 + $0x170] ss:$8 sps:$4 sm:$0xff]  }
0x27f4   : > { %8865 = vmatpush1.bf16.msra.mxu0 %v11669_v10  ;;  %v8288_v56 = vmul.f32 %v14622_v42, %v8284_v40  ;;  %v11681_v42 = vld [vmem:[%s12852_s11 + $0x10] ss:$8 sps:$4 sm:$0xff]   ;;  %v11146_v30 = vunpack.i.h.bf16 %v11144_v18  ;;  %v11145_v0 = vunpack.i.l.bf16 %v11144_v18  ;;  %8913 = vmatprep.subr.bf16.mxu1 %v11713_v53  ;;  %v11714_v40 = vld [vmem:[%s12852_s11 + $0x160] ss:$8 sps:$4 sm:$0xff]  }
0x27f5   : > { %v12118_v29 = vpop.eup %12117  ;;  %8892 = vmatprep.mubr.bf16.mxu0 %v8469_v12  ;;  %8866 = vmatprep.subr.bf16.mxu0 %v11674_v36  ;;  %v11716_v12 = vld [vmem:[%s12852_s11 + $0x164] ss:$8 sps:$4 sm:$0xff]  }
0x27f6   : > { %v8285_v4 = vmul.f32 %v12118_v29, %v12110_v48  ;;  %v11683_v48 = vld [vmem:[%s12852_s11 + $0x14] ss:$8 sps:$4 sm:$0xff]   ;;  %v8453_v10 = vsel %vm2213_vm1, %v14335_v3, %v11146_v30  ;;  %v8452_v61 = vsel %vm2213_vm1, %v14333_v27, %v11145_v0  ;;  %v11717_v3 = vld [vmem:[%s12852_s11 + $0x150] ss:$8 sps:$4 sm:$0xff]   ;;  %v11722_v27 = vld [vmem:[%s12852_s11 + $0x144] ss:$8 sps:$4 sm:$0xff]   ;;  %v15108_v0 = vpack.i.bf16 %v14509_v35, %v14506_v41 }
0x27f7   : > { %v8468_v36 = vpack.c.bf16 %v8453_v10, %v8452_v61  ;;  %v11720_v29 = vld [vmem:[%s12852_s11 + $0x140] ss:$8 sps:$4 sm:$0xff]  }
0x27f8   : > { %v8289_v15 = vmul.f32 %v14628_v20, %v8285_v4  ;;  %8867 = vmatpush1.bf16.msra.mxu0 %v11672_v55  ;;  %v11686_v20 = vld [vmem:[%s12852_s11 + $0x4] ss:$8 sps:$4 sm:$0xff]   ;;  %v11719_v55 = vld [vmem:[%s12852_s11 + $0x154] ss:$8 sps:$4 sm:$0xff]   ;;  %v11723_v4 = vld [vmem:[%s12852_s11 + $0x130] ss:$8 sps:$4 sm:$0xff]  }
0x27f9   : > { %8868 = vmatprep.subr.bf16.mxu0 %v11677_v28  ;;  %v11725_v28 = vld [vmem:[%s12852_s11 + $0x134] ss:$8 sps:$4 sm:$0xff]  }
0x27fa   : > { %v8291_v16 = vpack.c.bf16 %v8289_v15, %v8288_v56  ;;  %v11728_v56 = vld [vmem:[%s12852_s11 + $0x124] ss:$8 sps:$4 sm:$0xff]   ;;  %v11726_v15 = vld [vmem:[%s12852_s11 + $0x120] ss:$8 sps:$4 sm:$0xff]  }
0x27fc   : > { %11002 = vmatmul.mubr.msk.bf16.vlgmr.msra.gmra.mxu1 %vm2316_vm2, %v8291_v16  ;;  %8869 = vmatpush1.bf16.msra.mxu0 %v11675_v49  ;;  %v11731_v49 = vld [vmem:[%s12852_s11 + $0x114] ss:$8 sps:$4 sm:$0xff]   ;;  %v11734_v16 = vld [vmem:[%s12852_s11 + $0x104] ss:$8 sps:$4 sm:$0xff]  }
0x27fd   : > { %8870 = vmatprep.subr.bf16.mxu0 %v11680_v19  ;;  %8914 = vmatpush1.bf16.msra.mxu1 %v11711_v47  ;;  %v11729_v19 = vld [vmem:[%s12852_s11 + $0x110] ss:$8 sps:$4 sm:$0xff]   ;;  %v11149_v47 = vpop.permute.xlu1 %11148 }
0x27fe   : > { %8915 = vmatprep.subr.bf16.mxu1 %v11716_v12  ;;  %v11151_v12 = vunpack.i.h.bf16 %v11149_v47 }
0x2800   : > { %8871 = vmatpush1.bf16.msra.mxu0 %v11678_v14  ;;  %v11732_v14 = vld [vmem:[%s12852_s11 + $0x100] ss:$8 sps:$4 sm:$0xff]  }
0x2801   : > { %8872 = vmatprep.subr.bf16.mxu0 %v11683_v48  ;;  %8916 = vmatpush1.bf16.msra.mxu1 %v11714_v40  ;;  %v11737_v48 = vld [vmem:[%s12852_s11 + $0x1f4] ss:$8 sps:$4 sm:$0xff]   ;;  %v11150_v40 = vunpack.i.l.bf16 %v11149_v47 }
0x2802   : > { %8917 = vmatprep.subr.bf16.mxu1 %v11719_v55 }
0x2803   : > { %v8460_v41 = vsel %vm2213_vm1, %v14549_v51, %v11150_v40 }
0x2804   : > { %8873 = vmatpush1.bf16.msra.mxu0 %v11681_v42  ;;  %v11735_v42 = vld [vmem:[%s12852_s11 + $0x1f0] ss:$8 sps:$4 sm:$0xff]  }
0x2805   : > { %8874 = vmatprep.subr.bf16.mxu0 %v11686_v20  ;;  %8918 = vmatpush1.bf16.msra.mxu1 %v11717_v3  ;;  %v11740_v20 = vld [vmem:[%s12852_s11 + $0x1e4] ss:$8 sps:$4 sm:$0xff]   ;;  %v11164_v3 = vpop.permute.xlu1 %11163 }
0x2806   : > { %8919 = vmatprep.subr.bf16.mxu1 %v11722_v27  ;;  %v11166_v35 = vunpack.i.h.bf16 %v11164_v3 }
0x2808   : > { %8875 = vmatpush1.bf16.msra.mxu0 %v11684_v44  ;;  %v11738_v44 = vld [vmem:[%s12852_s11 + $0x1e0] ss:$8 sps:$4 sm:$0xff]  }
0x2809   : > { %8876 = vmatprep.subr.bf16.mxu0 %v11689_v21  ;;  %8920 = vmatpush1.bf16.msra.mxu1 %v11720_v29  ;;  %v11743_v21 = vld [vmem:[%s12852_s11 + $0x1d4] ss:$8 sps:$4 sm:$0xff]  }
0x280a   : > { %8921 = vmatprep.subr.bf16.mxu1 %v11725_v28  ;;  %v8461_v28 = vsel %vm2213_vm1, %v14551_v50, %v11151_v12 }
0x280c   : > { %8877 = vmatpush2.bf16.msra.mxu0 %v11687_v58  ;;  %v11741_v58 = vld [vmem:[%s12852_s11 + $0x1d0] ss:$8 sps:$4 sm:$0xff]  }
0x280d   : > { %8878 = vmatprep.subr.bf16.mxu0 %v11692_v46  ;;  %8922 = vmatpush1.bf16.msra.mxu1 %v11723_v4  ;;  %v11746_v46 = vld [vmem:[%s12852_s11 + $0x1c4] ss:$8 sps:$4 sm:$0xff]   ;;  %v11165_v4 = vunpack.i.l.bf16 %v11164_v3 }
0x280e   : > { %8923 = vmatprep.subr.bf16.mxu1 %v11728_v56 }
0x280f   : > { %v8454_v50 = vsel %vm2213_vm1, %v14341_v1, %v11165_v4  ;;  %v11761_v4 = vld [vmem:[%s12854_s25 + $0x74] ss:$8 sps:$4 sm:$0xff]  }
0x2810   : > { %8879 = vmatpush2.bf16.msra.mxu0 %v11690_v17  ;;  %v11744_v17 = vld [vmem:[%s12852_s11 + $0x1c0] ss:$8 sps:$4 sm:$0xff]  }
0x2811   : > { %8880 = vmatprep.subr.bf16.mxu0 %v11695_v5  ;;  %8924 = vmatpush1.bf16.msra.mxu1 %v11726_v15  ;;  %v11749_v5 = vld [vmem:[%s12852_s11 + $0x1b4] ss:$8 sps:$4 sm:$0xff]  }
0x2812   : > { %8925 = vmatprep.subr.bf16.mxu1 %v11731_v49 }
0x2814   : > { %8881 = vmatpush2.bf16.msra.mxu0 %v11693_v52  ;;  %v11747_v52 = vld [vmem:[%s12852_s11 + $0x1b0] ss:$8 sps:$4 sm:$0xff]  }
0x2815   : > { %8882 = vmatprep.subr.bf16.mxu0 %v11698_v32  ;;  %8926 = vmatpush1.bf16.msra.mxu1 %v11729_v19  ;;  %v11752_v32 = vld [vmem:[%s12852_s11 + $0x1a4] ss:$8 sps:$4 sm:$0xff]  }
0x2816   : > { %8927 = vmatprep.subr.bf16.mxu1 %v11734_v16  ;;  %v8470_v16 = vpack.c.bf16 %v8461_v28, %v8460_v41 }
0x2818   : > { %8883 = vmatpush2.bf16.msra.mxu0 %v11696_v63  ;;  %v11750_v63 = vld [vmem:[%s12852_s11 + $0x1a0] ss:$8 sps:$4 sm:$0xff]  }
0x2819   : > { %8884 = vmatprep.subr.bf16.mxu0 %v11701_v38  ;;  %8928 = vmatpush1.bf16.msra.mxu1 %v11732_v14  ;;  %v11755_v38 = vld [vmem:[%s12852_s11 + $0x194] ss:$8 sps:$4 sm:$0xff]  }
0x281a   : > { %8929 = vmatprep.subr.bf16.mxu1 %v11737_v48 }
0x281c   : > { %8885 = vmatpush2.bf16.msra.mxu0 %v11699_v33  ;;  %v11753_v33 = vld [vmem:[%s12852_s11 + $0x190] ss:$8 sps:$4 sm:$0xff]  }
0x281d   : > { %8886 = vmatprep.subr.bf16.mxu0 %v11704_v24  ;;  %8930 = vmatpush2.bf16.msra.mxu1 %v11735_v42  ;;  %v11756_v24 = vld [vmem:[%s12852_s11 + $0x180] ss:$8 sps:$4 sm:$0xff]   ;;  %v8455_v42 = vsel %vm2213_vm1, %v14343_v54, %v11166_v35 }
0x281e   : > { %8931 = vmatprep.subr.bf16.mxu1 %v11740_v20  ;;  %v8472_v20 = vpack.c.bf16 %v8455_v42, %v8454_v50  ;;  %v11776_v42 = vld [vmem:[%s12854_s25 + $0x24] ss:$8 sps:$4 sm:$0xff]   ;;  %v11774_v50 = vld [vmem:[%s12854_s25 + $0x20] ss:$8 sps:$4 sm:$0xff]  }
0x2820   : > { %8887 = vmatpush2.bf16.msra.mxu0 %v11702_v39  ;;  %v11758_v39 = vld [vmem:[%s12852_s11 + $0x184] ss:$8 sps:$4 sm:$0xff]   ;;  %s15109_s11 = sld [smem:[#allocation22_spill]] }
0x2821   : > { %8888 = vmatprep.subr.bf16.mxu0 %v11707_v9  ;;  %8932 = vmatpush2.bf16.msra.mxu1 %v11738_v44  ;;  %v11174_v44 = vpop.permute.xlu1 %11173 }
0x2822   : > { %8933 = vmatprep.subr.bf16.mxu1 %v11743_v21  ;;  %v11176_v21 = vunpack.i.h.bf16 %v11174_v44 }
0x2824   : > { %8889 = vmatpush2.bf16.msra.mxu0 %v11705_v57  ;;  %v8463_v1 = vsel %vm2213_vm1, %v14569_v6, %v11176_v21  ;;  %v11783_v21 = vld [vmem:[%s12854_s25 + $0xf0] ss:$8 sps:$4 sm:$0xff]  }
0x2825   : > { %8890 = vmatprep.subr.bf16.mxu0 %v11710_v22  ;;  %8934 = vmatpush2.bf16.msra.mxu1 %v11741_v58  ;;  %v11175_v58 = vunpack.i.l.bf16 %v11174_v44  ;;  %v11785_v44 = vld [vmem:[%s12854_s25 + $0xf4] ss:$8 sps:$4 sm:$0xff]  }
0x2826   : > { %8935 = vmatprep.subr.bf16.mxu1 %v11746_v46  ;;  %p10482_p1 = scmp.ne.s32.totalorder %s15109_s11, 5 }
0x2828   : > { %8891 = vmatpush2.bf16.msra.mxu0 %v11708_v60 }
0x2829   : > { %8936 = vmatpush2.bf16.msra.mxu1 %v11744_v17  ;;  %9226 = vmatprep.subr.bf16.mxu0 %v11761_v4  ;;  %v11813_v4 = vld [vmem:[%s12860_s15 + $0x50] ss:$8 sps:$4 sm:$0xff]  }
0x282a   : > { %8937 = vmatprep.subr.bf16.mxu1 %v11749_v5  ;;  %v8462_v5 = vsel %vm2213_vm1, %v14567_v37, %v11175_v58  ;;  %v11788_v58 = vld [vmem:[%s12854_s25 + $0xe4] ss:$8 sps:$4 sm:$0xff]  }
0x282b   : > { %8893 = vmatmul.mubr.bf16.vlgmr.msra.gmra.mxu0 %v8468_v36 }
0x282d   : > { %8938 = vmatpush2.bf16.msra.mxu1 %v11747_v52 }
0x282e   : > { %8939 = vmatprep.subr.bf16.mxu1 %v11752_v32  ;;  %v8474_v32 = vpack.c.bf16 %v8463_v1, %v8462_v5 }
0x2831   : > { %8940 = vmatpush2.bf16.msra.mxu1 %v11750_v63 }
0x2832   : > { %8941 = vmatprep.subr.bf16.mxu1 %v11755_v38 }
0x2835   : > { %8942 = vmatpush2.bf16.msra.mxu1 %v11753_v33 }
0x2836   : > { %8943 = vmatprep.subr.bf16.mxu1 %v11758_v39 }
0x2839   : > { %8944 = vmatpush2.bf16.msra.mxu1 %v11756_v24 }
0x28ab   : > { %v8333_v9 = vpop.f32.mrf.mxu0 }
0x28ad   : > { %v10997_v18 = vpop.f32.mrf.mxu0 }
0x28af   : > { %v8336_v57 = vpop.f32.mrf.mxu0 }
0x28b0   : > { %v11152_v22 = vpack.i.bf16 %v8336_v57, %v8333_v9 }
0x28b1   : > { %v10998_v30 = vpop.f32.mrf.mxu0 }
0x28b2   : > { %11153 = vrot.lane.b32.xlu0 %v11152_v22, %s12448_s30 }
0x28b6   : > { %11158 = vrot.lane.b32.xlu0 %v15108_v0, %s12448_s30 }
0x28bc   : > { %v8381_v60 = vpop.f32.mrf.mxu1 }
0x28be   : > { %v11003_v10 = vpop.f32.mrf.mxu1 }
0x28c0   : > { %v8384_v61 = vpop.f32.mrf.mxu1 }
0x28c1   : > { %v11167_v36 = vpack.i.bf16 %v8384_v61, %v8381_v60 }
0x28c2   : > { %v11004_v53 = vpop.f32.mrf.mxu1 }
0x28c3   : > { %11168 = vrot.lane.b32.xlu0 %v11167_v36, %s12448_s30 }
0x28eb   : > { %v8894_v63 = vpop.f32.mrf.mxu0 }
0x28ec   : > { %v8895_v39 = vadd.f32 %v8894_v63, %v13993_v62 }
0x28ed   : > { %v8896_v38 = vpop.f32.mrf.mxu0 }
0x28ee   : > { %v8897_v6 = vadd.f32 %v8896_v38, %v13987_v25 }
0x28ef   : > { %v8898_v33 = vpop.f32.mrf.mxu0 }
0x28f1   : > { %v8900_v9 = vpop.f32.mrf.mxu0 }
0x28f2   : > { %v8901_v22 = vadd.f32 %v8900_v9, %v13990_v11 }
0x2924   : > { %v11154_v55 = vpop.permute.xlu0 %11153 }
0x2925   : > { %v11156_v27 = vunpack.i.h.bf16 %v11154_v55  ;;  %v11155_v29 = vunpack.i.l.bf16 %v11154_v55 }
0x2927   : > { %v8464_v56 = vsel %vm2213_vm1, %v14699_v31, %v11155_v29  ;;  %v8465_v15 = vsel %vm2213_vm1, %v14701_v8, %v11156_v27 }
0x2928   : > { %v11159_v49 = vpop.permute.xlu0 %11158  ;;  %v8471_v19 = vpack.c.bf16 %v8465_v15, %v8464_v56  ;;  %v11762_v56 = vld [vmem:[%s12854_s25 + $0x60] ss:$8 sps:$4 sm:$0xff]   ;;  %v11767_v15 = vld [vmem:[%s12854_s25 + $0x54] ss:$8 sps:$4 sm:$0xff]  }
0x2929   : > { %v11161_v14 = vunpack.i.h.bf16 %v11159_v49  ;;  %v11160_v48 = vunpack.i.l.bf16 %v11159_v49  ;;  %v11765_v49 = vld [vmem:[%s12854_s25 + $0x50] ss:$8 sps:$4 sm:$0xff]  }
0x292a   : > { %8945 = vmatprep.mubr.bf16.mxu1 %v8471_v19  ;;  %v11770_v19 = vld [vmem:[%s12854_s25 + $0x44] ss:$8 sps:$4 sm:$0xff]  }
0x292b   : > { %8946 = vmatmul.mubr.bf16.vlgmr.msra.gmra.mxu1 %v8470_v16  ;;  %v8458_v51 = vsel %vm2213_vm1, %v14451_v34, %v11160_v48  ;;  %v8459_v31 = vsel %vm2213_vm1, %v14453_v7, %v11161_v14  ;;  %v11768_v16 = vld [vmem:[%s12854_s25 + $0x40] ss:$8 sps:$4 sm:$0xff]   ;;  %v11773_v14 = vld [vmem:[%s12854_s25 + $0x34] ss:$8 sps:$4 sm:$0xff]   ;;  %v11771_v48 = vld [vmem:[%s12854_s25 + $0x30] ss:$8 sps:$4 sm:$0xff]  }
0x292c   : > { %v8473_v8 = vpack.c.bf16 %v8459_v31, %v8458_v51  ;;  %v11779_v51 = vld [vmem:[%s12854_s25 + $0x14] ss:$8 sps:$4 sm:$0xff]   ;;  %v11777_v31 = vld [vmem:[%s12854_s25 + $0x10] ss:$8 sps:$4 sm:$0xff]  }
0x292e   : > { %8902 = vmatprep.mubr.bf16.mxu0 %v8473_v8  ;;  %v11782_v8 = vld [vmem:[%s12854_s25 + $0x4] ss:$8 sps:$4 sm:$0xff]  }
0x292f   : > { %8903 = vmatmul.mubr.bf16.gmra.mxu0 %v8472_v20  ;;  %v11780_v20 = vld [vmem:[%s12854_s25] ss:$8 sps:$4 sm:$0xff]  }
0x2935   : > { %v11169_v46 = vpop.permute.xlu0 %11168 }
0x2936   : > { %v11171_v54 = vunpack.i.h.bf16 %v11169_v46  ;;  %v11170_v17 = vunpack.i.l.bf16 %v11169_v46  ;;  %v11786_v46 = vld [vmem:[%s12854_s25 + $0xe0] ss:$8 sps:$4 sm:$0xff]  }
0x2938   : > { %v8466_v34 = vsel %vm2213_vm1, %v14707_v59, %v11170_v17  ;;  %v8467_v7 = vsel %vm2213_vm1, %v14709_v45, %v11171_v54  ;;  %v8899_v45 = vadd.f32 %v8898_v33, %v13996_v26 }
0x2939   : > { %v8475_v52 = vpack.c.bf16 %v8467_v7, %v8466_v34 }
0x293b   : > { %8955 = vmatprep.mubr.bf16.mxu1 %v8475_v52 }
0x293c   : > { %8956 = vmatmul.mubr.bf16.gmra.mxu1 %v8474_v32 }
0x29eb   : > { %v8947_v24 = vpop.f32.mrf.mxu1 }
0x29ec   : > { %v14853_v18 = vadd.f32 %v8947_v24, %v8895_v39 }
0x29ed   : > { %v8949_v37 = vpop.f32.mrf.mxu1 }
0x29ee   : > { %v14855_v59 = vadd.f32 %v8949_v37, %v8897_v6 }
0x29ef   : > { %v8951_v57 = vpop.f32.mrf.mxu1  ;;  %v8904_v60 = vpop.f32.mrf.mxu0 }
0x29f0   : > { %v8966_v30 = vadd.f32 %v14855_v59, %v14853_v18  ;;  %v14861_v10 = vadd.f32 %v8951_v57, %v8899_v45  ;;  %v8905_v26 = vadd.f32 %v8904_v60, %v14062_v2  ;;  %v11791_v45 = vld [vmem:[%s12854_s25 + $0xd4] ss:$8 sps:$4 sm:$0xff]   ;;  %v11789_v60 = vld [vmem:[%s12854_s25 + $0xd0] ss:$8 sps:$4 sm:$0xff]  }
0x29f1   : > { %v8953_v0 = vpop.f32.mrf.mxu1  ;;  %v8906_v61 = vpop.f32.mrf.mxu0 }
0x29f2   : > { %v14863_v62 = vadd.f32 %v8953_v0, %v8901_v22  ;;  %8967 = vadd.xlane.f32.xlu0 %v8966_v30  ;;  %v8907_v11 = vadd.f32 %v8906_v61, %v14054_v23  ;;  %v11794_v61 = vld [vmem:[%s12854_s25 + $0xc4] ss:$8 sps:$4 sm:$0xff]  }
0x29f3   : > { %v8908_v36 = vpop.f32.mrf.mxu0 }
0x29f4   : > { %v8969_v25 = vadd.f32 %v14863_v62, %v14861_v10  ;;  %v8909_v27 = vadd.f32 %v8908_v36, %v14065_v43  ;;  %v11759_v43 = vld [vmem:[%s12854_s25 + $0x70] ss:$8 sps:$4 sm:$0xff]  }
0x29f5   : > { %v8910_v47 = vpop.f32.mrf.mxu0  ;;  %9227 = vmatpush1.bf16.msra.mxu0 %v11759_v43  ;;  %v11815_v43 = vld [vmem:[%s12860_s15 + $0x54] ss:$8 sps:$4 sm:$0xff]  }
0x29f6   : > { %8970 = vadd.xlane.f32.xlu1 %v8969_v25  ;;  %v8911_v29 = vadd.f32 %v8910_v47, %v14059_v13  ;;  %v11764_v13 = vld [vmem:[%s12854_s25 + $0x64] ss:$8 sps:$4 sm:$0xff]   ;;  %v11797_v47 = vld [vmem:[%s12854_s25 + $0xb4] ss:$8 sps:$4 sm:$0xff]  }
0x29f7   : > { %9228 = vmatprep.subr.bf16.mxu0 %v11764_v13  ;;  %v11818_v13 = vld [vmem:[%s12860_s15 + $0x44] ss:$8 sps:$4 sm:$0xff]  }
0x29f9   : > { %9229 = vmatpush1.bf16.msra.mxu0 %v11762_v56  ;;  %v11816_v56 = vld [vmem:[%s12860_s15 + $0x40] ss:$8 sps:$4 sm:$0xff]  }
0x29fa   : > { %9230 = vmatprep.subr.bf16.mxu0 %v11767_v15  ;;  %v11821_v15 = vld [vmem:[%s12860_s15 + $0x34] ss:$8 sps:$4 sm:$0xff]  }
0x29fc   : > { %v8957_v53 = vpop.f32.mrf.mxu1 }
0x29fd   : > { %v14869_v40 = vadd.f32 %v8957_v53, %v8905_v26  ;;  %9231 = vmatpush1.bf16.msra.mxu0 %v11765_v49  ;;  %v11792_v26 = vld [vmem:[%s12854_s25 + $0xc0] ss:$8 sps:$4 sm:$0xff]   ;;  %v11819_v49 = vld [vmem:[%s12860_s15 + $0x30] ss:$8 sps:$4 sm:$0xff]  }
0x29fe   : > { %v8959_v12 = vpop.f32.mrf.mxu1  ;;  %9232 = vmatprep.subr.bf16.mxu0 %v11770_v19  ;;  %v11824_v19 = vld [vmem:[%s12860_s15 + $0x24] ss:$8 sps:$4 sm:$0xff]  }
0x29ff   : > { %v14871_v3 = vadd.f32 %v8959_v12, %v8907_v11  ;;  %v11795_v12 = vld [vmem:[%s12854_s25 + $0xb0] ss:$8 sps:$4 sm:$0xff]  }
0x2a00   : > { %v8961_v55 = vpop.f32.mrf.mxu1 }
0x2a01   : > { %v8972_v2 = vadd.f32 %v14871_v3, %v14869_v40  ;;  %v14877_v28 = vadd.f32 %v8961_v55, %v8909_v27  ;;  %9233 = vmatpush1.bf16.msra.mxu0 %v11768_v16  ;;  %v11803_v55 = vld [vmem:[%s12854_s25 + $0x94] ss:$8 sps:$4 sm:$0xff]   ;;  %v11801_v27 = vld [vmem:[%s12854_s25 + $0x90] ss:$8 sps:$4 sm:$0xff]   ;;  %v11822_v16 = vld [vmem:[%s12860_s15 + $0x20] ss:$8 sps:$4 sm:$0xff]  }
0x2a02   : > { %v8963_v23 = vpop.f32.mrf.mxu1  ;;  %9234 = vmatprep.subr.bf16.mxu0 %v11773_v14  ;;  %v11827_v14 = vld [vmem:[%s12860_s15 + $0x14] ss:$8 sps:$4 sm:$0xff]  }
0x2a03   : > { %v14879_v41 = vadd.f32 %v8963_v23, %v8911_v29  ;;  %8973 = vadd.xlane.f32.xlu0 %v8972_v2  ;;  %v11806_v29 = vld [vmem:[%s12854_s25 + $0x84] ss:$8 sps:$4 sm:$0xff]   ;;  %v11804_v2 = vld [vmem:[%s12854_s25 + $0x80] ss:$8 sps:$4 sm:$0xff]   ;;  %v11807_v23 = vld [vmem:[%s12860_s15 + $0x70] ss:$8 sps:$4 sm:$0xff]  }
0x2a05   : > { %v8975_v35 = vadd.f32 %v14879_v41, %v14877_v28  ;;  %9235 = vmatpush1.bf16.msra.mxu0 %v11771_v48  ;;  %v11825_v48 = vld [vmem:[%s12860_s15 + $0x10] ss:$8 sps:$4 sm:$0xff]  }
0x2a06   : > { %9236 = vmatprep.subr.bf16.mxu0 %v11776_v42  ;;  %v11830_v42 = vld [vmem:[%s12860_s15 + $0x4] ss:$8 sps:$4 sm:$0xff]  }
0x2a07   : > { %8976 = vadd.xlane.f32.xlu0 %v8975_v35  ;;  %v11810_v35 = vld [vmem:[%s12860_s15 + $0x60] ss:$8 sps:$4 sm:$0xff]  }
0x2a09   : > { %9237 = vmatpush1.bf16.msra.mxu0 %v11774_v50  ;;  %v11828_v50 = vld [vmem:[%s12860_s15] ss:$8 sps:$4 sm:$0xff]  }
0x2a0a   : > { %9238 = vmatprep.subr.bf16.mxu0 %v11779_v51  ;;  %v11833_v51 = vld [vmem:[%s12860_s15 + $0xf4] ss:$8 sps:$4 sm:$0xff]  }
0x2a0d   : > { %9239 = vmatpush1.bf16.msra.mxu0 %v11777_v31  ;;  %v11831_v31 = vld [vmem:[%s12860_s15 + $0xf0] ss:$8 sps:$4 sm:$0xff]  }
0x2a0e   : > { %9240 = vmatprep.subr.bf16.mxu0 %v11782_v8  ;;  %v11836_v8 = vld [vmem:[%s12860_s15 + $0xe4] ss:$8 sps:$4 sm:$0xff]  }
0x2a11   : > { %9241 = vmatpush1.bf16.msra.mxu0 %v11780_v20  ;;  %v11834_v20 = vld [vmem:[%s12860_s15 + $0xe0] ss:$8 sps:$4 sm:$0xff]  }
0x2a12   : > { %9242 = vmatprep.subr.bf16.mxu0 %v11785_v44  ;;  %v11839_v44 = vld [vmem:[%s12860_s15 + $0xd4] ss:$8 sps:$4 sm:$0xff]  }
0x2a15   : > { %9243 = vmatpush2.bf16.msra.mxu0 %v11783_v21  ;;  %v11837_v21 = vld [vmem:[%s12860_s15 + $0xd0] ss:$8 sps:$4 sm:$0xff]  }
0x2a16   : > { %9244 = vmatprep.subr.bf16.mxu0 %v11788_v58  ;;  %v11842_v58 = vld [vmem:[%s12860_s15 + $0xc4] ss:$8 sps:$4 sm:$0xff]  }
0x2a19   : > { %9245 = vmatpush2.bf16.msra.mxu0 %v11786_v46  ;;  %v11840_v46 = vld [vmem:[%s12860_s15 + $0xc0] ss:$8 sps:$4 sm:$0xff]  }
0x2a1a   : > { %9246 = vmatprep.subr.bf16.mxu0 %v11791_v45 }
0x2a1d   : > { %9247 = vmatpush2.bf16.msra.mxu0 %v11789_v60 }
0x2a1e   : > { %9248 = vmatprep.subr.bf16.mxu0 %v11794_v61 }
0x2a21   : > { %9249 = vmatpush2.bf16.msra.mxu0 %v11792_v26 }
0x2a22   : > { %9250 = vmatprep.subr.bf16.mxu0 %v11797_v47 }
0x2a25   : > { %9251 = vmatpush2.bf16.msra.mxu0 %v11795_v12 }
0x2a7b   : > { %v8968_v54 = vpop.xlane.xlu0 %8967 }
0x2a7c   : > { %v8978_v17 = vmul.f32 0.00390625, %v8968_v54  ;;  %v11845_v54 = vld [vmem:[%s12860_s15 + $0xb4] ss:$8 sps:$4 sm:$0xff]  }
0x2a7e   : > { %v14904_v1 = vsub.f32 %v14853_v18, %v8978_v17  ;;  %v14907_v5 = vsub.f32 %v14855_v59, %v8978_v17  ;;  %v11843_v17 = vld [vmem:[%s12860_s15 + $0xb0] ss:$8 sps:$4 sm:$0xff]  }
0x2a7f   : > { %v8971_v34 = vpop.xlane.xlu1 %8970 }
0x2a80   : > { %v8990_v7 = vmul.f32 %v14904_v1, %v14904_v1  ;;  %v8991_v52 = vmul.f32 %v14907_v5, %v14907_v5  ;;  %v8979_v32 = vmul.f32 0.00390625, %v8971_v34 }
0x2a82   : > { %v14914_v63 = vsub.f32 %v14861_v10, %v8979_v32  ;;  %v14917_v38 = vsub.f32 %v14863_v62, %v8979_v32  ;;  %v8998_v33 = vadd.f32 %v8991_v52, %v8990_v7 }
0x2a84   : > { %v8992_v24 = vmul.f32 %v14914_v63, %v14914_v63  ;;  %v8993_v39 = vmul.f32 %v14917_v38, %v14917_v38  ;;  %8999 = vadd.xlane.f32.xlu0 %v8998_v33 }
0x2a86   : > { %v9001_v6 = vadd.f32 %v8993_v39, %v8992_v24 }
0x2a88   : > { %9002 = vadd.xlane.f32.xlu1 %v9001_v6 }
0x2a8c   : > { %v8974_v9 = vpop.xlane.xlu0 %8973 }
0x2a8d   : > { %v8980_v37 = vmul.f32 0.00390625, %v8974_v9 }
0x2a8f   : > { %v14924_v18 = vsub.f32 %v14869_v40, %v8980_v37  ;;  %v14927_v59 = vsub.f32 %v14871_v3, %v8980_v37  ;;  %v11800_v40 = vld [vmem:[%s12854_s25 + $0xa4] ss:$8 sps:$4 sm:$0xff]   ;;  %v11798_v3 = vld [vmem:[%s12854_s25 + $0xa0] ss:$8 sps:$4 sm:$0xff]  }
0x2a90   : > { %v8977_v57 = vpop.xlane.xlu0 %8976  ;;  %9252 = vmatprep.subr.bf16.mxu0 %v11800_v40  ;;  %v11848_v40 = vld [vmem:[%s12860_s15 + $0xa4] ss:$8 sps:$4 sm:$0xff]  }
0x2a91   : > { %v8994_v22 = vmul.f32 %v14924_v18, %v14924_v18  ;;  %v8995_v30 = vmul.f32 %v14927_v59, %v14927_v59  ;;  %v8981_v0 = vmul.f32 0.00390625, %v8977_v57  ;;  %9253 = vmatpush2.bf16.msra.mxu0 %v11798_v3  ;;  %v11846_v3 = vld [vmem:[%s12860_s15 + $0xa0] ss:$8 sps:$4 sm:$0xff]  }
0x2a92   : > { %9254 = vmatprep.subr.bf16.mxu0 %v11803_v55  ;;  %v11851_v55 = vld [vmem:[%s12860_s15 + $0x94] ss:$8 sps:$4 sm:$0xff]  }
0x2a93   : > { %v14936_v10 = vsub.f32 %v14877_v28, %v8981_v0  ;;  %v14939_v62 = vsub.f32 %v14879_v41, %v8981_v0  ;;  %v9004_v25 = vadd.f32 %v8995_v30, %v8994_v22  ;;  %v11809_v28 = vld [vmem:[%s12860_s15 + $0x74] ss:$8 sps:$4 sm:$0xff]   ;;  %v11812_v41 = vld [vmem:[%s12860_s15 + $0x64] ss:$8 sps:$4 sm:$0xff]  }
0x2a94   : > { %9483 = vmatprep.subr.bf16.mxu1 %v11809_v28 }
0x2a95   : > { %v8996_v36 = vmul.f32 %v14936_v10, %v14936_v10  ;;  %v8997_v53 = vmul.f32 %v14939_v62, %v14939_v62  ;;  %9005 = vadd.xlane.f32.xlu0 %v9004_v25  ;;  %9255 = vmatpush2.bf16.msra.mxu0 %v11801_v27  ;;  %v11852_v27 = vld [vmem:[%s12860_s15 + $0x80] ss:$8 sps:$4 sm:$0xff]  }
0x2a96   : > { %9256 = vmatprep.subr.bf16.mxu0 %v11806_v29  ;;  %9484 = vmatpush1.bf16.msra.mxu1 %v11807_v23 }
0x2a97   : > { %v9007_v11 = vadd.f32 %v8997_v53, %v8996_v36  ;;  %9485 = vmatprep.subr.bf16.mxu1 %v11812_v41 }
0x2a99   : > { %9008 = vadd.xlane.f32.xlu1 %v9007_v11  ;;  %9257 = vmatpush2.bf16.msra.mxu0 %v11804_v2 }
0x2a9a   : > { %9486 = vmatpush1.bf16.msra.mxu1 %v11810_v35 }
0x2a9b   : > { %9487 = vmatprep.subr.bf16.mxu1 %v11815_v43 }
0x2a9e   : > { %9488 = vmatpush1.bf16.msra.mxu1 %v11813_v4 }
0x2a9f   : > { %9489 = vmatprep.subr.bf16.mxu1 %v11818_v13 }
0x2aa2   : > { %9490 = vmatpush1.bf16.msra.mxu1 %v11816_v56 }
0x2aa3   : > { %9491 = vmatprep.subr.bf16.mxu1 %v11821_v15 }
0x2aa6   : > { %9492 = vmatpush1.bf16.msra.mxu1 %v11819_v49 }
0x2aa7   : > { %9493 = vmatprep.subr.bf16.mxu1 %v11824_v19 }
0x2aaa   : > { %9494 = vmatpush1.bf16.msra.mxu1 %v11822_v16 }
0x2aab   : > { %9495 = vmatprep.subr.bf16.mxu1 %v11827_v14 }
0x2aae   : > { %9496 = vmatpush1.bf16.msra.mxu1 %v11825_v48 }
0x2aaf   : > { %9497 = vmatprep.subr.bf16.mxu1 %v11830_v42 }
0x2ab2   : > { %9498 = vmatpush1.bf16.msra.mxu1 %v11828_v50 }
0x2ab3   : > { %9499 = vmatprep.subr.bf16.mxu1 %v11833_v51 }
0x2ab6   : > { %9500 = vmatpush2.bf16.msra.mxu1 %v11831_v31 }
0x2ab7   : > { %9501 = vmatprep.subr.bf16.mxu1 %v11836_v8 }
0x2aba   : > { %9502 = vmatpush2.bf16.msra.mxu1 %v11834_v20 }
0x2abb   : > { %9503 = vmatprep.subr.bf16.mxu1 %v11839_v44 }
0x2abe   : > { %9504 = vmatpush2.bf16.msra.mxu1 %v11837_v21 }
0x2abf   : > { %9505 = vmatprep.subr.bf16.mxu1 %v11842_v58 }
0x2ac2   : > { %9506 = vmatpush2.bf16.msra.mxu1 %v11840_v46 }
0x2ac3   : > { %9507 = vmatprep.subr.bf16.mxu1 %v11845_v54 }
0x2ac6   : > { %9508 = vmatpush2.bf16.msra.mxu1 %v11843_v17 }
0x2ac7   : > { %9509 = vmatprep.subr.bf16.mxu1 %v11848_v40 }
0x2aca   : > { %9510 = vmatpush2.bf16.msra.mxu1 %v11846_v3 }
0x2acb   : > { %9511 = vmatprep.subr.bf16.mxu1 %v11851_v55 }
0x2b0d   : > { %v9000_v34 = vpop.xlane.xlu0 %8999 }
0x2b0e   : > { %v9010_v7 = vmul.f32 0.00390625, %v9000_v34 }
0x2b10   : > { %v9014_v52 = vadd.f32 1e-05, %v9010_v7 }
0x2b11   : > { %v9003_v32 = vpop.xlane.xlu1 %9002 }
0x2b12   : > { %v9011_v33 = vmul.f32 0.00390625, %v9003_v32  ;;  %12119 = vrsqrt.f32 %v9014_v52 }
0x2b14   : > { %v9015_v24 = vadd.f32 1e-05, %v9011_v33 }
0x2b16   : > { %12121 = vrsqrt.f32 %v9015_v24 }
0x2b1e   : > { %v9006_v39 = vpop.xlane.xlu0 %9005 }
0x2b1f   : > { %v9012_v6 = vmul.f32 0.00390625, %v9006_v39  ;;  %v12120_v9 = vpop.eup %12119 }
0x2b20   : > { %v9022_v30 = vmul.f32 %v12120_v9, %v14904_v1  ;;  %v9023_v60 = vmul.f32 %v12120_v9, %v14907_v5 }
0x2b21   : > { %v9016_v37 = vadd.f32 1e-05, %v9012_v6 }
0x2b22   : > { %v9009_v57 = vpop.xlane.xlu1 %9008 }
0x2b23   : > { %v12122_v45 = vpop.eup %12121  ;;  %v9013_v22 = vmul.f32 0.00390625, %v9009_v57  ;;  %12123 = vrsqrt.f32 %v9016_v37 }
0x2b24   : > { %v14983_v0 = vmul.f32 %v12122_v45, %v14914_v63  ;;  %v9025_v25 = vmul.f32 %v12122_v45, %v14917_v38 }
0x2b25   : > { %v9017_v61 = vadd.f32 1e-05, %v9013_v22 }
0x2b26   : > { %v9031_v36 = vpack.c.bf16 %v9025_v25, %v9023_v60  ;;  %v9030_v53 = vpack.c.bf16 %v14983_v0, %v9022_v30 }
0x2b27   : > { %12125 = vrsqrt.f32 %v9017_v61 }
0x2b28   : > { %9258 = vmatprep.mubr.bf16.mxu0 %v9031_v36 }
0x2b29   : > { %9259 = vmatmul.mubr.bf16.vlgmr.msra.gmra.mxu0 %v9030_v53 }
0x2b30   : > { %v12124_v1 = vpop.eup %12123 }
0x2b31   : > { %v9027_v63 = vmul.f32 %v12124_v1, %v14927_v59  ;;  %v9026_v38 = vmul.f32 %v12124_v1, %v14924_v18  ;;  %v11849_v59 = vld [vmem:[%s12860_s15 + $0x90] ss:$8 sps:$4 sm:$0xff]  }
0x2b32   : > { %9512 = vmatpush2.bf16.msra.mxu1 %v11849_v59 }
0x2b34   : > { %v12126_v26 = vpop.eup %12125 }
0x2b35   : > { %v14990_v5 = vmul.f32 %v12126_v26, %v14939_v62  ;;  %v9028_v11 = vmul.f32 %v12126_v26, %v14936_v10  ;;  %v11854_v62 = vld [vmem:[%s12860_s15 + $0x84] ss:$8 sps:$4 sm:$0xff]  }
0x2b36   : > { %9513 = vmatprep.subr.bf16.mxu1 %v11854_v62 }
0x2b37   : > { %v9033_v47 = vpack.c.bf16 %v14990_v5, %v9027_v63  ;;  %v9032_v12 = vpack.c.bf16 %v9028_v11, %v9026_v38  ;;  %9514 = vmatpush2.bf16.msra.mxu1 %v11852_v27 }
0x2b39   : > { %9268 = vmatprep.mubr.bf16.mxu0 %v9033_v47 }
0x2b3a   : > { %9269 = vmatmul.mubr.bf16.gmra.mxu0 %v9032_v12 }
0x2be9   : > { %v9260_v18 = vpop.f32.mrf.mxu0 }
0x2bea   : > { %v9279_v35 = vmax.f32 %v9260_v18, 0.0 }
0x2beb   : > { %v9262_v29 = vpop.f32.mrf.mxu0 }
0x2bec   : > { %v9280_v28 = vmax.f32 %v9262_v29, 0.0 }
0x2bed   : > { %v9264_v10 = vpop.f32.mrf.mxu0 }
0x2bee   : > { %v9281_v2 = vmax.f32 %v9264_v10, 0.0 }
0x2bef   : > { %v9266_v23 = vpop.f32.mrf.mxu0 }
0x2bf0   : > { %v9282_v41 = vmax.f32 %v9266_v23, 0.0  ;;  %v9287_v4 = vpack.c.bf16 %v9281_v2, %v9279_v35 }
0x2bf2   : > { %v9288_v43 = vpack.c.bf16 %v9282_v41, %v9280_v28 }
0x2bf4   : > { %9515 = vmatprep.mubr.bf16.mxu1 %v9288_v43 }
0x2bf5   : > { %9516 = vmatmul.mubr.bf16.vlgmr.msra.gmra.mxu1 %v9287_v4 }
0x2bfa   : > { %v9270_v13 = vpop.f32.mrf.mxu0 }
0x2bfb   : > { %v9283_v48 = vmax.f32 %v9270_v13, 0.0 }
0x2bfc   : > { %v9272_v56 = vpop.f32.mrf.mxu0 }
0x2bfd   : > { %v9284_v16 = vmax.f32 %v9272_v56, 0.0 }
0x2bfe   : > { %v9274_v15 = vpop.f32.mrf.mxu0 }
0x2bff   : > { %v9285_v49 = vmax.f32 %v9274_v15, 0.0 }
0x2c00   : > { %v9276_v19 = vpop.f32.mrf.mxu0 }
0x2c01   : > { %v9286_v14 = vmax.f32 %v9276_v19, 0.0  ;;  %v9289_v50 = vpack.c.bf16 %v9285_v49, %v9283_v48 }
0x2c03   : > { %v9290_v42 = vpack.c.bf16 %v9286_v14, %v9284_v16 }
0x2c05   : > { %9525 = vmatprep.mubr.bf16.mxu1 %v9290_v42 }
0x2c06   : > { %9526 = vmatmul.mubr.bf16.gmra.mxu1 %v9289_v50 }
0x2cb5   : > { %v9517_v51 = vpop.f32.mrf.mxu1 }
0x2cb6   : > { %v9518_v8 = vadd.f32 %v9517_v51, %v9022_v30 }
0x2cb7   : > { %v9519_v31 = vpop.f32.mrf.mxu1 }
0x2cb8   : > { %v9520_v20 = vadd.f32 %v9519_v31, %v9023_v60 }
0x2cb9   : > { %v9521_v44 = vpop.f32.mrf.mxu1 }
0x2cba   : > { %v9536_v21 = vadd.f32 %v9520_v20, %v9518_v8  ;;  %v9522_v46 = vadd.f32 %v9521_v44, %v14983_v0 }
0x2cbb   : > { %v9523_v58 = vpop.f32.mrf.mxu1 }
0x2cbc   : > { %v9524_v54 = vadd.f32 %v9523_v58, %v9025_v25  ;;  %9537 = vadd.xlane.f32.xlu0 %v9536_v21 }
0x2cbe   : > { %v9539_v17 = vadd.f32 %v9524_v54, %v9522_v46 }
0x2cc0   : > { %9540 = vadd.xlane.f32.xlu1 %v9539_v17 }
0x2cc6   : > { %v9527_v34 = vpop.f32.mrf.mxu1 }
0x2cc7   : > { %v9528_v52 = vadd.f32 %v9527_v34, %v9026_v38 }
0x2cc8   : > { %v9529_v7 = vpop.f32.mrf.mxu1 }
0x2cc9   : > { %v9530_v32 = vadd.f32 %v9529_v7, %v9027_v63 }
0x2cca   : > { %v9531_v33 = vpop.f32.mrf.mxu1 }
0x2ccb   : > { %v9542_v24 = vadd.f32 %v9530_v32, %v9528_v52  ;;  %v9532_v6 = vadd.f32 %v9531_v33, %v9028_v11 }
0x2ccc   : > { %v9533_v39 = vpop.f32.mrf.mxu1 }
0x2ccd   : > { %v9534_v9 = vadd.f32 %v9533_v39, %v14990_v5  ;;  %9543 = vadd.xlane.f32.xlu0 %v9542_v24 }
0x2ccf   : > { %v9545_v37 = vadd.f32 %v9534_v9, %v9532_v6 }
0x2cd1   : > { %9546 = vadd.xlane.f32.xlu1 %v9545_v37 }
0x2d45   : > { %v9538_v57 = vpop.xlane.xlu0 %9537 }
0x2d46   : > { %v9548_v45 = vmul.f32 0.00390625, %v9538_v57 }
0x2d48   : > { %v9552_v22 = vsub.f32 %v9518_v8, %v9548_v45  ;;  %v9553_v30 = vsub.f32 %v9520_v20, %v9548_v45 }
0x2d49   : > { %v9541_v0 = vpop.xlane.xlu1 %9540 }
0x2d4a   : > { %v9560_v60 = vmul.f32 %v9552_v22, %v9552_v22  ;;  %v9561_v25 = vmul.f32 %v9553_v30, %v9553_v30  ;;  %v9549_v61 = vmul.f32 0.00390625, %v9541_v0 }
0x2d4c   : > { %v9554_v36 = vsub.f32 %v9522_v46, %v9549_v61  ;;  %v9555_v53 = vsub.f32 %v9524_v54, %v9549_v61  ;;  %v9568_v1 = vadd.f32 %v9561_v25, %v9560_v60 }
0x2d4e   : > { %v9562_v26 = vmul.f32 %v9554_v36, %v9554_v36  ;;  %v9563_v63 = vmul.f32 %v9555_v53, %v9555_v53  ;;  %9569 = vadd.xlane.f32.xlu0 %v9568_v1 }
0x2d50   : > { %v9571_v38 = vadd.f32 %v9563_v63, %v9562_v26 }
0x2d52   : > { %9572 = vadd.xlane.f32.xlu1 %v9571_v38 }
0x2d56   : > { %v9544_v5 = vpop.xlane.xlu0 %9543 }
0x2d57   : > { %v9550_v11 = vmul.f32 0.00390625, %v9544_v5 }
0x2d59   : > { %v9556_v47 = vsub.f32 %v9528_v52, %v9550_v11  ;;  %v9557_v12 = vsub.f32 %v9530_v32, %v9550_v11 }
0x2d5a   : > { %v9547_v40 = vpop.xlane.xlu1 %9546 }
0x2d5b   : > { %v9564_v3 = vmul.f32 %v9556_v47, %v9556_v47  ;;  %v9565_v55 = vmul.f32 %v9557_v12, %v9557_v12  ;;  %v9551_v59 = vmul.f32 0.00390625, %v9547_v40 }
0x2d5d   : > { %v9558_v62 = vsub.f32 %v9532_v6, %v9551_v59  ;;  %v9559_v27 = vsub.f32 %v9534_v9, %v9551_v59  ;;  %v9574_v18 = vadd.f32 %v9565_v55, %v9564_v3 }
0x2d5f   : > { %v9566_v29 = vmul.f32 %v9558_v62, %v9558_v62  ;;  %v9567_v10 = vmul.f32 %v9559_v27, %v9559_v27  ;;  %9575 = vadd.xlane.f32.xlu0 %v9574_v18 }
0x2d61   : > { %v9577_v2 = vadd.f32 %v9567_v10, %v9566_v29 }
0x2d63   : > { %9578 = vadd.xlane.f32.xlu1 %v9577_v2 }
0x2dd7   : > { %v9570_v23 = vpop.xlane.xlu0 %9569 }
0x2dd8   : > { %v9580_v28 = vmul.f32 0.00390625, %v9570_v23 }
0x2dda   : > { %v9584_v41 = vadd.f32 1e-05, %v9580_v28 }
0x2ddb   : > { %v9573_v35 = vpop.xlane.xlu1 %9572 }
0x2ddc   : > { %12127 = vrsqrt.f32 %v9584_v41  ;;  %v9581_v43 = vmul.f32 0.00390625, %v9573_v35 }
0x2dde   : > { %v9585_v4 = vadd.f32 1e-05, %v9581_v43 }
0x2de0   : > { %12129 = vrsqrt.f32 %v9585_v4 }
0x2de8   : > { %v9576_v13 = vpop.xlane.xlu0 %9575 }
0x2de9   : > { %v12128_v56 = vpop.eup %12127  ;;  %v9582_v15 = vmul.f32 0.00390625, %v9576_v13 }
0x2dea   : > { %v9592_v49 = vmul.f32 %v12128_v56, %v9552_v22  ;;  %v9593_v19 = vmul.f32 %v12128_v56, %v9553_v30 }
0x2deb   : > { %v9586_v16 = vadd.f32 1e-05, %v9582_v15 }
0x2dec   : > { %9600 = vst [vmem:[#allocation2 + $0x30] sm:$0xff] %v9592_v49  ;;  %9601 = vst [vmem:[#allocation2] sm:$0xff] %v9593_v19  ;;  %v9579_v14 = vpop.xlane.xlu1 %9578 }
0x2ded   : > { %v12130_v48 = vpop.eup %12129  ;;  %12131 = vrsqrt.f32 %v9586_v16  ;;  %v9583_v42 = vmul.f32 0.00390625, %v9579_v14 }
0x2dee   : > { %v9594_v50 = vmul.f32 %v12130_v48, %v9554_v36  ;;  %v9595_v51 = vmul.f32 %v12130_v48, %v9555_v53 }
0x2def   : > { %v9587_v31 = vadd.f32 1e-05, %v9583_v42 }
0x2df0   : > { %9602 = vst [vmem:[#allocation2 + $0x18] sm:$0xff] %v9594_v50  ;;  %9603 = vst [vmem:[#allocation2 + $0x10] sm:$0xff] %v9595_v51 }
0x2df1   : > { %12133 = vrsqrt.f32 %v9587_v31 }
0x2dfa   : > { %v12132_v8 = vpop.eup %12131 }
0x2dfb   : > { %v9596_v20 = vmul.f32 %v12132_v8, %v9556_v47  ;;  %v9597_v44 = vmul.f32 %v12132_v8, %v9557_v12 }
0x2dfd   : > { %9604 = vst [vmem:[#allocation2 + $0x8] sm:$0xff] %v9596_v20  ;;  %9605 = vst [vmem:[#allocation2 + $0x20] sm:$0xff] %v9597_v44  ;;  %9611 = sbr.rel (%p10482_p1) target bundleno = 11782 (0x2e06), region = 108 }
0x2dfe   : > { %v12134_v21 = vpop.eup %12133 }
0x2dff   : > { %v9598_v58 = vmul.f32 %v12134_v21, %v9558_v62  ;;  %v9599_v46 = vmul.f32 %v12134_v21, %v9559_v27 }
0x2e01   : > { %9606 = vst [vmem:[#allocation2 + $0x28] sm:$0xff] %v9598_v58  ;;  %9607 = vst [vmem:[#allocation2 + $0x38] sm:$0xff] %v9599_v46 }
0x2e02   : > { %9612 = vst [vmem:[#allocation15] sm:$0xff] %v9592_v49  ;;  %9613 = vst [vmem:[#allocation15 + $0x8] sm:$0xff] %v9593_v19 }
0x2e03   : > { %9614 = vst [vmem:[#allocation15 + $0x10] sm:$0xff] %v9594_v50  ;;  %9615 = vst [vmem:[#allocation15 + $0x18] sm:$0xff] %v9595_v51 }
0x2e04   : > { %9616 = vst [vmem:[#allocation15 + $0x20] sm:$0xff] %v9596_v20  ;;  %9617 = vst [vmem:[#allocation15 + $0x28] sm:$0xff] %v9597_v44 }
0x2e05   : > { %9618 = vst [vmem:[#allocation15 + $0x30] sm:$0xff] %v9598_v58  ;;  %9619 = vst [vmem:[#allocation15 + $0x38] sm:$0xff] %v9599_v46 }
0x2e06 PF: > { %s15110_s25 = sld [smem:[#allocation22_spill]]  ;;  %s12449_s15 = smov [#allocation15]  }
0x2e07   : > { %s9626_s30 = sshll.u32 %s12449_s15, 4  ;;  %s9627_s30 = int_to_ptr.vmem [resolvable:$true] %s9626_s30 }
0x2e08   : > { %s12355_s3 = scalar_lea.vmem %s9627_s30, 1024  ;;  %p12362_p5 = scmp.lt.s32.totalorder %s9627_s30, %s9627_s30 }
0x2e09   : > { %p12356_p2 = scmp.ne.s32.totalorder %s9627_s30, %s12355_s3  ;;  %p12363_p6 = scmp.lt.s32.totalorder %s12355_s3, %s12355_s3 }
0x2e0b   : > { %p12364_p9 = por %p12363_p6, %p12362_p5 }
0x2e0c   : > { %p11049_p13 = scmp.eq.s32.totalorder %s15110_s25, 5 }
0x2e0e   : > { %p12357_p3 = pnand %p12356_p2, %p11049_p13 }
0x2e10   : > { %p12358_p4 = pneg %p12357_p3 }
0x2e12   : > { %p12365_p11 = pnand %p12364_p9, %p12358_p4 }
0x2e14   : > { %12368 = shalt.err (!%p12365_p11)
}
0x2e15   : > { %s12450_s17 = smov 256   ;;  %s12451_s21 = smov 16  }
0x2e16   : > { %s15111_s2 = sld [smem:[#allocation34_spill]] }
0x2e1c   : > { %11023 = dma.vmem_to_hbm [thread:$0]  (%p11049_p13), %s9627_s30, 1024, %s15111_s2, [#allocation5], %s12450_s17, %s12450_s17, %s12451_s21  }
0x2e1d   : > { %12412 = dma.done.wait (%p11049_p13), [#allocation5], 1024  }
0x2e1e   : > { %12414 = vsyncadd (%p11049_p13), [#allocation5], 4294966272 }
0x2e1f PF: > { %s15112_s28 = sld [smem:[#allocation23_spill]]  ;;  %s15115_s25 = smov %s12421_s26 }
0x2e20   : > { %s15113_s16 = sld [smem:[#allocation21_spill]] }
0x2e21   : > { %s15114_s27 = sld [smem:[#allocation24_spill]] }
0x2e25   : > { %p33_p12 = scmp.ge.s32.totalorder %s15112_s28, 8  }
0x2e26   : > { %s15116_s26 = smov %s15113_s16 }
0x2e27   :  { %35 = sbr.rel (!%p33_p12) target bundleno = 21 (0x15), region = 189 }
0x2e2c   :  { %9642 = vsyncpa [#allocation4], 1 }
0x2e2d   :  { %9644 = vsyncpa [#allocation4 + $0x1], 1 }
0x2e2e   :  { %9645 = vsyncpa [#allocation7], 1 }
0x2e2f   :  { %9647 = vsyncpa [#allocation7 + $0x1], 1 }
0x2e30   :  { %9648 = vsyncpa [#allocation10], 1 }
0x2e31   :  { %9650 = vsyncpa [#allocation10 + $0x1], 1 }
0x2e32   :  { %9651 = vsyncpa [#allocation13], 1 }
0x2e33   :  { %9653 = vsyncpa [#allocation13 + $0x1], 1 }
0x2e34   :  { %9654 = vsyncpa [#allocation5], 1 }
0x2e35   :  { %9656 = vsyncpa [#allocation5 + $0x1], 1 }

</bundles_post_ra>
